<compile_context>
chip_gen: v5e
topology: v5e:2x2
jax: 0.10.0
libtpu: 0.0.40
codegen_flags: <defaults>
</compile_context>

<pallas_src>
import functools
import math

import jax
import jax.numpy as jnp
from jax.experimental import pallas as pl
from jax.experimental.pallas import tpu as pltpu


def _round_up(x: int, m: int) -> int:
    return (x + m - 1) // m * m


def _pick_tile(dim: int, candidates) -> int | None:
    for c in candidates:
        if dim % c == 0:
            return c
    return None


# ---------------------------------------------------------------------------
# Tiled GEMM kernel (MXU, bf16 operands, f32 VMEM accumulator) with fused
# ReLU / output scaling.
# ---------------------------------------------------------------------------
def _matmul_kernel(a_ref, b_ref, o_ref, acc_ref, *, apply_relu, scale):
    @pl.when(pl.program_id(2) == 0)
    def _():
        acc_ref[...] = jnp.zeros_like(acc_ref)

    acc_ref[...] += jnp.dot(a_ref[...], b_ref[...],
                            preferred_element_type=jnp.float32)

    @pl.when(pl.program_id(2) == pl.num_programs(2) - 1)
    def _():
        r = acc_ref[...]
        if scale != 1.0:            # resolved at trace time; skipped when vth==1
            r = r * scale
        if apply_relu:
            r = jnp.maximum(r, 0.0)
        o_ref[...] = r.astype(o_ref.dtype)


def pallas_matmul(a, b, *, apply_relu=False, scale=1.0, out_dtype=jnp.float32):
    """out = (optional relu)((a @ b) * scale).  No per-call padding: M/N/K must
    already be tileable (weights are pre-padded once at setup time)."""
    M, K = a.shape
    Kb, N = b.shape
    assert K == Kb
    tm = M if M <= 256 else _pick_tile(M, (256, 128, 64, 32, 16, 8))
    tn = N if N <= 256 else _pick_tile(N, (256, 128))
    tk = K if K <= 512 else _pick_tile(K, (512, 256, 128))
    assert tm and tn and tk, (M, N, K)

    grid = (M // tm, N // tn, K // tk)
    kernel = functools.partial(_matmul_kernel, apply_relu=apply_relu,
                               scale=float(scale))
    return pl.pallas_call(
        kernel,
        out_shape=jax.ShapeDtypeStruct((M, N), out_dtype),
        grid_spec=pltpu.PrefetchScalarGridSpec(
            num_scalar_prefetch=0,
            grid=grid,
            in_specs=[
                pl.BlockSpec((tm, tk), lambda i, j, k: (i, k)),
                pl.BlockSpec((tk, tn), lambda i, j, k: (k, j)),
            ],
            out_specs=pl.BlockSpec((tm, tn), lambda i, j, k: (i, j)),
            scratch_shapes=[pltpu.VMEM((tm, tn), jnp.float32)],
        ),
        compiler_params=pltpu.CompilerParams(
            dimension_semantics=("parallel", "parallel", "arbitrary")),
    )(a, b)


# ---------------------------------------------------------------------------
# Fused Conv2d(3x3, pad=1, stride=1, no bias) + ReLU + MaxPool2d(2,2) kernel.
#
# The padded NHWC image is flattened to (P2, C) rows ordered (h_pad, w_pad).
# For tap (kh, kw) the rows needed for ALL outputs form a contiguous slab at
# element offset kh*(W+2)+kw, so the conv is 9 shifted matmuls with K = C.
# Two "garbage" output columns per row (w = W, W+1) are computed and dropped
# after pooling; one extra bottom halo row keeps their reads in-bounds.
# ---------------------------------------------------------------------------
def _conv3x3_relu_pool_kernel(x_ref, w_ref, o_ref, *, H, W, Wp2):
    # x_ref: (1, P2, C) bf16   w_ref: (9, C, to) bf16   o_ref: (1, HWo, to)
    to = o_ref.shape[-1]
    rows = H * Wp2
    x = x_ref[0]                                   # (P2, C)
    acc = None
    for kh in range(3):                            # 9 shifted MXU matmuls
        for kw in range(3):
            off = kh * Wp2 + kw
            xt = jax.lax.slice_in_dim(x, off, off + rows, axis=0)
            d = jnp.dot(xt, w_ref[kh * 3 + kw],
                        preferred_element_type=jnp.float32)
            acc = d if acc is None else acc + d
    y = jnp.maximum(acc, 0.0)                      # Neuron activation (ReLU)
    # Fused MaxPool2d(2,2): pool along W (adjacent flat rows), then along H.
    W2 = Wp2 // 2
    y = jnp.max(y.reshape(rows // 2, 2, to), axis=1)     # (H*W2, to)
    y = jnp.max(y.reshape(H // 2, 2, W2, to), axis=1)    # (H//2, W2, to)
    y = y[:, : W // 2, :]                                 # drop garbage column
    o_ref[0] = y.reshape((H // 2) * (W // 2), to).astype(o_ref.dtype)


def conv3x3_relu_pool(x, w9):
    """x: (N, H, W, C) NHWC bf16; w9: (9, C, O) bf16 (taps ordered (kh, kw)).
    Returns conv3x3(pad=1) + ReLU + MaxPool2d(2,2) as (N, H//2, W//2, O) bf16."""
    N, H, W, C = x.shape
    assert H % 2 == 0 and W % 2 == 0, "fused 2x2 pool requires even H, W"
    O = w9.shape[-1]
    Wp2 = W + 2
    # Zero halo: 1 row top, 2 rows bottom, 1 col left/right.  The extra bottom
    # row keeps the largest tap shift of the garbage columns in-bounds.
    xp = jnp.pad(x, ((0, 0), (1, 2), (1, 1), (0, 0)))
    P2 = (H + 3) * Wp2
    xp = xp.reshape(N, P2, C)
    to = O if O <= 256 else _pick_tile(O, (256, 128))
    assert to and O % to == 0
    HWo = (H // 2) * (W // 2)
    kernel = functools.partial(_conv3x3_relu_pool_kernel, H=H, W=W, Wp2=Wp2)
    # TODO(synk): for large feature maps add an H-tile grid axis so the f32
    # accumulator stays small; unnecessary at these spatial sizes.
    out = pl.pallas_call(
        kernel,
        out_shape=jax.ShapeDtypeStruct((N, HWo, O), jnp.bfloat16),
        grid_spec=pltpu.PrefetchScalarGridSpec(
            num_scalar_prefetch=0,
            grid=(N, O // to),
            in_specs=[
                pl.BlockSpec((1, P2, C), lambda n, j: (n, 0, 0)),
                pl.BlockSpec((9, C, to), lambda n, j: (0, 0, j)),
            ],
            out_specs=pl.BlockSpec((1, HWo, to), lambda n, j: (n, 0, j)),
        ),
        compiler_params=pltpu.CompilerParams(
            dimension_semantics=("parallel", "parallel")),
    )(xp, w9)
    return out.reshape(N, H // 2, W // 2, O)


# ---------------------------------------------------------------------------
# One-time parameter re-layout (PyTorch layout -> kernel layout).
# ---------------------------------------------------------------------------
def prepare_params(torch_params, hw, down_num=1):
    H, W = hw
    ds = 2 ** (1 + down_num)
    Hd, Wd = H // ds, W // ds

    def conv_taps(w):                               # (O, C, 3, 3) -> (9, C, O)
        o, c = w.shape[0], w.shape[1]
        return jnp.transpose(w, (2, 3, 1, 0)).reshape(9, c, o).astype(jnp.bfloat16)

    c_last = torch_params["conv2_w"].shape[0]        # 256
    fc1 = torch_params["fc1_w"]                      # (1024, c_last*Hd*Wd), NCHW order
    fc1 = fc1.reshape(-1, c_last, Hd, Wd).transpose(0, 2, 3, 1)   # -> NHWC column order
    fc1_wT = fc1.reshape(fc1.shape[0], -1).T.astype(jnp.bfloat16)  # (F, 1024)

    fc2 = torch_params["fc2_w"]                      # (num_classes, 1024)
    nc = fc2.shape[0]
    nc_pad = _round_up(nc, 128)                      # lane-dense final store
    fc2_wT = jnp.pad(fc2.T, ((0, 0), (0, nc_pad - nc))).astype(jnp.bfloat16)

    return {
        "conv1_w9": conv_taps(torch_params["conv1_w"]),
        "conv2_w9": conv_taps(torch_params["conv2_w"]),
        "fc1_wT": fc1_wT,
        "fc2_wT": fc2_wT,
    }


# ---------------------------------------------------------------------------
# snnSmallVGG.forward (ANN path)
# ---------------------------------------------------------------------------
@functools.partial(jax.jit, static_argnames=("num_classes", "vth"))
def snn_small_vgg_forward(x_nchw, params, *, num_classes, vth=1.0):
    # NCHW (PyTorch convention) -> NHWC once; bf16 operands everywhere.
    x = jnp.transpose(x_nchw, (0, 2, 3, 1)).astype(jnp.bfloat16)
    # features (down_num=1): Neuron(Conv(Cin->64)) -> MaxPool -> Neuron(Conv(64->256)),
    # with each pool (incl. self.pool after features) fused into the conv kernel.
    x = conv3x3_relu_pool(x, params["conv1_w9"])
    x = conv3x3_relu_pool(x, params["conv2_w9"])
    # torch.flatten(x, 1): fc1 columns were permuted to NHWC order at setup.
    x = x.reshape(x.shape[0], -1)
    x = pallas_matmul(x, params["fc1_wT"], apply_relu=True,
                      out_dtype=jnp.bfloat16)                      # fc1 = Neuron(Linear)
    x = pallas_matmul(x, params["fc2_wT"], apply_relu=False,
                      scale=1.0 / vth, out_dtype=jnp.float32)      # fc2, /vth fused
    return x[:, :num_classes]


# ---------------------------------------------------------------------------
# Pure-JAX f32 reference (PyTorch layout) for a correctness check.
# ---------------------------------------------------------------------------
def reference_forward(x, torch_params, vth=1.0):
    dn = ("NCHW", "OIHW", "NCHW")

    def conv_relu(x, w):
        y = jax.lax.conv_general_dilated(x, w, (1, 1), ((1, 1), (1, 1)),
                                         dimension_numbers=dn)
        return jnp.maximum(y, 0.0)

    def pool(x):
        n, c, h, w = x.shape
        return x.reshape(n, c, h // 2, 2, w // 2, 2).max(axis=(3, 5))

    x = pool(conv_relu(x, torch_params["conv1_w"]))
    x = pool(conv_relu(x, torch_params["conv2_w"]))
    x = x.reshape(x.shape[0], -1)
    x = jnp.maximum(x @ torch_params["fc1_w"].T, 0.0)
    x = x @ torch_params["fc2_w"].T
    return x / vth


if __name__ == "__main__":
    # HW=(16,16), down_num=1 -> down_size=4, fc1 in = 256*4*4 = 4096,
    # num_classes=10, vth=2 (exercises the fused 1/vth scale path).
    N, C_IN, H, W = 2, 2, 16, 16
    NUM_CLASSES = 10
    VTH = 2.0

    key = jax.random.PRNGKey(0)
    kx, k1, k2, k3, k4 = jax.random.split(key, 5)
    x = jax.random.normal(kx, (N, C_IN, H, W), jnp.float32)
    torch_params = {
        "conv1_w": jax.random.normal(k1, (64, C_IN, 3, 3), jnp.float32)
                   * (1.0 / math.sqrt(C_IN * 9)),
        "conv2_w": jax.random.normal(k2, (256, 64, 3, 3), jnp.float32)
                   * (1.0 / math.sqrt(64 * 9)),
        "fc1_w": jax.random.normal(k3, (1024, 256 * (H // 4) * (W // 4)),
                                   jnp.float32) * (1.0 / math.sqrt(4096.0)),
        "fc2_w": jax.random.normal(k4, (NUM_CLASSES, 1024), jnp.float32)
                 * (1.0 / math.sqrt(1024.0)),
    }
    params = prepare_params(torch_params, hw=(H, W), down_num=1)

    out = snn_small_vgg_forward(x, params, num_classes=NUM_CLASSES, vth=VTH)
    out = jax.block_until_ready(out)
    assert out.shape == (N, NUM_CLASSES), out.shape

    ref = jax.block_until_ready(reference_forward(x, torch_params, vth=VTH))
    err = float(jnp.max(jnp.abs(out - ref)))
    tol = 3e-2 * max(1.0, float(jnp.max(jnp.abs(ref))))
    assert err < tol, f"mismatch vs. JAX reference: err={err} tol={tol}"

    print("KERNEL_OK")
</pallas_src>

<mosaic_0001>
module attributes {stable_mosaic.version = 11 : i64} {
  func.func @_conv3x3_relu_pool_kernel(%arg0: i32, %arg1: i32, %arg2: memref<1x342x2xbf16, #tpu.memory_space<vmem>>, %arg3: memref<9x2x64xbf16, #tpu.memory_space<vmem>>, %arg4: memref<1x64x64xbf16, #tpu.memory_space<vmem>>) attributes {dimension_semantics = [#tpu.dimension_semantics<parallel>, #tpu.dimension_semantics<parallel>], iteration_bounds = array<i64: 2, 1>, scalar_prefetch = 0 : i64, scratch_operands = 0 : i64, tpu.core_type = #tpu.core_type<tc>, window_params = [{transform_indices = @transform_0, window_bounds = array<i64: 1, 342, 2>}, {transform_indices = @transform_1, window_bounds = array<i64: 9, 2, 64>}, {transform_indices = @transform_2, window_bounds = array<i64: 1, 64, 64>}]} {
    %c0 = arith.constant 0 : index
    %c0_0 = arith.constant 0 : index
    %c0_1 = arith.constant 0 : index
    %0 = vector.load %arg2[%c0, %c0_0, %c0_1] : memref<1x342x2xbf16, #tpu.memory_space<vmem>>, vector<1x342x2xbf16>
    %1 = vector.shape_cast %0 : vector<1x342x2xbf16> to vector<342x2xbf16>
    %2 = vector.extract_strided_slice %1 {offsets = [0, 0], sizes = [288, 2], strides = [1, 1]} : vector<342x2xbf16> to vector<288x2xbf16>
    %c0_2 = arith.constant 0 : index
    %c0_3 = arith.constant 0 : index
    %c0_4 = arith.constant 0 : index
    %3 = vector.load %arg3[%c0_2, %c0_3, %c0_4] : memref<9x2x64xbf16, #tpu.memory_space<vmem>>, vector<1x2x64xbf16>
    %4 = vector.shape_cast %3 : vector<1x2x64xbf16> to vector<2x64xbf16>
    %cst = arith.constant dense<0.000000e+00> : vector<288x64xf32>
    %5 = tpu.matmul %2, %4, %cst {dimension_numbers = #tpu.dot_dimension_numbers<[1], [0], [0], [1], [0, 0, 1, 1], [], []>} : vector<288x2xbf16>, vector<2x64xbf16>, vector<288x64xf32> -> vector<288x64xf32>
    %6 = vector.extract_strided_slice %1 {offsets = [1, 0], sizes = [288, 2], strides = [1, 1]} : vector<342x2xbf16> to vector<288x2xbf16>
    %c1 = arith.constant 1 : index
    %c0_5 = arith.constant 0 : index
    %c0_6 = arith.constant 0 : index
    %7 = vector.load %arg3[%c1, %c0_5, %c0_6] : memref<9x2x64xbf16, #tpu.memory_space<vmem>>, vector<1x2x64xbf16>
    %8 = vector.shape_cast %7 : vector<1x2x64xbf16> to vector<2x64xbf16>
    %cst_7 = arith.constant dense<0.000000e+00> : vector<288x64xf32>
    %9 = tpu.matmul %6, %8, %cst_7 {dimension_numbers = #tpu.dot_dimension_numbers<[1], [0], [0], [1], [0, 0, 1, 1], [], []>} : vector<288x2xbf16>, vector<2x64xbf16>, vector<288x64xf32> -> vector<288x64xf32>
    %10 = arith.addf %5, %9 : vector<288x64xf32>
    %11 = vector.extract_strided_slice %1 {offsets = [2, 0], sizes = [288, 2], strides = [1, 1]} : vector<342x2xbf16> to vector<288x2xbf16>
    %c2 = arith.constant 2 : index
    %c0_8 = arith.constant 0 : index
    %c0_9 = arith.constant 0 : index
    %12 = vector.load %arg3[%c2, %c0_8, %c0_9] : memref<9x2x64xbf16, #tpu.memory_space<vmem>>, vector<1x2x64xbf16>
    %13 = vector.shape_cast %12 : vector<1x2x64xbf16> to vector<2x64xbf16>
    %cst_10 = arith.constant dense<0.000000e+00> : vector<288x64xf32>
    %14 = tpu.matmul %11, %13, %cst_10 {dimension_numbers = #tpu.dot_dimension_numbers<[1], [0], [0], [1], [0, 0, 1, 1], [], []>} : vector<288x2xbf16>, vector<2x64xbf16>, vector<288x64xf32> -> vector<288x64xf32>
    %15 = arith.addf %10, %14 : vector<288x64xf32>
    %16 = vector.extract_strided_slice %1 {offsets = [18, 0], sizes = [288, 2], strides = [1, 1]} : vector<342x2xbf16> to vector<288x2xbf16>
    %c3 = arith.constant 3 : index
    %c0_11 = arith.constant 0 : index
    %c0_12 = arith.constant 0 : index
    %17 = vector.load %arg3[%c3, %c0_11, %c0_12] : memref<9x2x64xbf16, #tpu.memory_space<vmem>>, vector<1x2x64xbf16>
    %18 = vector.shape_cast %17 : vector<1x2x64xbf16> to vector<2x64xbf16>
    %cst_13 = arith.constant dense<0.000000e+00> : vector<288x64xf32>
    %19 = tpu.matmul %16, %18, %cst_13 {dimension_numbers = #tpu.dot_dimension_numbers<[1], [0], [0], [1], [0, 0, 1, 1], [], []>} : vector<288x2xbf16>, vector<2x64xbf16>, vector<288x64xf32> -> vector<288x64xf32>
    %20 = arith.addf %15, %19 : vector<288x64xf32>
    %21 = vector.extract_strided_slice %1 {offsets = [19, 0], sizes = [288, 2], strides = [1, 1]} : vector<342x2xbf16> to vector<288x2xbf16>
    %c4 = arith.constant 4 : index
    %c0_14 = arith.constant 0 : index
    %c0_15 = arith.constant 0 : index
    %22 = vector.load %arg3[%c4, %c0_14, %c0_15] : memref<9x2x64xbf16, #tpu.memory_space<vmem>>, vector<1x2x64xbf16>
    %23 = vector.shape_cast %22 : vector<1x2x64xbf16> to vector<2x64xbf16>
    %cst_16 = arith.constant dense<0.000000e+00> : vector<288x64xf32>
    %24 = tpu.matmul %21, %23, %cst_16 {dimension_numbers = #tpu.dot_dimension_numbers<[1], [0], [0], [1], [0, 0, 1, 1], [], []>} : vector<288x2xbf16>, vector<2x64xbf16>, vector<288x64xf32> -> vector<288x64xf32>
    %25 = arith.addf %20, %24 : vector<288x64xf32>
    %26 = vector.extract_strided_slice %1 {offsets = [20, 0], sizes = [288, 2], strides = [1, 1]} : vector<342x2xbf16> to vector<288x2xbf16>
    %c5 = arith.constant 5 : index
    %c0_17 = arith.constant 0 : index
    %c0_18 = arith.constant 0 : index
    %27 = vector.load %arg3[%c5, %c0_17, %c0_18] : memref<9x2x64xbf16, #tpu.memory_space<vmem>>, vector<1x2x64xbf16>
    %28 = vector.shape_cast %27 : vector<1x2x64xbf16> to vector<2x64xbf16>
    %cst_19 = arith.constant dense<0.000000e+00> : vector<288x64xf32>
    %29 = tpu.matmul %26, %28, %cst_19 {dimension_numbers = #tpu.dot_dimension_numbers<[1], [0], [0], [1], [0, 0, 1, 1], [], []>} : vector<288x2xbf16>, vector<2x64xbf16>, vector<288x64xf32> -> vector<288x64xf32>
    %30 = arith.addf %25, %29 : vector<288x64xf32>
    %31 = vector.extract_strided_slice %1 {offsets = [36, 0], sizes = [288, 2], strides = [1, 1]} : vector<342x2xbf16> to vector<288x2xbf16>
    %c6 = arith.constant 6 : index
    %c0_20 = arith.constant 0 : index
    %c0_21 = arith.constant 0 : index
    %32 = vector.load %arg3[%c6, %c0_20, %c0_21] : memref<9x2x64xbf16, #tpu.memory_space<vmem>>, vector<1x2x64xbf16>
    %33 = vector.shape_cast %32 : vector<1x2x64xbf16> to vector<2x64xbf16>
    %cst_22 = arith.constant dense<0.000000e+00> : vector<288x64xf32>
    %34 = tpu.matmul %31, %33, %cst_22 {dimension_numbers = #tpu.dot_dimension_numbers<[1], [0], [0], [1], [0, 0, 1, 1], [], []>} : vector<288x2xbf16>, vector<2x64xbf16>, vector<288x64xf32> -> vector<288x64xf32>
    %35 = arith.addf %30, %34 : vector<288x64xf32>
    %36 = vector.extract_strided_slice %1 {offsets = [37, 0], sizes = [288, 2], strides = [1, 1]} : vector<342x2xbf16> to vector<288x2xbf16>
    %c7 = arith.constant 7 : index
    %c0_23 = arith.constant 0 : index
    %c0_24 = arith.constant 0 : index
    %37 = vector.load %arg3[%c7, %c0_23, %c0_24] : memref<9x2x64xbf16, #tpu.memory_space<vmem>>, vector<1x2x64xbf16>
    %38 = vector.shape_cast %37 : vector<1x2x64xbf16> to vector<2x64xbf16>
    %cst_25 = arith.constant dense<0.000000e+00> : vector<288x64xf32>
    %39 = tpu.matmul %36, %38, %cst_25 {dimension_numbers = #tpu.dot_dimension_numbers<[1], [0], [0], [1], [0, 0, 1, 1], [], []>} : vector<288x2xbf16>, vector<2x64xbf16>, vector<288x64xf32> -> vector<288x64xf32>
    %40 = arith.addf %35, %39 : vector<288x64xf32>
    %41 = vector.extract_strided_slice %1 {offsets = [38, 0], sizes = [288, 2], strides = [1, 1]} : vector<342x2xbf16> to vector<288x2xbf16>
    %c8 = arith.constant 8 : index
    %c0_26 = arith.constant 0 : index
    %c0_27 = arith.constant 0 : index
    %42 = vector.load %arg3[%c8, %c0_26, %c0_27] : memref<9x2x64xbf16, #tpu.memory_space<vmem>>, vector<1x2x64xbf16>
    %43 = vector.shape_cast %42 : vector<1x2x64xbf16> to vector<2x64xbf16>
    %cst_28 = arith.constant dense<0.000000e+00> : vector<288x64xf32>
    %44 = tpu.matmul %41, %43, %cst_28 {dimension_numbers = #tpu.dot_dimension_numbers<[1], [0], [0], [1], [0, 0, 1, 1], [], []>} : vector<288x2xbf16>, vector<2x64xbf16>, vector<288x64xf32> -> vector<288x64xf32>
    %45 = arith.addf %40, %44 : vector<288x64xf32>
    %cst_29 = arith.constant 0.000000e+00 : f32
    %46 = vector.broadcast %cst_29 : f32 to vector<288x64xf32>
    %47 = arith.maximumf %45, %46 : vector<288x64xf32>
    %48 = vector.shape_cast %47 : vector<288x64xf32> to vector<144x2x64xf32>
    %cst_30 = arith.constant dense<0xFF800000> : vector<144x64xf32>
    %49 = vector.multi_reduction <maximumf>, %48, %cst_30 [1] : vector<144x2x64xf32> to vector<144x64xf32>
    %50 = vector.shape_cast %49 : vector<144x64xf32> to vector<8x2x9x64xf32>
    %cst_31 = arith.constant dense<0xFF800000> : vector<8x9x64xf32>
    %51 = vector.multi_reduction <maximumf>, %50, %cst_31 [1] : vector<8x2x9x64xf32> to vector<8x9x64xf32>
    %52 = vector.extract_strided_slice %51 {offsets = [0, 0, 0], sizes = [8, 8, 64], strides = [1, 1, 1]} : vector<8x9x64xf32> to vector<8x8x64xf32>
    %53 = vector.shape_cast %52 : vector<8x8x64xf32> to vector<64x64xf32>
    %54 = arith.truncf %53 : vector<64x64xf32> to vector<64x64xbf16>
    %c0_32 = arith.constant 0 : index
    %c0_33 = arith.constant 0 : index
    %c0_34 = arith.constant 0 : index
    %55 = vector.load %arg4[%c0_32, %c0_33, %c0_34] : memref<1x64x64xbf16, #tpu.memory_space<vmem>>, vector<1x64x64xbf16>
    %56 = vector.shape_cast %55 : vector<1x64x64xbf16> to vector<64x64xbf16>
    %57 = vector.shape_cast %54 : vector<64x64xbf16> to vector<1x64x64xbf16>
    tpu.vector_store %arg4[%c0_32, %c0_33, %c0_34], %57 {strides = array<i32>} : memref<1x64x64xbf16, #tpu.memory_space<vmem>>, vector<1x64x64xbf16>,
    return
  }
  func.func @transform_0(%arg0: i32, %arg1: i32) -> (i32, i32, i32) {
    %c0_i32 = arith.constant 0 : i32
    %c0_i32_0 = arith.constant 0 : i32
    %c0_i32_1 = arith.constant 0 : i32
    return %arg0, %c0_i32, %c0_i32_0 : i32, i32, i32
  }
  func.func @transform_1(%arg0: i32, %arg1: i32) -> (i32, i32, i32) {
    %c0_i32 = arith.constant 0 : i32
    %c0_i32_0 = arith.constant 0 : i32
    %c0_i32_1 = arith.constant 0 : i32
    return %c0_i32, %c0_i32_0, %arg1 : i32, i32, i32
  }
  func.func @transform_2(%arg0: i32, %arg1: i32) -> (i32, i32, i32) {
    %c0_i32 = arith.constant 0 : i32
    %c0_i32_0 = arith.constant 0 : i32
    return %arg0, %c0_i32, %arg1 : i32, i32, i32
  }
}

module attributes {stable_mosaic.version = 11 : i64} {
  func.func @_conv3x3_relu_pool_kernel(%arg0: i32, %arg1: i32, %arg2: memref<1x110x64xbf16, #tpu.memory_space<vmem>>, %arg3: memref<9x64x256xbf16, #tpu.memory_space<vmem>>, %arg4: memref<1x16x256xbf16, #tpu.memory_space<vmem>>) attributes {dimension_semantics = [#tpu.dimension_semantics<parallel>, #tpu.dimension_semantics<parallel>], iteration_bounds = array<i64: 2, 1>, scalar_prefetch = 0 : i64, scratch_operands = 0 : i64, tpu.core_type = #tpu.core_type<tc>, window_params = [{transform_indices = @transform_0, window_bounds = array<i64: 1, 110, 64>}, {transform_indices = @transform_1, window_bounds = array<i64: 9, 64, 256>}, {transform_indices = @transform_2, window_bounds = array<i64: 1, 16, 256>}]} {
    %c0 = arith.constant 0 : index
    %c0_0 = arith.constant 0 : index
    %c0_1 = arith.constant 0 : index
    %0 = vector.load %arg2[%c0, %c0_0, %c0_1] : memref<1x110x64xbf16, #tpu.memory_space<vmem>>, vector<1x110x64xbf16>
    %1 = vector.shape_cast %0 : vector<1x110x64xbf16> to vector<110x64xbf16>
    %2 = vector.extract_strided_slice %1 {offsets = [0, 0], sizes = [80, 64], strides = [1, 1]} : vector<110x64xbf16> to vector<80x64xbf16>
    %c0_2 = arith.constant 0 : index
    %c0_3 = arith.constant 0 : index
    %c0_4 = arith.constant 0 : index
    %3 = vector.load %arg3[%c0_2, %c0_3, %c0_4] : memref<9x64x256xbf16, #tpu.memory_space<vmem>>, vector<1x64x256xbf16>
    %4 = vector.shape_cast %3 : vector<1x64x256xbf16> to vector<64x256xbf16>
    %cst = arith.constant dense<0.000000e+00> : vector<80x256xf32>
    %5 = tpu.matmul %2, %4, %cst {dimension_numbers = #tpu.dot_dimension_numbers<[1], [0], [0], [1], [0, 0, 1, 1], [], []>} : vector<80x64xbf16>, vector<64x256xbf16>, vector<80x256xf32> -> vector<80x256xf32>
    %6 = vector.extract_strided_slice %1 {offsets = [1, 0], sizes = [80, 64], strides = [1, 1]} : vector<110x64xbf16> to vector<80x64xbf16>
    %c1 = arith.constant 1 : index
    %c0_5 = arith.constant 0 : index
    %c0_6 = arith.constant 0 : index
    %7 = vector.load %arg3[%c1, %c0_5, %c0_6] : memref<9x64x256xbf16, #tpu.memory_space<vmem>>, vector<1x64x256xbf16>
    %8 = vector.shape_cast %7 : vector<1x64x256xbf16> to vector<64x256xbf16>
    %cst_7 = arith.constant dense<0.000000e+00> : vector<80x256xf32>
    %9 = tpu.matmul %6, %8, %cst_7 {dimension_numbers = #tpu.dot_dimension_numbers<[1], [0], [0], [1], [0, 0, 1, 1], [], []>} : vector<80x64xbf16>, vector<64x256xbf16>, vector<80x256xf32> -> vector<80x256xf32>
    %10 = arith.addf %5, %9 : vector<80x256xf32>
    %11 = vector.extract_strided_slice %1 {offsets = [2, 0], sizes = [80, 64], strides = [1, 1]} : vector<110x64xbf16> to vector<80x64xbf16>
    %c2 = arith.constant 2 : index
    %c0_8 = arith.constant 0 : index
    %c0_9 = arith.constant 0 : index
    %12 = vector.load %arg3[%c2, %c0_8, %c0_9] : memref<9x64x256xbf16, #tpu.memory_space<vmem>>, vector<1x64x256xbf16>
    %13 = vector.shape_cast %12 : vector<1x64x256xbf16> to vector<64x256xbf16>
    %cst_10 = arith.constant dense<0.000000e+00> : vector<80x256xf32>
    %14 = tpu.matmul %11, %13, %cst_10 {dimension_numbers = #tpu.dot_dimension_numbers<[1], [0], [0], [1], [0, 0, 1, 1], [], []>} : vector<80x64xbf16>, vector<64x256xbf16>, vector<80x256xf32> -> vector<80x256xf32>
    %15 = arith.addf %10, %14 : vector<80x256xf32>
    %16 = vector.extract_strided_slice %1 {offsets = [10, 0], sizes = [80, 64], strides = [1, 1]} : vector<110x64xbf16> to vector<80x64xbf16>
    %c3 = arith.constant 3 : index
    %c0_11 = arith.constant 0 : index
    %c0_12 = arith.constant 0 : index
    %17 = vector.load %arg3[%c3, %c0_11, %c0_12] : memref<9x64x256xbf16, #tpu.memory_space<vmem>>, vector<1x64x256xbf16>
    %18 = vector.shape_cast %17 : vector<1x64x256xbf16> to vector<64x256xbf16>
    %cst_13 = arith.constant dense<0.000000e+00> : vector<80x256xf32>
    %19 = tpu.matmul %16, %18, %cst_13 {dimension_numbers = #tpu.dot_dimension_numbers<[1], [0], [0], [1], [0, 0, 1, 1], [], []>} : vector<80x64xbf16>, vector<64x256xbf16>, vector<80x256xf32> -> vector<80x256xf32>
    %20 = arith.addf %15, %19 : vector<80x256xf32>
    %21 = vector.extract_strided_slice %1 {offsets = [11, 0], sizes = [80, 64], strides = [1, 1]} : vector<110x64xbf16> to vector<80x64xbf16>
    %c4 = arith.constant 4 : index
    %c0_14 = arith.constant 0 : index
    %c0_15 = arith.constant 0 : index
    %22 = vector.load %arg3[%c4, %c0_14, %c0_15] : memref<9x64x256xbf16, #tpu.memory_space<vmem>>, vector<1x64x256xbf16>
    %23 = vector.shape_cast %22 : vector<1x64x256xbf16> to vector<64x256xbf16>
    %cst_16 = arith.constant dense<0.000000e+00> : vector<80x256xf32>
    %24 = tpu.matmul %21, %23, %cst_16 {dimension_numbers = #tpu.dot_dimension_numbers<[1], [0], [0], [1], [0, 0, 1, 1], [], []>} : vector<80x64xbf16>, vector<64x256xbf16>, vector<80x256xf32> -> vector<80x256xf32>
    %25 = arith.addf %20, %24 : vector<80x256xf32>
    %26 = vector.extract_strided_slice %1 {offsets = [12, 0], sizes = [80, 64], strides = [1, 1]} : vector<110x64xbf16> to vector<80x64xbf16>
    %c5 = arith.constant 5 : index
    %c0_17 = arith.constant 0 : index
    %c0_18 = arith.constant 0 : index
    %27 = vector.load %arg3[%c5, %c0_17, %c0_18] : memref<9x64x256xbf16, #tpu.memory_space<vmem>>, vector<1x64x256xbf16>
    %28 = vector.shape_cast %27 : vector<1x64x256xbf16> to vector<64x256xbf16>
    %cst_19 = arith.constant dense<0.000000e+00> : vector<80x256xf32>
    %29 = tpu.matmul %26, %28, %cst_19 {dimension_numbers = #tpu.dot_dimension_numbers<[1], [0], [0], [1], [0, 0, 1, 1], [], []>} : vector<80x64xbf16>, vector<64x256xbf16>, vector<80x256xf32> -> vector<80x256xf32>
    %30 = arith.addf %25, %29 : vector<80x256xf32>
    %31 = vector.extract_strided_slice %1 {offsets = [20, 0], sizes = [80, 64], strides = [1, 1]} : vector<110x64xbf16> to vector<80x64xbf16>
    %c6 = arith.constant 6 : index
    %c0_20 = arith.constant 0 : index
    %c0_21 = arith.constant 0 : index
    %32 = vector.load %arg3[%c6, %c0_20, %c0_21] : memref<9x64x256xbf16, #tpu.memory_space<vmem>>, vector<1x64x256xbf16>
    %33 = vector.shape_cast %32 : vector<1x64x256xbf16> to vector<64x256xbf16>
    %cst_22 = arith.constant dense<0.000000e+00> : vector<80x256xf32>
    %34 = tpu.matmul %31, %33, %cst_22 {dimension_numbers = #tpu.dot_dimension_numbers<[1], [0], [0], [1], [0, 0, 1, 1], [], []>} : vector<80x64xbf16>, vector<64x256xbf16>, vector<80x256xf32> -> vector<80x256xf32>
    %35 = arith.addf %30, %34 : vector<80x256xf32>
    %36 = vector.extract_strided_slice %1 {offsets = [21, 0], sizes = [80, 64], strides = [1, 1]} : vector<110x64xbf16> to vector<80x64xbf16>
    %c7 = arith.constant 7 : index
    %c0_23 = arith.constant 0 : index
    %c0_24 = arith.constant 0 : index
    %37 = vector.load %arg3[%c7, %c0_23, %c0_24] : memref<9x64x256xbf16, #tpu.memory_space<vmem>>, vector<1x64x256xbf16>
    %38 = vector.shape_cast %37 : vector<1x64x256xbf16> to vector<64x256xbf16>
    %cst_25 = arith.constant dense<0.000000e+00> : vector<80x256xf32>
    %39 = tpu.matmul %36, %38, %cst_25 {dimension_numbers = #tpu.dot_dimension_numbers<[1], [0], [0], [1], [0, 0, 1, 1], [], []>} : vector<80x64xbf16>, vector<64x256xbf16>, vector<80x256xf32> -> vector<80x256xf32>
    %40 = arith.addf %35, %39 : vector<80x256xf32>
    %41 = vector.extract_strided_slice %1 {offsets = [22, 0], sizes = [80, 64], strides = [1, 1]} : vector<110x64xbf16> to vector<80x64xbf16>
    %c8 = arith.constant 8 : index
    %c0_26 = arith.constant 0 : index
    %c0_27 = arith.constant 0 : index
    %42 = vector.load %arg3[%c8, %c0_26, %c0_27] : memref<9x64x256xbf16, #tpu.memory_space<vmem>>, vector<1x64x256xbf16>
    %43 = vector.shape_cast %42 : vector<1x64x256xbf16> to vector<64x256xbf16>
    %cst_28 = arith.constant dense<0.000000e+00> : vector<80x256xf32>
    %44 = tpu.matmul %41, %43, %cst_28 {dimension_numbers = #tpu.dot_dimension_numbers<[1], [0], [0], [1], [0, 0, 1, 1], [], []>} : vector<80x64xbf16>, vector<64x256xbf16>, vector<80x256xf32> -> vector<80x256xf32>
    %45 = arith.addf %40, %44 : vector<80x256xf32>
    %cst_29 = arith.constant 0.000000e+00 : f32
    %46 = vector.broadcast %cst_29 : f32 to vector<80x256xf32>
    %47 = arith.maximumf %45, %46 : vector<80x256xf32>
    %48 = vector.shape_cast %47 : vector<80x256xf32> to vector<40x2x256xf32>
    %cst_30 = arith.constant dense<0xFF800000> : vector<40x256xf32>
    %49 = vector.multi_reduction <maximumf>, %48, %cst_30 [1] : vector<40x2x256xf32> to vector<40x256xf32>
    %50 = vector.shape_cast %49 : vector<40x256xf32> to vector<4x2x5x256xf32>
    %cst_31 = arith.constant dense<0xFF800000> : vector<4x5x256xf32>
    %51 = vector.multi_reduction <maximumf>, %50, %cst_31 [1] : vector<4x2x5x256xf32> to vector<4x5x256xf32>
    %52 = vector.extract_strided_slice %51 {offsets = [0, 0, 0], sizes = [4, 4, 256], strides = [1, 1, 1]} : vector<4x5x256xf32> to vector<4x4x256xf32>
    %53 = vector.shape_cast %52 : vector<4x4x256xf32> to vector<16x256xf32>
    %54 = arith.truncf %53 : vector<16x256xf32> to vector<16x256xbf16>
    %c0_32 = arith.constant 0 : index
    %c0_33 = arith.constant 0 : index
    %c0_34 = arith.constant 0 : index
    %55 = vector.load %arg4[%c0_32, %c0_33, %c0_34] : memref<1x16x256xbf16, #tpu.memory_space<vmem>>, vector<1x16x256xbf16>
    %56 = vector.shape_cast %55 : vector<1x16x256xbf16> to vector<16x256xbf16>
    %57 = vector.shape_cast %54 : vector<16x256xbf16> to vector<1x16x256xbf16>
    tpu.vector_store %arg4[%c0_32, %c0_33, %c0_34], %57 {strides = array<i32>} : memref<1x16x256xbf16, #tpu.memory_space<vmem>>, vector<1x16x256xbf16>,
    return
  }
  func.func @transform_0(%arg0: i32, %arg1: i32) -> (i32, i32, i32) {
    %c0_i32 = arith.constant 0 : i32
    %c0_i32_0 = arith.constant 0 : i32
    %c0_i32_1 = arith.constant 0 : i32
    return %arg0, %c0_i32, %c0_i32_0 : i32, i32, i32
  }
  func.func @transform_1(%arg0: i32, %arg1: i32) -> (i32, i32, i32) {
    %c0_i32 = arith.constant 0 : i32
    %c0_i32_0 = arith.constant 0 : i32
    %c0_i32_1 = arith.constant 0 : i32
    return %c0_i32, %c0_i32_0, %arg1 : i32, i32, i32
  }
  func.func @transform_2(%arg0: i32, %arg1: i32) -> (i32, i32, i32) {
    %c0_i32 = arith.constant 0 : i32
    %c0_i32_0 = arith.constant 0 : i32
    return %arg0, %c0_i32, %arg1 : i32, i32, i32
  }
}

module attributes {stable_mosaic.version = 11 : i64} {
  func.func @_matmul_kernel(%arg0: i32, %arg1: i32, %arg2: i32, %arg3: memref<2x512xbf16, #tpu.memory_space<vmem>>, %arg4: memref<512x256xbf16, #tpu.memory_space<vmem>>, %arg5: memref<2x256xbf16, #tpu.memory_space<vmem>>, %arg6: memref<2x256xf32, #tpu.memory_space<vmem>>) attributes {dimension_semantics = [#tpu.dimension_semantics<parallel>, #tpu.dimension_semantics<parallel>, #tpu.dimension_semantics<arbitrary>], iteration_bounds = array<i64: 1, 4, 8>, scalar_prefetch = 0 : i64, scratch_operands = 1 : i64, tpu.core_type = #tpu.core_type<tc>, window_params = [{transform_indices = @transform_0, window_bounds = array<i64: 2, 512>}, {transform_indices = @transform_1, window_bounds = array<i64: 512, 256>}, {transform_indices = @transform_2, window_bounds = array<i64: 2, 256>}]} {
    %c0_i32 = arith.constant 0 : i32
    %0 = arith.cmpi eq, %arg2, %c0_i32 : i32
    %1 = arith.extui %0 : i1 to i32
    %c0_i32_0 = arith.constant 0 : i32
    %2 = arith.cmpi ne, %1, %c0_i32_0 : i32
    scf.if %2 {
      %cst_9 = arith.constant 0.000000e+00 : f32
      %12 = vector.broadcast %cst_9 : f32 to vector<2x256xf32>
      %c0_10 = arith.constant 0 : index
      %c0_11 = arith.constant 0 : index
      %13 = vector.load %arg6[%c0_10, %c0_11] : memref<2x256xf32, #tpu.memory_space<vmem>>, vector<2x256xf32>
      tpu.vector_store %arg6[%c0_10, %c0_11], %12 {strides = array<i32>} : memref<2x256xf32, #tpu.memory_space<vmem>>, vector<2x256xf32>,
    } else {
    }
    %c0 = arith.constant 0 : index
    %c0_1 = arith.constant 0 : index
    %3 = vector.load %arg6[%c0, %c0_1] : memref<2x256xf32, #tpu.memory_space<vmem>>, vector<2x256xf32>
    %c0_2 = arith.constant 0 : index
    %c0_3 = arith.constant 0 : index
    %4 = vector.load %arg3[%c0_2, %c0_3] : memref<2x512xbf16, #tpu.memory_space<vmem>>, vector<2x512xbf16>
    %c0_4 = arith.constant 0 : index
    %c0_5 = arith.constant 0 : index
    %5 = vector.load %arg4[%c0_4, %c0_5] : memref<512x256xbf16, #tpu.memory_space<vmem>>, vector<512x256xbf16>
    %cst = arith.constant dense<0.000000e+00> : vector<2x256xf32>
    %6 = tpu.matmul %4, %5, %cst {dimension_numbers = #tpu.dot_dimension_numbers<[1], [0], [0], [1], [0, 0, 1, 1], [], []>} : vector<2x512xbf16>, vector<512x256xbf16>, vector<2x256xf32> -> vector<2x256xf32>
    %7 = arith.addf %3, %6 : vector<2x256xf32>
    %c0_6 = arith.constant 0 : index
    %c0_7 = arith.constant 0 : index
    %8 = vector.load %arg6[%c0_6, %c0_7] : memref<2x256xf32, #tpu.memory_space<vmem>>, vector<2x256xf32>
    tpu.vector_store %arg6[%c0_6, %c0_7], %7 {strides = array<i32>} : memref<2x256xf32, #tpu.memory_space<vmem>>, vector<2x256xf32>,
    %c7_i32 = arith.constant 7 : i32
    %9 = arith.cmpi eq, %arg2, %c7_i32 : i32
    %10 = arith.extui %9 : i1 to i32
    %c0_i32_8 = arith.constant 0 : i32
    %11 = arith.cmpi ne, %10, %c0_i32_8 : i32
    scf.if %11 {
      %c0_9 = arith.constant 0 : index
      %c0_10 = arith.constant 0 : index
      %12 = vector.load %arg6[%c0_9, %c0_10] : memref<2x256xf32, #tpu.memory_space<vmem>>, vector<2x256xf32>
      %cst_11 = arith.constant 0.000000e+00 : f32
      %13 = vector.broadcast %cst_11 : f32 to vector<2x256xf32>
      %14 = arith.maximumf %12, %13 : vector<2x256xf32>
      %15 = arith.truncf %14 : vector<2x256xf32> to vector<2x256xbf16>
      %c0_12 = arith.constant 0 : index
      %c0_13 = arith.constant 0 : index
      %16 = vector.load %arg5[%c0_12, %c0_13] : memref<2x256xbf16, #tpu.memory_space<vmem>>, vector<2x256xbf16>
      tpu.vector_store %arg5[%c0_12, %c0_13], %15 {strides = array<i32>} : memref<2x256xbf16, #tpu.memory_space<vmem>>, vector<2x256xbf16>,
    } else {
    }
    return
  }
  func.func @transform_0(%arg0: i32, %arg1: i32, %arg2: i32) -> (i32, i32) {
    %c0_i32 = arith.constant 0 : i32
    return %arg0, %arg2 : i32, i32
  }
  func.func @transform_1(%arg0: i32, %arg1: i32, %arg2: i32) -> (i32, i32) {
    %c0_i32 = arith.constant 0 : i32
    return %arg2, %arg1 : i32, i32
  }
  func.func @transform_2(%arg0: i32, %arg1: i32, %arg2: i32) -> (i32, i32) {
    %c0_i32 = arith.constant 0 : i32
    return %arg0, %arg1 : i32, i32
  }
}

module attributes {stable_mosaic.version = 11 : i64} {
  func.func @_matmul_kernel(%arg0: i32, %arg1: i32, %arg2: i32, %arg3: memref<2x512xbf16, #tpu.memory_space<vmem>>, %arg4: memref<512x128xbf16, #tpu.memory_space<vmem>>, %arg5: memref<2x128xf32, #tpu.memory_space<vmem>>, %arg6: memref<2x128xf32, #tpu.memory_space<vmem>>) attributes {dimension_semantics = [#tpu.dimension_semantics<parallel>, #tpu.dimension_semantics<parallel>, #tpu.dimension_semantics<arbitrary>], iteration_bounds = array<i64: 1, 1, 2>, scalar_prefetch = 0 : i64, scratch_operands = 1 : i64, tpu.core_type = #tpu.core_type<tc>, window_params = [{transform_indices = @transform_0, window_bounds = array<i64: 2, 512>}, {transform_indices = @transform_1, window_bounds = array<i64: 512, 128>}, {transform_indices = @transform_2, window_bounds = array<i64: 2, 128>}]} {
    %c0_i32 = arith.constant 0 : i32
    %0 = arith.cmpi eq, %arg2, %c0_i32 : i32
    %1 = arith.extui %0 : i1 to i32
    %c0_i32_0 = arith.constant 0 : i32
    %2 = arith.cmpi ne, %1, %c0_i32_0 : i32
    scf.if %2 {
      %cst_9 = arith.constant 0.000000e+00 : f32
      %12 = vector.broadcast %cst_9 : f32 to vector<2x128xf32>
      %c0_10 = arith.constant 0 : index
      %c0_11 = arith.constant 0 : index
      %13 = vector.load %arg6[%c0_10, %c0_11] : memref<2x128xf32, #tpu.memory_space<vmem>>, vector<2x128xf32>
      tpu.vector_store %arg6[%c0_10, %c0_11], %12 {strides = array<i32>} : memref<2x128xf32, #tpu.memory_space<vmem>>, vector<2x128xf32>,
    } else {
    }
    %c0 = arith.constant 0 : index
    %c0_1 = arith.constant 0 : index
    %3 = vector.load %arg6[%c0, %c0_1] : memref<2x128xf32, #tpu.memory_space<vmem>>, vector<2x128xf32>
    %c0_2 = arith.constant 0 : index
    %c0_3 = arith.constant 0 : index
    %4 = vector.load %arg3[%c0_2, %c0_3] : memref<2x512xbf16, #tpu.memory_space<vmem>>, vector<2x512xbf16>
    %c0_4 = arith.constant 0 : index
    %c0_5 = arith.constant 0 : index
    %5 = vector.load %arg4[%c0_4, %c0_5] : memref<512x128xbf16, #tpu.memory_space<vmem>>, vector<512x128xbf16>
    %cst = arith.constant dense<0.000000e+00> : vector<2x128xf32>
    %6 = tpu.matmul %4, %5, %cst {dimension_numbers = #tpu.dot_dimension_numbers<[1], [0], [0], [1], [0, 0, 1, 1], [], []>} : vector<2x512xbf16>, vector<512x128xbf16>, vector<2x128xf32> -> vector<2x128xf32>
    %7 = arith.addf %3, %6 : vector<2x128xf32>
    %c0_6 = arith.constant 0 : index
    %c0_7 = arith.constant 0 : index
    %8 = vector.load %arg6[%c0_6, %c0_7] : memref<2x128xf32, #tpu.memory_space<vmem>>, vector<2x128xf32>
    tpu.vector_store %arg6[%c0_6, %c0_7], %7 {strides = array<i32>} : memref<2x128xf32, #tpu.memory_space<vmem>>, vector<2x128xf32>,
    %c1_i32 = arith.constant 1 : i32
    %9 = arith.cmpi eq, %arg2, %c1_i32 : i32
    %10 = arith.extui %9 : i1 to i32
    %c0_i32_8 = arith.constant 0 : i32
    %11 = arith.cmpi ne, %10, %c0_i32_8 : i32
    scf.if %11 {
      %c0_9 = arith.constant 0 : index
      %c0_10 = arith.constant 0 : index
      %12 = vector.load %arg6[%c0_9, %c0_10] : memref<2x128xf32, #tpu.memory_space<vmem>>, vector<2x128xf32>
      %cst_11 = arith.constant 5.000000e-01 : f32
      %13 = vector.broadcast %cst_11 : f32 to vector<2x128xf32>
      %14 = arith.mulf %12, %13 : vector<2x128xf32>
      %c0_12 = arith.constant 0 : index
      %c0_13 = arith.constant 0 : index
      %15 = vector.load %arg5[%c0_12, %c0_13] : memref<2x128xf32, #tpu.memory_space<vmem>>, vector<2x128xf32>
      tpu.vector_store %arg5[%c0_12, %c0_13], %14 {strides = array<i32>} : memref<2x128xf32, #tpu.memory_space<vmem>>, vector<2x128xf32>,
    } else {
    }
    return
  }
  func.func @transform_0(%arg0: i32, %arg1: i32, %arg2: i32) -> (i32, i32) {
    %c0_i32 = arith.constant 0 : i32
    return %arg0, %arg2 : i32, i32
  }
  func.func @transform_1(%arg0: i32, %arg1: i32, %arg2: i32) -> (i32, i32) {
    %c0_i32 = arith.constant 0 : i32
    return %arg2, %arg1 : i32, i32
  }
  func.func @transform_2(%arg0: i32, %arg1: i32, %arg2: i32) -> (i32, i32) {
    %c0_i32 = arith.constant 0 : i32
    return %arg0, %arg1 : i32, i32
  }
}

</mosaic_0001>

<bundles_post_ra>
// kernel: snn_small_vgg_forward.6
= control target key start
LH: loop header
LB: loop body
LE: loop exit
PB: predicated region body
PF: predicated region fallthrough
CT: control target
= control target key end

     0   :  { %7 = vsyncpa [#allocation4], 0  ;;  %s1688_s0 = inlined_call_operand.vmem [shape: bf16[2,4096], index: 0, kind: input, shape index: {}]   ;;  %s1689_s1 = inlined_call_operand.hbm [shape: bf16[4096,1024], index: 1, kind: input, shape index: {}]   ;;  %s1690_s2 = inlined_call_operand.vmem [shape: bf16[2,1024], index: 2, kind: output, shape index: {}]  }
   0x1   :  { %9 = vsyncpa [#allocation4 + $0x1], 0  ;;  %s1408_s9 = smov 0   ;;  %s1410_s10 = smov 0  }
   0x2   :  { %s1412_s11 = smov 0   ;;  %s1414_s12 = smov 0  }
   0x3   :  { %s1416_s13 = smov 0   ;;  %s1418_s14 = smov 0  }
   0x4   :  { %s1420_s15 = smov 0   ;;  %s1422_s16 = smov 0  }
   0x5 LB: > { %s878_s17 = sadd.s32 4294967295, %s1387_s16   ;;  %s27_s18 = sadd.s32 1, %s1379_s14  ;;  %s1387_s16 = sphi %s1422_s16, %s15_s16   ;;  %s1383_s15 = sphi %s1420_s15, %s1699_s15   ;;  %s1379_s14 = sphi %s1418_s14, %s1698_s14   ;;  %s1375_s13 = sphi %s1416_s13, %s1697_s13   ;;  %s1371_s12 = sphi %s1414_s12, %s1696_s12   ;;  %s1367_s11 = sphi %s1412_s11, %s1695_s11   ;;  %s1363_s10 = sphi %s1410_s10, %s1694_s10   ;;  %s1359_s9 = sphi %s1408_s9, %s1693_s9  }
   0x6   : > { %p28_p0 = scmp.ge.s32.totalorder %s27_s18, 8  ;;  %s30_s19 = sadd.s32 1, %s1383_s15 }
   0x7   : > { %s71_s20 = sadd.s32 1, %s1367_s11  ;;  %p78_p1 = scmp.ne.s32.totalorder %s1367_s11, %s1363_s10 }
   0x8   : > { %s1701_s18 = smov (%p28_p0, %s27_s18), 0  ;;  %s1703_s19 = smov (!%p28_p0, %s30_s19), %s1383_s15 }
   0x9   : > { %s66_s21 = ssub.s32 %s1379_s14, %s1701_s18  ;;  %p79_p2 = scmp.eq.s32.totalorder %s1387_s16, 0 }
   0xa   : > { %p32_p3 = scmp.ge.s32.totalorder %s1703_s19, 4  ;;  %p84_p4 = scmp.ne.s32.totalorder %s1363_s10, %s1359_s9 }
   0xb   : > { %p1459_p5 = por %p79_p2, %p78_p1  ;;  %p85_p6 = scmp.eq.s32.totalorder %s878_s17, 0 }
   0xc   : > { %s1705_s19 = smov (%p32_p3, %s1703_s19), 0  ;;  %p1222_p8 = scmp.lt.s32.totalorder %s1387_s16, 32 }
   0xd   : > { %p1465_p7 = por %p85_p6, %p84_p4  ;;  %s67_s24 = ssub.s32 %s1383_s15, %s1705_s19 }
   0xe   : > { %s68_s25 = sor.u32 %s67_s24, %s66_s21  ;;  %s148_s26 = sand.u32 1, %s1367_s11  }
   0xf   : > { %p69_p9 = scmp.eq.s32.totalorder %s68_s25, 0  ;;  %s882_s27 = sshll.u32 %s148_s26, 9 }
  0x10   : > { %s884_s28 = sshll.u32 %s1383_s15, 1  ;;  %s1151_s30 = sshll.u32 %s1379_s14, 9 }
  0x11   : > { %s1475_s29 = scalar_select %p69_p9, %s1367_s11, %s71_s20  }
  0x12   : > { %s158_s3 = sadd.s32 %s1151_s30, %s884_s28  ;;  %s152_s4 = scalar_lea.vmem [#allocation3], %s882_s27 }
  0x13   : > { %s163_s5 = sshll.u32 %s152_s4, 4  ;;  %s886_s6 = sshll.u32 %s158_s3, 2  ;;  %s164_s5 = int_to_ptr.vmem [resolvable:$true] %s163_s5 }
  0x14   : > { %s160_s9 = scalar_lea.hbm %s1689_s1, %s886_s6  ;;  %p1219_p10 = pnand %p1222_p8, %p1459_p5 }
  0x15   : > { %s161_s17 = sshll.u32 %s160_s9, 4  ;;  %s149_s21 = scalar_lea.sflag [#allocation4], %s148_s26  ;;  %s162_s17 = int_to_ptr.hbm [resolvable:$true] %s161_s17 }
  0x16   : > { %s1389_s20 = smov 512   ;;  %s1390_s24 = smov 128  }
  0x17   : > { %s1391_s25 = smov 8   ;;  %p887_p11 = scmp.ge.s32.totalorder %s1387_s16, 1 }
  0x18   : > { %1221 = dma.hbm_to_vmem [thread:$0]  (!%p1219_p10), %s162_s17, 8192, %s164_s5, %s149_s21, %s1389_s20, %s1390_s24, %s1391_s25  }
  0x19   : > { %p171_p12 = scmp.lt.s32.totalorder %s1387_s16, 33 }
  0x1b   : > { %p172_p13 = pnand %p887_p11, %p171_p12 }
  0x1c   : > { %s177_s27 = sand.u32 (!%p172_p13), 1, %s1363_s10  }
  0x1d   : > { %175 = sbr.rel (%p172_p13) target bundleno = 280 (0x118), region = 28  ;;  %s888_s28 = sshll.u32 (!%p172_p13), %s177_s27, 9 }
  0x1e   : > { %s178_s30 = scalar_lea.sflag (!%p172_p13), [#allocation4], %s177_s27  ;;  %s1488_s3 = scalar_lea.vmem (!%p172_p13), [#allocation3], %s888_s28 }
  0x22   : > { %1354 = dma.done.wait (%p1465_p7), %s178_s30, 8192  }
  0x23   : > { %1356 = vsyncadd (%p1465_p7), %s178_s30, 4294959104  ;;  %s889_s22 = sshll.u32 %s1371_s12, 2  ;;  %s890_s26 = sshll.u32 %s1375_s13, 1 }
  0x24   : > { %p217_p0 = scmp.lt.s32.totalorder %s889_s22, 31  ;;  %p228_p1 = scmp.lt.s32.totalorder %s890_s26, 7 }
  0x25   : > { %p891_p2 = scmp.ne.s32.totalorder %s1371_s12, 0 }
  0x26   : > { %s1707_s22 = smov (!%p217_p0, %s889_s22), 31  ;;  %s1709_s26 = smov (!%p228_p1, %s890_s26), 7 }
  0x27   : > { %s221_s6 = scalar_lea.vmem %s1688_s0, %s1707_s22  ;;  %s232_s23 = scalar_lea.vmem %s1690_s2, %s1709_s26 }
  0x28   : > { %237 = sbr.rel (%p891_p2) target bundleno = 47 (0x2f), region = 36 }
  0x2d   : > { %v1392_v0 = vmov 0.0  }
  0x2e   : > { %238 = vst [vmem:[#allocation2] sm:$0xf] %v1392_v0 }
  0x2f PF: > { %v950_v1 = vld [vmem:[%s1488_s3 + $0x70] sm:$0xf]  ;;  %v1167_v2 = vld [vmem:[%s1488_s3 + $0x74] sm:$0xf0]  ;;  %v942_v12 = vld [vmem:[%s1488_s3 + $0x60] sm:$0xf] }
  0x30   : > { %v1014_v3 = vld [vmem:[%s1488_s3 + $0xf0] sm:$0xf]  ;;  %v951_v4 = vor.u32 %v1167_v2, %v950_v1  ;;  %v1183_v5 = vld [vmem:[%s1488_s3 + $0xf4] sm:$0xf0]  ;;  %v1165_v14 = vld [vmem:[%s1488_s3 + $0x64] sm:$0xf0] }
  0x31   : > { %v1078_v6 = vld [vmem:[%s1488_s3 + $0x170] sm:$0xf]  ;;  %v1199_v7 = vld [vmem:[%s1488_s3 + $0x174] sm:$0xf0]  ;;  %v1015_v8 = vor.u32 %v1183_v5, %v1014_v3  ;;  %v1006_v15 = vld [vmem:[%s1488_s3 + $0xe0] sm:$0xf]  ;;  %v943_v17 = vor.u32 %v1165_v14, %v942_v12 }
  0x32   : > { %v1079_v9 = vor.u32 %v1199_v7, %v1078_v6  ;;  %v1142_v10 = vld [vmem:[%s1488_s3 + $0x1f0] sm:$0xf]  ;;  %v1215_v11 = vld [vmem:[%s1488_s3 + $0x1f4] sm:$0xf0]  ;;  %635 = vmatpush.bf16.msra.mxu0 %v951_v4  ;;  %v1181_v16 = vld [vmem:[%s1488_s3 + $0xe4] sm:$0xf0] }
  0x33   : > { %v1143_v13 = vor.u32 %v1215_v11, %v1142_v10  ;;  %648 = vmatpush.bf16.msra.mxu1 %v1015_v8  ;;  %v1007_v18 = vor.u32 %v1181_v16, %v1006_v15  ;;  %v1070_v19 = vld [vmem:[%s1488_s3 + $0x160] sm:$0xf]  ;;  %v1197_v20 = vld [vmem:[%s1488_s3 + $0x164] sm:$0xf0]  ;;  %v934_v24 = vld [vmem:[%s1488_s3 + $0x50] sm:$0xf] }
  0x34   : > { %661 = vmatpush.bf16.msra.mxu2 %v1079_v9  ;;  %v1134_v21 = vld [vmem:[%s1488_s3 + $0x1e0] sm:$0xf]  ;;  %v1071_v22 = vor.u32 %v1197_v20, %v1070_v19  ;;  %v1213_v23 = vld [vmem:[%s1488_s3 + $0x1e4] sm:$0xf0]  ;;  %v1163_v25 = vld [vmem:[%s1488_s3 + $0x54] sm:$0xf0] }
  0x35   : > { %674 = vmatpush.bf16.msra.mxu3 %v1143_v13  ;;  %v1135_v26 = vor.u32 %v1213_v23, %v1134_v21  ;;  %v998_v27 = vld [vmem:[%s1488_s3 + $0xd0] sm:$0xf]  ;;  %v1179_v28 = vld [vmem:[%s1488_s3 + $0xd4] sm:$0xf0]  ;;  %v935_v30 = vor.u32 %v1163_v25, %v934_v24  ;;  %v926_v36 = vld [vmem:[%s1488_s3 + $0x40] sm:$0xf] }
  0x36   : > { %v1062_v29 = vld [vmem:[%s1488_s3 + $0x150] sm:$0xf]  ;;  %636 = vmatpush.bf16.msra.mxu0 %v943_v17  ;;  %v1195_v31 = vld [vmem:[%s1488_s3 + $0x154] sm:$0xf0]  ;;  %v999_v34 = vor.u32 %v1179_v28, %v998_v27  ;;  %v1161_v37 = vld [vmem:[%s1488_s3 + $0x44] sm:$0xf0] }
  0x37   : > { %v1126_v32 = vld [vmem:[%s1488_s3 + $0x1d0] sm:$0xf]  ;;  %v1211_v33 = vld [vmem:[%s1488_s3 + $0x1d4] sm:$0xf0]  ;;  %649 = vmatpush.bf16.msra.mxu1 %v1007_v18  ;;  %v1063_v35 = vor.u32 %v1195_v31, %v1062_v29  ;;  %v990_v38 = vld [vmem:[%s1488_s3 + $0xc0] sm:$0xf]  ;;  %v927_v45 = vor.u32 %v1161_v37, %v926_v36 }
  0x38   : > { %662 = vmatpush.bf16.msra.mxu2 %v1071_v22  ;;  %v1127_v39 = vor.u32 %v1211_v33, %v1126_v32  ;;  %v1177_v40 = vld [vmem:[%s1488_s3 + $0xc4] sm:$0xf0]  ;;  %v1054_v41 = vld [vmem:[%s1488_s3 + $0x140] sm:$0xf]  ;;  %v918_v48 = vld [vmem:[%s1488_s3 + $0x30] sm:$0xf] }
  0x39   : > { %675 = vmatpush.bf16.msra.mxu3 %v1135_v26  ;;  %v1193_v42 = vld [vmem:[%s1488_s3 + $0x144] sm:$0xf0]  ;;  %v1118_v43 = vld [vmem:[%s1488_s3 + $0x1c0] sm:$0xf]  ;;  %v991_v46 = vor.u32 %v1177_v40, %v990_v38  ;;  %v1159_v49 = vld [vmem:[%s1488_s3 + $0x34] sm:$0xf0] }
  0x3a   : > { %v1209_v44 = vld [vmem:[%s1488_s3 + $0x1c4] sm:$0xf0]  ;;  %637 = vmatpush.bf16.msra.mxu0 %v935_v30  ;;  %v1055_v47 = vor.u32 %v1193_v42, %v1054_v41  ;;  %v982_v50 = vld [vmem:[%s1488_s3 + $0xb0] sm:$0xf]  ;;  %v1175_v52 = vld [vmem:[%s1488_s3 + $0xb4] sm:$0xf0]  ;;  %v919_v57 = vor.u32 %v1159_v49, %v918_v48 }
  0x3b   : > { %650 = vmatpush.bf16.msra.mxu1 %v999_v34  ;;  %v1119_v51 = vor.u32 %v1209_v44, %v1118_v43  ;;  %v1046_v53 = vld [vmem:[%s1488_s3 + $0x130] sm:$0xf]  ;;  %v1191_v54 = vld [vmem:[%s1488_s3 + $0x134] sm:$0xf0]  ;;  %v983_v58 = vor.u32 %v1175_v52, %v982_v50  ;;  %v910_v60 = vld [vmem:[%s1488_s3 + $0x20] sm:$0xf] }
  0x3c   : > { %663 = vmatpush.bf16.msra.mxu2 %v1063_v35  ;;  %v1110_v55 = vld [vmem:[%s1488_s3 + $0x1b0] sm:$0xf]  ;;  %v1207_v56 = vld [vmem:[%s1488_s3 + $0x1b4] sm:$0xf0]  ;;  %v1047_v59 = vor.u32 %v1191_v54, %v1046_v53  ;;  %v1157_v61 = vld [vmem:[%s1488_s3 + $0x24] sm:$0xf0] }
  0x3d   : > { %676 = vmatpush.bf16.msra.mxu3 %v1127_v39  ;;  %v974_v62 = vld [vmem:[%s1488_s3 + $0xa0] sm:$0xf]  ;;  %v1111_v63 = vor.u32 %v1207_v56, %v1110_v55  ;;  %v1173_v0 = vld [vmem:[%s1488_s3 + $0xa4] sm:$0xf0]  ;;  %v911_v5 = vor.u32 %v1157_v61, %v910_v60  ;;  %v902_v8 = vld [vmem:[%s1488_s3 + $0x10] sm:$0xf] }
  0x3e   : > { %638 = vmatpush.bf16.msra.mxu0 %v927_v45  ;;  %v1038_v1 = vld [vmem:[%s1488_s3 + $0x120] sm:$0xf]  ;;  %v1189_v2 = vld [vmem:[%s1488_s3 + $0x124] sm:$0xf0]  ;;  %v975_v6 = vor.u32 %v1173_v0, %v974_v62  ;;  %v1155_v9 = vld [vmem:[%s1488_s3 + $0x14] sm:$0xf0] }
  0x3f   : > { %651 = vmatpush.bf16.msra.mxu1 %v991_v46  ;;  %v1102_v3 = vld [vmem:[%s1488_s3 + $0x1a0] sm:$0xf]  ;;  %v1205_v4 = vld [vmem:[%s1488_s3 + $0x1a4] sm:$0xf0]  ;;  %v1039_v7 = vor.u32 %v1189_v2, %v1038_v1  ;;  %v966_v10 = vld [vmem:[%s1488_s3 + $0x90] sm:$0xf]  ;;  %v903_v18 = vor.u32 %v1155_v9, %v902_v8 }
  0x40   : > { %664 = vmatpush.bf16.msra.mxu2 %v1055_v47  ;;  %v1103_v11 = vor.u32 %v1205_v4, %v1102_v3  ;;  %v1171_v12 = vld [vmem:[%s1488_s3 + $0x94] sm:$0xf0]  ;;  %v1030_v13 = vld [vmem:[%s1488_s3 + $0x110] sm:$0xf]  ;;  %v894_v17 = vld [vmem:[%s1488_s3] sm:$0xf] }
  0x41   : > { %677 = vmatpush.bf16.msra.mxu3 %v1119_v51  ;;  %v1187_v14 = vld [vmem:[%s1488_s3 + $0x114] sm:$0xf0]  ;;  %v1094_v15 = vld [vmem:[%s1488_s3 + $0x190] sm:$0xf]  ;;  %v1153_v19 = vld [vmem:[%s1488_s3 + $0x4] sm:$0xf0]  ;;  %v967_v22 = vor.u32 %v1171_v12, %v966_v10 }
  0x42   : > { %639 = vmatpush.bf16.msra.mxu0 %v919_v57  ;;  %v1203_v16 = vld [vmem:[%s1488_s3 + $0x194] sm:$0xf0]  ;;  %v958_v20 = vld [vmem:[%s1488_s3 + $0x80] sm:$0xf]  ;;  %v1169_v21 = vld [vmem:[%s1488_s3 + $0x84] sm:$0xf0]  ;;  %v1031_v23 = vor.u32 %v1187_v14, %v1030_v13  ;;  %v895_v34 = vor.u32 %v1153_v19, %v894_v17 }
  0x43   : > { %652 = vmatpush.bf16.msra.mxu1 %v983_v58  ;;  %v1022_v24 = vld [vmem:[%s1488_s3 + $0x100] sm:$0xf]  ;;  %v1185_v25 = vld [vmem:[%s1488_s3 + $0x104] sm:$0xf0]  ;;  %v1095_v27 = vor.u32 %v1203_v16, %v1094_v15  ;;  %v1166_v29 = vld [vmem:[%s1488_s3 + $0x74] sm:$0xf]  ;;  %v959_v37 = vor.u32 %v1169_v21, %v958_v20 }
  0x44   : > { %665 = vmatpush.bf16.msra.mxu2 %v1047_v59  ;;  %v1086_v26 = vld [vmem:[%s1488_s3 + $0x180] sm:$0xf]  ;;  %v1201_v28 = vld [vmem:[%s1488_s3 + $0x184] sm:$0xf0]  ;;  %v952_v30 = vld [vmem:[%s1488_s3 + $0x78] sm:$0xf0]  ;;  %v1023_v38 = vor.u32 %v1185_v25, %v1022_v24 }
  0x45   : > { %678 = vmatpush.bf16.msra.mxu3 %v1111_v63  ;;  %v1182_v31 = vld [vmem:[%s1488_s3 + $0xf4] sm:$0xf]  ;;  %v1016_v32 = vld [vmem:[%s1488_s3 + $0xf8] sm:$0xf0]  ;;  %v1087_v41 = vor.u32 %v1201_v28, %v1086_v26  ;;  %v955_v42 = vor.u32 %v1166_v29, %v952_v30  ;;  %v1164_v45 = vld [vmem:[%s1488_s3 + $0x64] sm:$0xf] }
  0x46   : > { %640 = vmatpush.bf16.msra.mxu0 %v911_v5  ;;  %v240_v33 = vld [vmem:[%s221_s6] sm:$0xf]  ;;  %v1080_v36 = vld [vmem:[%s1488_s3 + $0x178] sm:$0xf0]  ;;  %v1019_v43 = vor.u32 %v1182_v31, %v1016_v32  ;;  %v944_v46 = vld [vmem:[%s1488_s3 + $0x68] sm:$0xf0] }
  0x47   : > { %653 = vmatpush.bf16.msra.mxu1 %v975_v6  ;;  %v1198_v35 = vld [vmem:[%s1488_s3 + $0x174] sm:$0xf]  ;;  %306 = vst [vmem:[#allocation1] ss:$9 sm:$0xff] %v240_v33  ;;  %v1144_v40 = vld [vmem:[%s1488_s3 + $0x1f8] sm:$0xf0]  ;;  %v947_v55 = vor.u32 %v1164_v45, %v944_v46 }
  0x48   : > { %666 = vmatpush.bf16.msra.mxu2 %v1039_v7  ;;  %v1214_v39 = vld [vmem:[%s1488_s3 + $0x1f4] sm:$0xf]  ;;  %v1083_v44 = vor.u32 %v1198_v35, %v1080_v36  ;;  %v1180_v47 = vld [vmem:[%s1488_s3 + $0xe4] sm:$0xf]  ;;  %v1008_v49 = vld [vmem:[%s1488_s3 + $0xe8] sm:$0xf0] }
  0x49   : > { %679 = vmatpush.bf16.msra.mxu3 %v1103_v11  ;;  %v1147_v48 = vor.u32 %v1214_v39, %v1144_v40  ;;  %v1196_v50 = vld [vmem:[%s1488_s3 + $0x164] sm:$0xf]  ;;  %v1072_v51 = vld [vmem:[%s1488_s3 + $0x168] sm:$0xf0]  ;;  %v1162_v54 = vld [vmem:[%s1488_s3 + $0x54] sm:$0xf]  ;;  %v1011_v59 = vor.u32 %v1180_v47, %v1008_v49 }
  0x4a   : > { %641 = vmatpush.bf16.msra.mxu0 %v903_v18  ;;  %v1212_v52 = vld [vmem:[%s1488_s3 + $0x1e4] sm:$0xf]  ;;  %v1136_v53 = vld [vmem:[%s1488_s3 + $0x1e8] sm:$0xf0]  ;;  %v936_v56 = vld [vmem:[%s1488_s3 + $0x58] sm:$0xf0]  ;;  %v1075_v60 = vor.u32 %v1196_v50, %v1072_v51 }
  0x4b   : > { %654 = vmatpush.bf16.msra.mxu1 %v967_v22  ;;  %v1178_v57 = vld [vmem:[%s1488_s3 + $0xd4] sm:$0xf]  ;;  %v1000_v58 = vld [vmem:[%s1488_s3 + $0xd8] sm:$0xf0]  ;;  %v1139_v0 = vor.u32 %v1212_v52, %v1136_v53  ;;  %v939_v6 = vor.u32 %v1162_v54, %v936_v56  ;;  %v1160_v9 = vld [vmem:[%s1488_s3 + $0x44] sm:$0xf] }
  0x4c   : > { %667 = vmatpush.bf16.msra.mxu2 %v1031_v23  ;;  %v1194_v1 = vld [vmem:[%s1488_s3 + $0x154] sm:$0xf]  ;;  %v1064_v2 = vld [vmem:[%s1488_s3 + $0x158] sm:$0xf0]  ;;  %v1003_v7 = vor.u32 %v1178_v57, %v1000_v58  ;;  %v928_v10 = vld [vmem:[%s1488_s3 + $0x48] sm:$0xf0] }
  0x4d   : > { %680 = vmatpush.bf16.msra.mxu3 %v1095_v27  ;;  %v1210_v4 = vld [vmem:[%s1488_s3 + $0x1d4] sm:$0xf]  ;;  %v1128_v5 = vld [vmem:[%s1488_s3 + $0x1d8] sm:$0xf0]  ;;  %v1067_v8 = vor.u32 %v1194_v1, %v1064_v2  ;;  %v1176_v11 = vld [vmem:[%s1488_s3 + $0xc4] sm:$0xf]  ;;  %v931_v18 = vor.u32 %v1160_v9, %v928_v10 }
  0x4e   : > { %642 = vmatpush.bf16.msra.mxu0 %v895_v34  ;;  %v1598_v61 = vld [vmem:[#allocation1 + $0x12] sm:$0xff]  ;;  %v1600_v62 = vld [vmem:[#allocation1 + $0x1b] sm:$0xff]  ;;  %v1607_v3 = vld [vmem:[#allocation1 + $0x9] sm:$0xff]  ;;  %v1131_v12 = vor.u32 %v1210_v4, %v1128_v5  ;;  %vm742_vm0 = vcmask 1041408   ;;  %p1148_p3 = scmp.ne.s32.totalorder %s1371_s12, 7 }
  0x4f   : > { %655 = vmatpush.bf16.msra.mxu1 %v959_v37  ;;  %v1602_v63 = vld [vmem:[#allocation1] sm:$0xff]  ;;  %v992_v13 = vld [vmem:[%s1488_s3 + $0xc8] sm:$0xf0]  ;;  %v1192_v14 = vld [vmem:[%s1488_s3 + $0x144] sm:$0xf] }
  0x50   : > { %668 = vmatpush.bf16.msra.mxu2 %v1023_v38  ;;  %v1056_v15 = vld [vmem:[%s1488_s3 + $0x148] sm:$0xf0]  ;;  %v1208_v16 = vld [vmem:[%s1488_s3 + $0x1c4] sm:$0xf]  ;;  %v995_v19 = vor.u32 %v1176_v11, %v992_v13  ;;  %v1158_v21 = vld [vmem:[%s1488_s3 + $0x34] sm:$0xf] }
  0x51   : > { %681 = vmatpush.bf16.msra.mxu3 %v1087_v41  ;;  %643 = vmatmul.bf16.vlgmr.msra.gmra.mxu0 %v1602_v63  ;;  %v1120_v17 = vld [vmem:[%s1488_s3 + $0x1c8] sm:$0xf0]  ;;  %v1059_v20 = vor.u32 %v1192_v14, %v1056_v15  ;;  %v920_v22 = vld [vmem:[%s1488_s3 + $0x38] sm:$0xf0]  ;;  %v1174_v23 = vld [vmem:[%s1488_s3 + $0xb4] sm:$0xf] }
  0x52   : > { %687 = vmatpush.bf16.msrb.mxu0 %v955_v42  ;;  %656 = vmatmul.bf16.vlgmr.msra.gmra.mxu1 %v1607_v3  ;;  %v1123_v24 = vor.u32 %v1208_v16, %v1120_v17  ;;  %v984_v25 = vld [vmem:[%s1488_s3 + $0xb8] sm:$0xf0]  ;;  %v1190_v26 = vld [vmem:[%s1488_s3 + $0x134] sm:$0xf]  ;;  %v923_v30 = vor.u32 %v1158_v21, %v920_v22  ;;  %v1156_v33 = vld [vmem:[%s1488_s3 + $0x24] sm:$0xf] }
  0x53   : > { %700 = vmatpush.bf16.msrb.mxu1 %v1019_v43  ;;  %669 = vmatmul.bf16.vlgmr.msra.gmra.mxu2 %v1598_v61  ;;  %v1048_v27 = vld [vmem:[%s1488_s3 + $0x138] sm:$0xf0]  ;;  %v1206_v28 = vld [vmem:[%s1488_s3 + $0x1b4] sm:$0xf]  ;;  %v987_v31 = vor.u32 %v1174_v23, %v984_v25  ;;  %v912_v34 = vld [vmem:[%s1488_s3 + $0x28] sm:$0xf0] }
  0x54   : > { %713 = vmatpush.bf16.msrb.mxu2 %v1083_v44  ;;  %682 = vmatmul.bf16.vlgmr.msra.gmra.mxu3 %v1600_v62  ;;  %v1112_v29 = vld [vmem:[%s1488_s3 + $0x1b8] sm:$0xf0]  ;;  %v1051_v32 = vor.u32 %v1190_v26, %v1048_v27  ;;  %v1172_v35 = vld [vmem:[%s1488_s3 + $0xa4] sm:$0xf]  ;;  %v976_v37 = vld [vmem:[%s1488_s3 + $0xa8] sm:$0xf0]  ;;  %v915_v42 = vor.u32 %v1156_v33, %v912_v34 }
  0x55   : > { %726 = vmatpush.bf16.msrb.mxu3 %v1147_v48  ;;  %v1115_v36 = vor.u32 %v1206_v28, %v1112_v29  ;;  %v1188_v38 = vld [vmem:[%s1488_s3 + $0x124] sm:$0xf]  ;;  %v1040_v39 = vld [vmem:[%s1488_s3 + $0x128] sm:$0xf0]  ;;  %v979_v43 = vor.u32 %v1172_v35, %v976_v37  ;;  %v1154_v45 = vld [vmem:[%s1488_s3 + $0x14] sm:$0xf] }
  0x56   : > { %688 = vmatpush.bf16.msrb.mxu0 %v947_v55  ;;  %v1204_v40 = vld [vmem:[%s1488_s3 + $0x1a4] sm:$0xf]  ;;  %v1104_v41 = vld [vmem:[%s1488_s3 + $0x1a8] sm:$0xf0]  ;;  %v1043_v44 = vor.u32 %v1188_v38, %v1040_v39  ;;  %v904_v46 = vld [vmem:[%s1488_s3 + $0x18] sm:$0xf0] }
  0x57   : > { %701 = vmatpush.bf16.msrb.mxu1 %v1011_v59  ;;  %v1170_v47 = vld [vmem:[%s1488_s3 + $0x94] sm:$0xf]  ;;  %v1107_v48 = vor.u32 %v1204_v40, %v1104_v41  ;;  %v968_v49 = vld [vmem:[%s1488_s3 + $0x98] sm:$0xf0]  ;;  %v907_v54 = vor.u32 %v1154_v45, %v904_v46  ;;  %v1152_v57 = vld [vmem:[%s1488_s3 + $0x4] sm:$0xf] }
  0x58   : > { %714 = vmatpush.bf16.msrb.mxu2 %v1075_v60  ;;  %v1186_v50 = vld [vmem:[%s1488_s3 + $0x114] sm:$0xf]  ;;  %v1032_v51 = vld [vmem:[%s1488_s3 + $0x118] sm:$0xf0]  ;;  %v971_v55 = vor.u32 %v1170_v47, %v968_v49  ;;  %v896_v58 = vld [vmem:[%s1488_s3 + $0x8] sm:$0xf0] }
  0x59   : > { %727 = vmatpush.bf16.msrb.mxu3 %v1139_v0  ;;  %v1202_v52 = vld [vmem:[%s1488_s3 + $0x194] sm:$0xf]  ;;  %v1096_v53 = vld [vmem:[%s1488_s3 + $0x198] sm:$0xf0]  ;;  %v1035_v56 = vor.u32 %v1186_v50, %v1032_v51  ;;  %v1168_v59 = vld [vmem:[%s1488_s3 + $0x84] sm:$0xf] }
  0x5a   : > { %689 = vmatpush.bf16.msrb.mxu0 %v939_v6  ;;  %v1099_v60 = vor.u32 %v1202_v52, %v1096_v53  ;;  %v960_v0 = vld [vmem:[%s1488_s3 + $0x88] sm:$0xf0]  ;;  %v1184_v1 = vld [vmem:[%s1488_s3 + $0x104] sm:$0xf]  ;;  %v899_v6 = vor.u32 %v1152_v57, %v896_v58  ;;  %v239_v26 = vld [vmem:[#allocation2] sm:$0xf] }
  0x5b   : > { %702 = vmatpush.bf16.msrb.mxu1 %v1003_v7  ;;  %v1024_v2 = vld [vmem:[%s1488_s3 + $0x108] sm:$0xf0]  ;;  %v1200_v4 = vld [vmem:[%s1488_s3 + $0x184] sm:$0xf]  ;;  %v963_v7 = vor.u32 %v1168_v59, %v960_v0 }
  0x5c   : > { %715 = vmatpush.bf16.msrb.mxu2 %v1067_v8  ;;  %v1088_v5 = vld [vmem:[%s1488_s3 + $0x188] sm:$0xf0]  ;;  %v1027_v8 = vor.u32 %v1184_v1, %v1024_v2 }
  0x5d   : > { %728 = vmatpush.bf16.msrb.mxu3 %v1131_v12  ;;  %v1091_v9 = vor.u32 %v1200_v4, %v1088_v5 }
  0x5e   : > { %690 = vmatpush.bf16.msrb.mxu0 %v931_v18 }
  0x5f   : > { %703 = vmatpush.bf16.msrb.mxu1 %v995_v19 }
  0x60   : > { %716 = vmatpush.bf16.msrb.mxu2 %v1059_v20 }
  0x61   : > { %729 = vmatpush.bf16.msrb.mxu3 %v1123_v24 }
  0x62   : > { %691 = vmatpush.bf16.msrb.mxu0 %v923_v30 }
  0x63   : > { %704 = vmatpush.bf16.msrb.mxu1 %v987_v31 }
  0x64   : > { %717 = vmatpush.bf16.msrb.mxu2 %v1051_v32 }
  0x65   : > { %730 = vmatpush.bf16.msrb.mxu3 %v1115_v36 }
  0x66   : > { %692 = vmatpush.bf16.msrb.mxu0 %v915_v42 }
  0x67   : > { %705 = vmatpush.bf16.msrb.mxu1 %v979_v43 }
  0x68   : > { %718 = vmatpush.bf16.msrb.mxu2 %v1043_v44 }
  0x69   : > { %731 = vmatpush.bf16.msrb.mxu3 %v1107_v48 }
  0x6a   : > { %693 = vmatpush.bf16.msrb.mxu0 %v907_v54 }
  0x6b   : > { %706 = vmatpush.bf16.msrb.mxu1 %v971_v55 }
  0x6c   : > { %719 = vmatpush.bf16.msrb.mxu2 %v1035_v56 }
  0x6d   : > { %732 = vmatpush.bf16.msrb.mxu3 %v1099_v60 }
  0x6e   : > { %694 = vmatpush.bf16.msrb.mxu0 %v899_v6 }
  0x6f   : > { %707 = vmatpush.bf16.msrb.mxu1 %v963_v7 }
  0x70   : > { %720 = vmatpush.bf16.msrb.mxu2 %v1027_v8 }
  0x71   : > { %733 = vmatpush.bf16.msrb.mxu3 %v1091_v9  ;;  %695 = vmatmul.bf16.vlgmr.msrb.gmra.mxu0 %v1602_v63 }
  0x72   : > { %708 = vmatmul.bf16.vlgmr.msrb.gmra.mxu1 %v1607_v3 }
  0x73   : > { %721 = vmatmul.bf16.vlgmr.msrb.gmra.mxu2 %v1598_v61 }
  0x74   : > { %734 = vmatmul.bf16.vlgmr.msrb.gmra.mxu3 %v1600_v62 }
  0xce   : > { %v644_v10 = vpop.f32.mrf.mxu0 }
  0xcf   : > { %v657_v11 = vpop.f32.mrf.mxu1 }
  0xd0   : > { %v658_v20 = vadd.f32 %v657_v11, %v644_v10 }
  0xd6   : > { %v670_v12 = vpop.f32.mrf.mxu2  ;;  %v646_v14 = vpop.f32.mrf.mxu0 }
  0xd7   : > { %v683_v13 = vpop.f32.mrf.mxu3  ;;  %v659_v15 = vpop.f32.mrf.mxu1  ;;  %v671_v63 = vadd.f32 %v670_v12, %v658_v20 }
  0xd9   : > { %v684_v62 = vadd.f32 %v683_v13, %v671_v63 }
  0xde   : > { %v672_v16 = vpop.f32.mrf.mxu2 }
  0xdf   : > { %v685_v17 = vpop.f32.mrf.mxu3 }
  0xee   : > { %v696_v18 = vpop.f32.mrf.mxu0 }
  0xef   : > { %v709_v19 = vpop.f32.mrf.mxu1 }
  0xf0   : > { %v710_v21 = vadd.f32 %v709_v19, %v696_v18 }
  0xf6   : > { %v722_v22 = vpop.f32.mrf.mxu2  ;;  %v698_v24 = vpop.f32.mrf.mxu0 }
  0xf7   : > { %v723_v23 = vadd.f32 %v722_v22, %v710_v21  ;;  %v735_v3 = vpop.f32.mrf.mxu3  ;;  %v711_v61 = vpop.f32.mrf.mxu1 }
  0xf9   : > { %v736_v25 = vadd.f32 %v735_v3, %v723_v23 }
  0xfb   : > { %v741_v27 = vrot.slane %v736_v25, 6 }
  0xfc   : > { %750 = sbr.rel (%p1148_p3) target bundleno = 280 (0x118), region = 40 }
  0xfd   : > { %v743_v28 = vsel %vm742_vm0, %v684_v62, %v741_v27 }
  0xfe   : > { %v745_v29 = vadd.f32 %v743_v28, %v239_v26  ;;  %v724_v30 = vpop.f32.mrf.mxu2 }
  0xff   : > { %v737_v31 = vpop.f32.mrf.mxu3 }
 0x100   : > { %746 = vst [vmem:[#allocation2] sm:$0xf] %v745_v29 }
 0x101   : > { %vm762_vm1 = vcmask 1040384  }
 0x107   : > { %v751_v32 = vld [vmem:[#allocation2] sm:$0xf] }
 0x108   : > { %v752_v33 = vmax.f32 %v751_v32, 0.0 }
 0x10a   : > { %754 = vst [vmem:[#allocation1] ss:$4 sm:$0xff] %v752_v33 }
 0x111   : > { %v755_v34 = vld.sshfl [vmem:[#allocation1] sm:$0xff pattern:$0x73625140]  ;;  %v756_v35 = vld.sshfl [vmem:[#allocation1 + $0x8] sm:$0xff pattern:$0x73625140] }
 0x112   : > { %v759_v36 = vpack.c.bf16 %v756_v35, %v755_v34 }
 0x114   : > { %v761_v37 = vrot.slane %v759_v36, 3 }
 0x116   : > { %v765_v38 = vsel %vm762_vm1, %v759_v36, %v761_v37 }
 0x117   : > { %767 = vst [vmem:[%s232_s23] sm:$0x3] %v765_v38 }
 0x118 PF: > { %s15_s16 = sadd.s32 1, %s1387_s16   ;;  %s1693_s9 = smov %s1363_s10 }
 0x119   : > { %p12_p4 = scmp.ge.s32.totalorder %s15_s16, 34   ;;  %s1694_s10 = smov %s1367_s11 }
 0x11a   : > { %s1695_s11 = smov %s1475_s29  ;;  %s1696_s12 = smov %s1379_s14 }
 0x11b   : > { %s1697_s13 = smov %s1383_s15  ;;  %s1698_s14 = smov %s1701_s18 }
 0x11c   : > { %s1699_s15 = smov %s1705_s19  ;;  %14 = sbr.rel (!%p12_p4) target bundleno = 5 (0x5), region = 79 }
 0x121   :  { %796 = vsyncpa [#allocation4], 1 }
 0x122   :  { %798 = vsyncpa [#allocation4 + $0x1], 1 }

// kernel: snn_small_vgg_forward.7
= control target key start
LH: loop header
LB: loop body
LE: loop exit
PB: predicated region body
PF: predicated region fallthrough
CT: control target
= control target key end

     0   :  { %7 = vsyncpa [#allocation4], 0  ;;  %s1155_s0 = inlined_call_operand.vmem [shape: bf16[2,1024], index: 0, kind: input, shape index: {}]   ;;  %s1156_s1 = inlined_call_operand.hbm [shape: bf16[1024,128], index: 1, kind: input, shape index: {}]   ;;  %s1157_s2 = inlined_call_operand.hbm [shape: f32[2,128], index: 2, kind: output, shape index: {}]  }
   0x1   :  { %9 = vsyncpa [#allocation4 + $0x1], 0 }
   0x2   :  { %10 = vsyncpa [#allocation5], 0  ;;  %s1017_s9 = smov 0   ;;  %s1019_s10 = smov 0  }
   0x3   :  { %s1021_s11 = smov 0   ;;  %s1023_s12 = smov 0  }
   0x4   :  { %s1025_s13 = smov 0   ;;  %s1027_s14 = smov 0  }
   0x5 LB: > { %s643_s15 = sadd.s32 4294967295, %s996_s14   ;;  %s28_s16 = sadd.s32 1, %s992_s13  ;;  %s996_s14 = sphi %s1027_s14, %s16_s14   ;;  %s992_s13 = sphi %s1025_s13, %s1164_s13   ;;  %s988_s12 = sphi %s1023_s12, %s1163_s12   ;;  %s984_s11 = sphi %s1021_s11, %s1162_s11   ;;  %s980_s10 = sphi %s1019_s10, %s1161_s10   ;;  %s976_s9 = sphi %s1017_s9, %s1160_s9  }
   0x6   : > { %p29_p0 = scmp.ge.s32.totalorder %s28_s16, 2  ;;  %s72_s17 = sadd.s32 1, %s984_s11 }
   0x7   : > { %p79_p1 = scmp.ne.s32.totalorder %s984_s11, %s980_s10  ;;  %p80_p2 = scmp.eq.s32.totalorder %s996_s14, 0 }
   0x8   : > { %s1166_s16 = smov (%p29_p0, %s28_s16), 0  ;;  %p85_p4 = scmp.ne.s32.totalorder %s980_s10, %s976_s9 }
   0x9   : > { %p1053_p3 = por %p80_p2, %p79_p1  ;;  %s67_s19 = ssub.s32 %s992_s13, %s1166_s16 }
   0xa   : > { %p86_p5 = scmp.eq.s32.totalorder %s643_s15, 0  ;;  %p70_p6 = scmp.eq.s32.totalorder %s67_s19, 0 }
   0xb   : > { %p829_p8 = scmp.lt.s32.totalorder %s996_s14, 2  ;;  %s149_s22 = sand.u32 1, %s984_s11  }
   0xc   : > { %p1062_p7 = por %p86_p5, %p85_p4  ;;  %s786_s23 = sshll.u32 %s992_s13, 8 }
   0xd   : > { %s1068_s21 = scalar_select %p70_p6, %s984_s11, %s72_s17  }
   0xe   : > { %s646_s24 = sshll.u32 %s149_s22, 8  ;;  %s159_s27 = scalar_lea.hbm %s1156_s1, %s786_s23 }
   0xf   : > { %s160_s28 = sshll.u32 %s159_s27, 4  ;;  %s153_s29 = scalar_lea.vmem [#allocation3], %s646_s24  ;;  %s161_s28 = int_to_ptr.hbm [resolvable:$true] %s160_s28 }
  0x10   : > { %s162_s30 = sshll.u32 %s153_s29, 4  ;;  %p826_p9 = pnand %p829_p8, %p1053_p3  ;;  %s163_s30 = int_to_ptr.vmem [resolvable:$true] %s162_s30 }
  0x11   : > { %p649_p10 = scmp.ge.s32.totalorder %s996_s14, 1  ;;  %p170_p11 = scmp.lt.s32.totalorder %s996_s14, 3 }
  0x12   : > { %s150_s3 = scalar_lea.sflag [#allocation4], %s149_s22  ;;  %s998_s4 = smov 64  }
  0x13   : > { %s999_s5 = smov 4   ;;  %p171_p12 = pnand %p649_p10, %p170_p11 }
  0x14   : > { %828 = dma.hbm_to_vmem [thread:$0]  (!%p826_p9), %s161_s28, 4096, %s163_s30, %s150_s3, %s998_s4, %s998_s4, %s999_s5  }
  0x15   : > { %174 = sbr.rel (%p171_p12) target bundleno = 225 (0xe1), region = 28  ;;  %s176_s6 = sand.u32 (!%p171_p12), 1, %s980_s10  }
  0x16   : > { %s650_s7 = sshll.u32 (!%p171_p12), %s176_s6, 8  ;;  %s177_s8 = scalar_lea.sflag (!%p171_p12), [#allocation4], %s176_s6 }
  0x17   : > { %s1080_s9 = scalar_lea.vmem (!%p171_p12), [#allocation3], %s650_s7 }
  0x1a   : > { %967 = dma.done.wait (%p1062_p7), %s177_s8, 4096  }
  0x1b   : > { %969 = vsyncadd (%p1062_p7), %s177_s8, 4294963200  ;;  %s651_s17 = sshll.u32 %s988_s12, 2  ;;  %p652_p0 = scmp.ne.s32.totalorder %s988_s12, 0 }
  0x1c   : > { %p208_p13 = scmp.lt.s32.totalorder %s651_s17, 7 }
  0x1d   : > { %218 = sbr.rel (%p652_p0) target bundleno = 36 (0x24), region = 36 }
  0x1e   : > { %s1168_s17 = smov (!%p208_p13, %s651_s17), 7 }
  0x1f   : > { %s212_s22 = scalar_lea.vmem %s1155_s0, %s1168_s17 }
  0x22   : > { %v1000_v0 = vmov 0.0  }
  0x23   : > { %219 = vst [vmem:[#allocation2] sm:$0x3] %v1000_v0 }
  0x24 PF: > { %v794_v1 = vld [vmem:[%s1080_s9 + $0x38] sm:$0xff]  ;;  %v793_v5 = vld [vmem:[%s1080_s9 + $0x30] sm:$0xff]  ;;  %v792_v9 = vld [vmem:[%s1080_s9 + $0x28] sm:$0xff]  ;;  %p781_p1 = scmp.ne.s32.totalorder %s988_s12, 1 }
  0x25   : > { %v802_v2 = vld [vmem:[%s1080_s9 + $0x78] sm:$0xff]  ;;  %488 = vmatpush.bf16.msra.mxu0 %v794_v1  ;;  %v801_v6 = vld [vmem:[%s1080_s9 + $0x70] sm:$0xff]  ;;  %v800_v10 = vld [vmem:[%s1080_s9 + $0x68] sm:$0xff] }
  0x26   : > { %v810_v3 = vld [vmem:[%s1080_s9 + $0xb8] sm:$0xff]  ;;  %501 = vmatpush.bf16.msra.mxu1 %v802_v2  ;;  %v809_v7 = vld [vmem:[%s1080_s9 + $0xb0] sm:$0xff]  ;;  %v808_v11 = vld [vmem:[%s1080_s9 + $0xa8] sm:$0xff] }
  0x27   : > { %v818_v4 = vld [vmem:[%s1080_s9 + $0xf8] sm:$0xff]  ;;  %514 = vmatpush.bf16.msra.mxu2 %v810_v3  ;;  %v817_v8 = vld [vmem:[%s1080_s9 + $0xf0] sm:$0xff]  ;;  %v816_v12 = vld [vmem:[%s1080_s9 + $0xe8] sm:$0xff] }
  0x28   : > { %527 = vmatpush.bf16.msra.mxu3 %v818_v4  ;;  %v791_v13 = vld [vmem:[%s1080_s9 + $0x20] sm:$0xff]  ;;  %v221_v15 = vld [vmem:[%s212_s22] sm:$0xf]  ;;  %v788_v26 = vld [vmem:[%s1080_s9 + $0x8] sm:$0xff] }
  0x29   : > { %489 = vmatpush.bf16.msra.mxu0 %v793_v5  ;;  %v799_v14 = vld [vmem:[%s1080_s9 + $0x60] sm:$0xff]  ;;  %287 = vst [vmem:[#allocation1] ss:$9 sm:$0xff] %v221_v15  ;;  %v790_v18 = vld [vmem:[%s1080_s9 + $0x18] sm:$0xff]  ;;  %v789_v22 = vld [vmem:[%s1080_s9 + $0x10] sm:$0xff] }
  0x2a   : > { %502 = vmatpush.bf16.msra.mxu1 %v801_v6  ;;  %v807_v16 = vld [vmem:[%s1080_s9 + $0xa0] sm:$0xff]  ;;  %v798_v19 = vld [vmem:[%s1080_s9 + $0x58] sm:$0xff]  ;;  %v797_v23 = vld [vmem:[%s1080_s9 + $0x50] sm:$0xff] }
  0x2b   : > { %515 = vmatpush.bf16.msra.mxu2 %v809_v7  ;;  %v815_v17 = vld [vmem:[%s1080_s9 + $0xe0] sm:$0xff]  ;;  %v806_v20 = vld [vmem:[%s1080_s9 + $0x98] sm:$0xff]  ;;  %v805_v24 = vld [vmem:[%s1080_s9 + $0x90] sm:$0xff] }
  0x2c   : > { %528 = vmatpush.bf16.msra.mxu3 %v817_v8  ;;  %v814_v21 = vld [vmem:[%s1080_s9 + $0xd8] sm:$0xff]  ;;  %v813_v25 = vld [vmem:[%s1080_s9 + $0xd0] sm:$0xff]  ;;  %v796_v27 = vld [vmem:[%s1080_s9 + $0x48] sm:$0xff] }
  0x2d   : > { %490 = vmatpush.bf16.msra.mxu0 %v792_v9  ;;  %v804_v28 = vld [vmem:[%s1080_s9 + $0x88] sm:$0xff]  ;;  %v787_v30 = vld [vmem:[%s1080_s9] sm:$0xff]  ;;  %v220_v46 = vld [vmem:[#allocation2] sm:$0x3] }
  0x2e   : > { %503 = vmatpush.bf16.msra.mxu1 %v800_v10  ;;  %v812_v29 = vld [vmem:[%s1080_s9 + $0xc8] sm:$0xff]  ;;  %v795_v31 = vld [vmem:[%s1080_s9 + $0x40] sm:$0xff] }
  0x2f   : > { %516 = vmatpush.bf16.msra.mxu2 %v808_v11  ;;  %v803_v32 = vld [vmem:[%s1080_s9 + $0x80] sm:$0xff] }
  0x30   : > { %529 = vmatpush.bf16.msra.mxu3 %v816_v12  ;;  %v811_v33 = vld [vmem:[%s1080_s9 + $0xc0] sm:$0xff]  ;;  %v288_v34 = vld [vmem:[#allocation1] sm:$0xff]  ;;  %v290_v36 = vld [vmem:[#allocation1 + $0x12] sm:$0xff] }
  0x31   : > { %491 = vmatpush.bf16.msra.mxu0 %v791_v13  ;;  %v289_v35 = vld [vmem:[#allocation1 + $0x9] sm:$0xff]  ;;  %v291_v37 = vld [vmem:[#allocation1 + $0x1b] sm:$0xff] }
  0x32   : > { %504 = vmatpush.bf16.msra.mxu1 %v799_v14 }
  0x33   : > { %517 = vmatpush.bf16.msra.mxu2 %v807_v16 }
  0x34   : > { %530 = vmatpush.bf16.msra.mxu3 %v815_v17 }
  0x35   : > { %492 = vmatpush.bf16.msra.mxu0 %v790_v18 }
  0x36   : > { %505 = vmatpush.bf16.msra.mxu1 %v798_v19 }
  0x37   : > { %518 = vmatpush.bf16.msra.mxu2 %v806_v20 }
  0x38   : > { %531 = vmatpush.bf16.msra.mxu3 %v814_v21 }
  0x39   : > { %493 = vmatpush.bf16.msra.mxu0 %v789_v22 }
  0x3a   : > { %506 = vmatpush.bf16.msra.mxu1 %v797_v23 }
  0x3b   : > { %519 = vmatpush.bf16.msra.mxu2 %v805_v24 }
  0x3c   : > { %532 = vmatpush.bf16.msra.mxu3 %v813_v25 }
  0x3d   : > { %494 = vmatpush.bf16.msra.mxu0 %v788_v26 }
  0x3e   : > { %507 = vmatpush.bf16.msra.mxu1 %v796_v27 }
  0x3f   : > { %520 = vmatpush.bf16.msra.mxu2 %v804_v28 }
  0x40   : > { %533 = vmatpush.bf16.msra.mxu3 %v812_v29 }
  0x41   : > { %495 = vmatpush.bf16.msra.mxu0 %v787_v30 }
  0x42   : > { %508 = vmatpush.bf16.msra.mxu1 %v795_v31 }
  0x43   : > { %521 = vmatpush.bf16.msra.mxu2 %v803_v32 }
  0x44   : > { %534 = vmatpush.bf16.msra.mxu3 %v811_v33  ;;  %496 = vmatmul.bf16.vlgmr.msra.gmra.mxu0 %v288_v34 }
  0x45   : > { %509 = vmatmul.bf16.vlgmr.msra.gmra.mxu1 %v289_v35 }
  0x46   : > { %522 = vmatmul.bf16.vlgmr.msra.gmra.mxu2 %v290_v36 }
  0x47   : > { %535 = vmatmul.bf16.vlgmr.msra.gmra.mxu3 %v291_v37 }
  0xc1   : > { %v497_v38 = vpop.f32.mrf.mxu0 }
  0xc2   : > { %v510_v39 = vpop.f32.mrf.mxu1 }
  0xc3   : > { %v511_v40 = vadd.f32 %v510_v39, %v497_v38 }
  0xc9   : > { %v523_v41 = vpop.f32.mrf.mxu2  ;;  %v499_v44 = vpop.f32.mrf.mxu0 }
  0xca   : > { %v536_v42 = vpop.f32.mrf.mxu3  ;;  %v524_v43 = vadd.f32 %v523_v41, %v511_v40  ;;  %v512_v45 = vpop.f32.mrf.mxu1 }
  0xcc   : > { %v537_v47 = vadd.f32 %v536_v42, %v524_v43 }
  0xce   : > { %v540_v48 = vadd.f32 %v537_v47, %v220_v46  ;;  %545 = sbr.rel (%p781_p1) target bundleno = 219 (0xdb), region = 40 }
  0xd0   : > { %541 = vst [vmem:[#allocation2] sm:$0x3] %v540_v48 }
  0xd1   : > { %v525_v49 = vpop.f32.mrf.mxu2 }
  0xd2   : > { %v538_v50 = vpop.f32.mrf.mxu3 }
  0xd7   : > { %v546_v51 = vld [vmem:[#allocation2] sm:$0x3] }
  0xd8   : > { %v547_v52 = vmul.f32 0.5, %v546_v51 }
  0xda   : > { %548 = vst [vmem:[#allocation6] sm:$0x3] %v547_v52 }
  0xdb PF: > { %p830_p2 = scmp.eq.s32.totalorder %s643_s15, 1  ;;  %s560_s26 = sshll.u32 %s1157_s2, 4  ;;  %s561_s26 = int_to_ptr.hbm [resolvable:$true] %s560_s26 }
  0xdc   : > { %s1001_s27 = smov [#allocation6]  }
  0xdd   : > { %s558_s28 = sshll.u32 %s1001_s27, 4  ;;  %s559_s28 = int_to_ptr.vmem [resolvable:$true] %s558_s28 }
  0xde   : > { %822 = dma.vmem_to_hbm [thread:$0]  (%p830_p2), %s559_s28, 32, %s561_s26, [#allocation5]  }
  0xdf   : > { %971 = dma.done.wait (%p830_p2), [#allocation5], 32  }
  0xe0   : > { %973 = vsyncadd (%p830_p2), [#allocation5], 4294967264 }
  0xe1 PF: > { %s16_s14 = sadd.s32 1, %s996_s14   ;;  %s1160_s9 = smov %s980_s10 }
  0xe2   : > { %p13_p3 = scmp.ge.s32.totalorder %s16_s14, 4   ;;  %s1161_s10 = smov %s984_s11 }
  0xe3   : > { %s1162_s11 = smov %s1068_s21  ;;  %s1163_s12 = smov %s992_s13 }
  0xe4   : > { %s1164_s13 = smov %s1166_s16  ;;  %15 = sbr.rel (!%p13_p3) target bundleno = 5 (0x5), region = 77 }
  0xe9   :  { %574 = vsyncpa [#allocation4], 1 }
  0xea   :  { %576 = vsyncpa [#allocation4 + $0x1], 1 }
  0xeb   :  { %577 = vsyncpa [#allocation5], 1 }
  0xec   :  { %579 = vsyncpa [#allocation5 + $0x1], 1 }

// kernel: snn_small_vgg_forward.4
= control target key start
LH: loop header
LB: loop body
LE: loop exit
PB: predicated region body
PF: predicated region fallthrough
CT: control target
= control target key end

     0   :  { %7 = vsyncpa [#allocation3], 0  ;;  %s4472_s9 = smov 0   ;;  %s4474_s10 = smov 0   ;;  %s6301_s0 = inlined_call_operand.vmem [shape: bf16[2,342,2], index: 0, kind: input, shape index: {}]   ;;  %s6302_s1 = inlined_call_operand.hbm [shape: bf16[9,2,64], index: 1, kind: input, shape index: {}]   ;;  %s6303_s2 = inlined_call_operand.vmem [shape: bf16[2,64,64], index: 2, kind: output, shape index: {}]  }
   0x1   :  { %s4476_s11 = smov 0  }
   0x2 LB: > { %s4063_s12 = sadd.s32 4294967295, %s4452_s11   ;;  %s25_s13 = sadd.s32 1, %s4448_s10  ;;  %s4452_s11 = sphi %s4476_s11, %s13_s11   ;;  %s4448_s10 = sphi %s4474_s10, %s6493_s10   ;;  %s4444_s9 = sphi %s4472_s9, %s6492_s9  }
   0x3   : > { %p27_p0 = scmp.ge.s32.totalorder %s25_s13, 2  ;;  %p4065_p1 = scmp.ge.s32.totalorder %s4452_s11, 1 }
   0x4   : > { %p110_p2 = scmp.lt.s32.totalorder %s4452_s11, 3  ;;  %p4350_p4 = scmp.eq.s32.totalorder %s4063_s12, 0 }
   0x5   : > { %s6495_s13 = smov (%p27_p0, %s25_s13), 0  ;;  %s122_s16 = sshll.u32 %s6302_s1, 4  ;;  %s123_s16 = int_to_ptr.hbm [resolvable:$true] %s122_s16 }
   0x6   : > { %p111_p3 = pnand %p4065_p1, %p110_p2  ;;  %s4454_s17 = smov [#allocation2]  }
   0x7   : > { %s124_s18 = sshll.u32 %s4454_s17, 4  ;;  %s4455_s19 = smov 16   ;;  %s125_s18 = int_to_ptr.vmem [resolvable:$true] %s124_s18 }
   0x8   : > { %p4346_p5 = pneg %p111_p3  ;;  %s4456_s20 = smov 1  }
   0x9   : > { %148 = sbr.rel (%p111_p3) target bundleno = 962 (0x3c2), region = 28 }
   0xa   : > { %p4347_p6 = pnand %p4350_p4, %p4346_p5 }
   0xc   : > { %4349 = dma.hbm_to_vmem [thread:$0]  (!%p4347_p6), %s123_s16, 144, %s125_s18, [#allocation3], %s4455_s19, %s4455_s19, %s4456_s20  }
   0xe   : > { %4439 = dma.done.wait (%p4350_p4), [#allocation3], 144  }
   0xf   : > { %4441 = vsyncadd (%p4350_p4), [#allocation3], 4294967152  ;;  %p174_p7 = scmp.lt.s32.totalorder %s4444_s9, 1  ;;  %vm529_vm0 = vcmask 1040384   ;;  %v231_v0 = vld [vmem:[#allocation2 + $0x1] sm:$0x1] }
  0x10   : > { %vm325_vm1 = vsmask.f32 7424  ;;  %v531_v3 = vsel %vm529_vm0, %v231_v0, 0  ;;  %v771_v6 = vld [vmem:[#allocation2 + $0x2] sm:$0x1]  ;;  %vm474_vm2 = vcmask 15360  }
  0x11   : > { %s6497_s9 = smov (!%p174_p7, %s4444_s9), 1  ;;  %4338 = vmatpush.bf16.msra.mxu1 %v531_v3  ;;  %4339 = vmatpush.bf16.msra.mxu2 %v531_v3  ;;  %v865_v10 = vsel %vm529_vm0, %v771_v6, 0  ;;  %v229_v16 = vld [vmem:[#allocation2] sm:$0x1]  ;;  %v1159_v21 = vld [vmem:[#allocation2 + $0x4] sm:$0x1] }
  0x12   : > { %s4341_s21 = smul.u32 172, %s6497_s9  ;;  %540 = vmatpush.bf16.msra.mxu0 %v531_v3  ;;  %4340 = vmatpush.bf16.msra.mxu3 %v531_v3  ;;  %v669_v25 = vsel %vm529_vm0, %v229_v16, 0  ;;  %v1301_v28 = vsel %vm529_vm0, %v1159_v21, 0  ;;  %v1003_v45 = vld [vmem:[#allocation2 + $0x3] sm:$0x1]  ;;  %vm772_vm3 = vcmask 1046528  }
  0x13   : > { %v1021_v54 = vsel %vm529_vm0, %v1003_v45, 0  ;;  %vm1160_vm4 = vsmask.f32 6400  ;;  %vm1828_vm5 = vsmask.f32 5376  ;;  %vm1440_vm6 = vcmask 1045504  }
  0x14   : > { %s4500_s24 = scalar_lea.vmem %s6301_s0, %s4341_s21  ;;  %vm2108_vm7 = vcmask 1044480   ;;  %vm2602_vm8 = vcmask 517120   ;;  %vm3499_vm9 = vcmask 523264   ;;  %vm3884_vm10 = vcmask 1041409   ;;  %s4309_s25 = sshll.u32 %s6497_s9, 5 }
  0x15   : > { %v4503_v1 = vld [vmem:[%s4500_s24 + $0x28] sm:$0xff]  ;;  %v4506_v2 = vld [vmem:[%s4500_s24 + $0x30] sm:$0xff]  ;;  %v4513_v5 = vld [vmem:[%s4500_s24 + $0x58] sm:$0xff]  ;;  %874 = vmatpush.bf16.msrb.mxu2 %v865_v10  ;;  %678 = vmatpush.bf16.msrb.mxu1 %v669_v25  ;;  %vm3886_vm11 = vcmask 1042434   ;;  %vm3888_vm12 = vcmask 1043459   ;;  %vm3890_vm13 = vcmask 1044484   ;;  %s5545_s28 = scalar_lea.vmem %s6303_s2, %s4309_s25 }
  0x16   : > { %v4510_v4 = vld [vmem:[%s4500_s24 + $0x50] sm:$0xff]  ;;  %v4516_v7 = vshll.u32 %v4503_v1, 16  ;;  %v4519_v8 = vshrl.u32 %v4503_v1, 16  ;;  %v4522_v9 = vshll.u32 %v4506_v2, 16  ;;  %v4526_v11 = vld [vmem:[%s4500_s24] sm:$0xff]  ;;  %v4529_v12 = vld [vmem:[%s4500_s24 + $0x8] sm:$0xff]  ;;  %1310 = vmatpush.bf16.msrb.mxu0 %v1301_v28  ;;  %1030 = vmatpush.bf16.msrb.mxu3 %v1021_v54 }
  0x17   : > { %v4532_v13 = vshll.u32 %v4510_v4, 16  ;;  %v4535_v14 = vshrl.u32 %v4510_v4, 16  ;;  %v4538_v15 = vshll.u32 %v4513_v5, 16  ;;  %v327_v19 = vshrl.u32 %v4526_v11, 16  ;;  %v4553_v29 = vld [vmem:[%s4500_s24 + $0x78] sm:$0xff]  ;;  %v4561_v32 = vld [vmem:[%s4500_s24 + $0x80] sm:$0xff] }
  0x18   : > { %6340 = vst [vmem:[#allocation5_spill] sm:$0xff] %v4516_v7  ;;  %v368_v17 = vrot.slane %v4516_v7, 1  ;;  %v376_v18 = vrot.slane %v4522_v9, 1  ;;  %v329_v20 = vshll.u32 %v4526_v11, 16  ;;  %v6304_v24 = vshll.u32 %v4529_v12, 16  ;;  %v4569_v37 = vld [vmem:[%s4500_s24 + $0x38] sm:$0xff] }
  0x19   : > { %6341 = vst [vmem:[#allocation6_spill] sm:$0xff] %v4519_v8  ;;  %v408_v22 = vrot.slane %v4532_v13, 1  ;;  %v416_v23 = vrot.slane %v4538_v15, 1  ;;  %v4572_v38 = vshll.u32 %v4553_v29, 16  ;;  %v4576_v39 = vld [vmem:[%s4500_s24 + $0x60] sm:$0xff]  ;;  %v4579_v40 = vshrl.u32 %v4553_v29, 16 }
  0x1a   : > { %6342 = vst [vmem:[#allocation7_spill] sm:$0xff] %v4522_v9  ;;  %v372_v26 = vor.u32 %v4519_v8, %v368_v17  ;;  %v331_v27 = vrot.slane %v329_v20, 1  ;;  %v336_v31 = vrot.slane %v6304_v24, 1  ;;  %v4582_v41 = vshll.u32 %v4561_v32, 16  ;;  %v4585_v42 = vld [vmem:[%s4500_s24 + $0x10] sm:$0xff]  ;;  %v4614_v57 = vld [vmem:[%s4500_s24 + $0x88] sm:$0xff] }
  0x1b   : > { %6343 = vst [vmem:[#allocation8_spill] sm:$0xff] %v4532_v13  ;;  %v412_v30 = vor.u32 %v4535_v14, %v408_v22  ;;  %v6306_v43 = vrot.slane %v4572_v38, 1  ;;  %v4590_v46 = vshrl.u32 %v4506_v2, 16  ;;  %v4593_v47 = vshll.u32 %v4569_v37, 16  ;;  %v4619_v60 = vld [vmem:[%s4500_s24 + $0x48] sm:$0xff]  ;;  %v4649_v25 = vld [vmem:[%s4500_s24 + $0x90] sm:$0xff]  }
  0x1c   : > { %6344 = vst [vmem:[#allocation9_spill] sm:$0xff] %v4535_v14  ;;  %v377_v33 = vsel %vm325_vm1, %v372_v26, %v376_v18  ;;  %v332_v34 = vor.u32 %v331_v27, %v327_v19  ;;  %v456_v44 = vrot.slane %v4582_v41, 1  ;;  %v4599_v49 = vshrl.u32 %v4513_v5, 16  ;;  %v4645_v21 = vld [vmem:[%s4500_s24 + $0x68] sm:$0xff]  ;;  %v4655_v27 = vld [vmem:[%s4500_s24 + $0x18] sm:$0xff] }
  0x1d   : > { %4150 = vmatmul.msk.bf16.vlgmr.msra.gmra.mxu1 %vm474_vm2, %v377_v33  ;;  %v417_v35 = vsel %vm325_vm1, %v412_v30, %v416_v23  ;;  %6345 = vst [vmem:[#allocation10_spill] sm:$0xff] %v4585_v42  ;;  %v452_v48 = vor.u32 %v4579_v40, %v6306_v43  ;;  %v4602_v50 = vshll.u32 %v4576_v39, 16  ;;  %v6305_v51 = vshrl.u32 %v4529_v12, 16  ;;  %v4715_v43 = vld [vmem:[%s4500_s24 + $0x70] sm:$0xff] }
  0x1e   : > { %4155 = vmatmul.msk.bf16.vlgmr.msra.gmra.mxu2 %vm474_vm2, %v417_v35  ;;  %v337_v36 = vsel %vm325_vm1, %v332_v34, %v336_v31  ;;  %6346 = vst [vmem:[#allocation11_spill] sm:$0xff] %v4590_v46  ;;  %v4606_v52 = vshll.u32 %v4585_v42, 16  ;;  %v380_v55 = vor.u32 %v4590_v46, %v376_v18  ;;  %v384_v56 = vrot.slane %v4593_v47, 1  ;;  %v4639_v18 = vld [vmem:[%s4500_s24 + $0x40] sm:$0xff] }
  0x1f   : > { %4145 = vmatmul.msk.bf16.vlgmr.msra.gmra.mxu0 %vm474_vm2, %v337_v36  ;;  %6347 = vst [vmem:[#allocation12_spill] sm:$0xff] %v4593_v47  ;;  %v457_v53 = vsel %vm325_vm1, %v452_v48, %v456_v44  ;;  %v420_v58 = vor.u32 %v4599_v49, %v416_v23  ;;  %v424_v59 = vrot.slane %v4602_v50, 1  ;;  %v340_v61 = vor.u32 %v6305_v51, %v336_v31 }
  0x20   : > { %6348 = vst [vmem:[#allocation13_spill] sm:$0xff] %v4606_v52  ;;  %4160 = vmatmul.msk.bf16.vlgmr.msra.gmra.mxu3 %vm474_vm2, %v457_v53  ;;  %v344_v62 = vrot.slane %v4606_v52, 1  ;;  %v385_v63 = vsel %vm325_vm1, %v380_v55, %v384_v56  ;;  %v4626_v0 = vshrl.u32 %v4561_v32, 16  ;;  %v4629_v3 = vshll.u32 %v4614_v57, 16 }
  0x21   : > { %v425_v6 = vsel %vm325_vm1, %v420_v58, %v424_v59  ;;  %v4633_v10 = vshll.u32 %v4619_v60, 16  ;;  %6351 = vst [vmem:[#allocation16_spill] sm:$0xff] %v4649_v25  ;;  %v4652_v26 = vshrl.u32 %v4619_v60, 16  ;;  %v4659_v30 = vshrl.u32 %v4569_v37, 16 }
  0x22   : > { %6349 = vst [vmem:[#allocation14_spill] sm:$0xff] %v4629_v3  ;;  %v345_v16 = vsel %vm325_vm1, %v340_v61, %v344_v62  ;;  %v460_v19 = vor.u32 %v4626_v0, %v456_v44  ;;  %v464_v20 = vrot.slane %v4629_v3, 1  ;;  %v4662_v31 = vshll.u32 %v4639_v18, 16  ;;  %v4673_v44 = vld [vmem:[%s4500_s24 + $0x20] sm:$0xff] }
  0x23   : > { %6350 = vst [vmem:[#allocation15_spill] sm:$0xff] %v4633_v10  ;;  %v400_v23 = vrot.slane %v4633_v10, 1  ;;  %v4330_v34 = vunpack.c.l.b16 %v4649_v25  ;;  %v4667_v35 = vshrl.u32 %v4576_v39, 16  ;;  %v4670_v36 = vshll.u32 %v4645_v21, 16 }
  0x24   : > { %6352 = vst [vmem:[#allocation17_spill] sm:$0xff] %v4652_v26  ;;  %v465_v33 = vsel %vm325_vm1, %v460_v19, %v464_v20  ;;  %v4681_v48 = vshrl.u32 %v4585_v42, 16  ;;  %v4684_v53 = vshll.u32 %v4655_v27, 16  ;;  %v388_v54 = vor.u32 %v4659_v30, %v384_v56 }
  0x25   : > { %6353 = vst [vmem:[#allocation18_spill] sm:$0xff] %v4655_v27  ;;  %v404_v28 = vor.u32 %v4652_v26, %v400_v23  ;;  %v392_v55 = vrot.slane %v4662_v31, 1  ;;  %v4689_v58 = vpack.c.b16 %v4330_v34, %v4330_v34  ;;  %v428_v61 = vor.u32 %v4667_v35, %v424_v59 }
  0x26   : > { %6354 = vst [vmem:[#allocation19_spill] sm:$0xff] %v4659_v30  ;;  %v4700_v56 = vshrl.u32 %v4614_v57, 16  ;;  %v4706_v34 = vshrl.u32 %v4673_v44, 16  ;;  %vm3892_vm14 = vcmask 1045509   ;;  %vm3894_vm15 = vcmask 1046534  }
  0x27   : > { %6355 = vst [vmem:[#allocation20_spill] sm:$0xff] %v4662_v31  ;;  %v4678_v45 = vsel %vm325_vm1, %v404_v28, %v408_v22  ;;  %v4694_v22 = vshll.u32 %v4673_v44, 16  ;;  %v393_v19 = vsel %vm325_vm1, %v388_v54, %v392_v55  ;;  %v470_v28 = vshll.u32 %v4689_v58, 16 }
  0x28   : > { %6356 = vst [vmem:[#allocation21_spill] sm:$0xff] %v4673_v44  ;;  %v468_v54 = vor.u32 %v4700_v56, %v464_v20  ;;  %v4731_v20 = vshrl.u32 %v4655_v27, 16 }
  0x29   : > { %6357 = vst [vmem:[#allocation22_spill] sm:$0xff] %v4684_v53  ;;  %v360_v59 = vrot.slane %v4694_v22, 1  ;;  %v472_v51 = vrot.slane %v470_v28, 1 }
  0x2a   : > { %6358 = vst [vmem:[#allocation23_spill] sm:$0xff] %v4689_v58  ;;  %v4721_v58 = vshrl.u32 %v4639_v18, 16 }
  0x2b   : > { %6359 = vst [vmem:[#allocation24_spill] sm:$0xff] %v4694_v22 }
  0x2c   : > { %6360 = vst [vmem:[#allocation25_spill] sm:$0xff] %v4700_v56  ;;  %v1671_v56 = vld [vmem:[#allocation2 + $0x6] sm:$0x1] }
  0x2d   : > { %4151 = vmatmul.msk.bf16.gmra.mxu1 %vm474_vm2, %v385_v63  ;;  %v432_v63 = vrot.slane %v4670_v36, 1  ;;  %6361 = vst [vmem:[#allocation26_spill] sm:$0xff] %v4706_v34 }
  0x2e   : > { %4156 = vmatmul.msk.bf16.gmra.mxu2 %vm474_vm2, %v425_v6  ;;  %v348_v6 = vor.u32 %v4681_v48, %v344_v62  ;;  %v364_v62 = vor.u32 %v4706_v34, %v360_v59  ;;  %6362 = vst [vmem:[#allocation27_spill] sm:$0xff] %v4721_v58 }
  0x2f   : > { %4146 = vmatmul.msk.bf16.gmra.mxu0 %vm474_vm2, %v345_v16  ;;  %v352_v16 = vrot.slane %v4684_v53, 1 }
  0x30   : > { %4161 = vmatmul.msk.bf16.gmra.mxu3 %vm474_vm2, %v465_v33  ;;  %v433_v33 = vsel %vm325_vm1, %v428_v61, %v432_v63  ;;  %v369_v61 = vsel %vm325_vm1, %v364_v62, %v368_v17 }
  0x31   : > { %v353_v24 = vsel %vm325_vm1, %v348_v6, %v352_v16  ;;  %v473_v6 = vsel %vm325_vm1, %v468_v54, %v472_v51  ;;  %v356_v62 = vor.u32 %v4731_v20, %v352_v16  ;;  %v1827_v16 = vld [vmem:[#allocation2 + $0x7] sm:$0x1] }
  0x33   : > { %v361_v3 = vsel %vm325_vm1, %v356_v62, %v360_v59 }
  0x3d   : > { %4152 = vmatmul.msk.bf16.gmra.mxu1 %vm474_vm2, %v393_v19  ;;  %v4725_v19 = vshrl.u32 %v4645_v21, 16 }
  0x3e   : > { %4157 = vmatmul.msk.bf16.gmra.mxu2 %vm474_vm2, %v433_v33  ;;  %v4728_v33 = vshll.u32 %v4715_v43, 16 }
  0x3f   : > { %4147 = vmatmul.msk.bf16.gmra.mxu0 %vm474_vm2, %v353_v24  ;;  %v396_v24 = vor.u32 %v4721_v58, %v392_v55  ;;  %v436_v17 = vor.u32 %v4725_v19, %v432_v63  ;;  %v776_v55 = vrot.slane %v4585_v42, 1  ;;  %v1689_v63 = vsel %vm529_vm0, %v1671_v56, 0 }
  0x40   : > { %4162 = vmatmul.msk.bf16.gmra.mxu3 %vm474_vm2, %v473_v6  ;;  %v440_v28 = vrot.slane %v4728_v33, 1  ;;  %v774_v6 = vrot.slane %v4529_v12, 1  ;;  %1698 = vmatpush.bf16.msra.mxu2 %v1689_v63 }
  0x41   : > { %v401_v51 = vsel %vm325_vm1, %v396_v24, %v400_v23  ;;  %v1439_v23 = vld [vmem:[#allocation2 + $0x5] sm:$0x1]  ;;  %v1969_v24 = vsel %vm529_vm0, %v1827_v16, 0  ;;  %v778_v16 = vrot.slane %v4655_v27, 1 }
  0x42   : > { %v441_v54 = vsel %vm325_vm1, %v436_v17, %v440_v28  ;;  %v1533_v59 = vsel %vm529_vm0, %v1439_v23, 0  ;;  %v2107_v17 = vld [vmem:[#allocation2 + $0x8] sm:$0x1]  ;;  %1978 = vmatpush.bf16.msra.mxu3 %v1969_v24  ;;  %v6364_v24 = vshrl.u32 %v4529_v12, 16 }
  0x43   : > { %1542 = vmatpush.bf16.msra.mxu1 %v1533_v59  ;;  %v2201_v62 = vsel %vm529_vm0, %v2107_v17, 0  ;;  %v779_v23 = vsel %vm772_vm3, %v776_v55, %v778_v16  ;;  %vm3896_vm0 = vcmask 1047559  }
  0x44   : > { %2210 = vmatpush.bf16.msra.mxu0 %v2201_v62  ;;  %v1161_v59 = vrot.slane %v6364_v24, 1  ;;  %v1164_v62 = vrot.slane %v4681_v48, 1  ;;  %v780_v24 = vrot.slane %v4673_v44, 1 }
  0x4d   : > { %4153 = vmatmul.msk.bf16.gmra.mxu1 %vm474_vm2, %v401_v51  ;;  %v777_v51 = vsel %vm772_vm3, %v774_v6, %v776_v55 }
  0x4e   : > { %4158 = vmatmul.msk.bf16.gmra.mxu2 %vm474_vm2, %v441_v54  ;;  %v6363_v54 = vrot.slane %v4572_v38, 1 }
  0x4f   : > { %4148 = vmatmul.msk.bf16.gmra.mxu0 %vm474_vm2, %v361_v3  ;;  %v4752_v3 = vshrl.u32 %v4715_v43, 16 }
  0x50   : > { %4199 = vmatmul.msk.bf16.vlgmr.msrb.gmra.mxu3 %vm474_vm2, %v777_v51 }
  0x51   : > { %v444_v56 = vor.u32 %v4752_v3, %v440_v28  ;;  %v6365_v28 = vshll.u32 %v4529_v12, 16 }
  0x53   : > { %v449_v63 = vsel %vm325_vm1, %v444_v56, %v6363_v54  ;;  %v1162_v17 = vrot.slane %v6365_v28, 2  ;;  %v1165_v56 = vrot.slane %v4606_v52, 2  ;;  %v781_v28 = vsel %vm772_vm3, %v778_v16, %v780_v24 }
  0x54   : > { %v1168_v52 = vrot.slane %v4731_v20, 1  ;;  %vm3963_vm1 = vcmask 519168  }
  0x55   : > { %v1163_v54 = vor.u32 %v1162_v17, %v1161_v59  ;;  %v1169_v59 = vrot.slane %v4684_v53, 2 }
  0x5d   : > { %4154 = vmatmul.msk.bf16.gmra.mxu1 %vm474_vm2, %v4678_v45  ;;  %v773_v45 = vrot.slane %v4526_v11, 1 }
  0x5e   : > { %4159 = vmatmul.msk.bf16.gmra.mxu2 %vm474_vm2, %v449_v63  ;;  %v1166_v63 = vor.u32 %v1165_v56, %v1164_v62  ;;  %v1172_v62 = vrot.slane %v4706_v34, 1  ;;  %v1173_v56 = vrot.slane %v4694_v22, 2 }
  0x5f   : > { %4149 = vmatmul.msk.bf16.gmra.mxu0 %vm474_vm2, %v369_v61  ;;  %v775_v61 = vsel %vm772_vm3, %v773_v45, %v774_v6  ;;  %v1170_v6 = vor.u32 %v1169_v59, %v1168_v52 }
  0x60   : > { %4200 = vmatmul.msk.bf16.gmra.mxu3 %vm474_vm2, %v779_v23  ;;  %v1167_v55 = vsel %vm1160_vm4, %v1163_v54, %v1166_v63  ;;  %v1174_v52 = vor.u32 %v1173_v56, %v1172_v62  ;;  %v1176_v54 = vrot.slane %v4519_v8, 1  ;;  %v1180_v56 = vrot.slane %v4590_v46, 1 }
  0x61   : > { %v1171_v17 = vsel %vm1160_vm4, %v1166_v63, %v1170_v6  ;;  %v1177_v63 = vrot.slane %v4516_v7, 2 }
  0x62   : > { %v1175_v45 = vsel %vm1160_vm4, %v1170_v6, %v1174_v52 }
  0x6d   : > { %4163 = vmatmul.msk.bf16.vlgmr.msrb.gmra.mxu1 %vm474_vm2, %v4526_v11  ;;  %v782_v11 = vrot.slane %v4503_v1, 1 }
  0x6e   : > { %4181 = vmatmul.msk.bf16.vlgmr.msrb.gmra.mxu2 %vm474_vm2, %v775_v61  ;;  %v1178_v61 = vor.u32 %v1177_v63, %v1176_v54 }
  0x6f   : > { %4217 = vmatmul.msk.bf16.vlgmr.msrb.gmra.mxu0 %vm474_vm2, %v1167_v55  ;;  %v783_v16 = vsel %vm772_vm3, %v780_v24, %v782_v11 }
  0x70   : > { %4201 = vmatmul.msk.bf16.gmra.mxu3 %vm474_vm2, %v781_v28  ;;  %v1179_v59 = vsel %vm1160_vm4, %v1174_v52, %v1178_v61  ;;  %v1181_v52 = vrot.slane %v4522_v9, 2 }
  0x7d   : > { %4164 = vmatmul.msk.bf16.gmra.mxu1 %vm474_vm2, %v4529_v12  ;;  %v784_v12 = vrot.slane %v4506_v2, 1 }
  0x7e   : > { %4182 = vmatmul.msk.bf16.gmra.mxu2 %vm474_vm2, %v777_v51 }
  0x7f   : > { %4218 = vmatmul.msk.bf16.gmra.mxu0 %vm474_vm2, %v1171_v17  ;;  %v785_v51 = vsel %vm772_vm3, %v782_v11, %v784_v12 }
  0x80   : > { %4202 = vmatmul.msk.bf16.gmra.mxu3 %vm474_vm2, %v783_v16 }
  0x8d   : > { %4165 = vmatmul.msk.bf16.gmra.mxu1 %vm474_vm2, %v4585_v42 }
  0x8e   : > { %4183 = vmatmul.msk.bf16.gmra.mxu2 %vm474_vm2, %v779_v23  ;;  %v786_v23 = vrot.slane %v4569_v37, 1 }
  0x8f   : > { %4219 = vmatmul.msk.bf16.gmra.mxu0 %vm474_vm2, %v1175_v45  ;;  %v1182_v45 = vor.u32 %v1181_v52, %v1180_v56 }
  0x90   : > { %4203 = vmatmul.msk.bf16.gmra.mxu3 %vm474_vm2, %v785_v51  ;;  %v787_v11 = vsel %vm772_vm3, %v784_v12, %v786_v23  ;;  %v788_v12 = vrot.slane %v4639_v18, 1 }
  0x92   : > { %v789_v9 = vsel %vm772_vm3, %v786_v23, %v788_v12  ;;  %v790_v23 = vrot.slane %v4619_v60, 1 }
  0x9a   : > { %v4804_v55 = vpop.f32.mrf.mxu1 }
  0x9c   : > { %v4806_v24 = vpop.f32.mrf.mxu0 }
  0x9d   : > { %4166 = vmatmul.msk.bf16.gmra.mxu1 %vm474_vm2, %v4655_v27 }
  0x9e   : > { %4184 = vmatmul.msk.bf16.gmra.mxu2 %vm474_vm2, %v781_v28 }
  0x9f   : > { %4220 = vmatmul.msk.bf16.gmra.mxu0 %vm474_vm2, %v1179_v59 }
  0xa0   : > { %4204 = vmatmul.msk.bf16.gmra.mxu3 %vm474_vm2, %v787_v11 }
  0xa1   : > { %v4814_v6 = vpop.f32.mrf.mxu2 }
  0xa2   : > { %6366 = vst [vmem:[#allocation28_spill] sm:$0xff] %v4814_v6  ;;  %v4816_v17 = vpop.f32.mrf.mxu1  ;;  %v1183_v6 = vsel %vm1160_vm4, %v1178_v61, %v1182_v45  ;;  %v1184_v61 = vrot.slane %v4659_v30, 1 }
  0xa3   : > { %v4824_v28 = vpop.f32.mrf.mxu3 }
  0xa4   : > { %v4819_v62 = vpop.f32.mrf.mxu0  ;;  %6367 = vst [vmem:[#allocation29_spill] sm:$0xff] %v4824_v28 }
  0xa9   : > { %v4826_v54 = vpop.f32.mrf.mxu2 }
  0xaa   : > { %6368 = vst [vmem:[#allocation30_spill] sm:$0xff] %v4826_v54  ;;  %v4828_v63 = vpop.f32.mrf.mxu1  ;;  %v1185_v54 = vrot.slane %v4593_v47, 2  ;;  %v791_v47 = vsel %vm772_vm3, %v788_v12, %v790_v23  ;;  %v792_v12 = vrot.slane %v4510_v4, 1 }
  0xab   : > { %v4838_v56 = vpop.f32.mrf.mxu3 }
  0xac   : > { %v4830_v59 = vpop.f32.mrf.mxu0  ;;  %6369 = vst [vmem:[#allocation31_spill] sm:$0xff] %v4838_v56 }
  0xad   : > { %4167 = vmatmul.msk.bf16.gmra.mxu1 %vm474_vm2, %v4673_v44 }
  0xae   : > { %4185 = vmatmul.msk.bf16.gmra.mxu2 %vm474_vm2, %v783_v16  ;;  %v1186_v16 = vor.u32 %v1185_v54, %v1184_v61 }
  0xaf   : > { %4221 = vmatmul.msk.bf16.gmra.mxu0 %vm474_vm2, %v1183_v6 }
  0xb0   : > { %4205 = vmatmul.msk.bf16.gmra.mxu3 %vm474_vm2, %v789_v9  ;;  %v1187_v7 = vsel %vm1160_vm4, %v1182_v45, %v1186_v16  ;;  %v1188_v45 = vrot.slane %v4721_v58, 1 }
  0xb1   : > { %v4840_v52 = vpop.f32.mrf.mxu2 }
  0xb2   : > { %6370 = vst [vmem:[#allocation32_spill] sm:$0xff] %v4840_v52  ;;  %v4842_v28 = vpop.f32.mrf.mxu1 }
  0xb3   : > { %v4850_v44 = vpop.f32.mrf.mxu3 }
  0xb4   : > { %v4845_v46 = vpop.f32.mrf.mxu0  ;;  %6371 = vst [vmem:[#allocation33_spill] sm:$0xff] %v4850_v44 }
  0xb9   : > { %v4852_v6 = vpop.f32.mrf.mxu2 }
  0xba   : > { %6372 = vst [vmem:[#allocation34_spill] sm:$0xff] %v4852_v6  ;;  %v4854_v56 = vpop.f32.mrf.mxu1 }
  0xbb   : > { %v4864_v54 = vpop.f32.mrf.mxu3 }
  0xbc   : > { %v4856_v52 = vpop.f32.mrf.mxu0  ;;  %6373 = vst [vmem:[#allocation35_spill] sm:$0xff] %v4864_v54 }
  0xbd   : > { %4168 = vmatmul.msk.bf16.gmra.mxu1 %vm474_vm2, %v4503_v1  ;;  %v1189_v1 = vrot.slane %v4662_v31, 2  ;;  %v793_v31 = vsel %vm772_vm3, %v790_v23, %v792_v12  ;;  %v794_v23 = vrot.slane %v4513_v5, 1 }
  0xbe   : > { %4186 = vmatmul.msk.bf16.gmra.mxu2 %vm474_vm2, %v785_v51 }
  0xbf   : > { %4222 = vmatmul.msk.bf16.gmra.mxu0 %vm474_vm2, %v1187_v7  ;;  %v1190_v51 = vor.u32 %v1189_v1, %v1188_v45 }
  0xc0   : > { %4206 = vmatmul.msk.bf16.gmra.mxu3 %vm474_vm2, %v791_v47 }
  0xc1   : > { %v4866_v61 = vpop.f32.mrf.mxu2  ;;  %v1191_v8 = vsel %vm1160_vm4, %v1186_v16, %v1190_v51  ;;  %v1192_v16 = vrot.slane %v4652_v26, 1  ;;  %v4919_v26 = vsel %vm772_vm3, %v792_v12, %v794_v23  ;;  %v796_v12 = vrot.slane %v4576_v39, 1 }
  0xc2   : > { %6374 = vst [vmem:[#allocation36_spill] sm:$0xff] %v4866_v61  ;;  %v4868_v44 = vpop.f32.mrf.mxu1 }
  0xc3   : > { %v4876_v6 = vpop.f32.mrf.mxu3 }
  0xc4   : > { %v4871_v30 = vpop.f32.mrf.mxu0  ;;  %6375 = vst [vmem:[#allocation37_spill] sm:$0xff] %v4876_v6 }
  0xc9   : > { %v4878_v7 = vpop.f32.mrf.mxu2 }
  0xca   : > { %6376 = vst [vmem:[#allocation38_spill] sm:$0xff] %v4878_v7  ;;  %v4880_v54 = vpop.f32.mrf.mxu1 }
  0xcb   : > { %6377 = vst [vmem:[#allocation39_spill] sm:$0xff] %v4880_v54  ;;  %v4890_v45 = vpop.f32.mrf.mxu3 }
  0xcc   : > { %v4882_v61 = vpop.f32.mrf.mxu0  ;;  %6378 = vst [vmem:[#allocation40_spill] sm:$0xff] %v4890_v45 }
  0xcd   : > { %4169 = vmatmul.msk.bf16.gmra.mxu1 %vm474_vm2, %v4506_v2  ;;  %v1193_v2 = vrot.slane %v4633_v10, 2 }
  0xce   : > { %4187 = vmatmul.msk.bf16.gmra.mxu2 %vm474_vm2, %v787_v11 }
  0xcf   : > { %4223 = vmatmul.msk.bf16.gmra.mxu0 %vm474_vm2, %v1191_v8  ;;  %v1194_v11 = vor.u32 %v1193_v2, %v1192_v16 }
  0xd0   : > { %4207 = vmatmul.msk.bf16.gmra.mxu3 %vm474_vm2, %v793_v31 }
  0xd1   : > { %v4892_v1 = vpop.f32.mrf.mxu2 }
  0xd2   : > { %6379 = vst [vmem:[#allocation41_spill] sm:$0xff] %v4892_v1  ;;  %v4894_v6 = vpop.f32.mrf.mxu1  ;;  %v1195_v1 = vsel %vm1160_vm4, %v1190_v51, %v1194_v11  ;;  %v1196_v51 = vrot.slane %v4535_v14, 1 }
  0xd3   : > { %6380 = vst [vmem:[#allocation42_spill] sm:$0xff] %v4894_v6  ;;  %v1032_v7 = vpop.f32.mrf.mxu3  ;;  %v1200_v6 = vrot.slane %v4599_v49, 1 }
  0xd4   : > { %v4897_v58 = vpop.f32.mrf.mxu0 }
  0xd9   : > { %v4902_v27 = vpop.f32.mrf.mxu2 }
  0xda   : > { %6381 = vst [vmem:[#allocation43_spill] sm:$0xff] %v4902_v27  ;;  %v4904_v8 = vpop.f32.mrf.mxu1 }
  0xdb   : > { %6382 = vst [vmem:[#allocation44_spill] sm:$0xff] %v4904_v8  ;;  %v1034_v10 = vpop.f32.mrf.mxu3 }
  0xdc   : > { %v4906_v45 = vpop.f32.mrf.mxu0 }
  0xdd   : > { %4170 = vmatmul.msk.bf16.gmra.mxu1 %vm474_vm2, %v4569_v37  ;;  %v1197_v37 = vrot.slane %v4532_v13, 2 }
  0xde   : > { %4188 = vmatmul.msk.bf16.gmra.mxu2 %vm474_vm2, %v789_v9 }
  0xdf   : > { %4224 = vmatmul.msk.bf16.gmra.mxu0 %vm474_vm2, %v1195_v1  ;;  %v1198_v9 = vor.u32 %v1197_v37, %v1196_v51 }
  0xe0   : > { %4208 = vmatmul.msk.bf16.gmra.mxu3 %vm474_vm2, %v4919_v26 }
  0xe1   : > { %v4914_v16 = vpop.f32.mrf.mxu2 }
  0xe2   : > { %6383 = vst [vmem:[#allocation45_spill] sm:$0xff] %v4914_v16  ;;  %v4916_v2 = vpop.f32.mrf.mxu1 }
  0xe3   : > { %6384 = vst [vmem:[#allocation46_spill] sm:$0xff] %v4916_v2  ;;  %v1037_v42 = vpop.f32.mrf.mxu3  ;;  %v1199_v2 = vsel %vm1160_vm4, %v1194_v11, %v1198_v9 }
  0xe4   : > { %v4921_v27 = vpop.f32.mrf.mxu0 }
  0xe9   : > { %v4927_v1 = vpop.f32.mrf.mxu2 }
  0xea   : > { %6385 = vst [vmem:[#allocation47_spill] sm:$0xff] %v4927_v1  ;;  %v680_v8 = vpop.f32.mrf.mxu1  ;;  %v4937_v1 = vsel %vm772_vm3, %v794_v23, %v796_v12 }
  0xeb   : > { %v681_v13 = vadd.f32 %v680_v8, %v4806_v24  ;;  %v1039_v14 = vpop.f32.mrf.mxu3 }
  0xec   : > { %v1312_v16 = vpop.f32.mrf.mxu0 }
  0xed   : > { %4171 = vmatmul.msk.bf16.gmra.mxu1 %vm474_vm2, %v4639_v18  ;;  %v1201_v18 = vrot.slane %v4538_v15, 2 }
  0xee   : > { %4189 = vmatmul.msk.bf16.gmra.mxu2 %vm474_vm2, %v791_v47 }
  0xef   : > { %4225 = vmatmul.msk.bf16.gmra.mxu0 %vm474_vm2, %v1199_v2  ;;  %v1202_v8 = vor.u32 %v1201_v18, %v1200_v6 }
  0xf0   : > { %4209 = vmatmul.msk.bf16.gmra.mxu3 %vm474_vm2, %v4937_v1 }
  0xf1   : > { %v876_v51 = vpop.f32.mrf.mxu2 }
  0xf2   : > { %v966_v37 = vadd.f32 %v876_v51, %v681_v13  ;;  %v682_v22 = vpop.f32.mrf.mxu1 }
  0xf3   : > { %v683_v24 = vadd.f32 %v682_v22, %v4819_v62  ;;  %v1042_v2 = vpop.f32.mrf.mxu3 }
  0xf4   : > { %v1122_v34 = vadd.f32 %v1032_v7, %v966_v37  ;;  %v1314_v11 = vpop.f32.mrf.mxu0  ;;  %v1203_v7 = vsel %vm1160_vm4, %v1198_v9, %v1202_v8  ;;  %v798_v37 = vrot.slane %v4645_v21, 1 }
  0xf6   : > { %v4943_v47 = vadd.f32 %v1312_v16, %v1122_v34  ;;  %v4956_v18 = vsel %vm772_vm3, %v796_v12, %v798_v37 }
  0xf9   : > { %v878_v13 = vpop.f32.mrf.mxu2 }
  0xfa   : > { %v967_v51 = vadd.f32 %v878_v13, %v683_v24  ;;  %v685_v54 = vpop.f32.mrf.mxu1 }
  0xfb   : > { %v686_v22 = vadd.f32 %v685_v54, %v4830_v59  ;;  %v1044_v62 = vpop.f32.mrf.mxu3 }
  0xfc   : > { %v1123_v23 = vadd.f32 %v1034_v10, %v967_v51  ;;  %v1317_v53 = vpop.f32.mrf.mxu0 }
  0xfd   : > { %4172 = vmatmul.msk.bf16.gmra.mxu1 %vm474_vm2, %v4619_v60  ;;  %v1204_v60 = vrot.slane %v4667_v35, 1 }
  0xfe   : > { %4190 = vmatmul.msk.bf16.gmra.mxu2 %vm474_vm2, %v793_v31  ;;  %v4951_v34 = vadd.f32 %v1314_v11, %v1123_v23  ;;  %v1205_v31 = vrot.slane %v4602_v50, 2 }
  0xff   : > { %4226 = vmatmul.msk.bf16.gmra.mxu0 %vm474_vm2, %v1203_v7 }
 0x100   : > { %4210 = vmatmul.msk.bf16.gmra.mxu3 %vm474_vm2, %v4956_v18  ;;  %v1206_v54 = vor.u32 %v1205_v31, %v1204_v60  ;;  %v1208_v31 = vrot.slane %v4725_v19, 1 }
 0x101   : > { %v881_v6 = vpop.f32.mrf.mxu2 }
 0x102   : > { %v968_v16 = vadd.f32 %v881_v6, %v686_v22  ;;  %v687_v10 = vpop.f32.mrf.mxu1 }
 0x103   : > { %v688_v59 = vadd.f32 %v687_v10, %v4845_v46  ;;  %v1047_v13 = vpop.f32.mrf.mxu3 }
 0x104   : > { %v1124_v9 = vadd.f32 %v1037_v42, %v968_v16  ;;  %v1319_v24 = vpop.f32.mrf.mxu0  ;;  %v1207_v42 = vsel %vm1160_vm4, %v1202_v8, %v1206_v54 }
 0x106   : > { %v4962_v11 = vadd.f32 %v1317_v53, %v1124_v9  ;;  %v800_v53 = vrot.slane %v4715_v43, 1 }
 0x108   : > { %v4976_v8 = vsel %vm772_vm3, %v798_v37, %v800_v53 }
 0x109   : > { %v883_v51 = vpop.f32.mrf.mxu2 }
 0x10a   : > { %v969_v23 = vadd.f32 %v883_v51, %v688_v59  ;;  %v690_v7 = vpop.f32.mrf.mxu1 }
 0x10b   : > { %v691_v46 = vadd.f32 %v690_v7, %v4856_v52  ;;  %v1049_v16 = vpop.f32.mrf.mxu3 }
 0x10c   : > { %v1125_v12 = vadd.f32 %v1039_v14, %v969_v23  ;;  %v1322_v22 = vpop.f32.mrf.mxu0 }
 0x10d   : > { %4173 = vmatmul.msk.bf16.gmra.mxu1 %vm474_vm2, %v4510_v4 }
 0x10e   : > { %4191 = vmatmul.msk.bf16.gmra.mxu2 %vm474_vm2, %v4919_v26  ;;  %v4971_v6 = vadd.f32 %v1319_v24, %v1125_v12  ;;  %v1209_v26 = vrot.slane %v4670_v36, 2 }
 0x10f   : > { %4227 = vmatmul.msk.bf16.gmra.mxu0 %vm474_vm2, %v1207_v42 }
 0x110   : > { %4211 = vmatmul.msk.bf16.gmra.mxu3 %vm474_vm2, %v4976_v8  ;;  %v1210_v59 = vor.u32 %v1209_v26, %v1208_v31  ;;  %v1212_v31 = vrot.slane %v4752_v3, 1 }
 0x111   : > { %v886_v10 = vpop.f32.mrf.mxu2 }
 0x112   : > { %v970_v14 = vadd.f32 %v886_v10, %v691_v46  ;;  %v692_v9 = vpop.f32.mrf.mxu1 }
 0x113   : > { %v693_v52 = vadd.f32 %v692_v9, %v4871_v30  ;;  %v1052_v51 = vpop.f32.mrf.mxu3 }
 0x114   : > { %v1126_v60 = vadd.f32 %v1042_v2, %v970_v14  ;;  %v1324_v4 = vpop.f32.mrf.mxu0  ;;  %v1211_v2 = vsel %vm1160_vm4, %v1206_v54, %v1210_v59 }
 0x116   : > { %v4982_v24 = vadd.f32 %v1322_v22, %v1126_v60  ;;  %v802_v22 = vrot.slane %v4553_v29, 1 }
 0x118   : > { %v4996_v54 = vsel %vm772_vm3, %v800_v53, %v802_v22 }
 0x119   : > { %v888_v23 = vpop.f32.mrf.mxu2 }
 0x11a   : > { %v971_v7 = vadd.f32 %v888_v23, %v693_v52  ;;  %v695_v12 = vpop.f32.mrf.mxu1 }
 0x11b   : > { %v696_v30 = vadd.f32 %v695_v12, %v4882_v61  ;;  %v1054_v10 = vpop.f32.mrf.mxu3 }
 0x11c   : > { %v1127_v37 = vadd.f32 %v1044_v62, %v971_v7  ;;  %v1327_v42 = vpop.f32.mrf.mxu0 }
 0x11d   : > { %4174 = vmatmul.msk.bf16.gmra.mxu1 %vm474_vm2, %v4513_v5 }
 0x11e   : > { %4192 = vmatmul.msk.bf16.gmra.mxu2 %vm474_vm2, %v4937_v1  ;;  %v4991_v46 = vadd.f32 %v1324_v4, %v1127_v37  ;;  %v1213_v1 = vrot.slane %v4728_v33, 2 }
 0x11f   : > { %4228 = vmatmul.msk.bf16.gmra.mxu0 %vm474_vm2, %v1211_v2 }
 0x120   : > { %4212 = vmatmul.msk.bf16.gmra.mxu3 %vm474_vm2, %v4996_v54  ;;  %v1214_v26 = vor.u32 %v1213_v1, %v1212_v31 }
 0x121   : > { %v891_v14 = vpop.f32.mrf.mxu2 }
 0x122   : > { %v972_v62 = vadd.f32 %v891_v14, %v696_v30  ;;  %v697_v9 = vpop.f32.mrf.mxu1 }
 0x123   : > { %v698_v61 = vadd.f32 %v697_v9, %v4897_v58  ;;  %v1057_v52 = vpop.f32.mrf.mxu3 }
 0x124   : > { %v1128_v60 = vadd.f32 %v1047_v13, %v972_v62  ;;  %v1329_v5 = vpop.f32.mrf.mxu0  ;;  %v1215_v13 = vsel %vm1160_vm4, %v1210_v59, %v1214_v26 }
 0x126   : > { %v5002_v4 = vadd.f32 %v1327_v42, %v1128_v60  ;;  %v804_v42 = vrot.slane %v4561_v32, 1  ;;  %v1216_v60 = vrot.slane %v4579_v40, 1 }
 0x128   : > { %v5016_v59 = vsel %vm772_vm3, %v802_v22, %v804_v42 }
 0x129   : > { %v893_v23 = vpop.f32.mrf.mxu2 }
 0x12a   : > { %v973_v7 = vadd.f32 %v893_v23, %v698_v61  ;;  %v700_v12 = vpop.f32.mrf.mxu1 }
 0x12b   : > { %v701_v58 = vadd.f32 %v700_v12, %v4906_v45  ;;  %v1059_v30 = vpop.f32.mrf.mxu3 }
 0x12c   : > { %v1129_v53 = vadd.f32 %v1049_v16, %v973_v7  ;;  %v1332_v37 = vpop.f32.mrf.mxu0 }
 0x12d   : > { %4175 = vmatmul.msk.bf16.gmra.mxu1 %vm474_vm2, %v4576_v39 }
 0x12e   : > { %4193 = vmatmul.msk.bf16.gmra.mxu2 %vm474_vm2, %v4956_v18  ;;  %v5011_v2 = vadd.f32 %v1329_v5, %v1129_v53  ;;  %v1217_v18 = vrot.slane %v4572_v38, 2  ;;  %v5031_v53 = vrot.slane %v4614_v57, 1 }
 0x12f   : > { %4229 = vmatmul.msk.bf16.gmra.mxu0 %vm474_vm2, %v1215_v13 }
 0x130   : > { %4213 = vmatmul.msk.bf16.gmra.mxu3 %vm474_vm2, %v5016_v59  ;;  %v1218_v31 = vor.u32 %v1217_v18, %v1216_v60 }
 0x131   : > { %v896_v14 = vpop.f32.mrf.mxu2 }
 0x132   : > { %v974_v16 = vadd.f32 %v896_v14, %v701_v58  ;;  %v702_v62 = vpop.f32.mrf.mxu1 }
 0x133   : > { %v703_v45 = vadd.f32 %v702_v62, %v4921_v27  ;;  %v1062_v1 = vpop.f32.mrf.mxu3  ;;  %v1221_v62 = vrot.slane %v4582_v41, 2 }
 0x134   : > { %v1130_v9 = vadd.f32 %v1052_v51, %v974_v16  ;;  %v1334_v39 = vpop.f32.mrf.mxu0  ;;  %v1219_v51 = vsel %vm1160_vm4, %v1214_v26, %v1218_v31  ;;  %v5039_v26 = vsel %vm772_vm3, %v804_v42, %v5031_v53 }
 0x136   : > { %v5022_v5 = vadd.f32 %v1332_v37, %v1130_v9 }
 0x139   : > { %v898_v61 = vpop.f32.mrf.mxu2 }
 0x13a   : > { %v975_v23 = vadd.f32 %v898_v61, %v703_v45  ;;  %v705_v7 = vpop.f32.mrf.mxu1 }
 0x13b   : > { %v706_v27 = vadd.f32 %v705_v7, %v4804_v55  ;;  %v1064_v13 = vpop.f32.mrf.mxu3 }
 0x13c   : > { %v1131_v22 = vadd.f32 %v1054_v10, %v975_v23  ;;  %v1337_v12 = vpop.f32.mrf.mxu0 }
 0x13d   : > { %4176 = vmatmul.msk.bf16.gmra.mxu1 %vm474_vm2, %v4645_v21 }
 0x13e   : > { %4194 = vmatmul.msk.bf16.gmra.mxu2 %vm474_vm2, %v4976_v8  ;;  %v5033_v37 = vadd.f32 %v1334_v39, %v1131_v22  ;;  %v1220_v8 = vrot.slane %v4626_v0, 1 }
 0x13f   : > { %4230 = vmatmul.msk.bf16.gmra.mxu0 %vm474_vm2, %v1219_v51 }
 0x140   : > { %4214 = vmatmul.msk.bf16.gmra.mxu3 %vm474_vm2, %v5039_v26  ;;  %v1222_v55 = vor.u32 %v1221_v62, %v1220_v8 }
 0x141   : > { %v901_v10 = vpop.f32.mrf.mxu2 }
 0x142   : > { %v976_v58 = vadd.f32 %v901_v10, %v706_v27  ;;  %v707_v14 = vpop.f32.mrf.mxu1  ;;  %v1223_v23 = vsel %vm1160_vm4, %v1218_v31, %v1222_v55  ;;  %v4337_v31 = vld [vmem:[%s4500_s24 + $0x98] sm:$0xff]  }
 0x143   : > { %v708_v9 = vadd.f32 %v707_v14, %v4816_v17  ;;  %v1067_v39 = vpop.f32.mrf.mxu3  ;;  %v1010_v17 = vrot.slane %v4649_v25, 1  ;;  %v6386_v14 = vld [vmem:[#allocation25_spill] sm:$0xff]  ;;  %v4334_v62 = vunpack.c.l.b16 %v4337_v31 }
 0x144   : > { %v1132_v21 = vadd.f32 %v1057_v52, %v976_v58  ;;  %v1339_v16 = vpop.f32.mrf.mxu0 }
 0x146   : > { %v5046_v61 = vadd.f32 %v1337_v12, %v1132_v21  ;;  %v6387_v21 = vld [vmem:[#allocation14_spill] sm:$0xff] }
 0x147   : > { %v1225_v8 = vrot.slane %v6387_v21, 2 }
 0x149   : > { %v903_v60 = vpop.f32.mrf.mxu2 }
 0x14a   : > { %v977_v18 = vadd.f32 %v903_v60, %v708_v9  ;;  %v710_v45 = vpop.f32.mrf.mxu1 }
 0x14b   : > { %v711_v7 = vadd.f32 %v710_v45, %v4828_v63  ;;  %v1069_v22 = vpop.f32.mrf.mxu3 }
 0x14c   : > { %v1133_v42 = vadd.f32 %v1059_v30, %v977_v18  ;;  %v1342_v52 = vpop.f32.mrf.mxu0  ;;  %v1011_v30 = vsel %vm772_vm3, %v5031_v53, %v1010_v17 }
 0x14d   : > { %4177 = vmatmul.msk.bf16.gmra.mxu1 %vm474_vm2, %v4715_v43 }
 0x14e   : > { %4195 = vmatmul.msk.bf16.gmra.mxu2 %vm474_vm2, %v4996_v54  ;;  %v5059_v10 = vadd.f32 %v1339_v16, %v1133_v42  ;;  %v1224_v54 = vrot.slane %v6386_v14, 1 }
 0x14f   : > { %4231 = vmatmul.msk.bf16.gmra.mxu0 %vm474_vm2, %v1223_v23 }
 0x150   : > { %4215 = vmatmul.msk.bf16.gmra.mxu3 %vm474_vm2, %v1011_v30  ;;  %v1226_v9 = vor.u32 %v1225_v8, %v1224_v54 }
 0x151   : > { %v906_v51 = vpop.f32.mrf.mxu2 }
 0x152   : > { %v978_v12 = vadd.f32 %v906_v51, %v711_v7  ;;  %v712_v27 = vpop.f32.mrf.mxu1  ;;  %v5065_v7 = vpack.c.b16 %v4334_v62, %v4334_v62 }
 0x153   : > { %v713_v63 = vadd.f32 %v712_v27, %v4842_v28  ;;  %v1072_v60 = vpop.f32.mrf.mxu3  ;;  %v6334_v27 = vshll.u32 %v4649_v25, 16 }
 0x154   : > { %v1134_v43 = vadd.f32 %v1062_v1, %v978_v12  ;;  %v1344_v58 = vpop.f32.mrf.mxu0  ;;  %6388 = vst [vmem:[#allocation25_spill] sm:$0xff] %v5065_v7  ;;  %v1227_v1 = vsel %vm1160_vm4, %v1222_v55, %v1226_v9  ;;  %v1012_v51 = vrot.slane %v5065_v7, 1  ;;  %v6333_v12 = vshrl.u32 %v4649_v25, 16 }
 0x155   : > { %v1234_v62 = vrot.slane %v6334_v27, 2 }
 0x156   : > { %v1013_v54 = vsel %vm772_vm3, %v1010_v17, %v1012_v51  ;;  %v1829_v17 = vrot.slane %v4681_v48, 2  ;;  %v6389_v51 = vld [vmem:[#allocation13_spill] sm:$0xff] }
 0x159   : > { %v908_v18 = vpop.f32.mrf.mxu2 }
 0x15a   : > { %v979_v45 = vadd.f32 %v908_v18, %v713_v63  ;;  %v715_v23 = vpop.f32.mrf.mxu1 }
 0x15b   : > { %v716_v28 = vadd.f32 %v715_v23, %v4854_v56  ;;  %v5085_v56 = vadd.f32 %v1342_v52, %v1134_v43 }
 0x15c   : > { %v1135_v16 = vadd.f32 %v1064_v13, %v979_v45  ;;  %v1347_v42 = vpop.f32.mrf.mxu0  ;;  %v1074_v13 = vpop.f32.mrf.mxu3 }
 0x15d   : > { %4178 = vmatmul.msk.bf16.gmra.mxu1 %vm474_vm2, %v4553_v29 }
 0x15e   : > { %4196 = vmatmul.msk.bf16.gmra.mxu2 %vm474_vm2, %v5016_v59  ;;  %v1231_v59 = vrot.slane %v6333_v12, 1  ;;  %v5099_v43 = vadd.f32 %v1344_v58, %v1135_v16 }
 0x15f   : > { %4232 = vmatmul.msk.bf16.gmra.mxu0 %vm474_vm2, %v1227_v1 }
 0x160   : > { %4216 = vmatmul.msk.bf16.gmra.mxu3 %vm474_vm2, %v1013_v54  ;;  %v1235_v18 = vor.u32 %v1234_v62, %v1231_v59  ;;  %6391 = vst [vmem:[#allocation14_spill] sm:$0xff] %v5099_v43  ;;  %v1241_v54 = vshll.u32 %v5065_v7, 16 }
 0x161   : > { %v911_v30 = vpop.f32.mrf.mxu2 }
 0x162   : > { %v980_v31 = vadd.f32 %v911_v30, %v716_v28  ;;  %v717_v55 = vpop.f32.mrf.mxu1  ;;  %v1830_v28 = vrot.slane %v6389_v51, 3  ;;  %v1832_v30 = vrot.slane %v4731_v20, 2  ;;  %v1236_v52 = vsel %vm1160_vm4, %v1226_v9, %v1235_v18  ;;  %v6392_v20 = vld [vmem:[#allocation39_spill] sm:$0xff] }
 0x163   : > { %v718_v63 = vadd.f32 %v717_v55, %v4868_v44  ;;  %v1243_v16 = vrot.slane %v1241_v54, 2 }
 0x164   : > { %v1136_v29 = vadd.f32 %v1067_v39, %v980_v31  ;;  %v5078_v8 = vpop.f32.mrf.mxu0  ;;  %v1077_v45 = vpop.f32.mrf.mxu3  ;;  %v6390_v31 = vld [vmem:[#allocation22_spill] sm:$0xff]  ;;  %v1831_v44 = vor.u32 %v1830_v28, %v1829_v17 }
 0x165   : > { %v1833_v12 = vrot.slane %v6390_v31, 3 }
 0x167   : > { %v1834_v48 = vor.u32 %v1833_v12, %v1832_v30  ;;  %v6393_v12 = vld [vmem:[#allocation23_spill] sm:$0xff] }
 0x168   : > { %v808_v17 = vrot.slane %v6393_v12, 1 }
 0x169   : > { %v913_v23 = vpop.f32.mrf.mxu2 }
 0x16a   : > { %v981_v39 = vadd.f32 %v913_v23, %v718_v63  ;;  %v720_v1 = vpop.f32.mrf.mxu1  ;;  %v1835_v63 = vsel %vm1828_vm5, %v1831_v44, %v1834_v48 }
 0x16b   : > { %v721_v55 = vadd.f32 %v720_v1, %v6392_v20  ;;  %v6395_v1 = vld [vmem:[#allocation42_spill] sm:$0xff] }
 0x16c   : > { %v1137_v27 = vadd.f32 %v1069_v22, %v981_v39  ;;  %v5092_v25 = vpop.f32.mrf.mxu0  ;;  %v1238_v22 = vshrl.u32 %v5065_v7, 16  ;;  %v1079_v9 = vpop.f32.mrf.mxu3  ;;  %v5110_v39 = vadd.f32 %v1347_v42, %v1136_v29  ;;  %v6410_v7 = vld [vmem:[#allocation7_spill] sm:$0xff] }
 0x16d   : > { %4179 = vmatmul.msk.bf16.gmra.mxu1 %vm474_vm2, %v4561_v32 }
 0x16e   : > { %4197 = vmatmul.msk.bf16.gmra.mxu2 %vm474_vm2, %v5039_v26  ;;  %v1240_v58 = vrot.slane %v1238_v22, 1  ;;  %6394 = vst [vmem:[#allocation13_spill] sm:$0xff] %v5110_v39  ;;  %v809_v22 = vsel %vm772_vm3, %v5031_v53, %v808_v17 }
 0x16f   : > { %4233 = vmatmul.msk.bf16.gmra.mxu0 %vm474_vm2, %v1236_v52 }
 0x170   : > { %4271 = vmatmul.msk.bf16.vlgmr.msra.gmra.mxu3 %vm474_vm2, %v1835_v63  ;;  %v1244_v28 = vor.u32 %v1243_v16, %v1240_v58 }
 0x171   : > { %v916_v59 = vpop.f32.mrf.mxu2 }
 0x172   : > { %v982_v62 = vadd.f32 %v916_v59, %v721_v55  ;;  %v722_v32 = vpop.f32.mrf.mxu1  ;;  %v6396_v55 = vld [vmem:[#allocation26_spill] sm:$0xff]  ;;  %v1245_v42 = vsel %vm1160_vm4, %v1235_v18, %v1244_v28 }
 0x173   : > { %v723_v51 = vadd.f32 %v722_v32, %v6395_v1  ;;  %v1836_v44 = vrot.slane %v6396_v55, 2  ;;  %v6398_v32 = vld [vmem:[#allocation44_spill] sm:$0xff] }
 0x174   : > { %v1138_v26 = vadd.f32 %v1072_v60, %v982_v62  ;;  %v5106_v23 = vpop.f32.mrf.mxu0  ;;  %v1082_v30 = vpop.f32.mrf.mxu3  ;;  %v6397_v60 = vld [vmem:[#allocation24_spill] sm:$0xff] }
 0x175   : > { %v1837_v59 = vrot.slane %v6397_v60, 3 }
 0x177   : > { %v1838_v29 = vor.u32 %v1837_v59, %v1836_v44  ;;  %v4380_v44 = vld [vmem:[%s4500_s24 + $0x10] sm:$0xff] }
 0x178   : > { %v2109_v60 = vrot.slane %v4380_v44, 3 }
 0x179   : > { %v918_v31 = vpop.f32.mrf.mxu2  ;;  %v1839_v12 = vsel %vm1828_vm5, %v1834_v48, %v1838_v29 }
 0x17a   : > { %v983_v52 = vadd.f32 %v918_v31, %v723_v51  ;;  %v725_v20 = vpop.f32.mrf.mxu1  ;;  %v6399_v51 = vld [vmem:[#allocation10_spill] sm:$0xff] }
 0x17b   : > { %v726_v63 = vadd.f32 %v725_v20, %v6398_v32  ;;  %v1442_v28 = vrot.slane %v6399_v51, 2  ;;  %v6400_v31 = vld [vmem:[#allocation18_spill] sm:$0xff] }
 0x17c   : > { %v5117_v54 = vadd.f32 %v1074_v13, %v983_v52  ;;  %v5119_v62 = vpop.f32.mrf.mxu0  ;;  %v1084_v58 = vpop.f32.mrf.mxu3  ;;  %v1444_v52 = vrot.slane %v6400_v31, 2  ;;  %v6401_v20 = vld [vmem:[#allocation46_spill] sm:$0xff]  ;;  %v2110_v59 = vrot.slane %v6400_v31, 3 }
 0x17d   : > { %4180 = vmatmul.msk.bf16.gmra.mxu1 %vm474_vm2, %v4614_v57  ;;  %v4379_v57 = vld [vmem:[%s4500_s24 + $0x8] sm:$0xff] }
 0x17e   : > { %4198 = vmatmul.msk.bf16.gmra.mxu2 %vm474_vm2, %v809_v22  ;;  %v1441_v1 = vrot.slane %v4379_v57, 2  ;;  %v2111_v31 = vsel %vm2108_vm7, %v2109_v60, %v2110_v59 }
 0x17f   : > { %4234 = vmatmul.msk.bf16.gmra.mxu0 %vm474_vm2, %v1245_v42 }
 0x180   : > { %4272 = vmatmul.msk.bf16.gmra.mxu3 %vm474_vm2, %v1839_v12  ;;  %v6404_v12 = vld [vmem:[#allocation5_spill] sm:$0xff] }
 0x181   : > { %v921_v53 = vpop.f32.mrf.mxu2  ;;  %v1841_v57 = vrot.slane %v6404_v12, 3  ;;  %v6408_v12 = vld [vmem:[#allocation30_spill] sm:$0xff] }
 0x182   : > { %v984_v13 = vadd.f32 %v921_v53, %v726_v63  ;;  %v727_v16 = vpop.f32.mrf.mxu1  ;;  %v1443_v63 = vsel %vm1440_vm6, %v1441_v1, %v1442_v28  ;;  %v6403_v53 = vld [vmem:[#allocation6_spill] sm:$0xff] }
 0x183   : > { %v728_v55 = vadd.f32 %v727_v16, %v6401_v20  ;;  %v1445_v16 = vsel %vm1440_vm6, %v1442_v28, %v1444_v52 }
 0x184   : > { %v5128_v17 = vadd.f32 %v1077_v45, %v984_v13  ;;  %v5130_v18 = vpop.f32.mrf.mxu0  ;;  %v1087_v48 = vpop.f32.mrf.mxu3  ;;  %v5140_v45 = vadd.f32 %v5078_v8, %v1137_v27  ;;  %v1840_v13 = vrot.slane %v6403_v53, 2  ;;  %v6405_v8 = vld [vmem:[#allocation28_spill] sm:$0xff] }
 0x186   : > { %6402 = vst [vmem:[#allocation22_spill] sm:$0xff] %v5140_v45  ;;  %v1842_v27 = vor.u32 %v1841_v57, %v1840_v13  ;;  %v6414_v45 = vld [vmem:[#allocation19_spill] sm:$0xff] }
 0x189   : > { %v923_v22 = vpop.f32.mrf.mxu2 }
 0x18a   : > { %v985_v42 = vadd.f32 %v923_v22, %v728_v55  ;;  %v730_v32 = vpop.f32.mrf.mxu1  ;;  %v5156_v22 = vadd.f32 %v5092_v25, %v1138_v26 }
 0x18b   : > { %v731_v1 = vadd.f32 %v730_v32, %v6405_v8 }
 0x18c   : > { %v5146_v51 = vadd.f32 %v1079_v9, %v985_v42  ;;  %v5148_v20 = vpop.f32.mrf.mxu0  ;;  %v1089_v55 = vpop.f32.mrf.mxu3  ;;  %6406 = vst [vmem:[#allocation39_spill] sm:$0xff] %v5156_v22  ;;  %v1843_v42 = vsel %vm1828_vm5, %v1838_v29, %v1842_v27  ;;  %v1845_v29 = vrot.slane %v6410_v7, 3  ;;  %v6412_v7 = vld [vmem:[#allocation32_spill] sm:$0xff] }
 0x18d   : > { %4235 = vmatmul.msk.bf16.vlgmr.msra.gmra.mxu1 %vm474_vm2, %v1443_v63  ;;  %v6407_v63 = vld [vmem:[#allocation21_spill] sm:$0xff] }
 0x18e   : > { %4253 = vmatmul.msk.bf16.vlgmr.msra.gmra.mxu2 %vm474_vm2, %v1445_v16  ;;  %v1446_v13 = vrot.slane %v6407_v63, 2  ;;  %v2112_v32 = vrot.slane %v6407_v63, 3 }
 0x18f   : > { %4289 = vmatmul.msk.bf16.vlgmr.msra.gmra.mxu0 %vm474_vm2, %v2111_v31 }
 0x190   : > { %4273 = vmatmul.msk.bf16.gmra.mxu3 %vm474_vm2, %v1843_v42  ;;  %v2113_v63 = vsel %vm2108_vm7, %v2110_v59, %v2112_v32  ;;  %v4381_v59 = vld [vmem:[%s4500_s24 + $0x28] sm:$0xff] }
 0x191   : > { %v926_v44 = vpop.f32.mrf.mxu2 }
 0x192   : > { %v986_v9 = vadd.f32 %v926_v44, %v731_v1  ;;  %v732_v28 = vpop.f32.mrf.mxu1  ;;  %v6409_v1 = vld [vmem:[#allocation11_spill] sm:$0xff] }
 0x193   : > { %v733_v57 = vadd.f32 %v732_v28, %v6408_v12  ;;  %v1844_v44 = vrot.slane %v6409_v1, 2 }
 0x194   : > { %v5159_v53 = vadd.f32 %v1082_v30, %v986_v9  ;;  %v5161_v60 = vpop.f32.mrf.mxu0  ;;  %v1092_v31 = vpop.f32.mrf.mxu3  ;;  %v1447_v30 = vsel %vm1440_vm6, %v1444_v52, %v1446_v13  ;;  %v5172_v9 = vadd.f32 %v5106_v23, %v5117_v54 }
 0x195   : > { %v1846_v12 = vor.u32 %v1845_v29, %v1844_v44  ;;  %v2114_v29 = vrot.slane %v4381_v59, 3 }
 0x196   : > { %6411 = vst [vmem:[#allocation23_spill] sm:$0xff] %v5172_v9  ;;  %v6413_v9 = vld [vmem:[#allocation34_spill] sm:$0xff] }
 0x199   : > { %v928_v8 = vpop.f32.mrf.mxu2 }
 0x19a   : > { %v987_v25 = vadd.f32 %v928_v8, %v733_v57  ;;  %v735_v26 = vpop.f32.mrf.mxu1 }
 0x19b   : > { %v736_v52 = vadd.f32 %v735_v26, %v6412_v7 }
 0x19c   : > { %v5174_v42 = vadd.f32 %v1084_v58, %v987_v25  ;;  %v5176_v28 = vpop.f32.mrf.mxu0  ;;  %v1094_v57 = vpop.f32.mrf.mxu3  ;;  %v1847_v58 = vsel %vm1828_vm5, %v1842_v27, %v1846_v12 }
 0x19d   : > { %4236 = vmatmul.msk.bf16.gmra.mxu1 %vm474_vm2, %v1445_v16  ;;  %v1448_v16 = vrot.slane %v4381_v59, 2 }
 0x19e   : > { %4254 = vmatmul.msk.bf16.gmra.mxu2 %vm474_vm2, %v1447_v30 }
 0x19f   : > { %4290 = vmatmul.msk.bf16.gmra.mxu0 %vm474_vm2, %v2113_v63  ;;  %v1449_v27 = vsel %vm1440_vm6, %v1446_v13, %v1448_v16 }
 0x1a0   : > { %4274 = vmatmul.msk.bf16.gmra.mxu3 %vm474_vm2, %v1847_v58 }
 0x1a1   : > { %v931_v8 = vpop.f32.mrf.mxu2 }
 0x1a2   : > { %v988_v23 = vadd.f32 %v931_v8, %v736_v52  ;;  %v737_v54 = vpop.f32.mrf.mxu1  ;;  %v1848_v52 = vrot.slane %v6414_v45, 2  ;;  %v6415_v8 = vld [vmem:[#allocation12_spill] sm:$0xff] }
 0x1a3   : > { %v738_v44 = vadd.f32 %v737_v54, %v6413_v9  ;;  %v1849_v39 = vrot.slane %v6415_v8, 3  ;;  %v2115_v9 = vsel %vm2108_vm7, %v2112_v32, %v2114_v29  ;;  %v6417_v54 = vld [vmem:[#allocation36_spill] sm:$0xff]  ;;  %v4382_v32 = vld [vmem:[%s4500_s24 + $0x30] sm:$0xff] }
 0x1a4   : > { %v5184_v25 = vadd.f32 %v1087_v48, %v988_v23  ;;  %v5186_v1 = vpop.f32.mrf.mxu0  ;;  %v1097_v22 = vpop.f32.mrf.mxu3  ;;  %v5195_v48 = vadd.f32 %v5119_v62, %v5128_v17  ;;  %v2116_v8 = vrot.slane %v4382_v32, 3 }
 0x1a5   : > { %v1850_v45 = vor.u32 %v1849_v39, %v1848_v52  ;;  %v5216_v39 = vadd.f32 %v5130_v18, %v5146_v51  ;;  %v6419_v52 = vld [vmem:[#allocation38_spill] sm:$0xff] }
 0x1a6   : > { %6416 = vst [vmem:[#allocation42_spill] sm:$0xff] %v5195_v48  ;;  %v2117_v18 = vsel %vm2108_vm7, %v2114_v29, %v2116_v8 }
 0x1a7   : > { %6418 = vst [vmem:[#allocation26_spill] sm:$0xff] %v5216_v39 }
 0x1a9   : > { %v933_v63 = vpop.f32.mrf.mxu2 }
 0x1aa   : > { %v989_v26 = vadd.f32 %v933_v63, %v738_v44  ;;  %v740_v7 = vpop.f32.mrf.mxu1 }
 0x1ab   : > { %v741_v59 = vadd.f32 %v740_v7, %v6417_v54 }
 0x1ac   : > { %v5198_v23 = vadd.f32 %v1089_v55, %v989_v26  ;;  %v5200_v58 = vpop.f32.mrf.mxu0  ;;  %v1851_v55 = vsel %vm1828_vm5, %v1846_v12, %v1850_v45  ;;  %v1099_v13 = vpop.f32.mrf.mxu3  ;;  %v6420_v12 = vld [vmem:[#allocation27_spill] sm:$0xff] }
 0x1ad   : > { %4237 = vmatmul.msk.bf16.gmra.mxu1 %vm474_vm2, %v1447_v30  ;;  %v1450_v30 = vrot.slane %v4382_v32, 2  ;;  %v6422_v32 = vld [vmem:[#allocation41_spill] sm:$0xff] }
 0x1ae   : > { %4255 = vmatmul.msk.bf16.gmra.mxu2 %vm474_vm2, %v1449_v27 }
 0x1af   : > { %4291 = vmatmul.msk.bf16.gmra.mxu0 %vm474_vm2, %v2115_v9  ;;  %v1451_v48 = vsel %vm1440_vm6, %v1448_v16, %v1450_v30  ;;  %v5233_v16 = vadd.f32 %v5148_v20, %v5159_v53  ;;  %v5245_v20 = vadd.f32 %v5161_v60, %v5174_v42  ;;  %v6428_v42 = vld [vmem:[#allocation45_spill] sm:$0xff] }
 0x1b0   : > { %4275 = vmatmul.msk.bf16.gmra.mxu3 %vm474_vm2, %v1851_v55 }
 0x1b1   : > { %v936_v62 = vpop.f32.mrf.mxu2  ;;  %6423 = vst [vmem:[#allocation24_spill] sm:$0xff] %v5233_v16 }
 0x1b2   : > { %v990_v17 = vadd.f32 %v936_v62, %v741_v59  ;;  %v742_v44 = vpop.f32.mrf.mxu1  ;;  %v1852_v62 = vrot.slane %v6420_v12, 2  ;;  %v4383_v12 = vld [vmem:[%s4500_s24 + $0x38] sm:$0xff]  ;;  %6425 = vst [vmem:[#allocation44_spill] sm:$0xff] %v5245_v20 }
 0x1b3   : > { %v743_v7 = vadd.f32 %v742_v44, %v6419_v52 }
 0x1b4   : > { %v5208_v63 = vadd.f32 %v1092_v31, %v990_v17  ;;  %v5210_v26 = vpop.f32.mrf.mxu0  ;;  %v6421_v31 = vld [vmem:[#allocation20_spill] sm:$0xff]  ;;  %v1102_v51 = vpop.f32.mrf.mxu3 }
 0x1b5   : > { %v1853_v17 = vrot.slane %v6421_v31, 3 }
 0x1b7   : > { %v1854_v44 = vor.u32 %v1853_v17, %v1852_v62  ;;  %v1452_v62 = vrot.slane %v4383_v12, 2  ;;  %v6424_v17 = vld [vmem:[#allocation43_spill] sm:$0xff] }
 0x1b9   : > { %v938_v9 = vpop.f32.mrf.mxu2  ;;  %v1453_v16 = vsel %vm1440_vm6, %v1450_v30, %v1452_v62 }
 0x1ba   : > { %v991_v54 = vadd.f32 %v938_v9, %v743_v7  ;;  %v745_v59 = vpop.f32.mrf.mxu1 }
 0x1bb   : > { %v746_v52 = vadd.f32 %v745_v59, %v6422_v32 }
 0x1bc   : > { %v5222_v43 = vadd.f32 %v1094_v57, %v991_v54  ;;  %v5224_v55 = vpop.f32.mrf.mxu0  ;;  %v1855_v54 = vsel %vm1828_vm5, %v1850_v45, %v1854_v44  ;;  %v1104_v31 = vpop.f32.mrf.mxu3  ;;  %v6426_v45 = vld [vmem:[#allocation17_spill] sm:$0xff] }
 0x1bd   : > { %4238 = vmatmul.msk.bf16.gmra.mxu1 %vm474_vm2, %v1449_v27 }
 0x1be   : > { %4256 = vmatmul.msk.bf16.gmra.mxu2 %vm474_vm2, %v1451_v48 }
 0x1bf   : > { %4292 = vmatmul.msk.bf16.gmra.mxu0 %vm474_vm2, %v2117_v18  ;;  %v2118_v18 = vrot.slane %v4383_v12, 3 }
 0x1c0   : > { %4276 = vmatmul.msk.bf16.gmra.mxu3 %vm474_vm2, %v1855_v54 }
 0x1c1   : > { %v941_v57 = vpop.f32.mrf.mxu2 }
 0x1c2   : > { %v992_v7 = vadd.f32 %v941_v57, %v746_v52  ;;  %v747_v9 = vpop.f32.mrf.mxu1  ;;  %v6427_v57 = vld [vmem:[#allocation15_spill] sm:$0xff] }
 0x1c3   : > { %v748_v59 = vadd.f32 %v747_v9, %v6424_v17  ;;  %v2119_v9 = vsel %vm2108_vm7, %v2116_v8, %v2118_v18 }
 0x1c4   : > { %v5236_v29 = vadd.f32 %v1097_v22, %v992_v7  ;;  %v5238_v27 = vpop.f32.mrf.mxu0  ;;  %v1856_v22 = vrot.slane %v6426_v45, 2  ;;  %v1857_v7 = vrot.slane %v6427_v57, 3  ;;  %v4384_v45 = vld [vmem:[%s4500_s24 + $0x40] sm:$0xff] }
 0x1c5   : > { %v6430_v57 = vld [vmem:[#allocation47_spill] sm:$0xff] }
 0x1c6   : > { %v1858_v60 = vor.u32 %v1857_v7, %v1856_v22  ;;  %v1454_v22 = vrot.slane %v4384_v45, 2  ;;  %v2120_v7 = vrot.slane %v4384_v45, 3  ;;  %v6435_v45 = vld [vmem:[#allocation29_spill] sm:$0xff] }
 0x1c9   : > { %v943_v32 = vpop.f32.mrf.mxu2 }
 0x1ca   : > { %v993_v53 = vadd.f32 %v943_v32, %v748_v59  ;;  %v750_v52 = vpop.f32.mrf.mxu1  ;;  %v1107_v59 = vpop.f32.mrf.mxu3 }
 0x1cb   : > { %v751_v12 = vadd.f32 %v750_v52, %v6428_v42 }
 0x1cc   : > { %v5250_v54 = vadd.f32 %v1099_v13, %v993_v53  ;;  %v5252_v39 = vpop.f32.mrf.mxu0  ;;  %v5261_v13 = vadd.f32 %v5176_v28, %v5184_v25  ;;  %v1859_v53 = vsel %vm1828_vm5, %v1854_v44, %v1858_v60  ;;  %v6431_v28 = vld [vmem:[#allocation9_spill] sm:$0xff]  ;;  %v1455_v44 = vsel %vm1440_vm6, %v1452_v62, %v1454_v22 }
 0x1cd   : > { %4239 = vmatmul.msk.bf16.gmra.mxu1 %vm474_vm2, %v1451_v48  ;;  %v1860_v25 = vrot.slane %v6431_v28, 2 }
 0x1ce   : > { %4257 = vmatmul.msk.bf16.gmra.mxu2 %vm474_vm2, %v1453_v16 }
 0x1cf   : > { %4293 = vmatmul.msk.bf16.gmra.mxu0 %vm474_vm2, %v2119_v9 }
 0x1d0   : > { %4277 = vmatmul.msk.bf16.gmra.mxu3 %vm474_vm2, %v1859_v53  ;;  %v2121_v53 = vsel %vm2108_vm7, %v2118_v18, %v2120_v7 }
 0x1d1   : > { %v946_v17 = vpop.f32.mrf.mxu2 }
 0x1d2   : > { %v994_v30 = vadd.f32 %v946_v17, %v751_v12  ;;  %v752_v32 = vpop.f32.mrf.mxu1  ;;  %v6432_v12 = vld [vmem:[#allocation8_spill] sm:$0xff] }
 0x1d3   : > { %v753_v52 = vadd.f32 %v752_v32, %v6430_v57  ;;  %v1861_v17 = vrot.slane %v6432_v12, 3 }
 0x1d4   : > { %v5264_v8 = vadd.f32 %v1102_v51, %v994_v30  ;;  %v5266_v48 = vpop.f32.mrf.mxu0  ;;  %v1109_v51 = vpop.f32.mrf.mxu3 }
 0x1d5   : > { %6429 = vst [vmem:[#allocation10_spill] sm:$0xff] %v5266_v48  ;;  %v1862_v32 = vor.u32 %v1861_v17, %v1860_v25 }
 0x1d9   : > { %v948_v9 = vpop.f32.mrf.mxu2 }
 0x1da   : > { %v995_v42 = vadd.f32 %v948_v9, %v753_v52  ;;  %v755_v20 = vpop.f32.mrf.mxu1 }
 0x1db   : > { %v756_v57 = vadd.f32 %v755_v20, %v6435_v45  ;;  %v1864_v45 = vrot.slane %v4599_v49, 2 }
 0x1dc   : > { %v5274_v30 = vadd.f32 %v1104_v31, %v995_v42  ;;  %v5276_v48 = vpop.f32.mrf.mxu0  ;;  %v1863_v31 = vsel %vm1828_vm5, %v1858_v60, %v1862_v32  ;;  %v1112_v12 = vpop.f32.mrf.mxu3 }
 0x1dd   : > { %6434 = vst [vmem:[#allocation46_spill] sm:$0xff] %v5276_v48  ;;  %4240 = vmatmul.msk.bf16.gmra.mxu1 %vm474_vm2, %v1453_v16  ;;  %v4385_v16 = vld [vmem:[%s4500_s24 + $0x48] sm:$0xff]  ;;  %v6438_v48 = vld [vmem:[#allocation31_spill] sm:$0xff] }
 0x1de   : > { %6433 = vst [vmem:[#allocation18_spill] sm:$0xff] %v5274_v30  ;;  %4258 = vmatmul.msk.bf16.gmra.mxu2 %vm474_vm2, %v1455_v44  ;;  %v1456_v18 = vrot.slane %v4385_v16, 2  ;;  %v2122_v17 = vrot.slane %v4385_v16, 3  ;;  %v4386_v16 = vld [vmem:[%s4500_s24 + $0x50] sm:$0xff] }
 0x1df   : > { %4294 = vmatmul.msk.bf16.gmra.mxu0 %vm474_vm2, %v2121_v53 }
 0x1e0   : > { %4278 = vmatmul.msk.bf16.gmra.mxu3 %vm474_vm2, %v1863_v31  ;;  %v1457_v60 = vsel %vm1440_vm6, %v1454_v22, %v1456_v18  ;;  %v6441_v22 = vld [vmem:[#allocation33_spill] sm:$0xff] }
 0x1e1   : > { %v951_v52 = vpop.f32.mrf.mxu2 }
 0x1e2   : > { %v996_v9 = vadd.f32 %v951_v52, %v756_v57  ;;  %v757_v62 = vpop.f32.mrf.mxu1  ;;  %v1865_v57 = vrot.slane %v4538_v15, 3 }
 0x1e3   : > { %v758_v25 = vadd.f32 %v757_v62, %v6438_v48  ;;  %v2123_v48 = vsel %vm2108_vm7, %v2120_v7, %v2122_v17 }
 0x1e4   : > { %v5284_v42 = vadd.f32 %v1107_v59, %v996_v9  ;;  %v5286_v28 = vpop.f32.mrf.mxu0  ;;  %v5296_v59 = vadd.f32 %v5186_v1, %v5198_v23  ;;  %v1866_v49 = vor.u32 %v1865_v57, %v1864_v45  ;;  %v1114_v15 = vpop.f32.mrf.mxu3 }
 0x1e5   : > { %6437 = vst [vmem:[#allocation5_spill] sm:$0xff] %v5286_v28 }
 0x1e6   : > { %6436 = vst [vmem:[#allocation6_spill] sm:$0xff] %v5284_v42 }
 0x1e9   : > { %v953_v53 = vpop.f32.mrf.mxu2 }
 0x1ea   : > { %v997_v30 = vadd.f32 %v953_v53, %v758_v25  ;;  %v760_v20 = vpop.f32.mrf.mxu1  ;;  %v1458_v25 = vrot.slane %v4386_v16, 2  ;;  %v6444_v53 = vld [vmem:[#allocation35_spill] sm:$0xff] }
 0x1eb   : > { %v761_v62 = vadd.f32 %v760_v20, %v6441_v22  ;;  %v2124_v20 = vrot.slane %v4386_v16, 3 }
 0x1ec   : > { %v5298_v52 = vadd.f32 %v1109_v51, %v997_v30  ;;  %v5300_v9 = vpop.f32.mrf.mxu0  ;;  %v1867_v51 = vsel %vm1828_vm5, %v1862_v32, %v1866_v49  ;;  %v5310_v30 = vadd.f32 %v5200_v58, %v5208_v63  ;;  %v1868_v32 = vrot.slane %v4667_v35, 2 }
 0x1ed   : > { %6440 = vst [vmem:[#allocation21_spill] sm:$0xff] %v5300_v9  ;;  %4241 = vmatmul.msk.bf16.gmra.mxu1 %vm474_vm2, %v1455_v44  ;;  %v1869_v58 = vrot.slane %v4602_v50, 3  ;;  %v1459_v63 = vsel %vm1440_vm6, %v1456_v18, %v1458_v25  ;;  %v6447_v50 = vld [vmem:[#allocation37_spill] sm:$0xff] }
 0x1ee   : > { %6439 = vst [vmem:[#allocation28_spill] sm:$0xff] %v5298_v52  ;;  %4259 = vmatmul.msk.bf16.gmra.mxu2 %vm474_vm2, %v1457_v60 }
 0x1ef   : > { %4295 = vmatmul.msk.bf16.gmra.mxu0 %vm474_vm2, %v2123_v48  ;;  %v1117_v48 = vpop.f32.mrf.mxu3  ;;  %v1870_v35 = vor.u32 %v1869_v58, %v1868_v32  ;;  %v1873_v58 = vrot.slane %v4670_v36, 3 }
 0x1f0   : > { %4279 = vmatmul.msk.bf16.gmra.mxu3 %vm474_vm2, %v1867_v51 }
 0x1f1   : > { %v956_v31 = vpop.f32.mrf.mxu2 }
 0x1f2   : > { %v998_v1 = vadd.f32 %v956_v31, %v761_v62  ;;  %v762_v23 = vpop.f32.mrf.mxu1 }
 0x1f3   : > { %v763_v45 = vadd.f32 %v762_v23, %v6444_v53 }
 0x1f4   : > { %v5312_v7 = vadd.f32 %v1112_v12, %v998_v1  ;;  %v5314_v44 = vpop.f32.mrf.mxu0  ;;  %v5324_v12 = vadd.f32 %v5210_v26, %v5222_v43  ;;  %v2125_v1 = vsel %vm2108_vm7, %v2122_v17, %v2124_v20  ;;  %v1871_v26 = vsel %vm1828_vm5, %v1866_v49, %v1870_v35 }
 0x1f5   : > { %6443 = vst [vmem:[#allocation11_spill] sm:$0xff] %v5314_v44  ;;  %v5342_v17 = vadd.f32 %v5224_v55, %v5236_v29  ;;  %v1872_v49 = vrot.slane %v4725_v19, 2  ;;  %v5357_v55 = vadd.f32 %v5238_v27, %v5250_v54 }
 0x1f6   : > { %6442 = vst [vmem:[#allocation30_spill] sm:$0xff] %v5312_v7 }
 0x1f9   : > { %v958_v57 = vpop.f32.mrf.mxu2 }
 0x1fa   : > { %v999_v22 = vadd.f32 %v958_v57, %v763_v45  ;;  %v765_v62 = vpop.f32.mrf.mxu1  ;;  %v4387_v45 = vld [vmem:[%s4500_s24 + $0x58] sm:$0xff] }
 0x1fb   : > { %v766_v18 = vadd.f32 %v765_v62, %v6447_v50  ;;  %v1460_v57 = vrot.slane %v4387_v45, 2  ;;  %v5362_v50 = vor.u32 %v1873_v58, %v1872_v49 }
 0x1fc   : > { %v5326_v31 = vadd.f32 %v1114_v15, %v999_v22  ;;  %v5329_v23 = vpop.f32.mrf.mxu0  ;;  %v5338_v15 = vpop.f32.mrf.mxu3  ;;  %v2126_v22 = vrot.slane %v4387_v45, 3 }
 0x1fd   : > { %6446 = vst [vmem:[#allocation32_spill] sm:$0xff] %v5329_v23  ;;  %4242 = vmatmul.msk.bf16.gmra.mxu1 %vm474_vm2, %v1457_v60  ;;  %v1875_v27 = vsel %vm1828_vm5, %v1870_v35, %v5362_v50 }
 0x1fe   : > { %6445 = vst [vmem:[#allocation7_spill] sm:$0xff] %v5326_v31  ;;  %4260 = vmatmul.msk.bf16.gmra.mxu2 %vm474_vm2, %v1459_v63  ;;  %v2127_v29 = vsel %vm2108_vm7, %v2124_v20, %v2126_v22  ;;  %v5370_v20 = vadd.f32 %v5252_v39, %v5264_v8 }
 0x1ff   : > { %4296 = vmatmul.msk.bf16.gmra.mxu0 %vm474_vm2, %v2125_v1  ;;  %6449 = vst [vmem:[#allocation19_spill] sm:$0xff] %v5338_v15  ;;  %v1461_v1 = vsel %vm1440_vm6, %v1458_v25, %v1460_v57 }
 0x200   : > { %4280 = vmatmul.msk.bf16.gmra.mxu3 %vm474_vm2, %v1871_v26  ;;  %6453 = vst [vmem:[#allocation27_spill] sm:$0xff] %v5370_v20  ;;  %v5374_v26 = vld [vmem:[%s4500_s24 + $0x60] sm:$0xff] }
 0x201   : > { %v961_v51 = vpop.f32.mrf.mxu2 }
 0x202   : > { %v1000_v16 = vadd.f32 %v961_v51, %v766_v18  ;;  %v5335_v43 = vpop.f32.mrf.mxu1 }
 0x203   : > { %6448 = vst [vmem:[#allocation34_spill] sm:$0xff] %v5335_v43 }
 0x204   : > { %v5344_v60 = vadd.f32 %v1117_v48, %v1000_v16  ;;  %v5347_v53 = vpop.f32.mrf.mxu0  ;;  %v1980_v48 = vpop.f32.mrf.mxu3 }
 0x205   : > { %6451 = vst [vmem:[#allocation36_spill] sm:$0xff] %v5347_v53 }
 0x206   : > { %6450 = vst [vmem:[#allocation12_spill] sm:$0xff] %v5344_v60 }
 0x209   : > { %v5350_v62 = vpop.f32.mrf.mxu2 }
 0x20a   : > { %6452 = vst [vmem:[#allocation38_spill] sm:$0xff] %v5350_v62  ;;  %v1544_v32 = vpop.f32.mrf.mxu1 }
 0x20b   : > { %v1634_v36 = vadd.f32 %v1544_v32, %v4943_v47  ;;  %v6338_v47 = vrot.slane %v5374_v26, 2  ;;  %v6339_v32 = vrot.slane %v5374_v26, 3 }
 0x20c   : > { %v2212_v19 = vpop.f32.mrf.mxu0  ;;  %v1982_v16 = vpop.f32.mrf.mxu3 }
 0x20d   : > { %4243 = vmatmul.msk.bf16.gmra.mxu1 %vm474_vm2, %v1459_v63 }
 0x20e   : > { %4261 = vmatmul.msk.bf16.gmra.mxu2 %vm474_vm2, %v1461_v1 }
 0x20f   : > { %4297 = vmatmul.msk.bf16.gmra.mxu0 %vm474_vm2, %v2127_v29 }
 0x210   : > { %4281 = vmatmul.msk.bf16.gmra.mxu3 %vm474_vm2, %v1875_v27 }
 0x211   : > { %v1700_v25 = vpop.f32.mrf.mxu2 }
 0x212   : > { %v1790_v18 = vadd.f32 %v1700_v25, %v1634_v36  ;;  %v1546_v51 = vpop.f32.mrf.mxu1 }
 0x213   : > { %v1635_v49 = vadd.f32 %v1546_v51, %v4951_v34  ;;  %v2129_v51 = vsel %vm2108_vm7, %v2126_v22, %v6339_v32 }
 0x214   : > { %v2070_v54 = vadd.f32 %v1980_v48, %v1790_v18  ;;  %v5383_v18 = vsel %vm1440_vm6, %v1460_v57, %v6338_v47  ;;  %v1985_v32 = vpop.f32.mrf.mxu3 }
 0x216   : > { %v2302_v63 = vadd.f32 %v2212_v19, %v2070_v54  ;;  %v2214_v19 = vpop.f32.mrf.mxu0 }
 0x218   : > { %v2338_v45 = vmax.f32 %v2302_v63, 0.0 }
 0x219   : > { %v1702_v35 = vpop.f32.mrf.mxu2 }
 0x21a   : > { %v2410_v58 = vrot.slane %v2338_v45, 2  ;;  %v2411_v29 = vrot.slane %v2338_v45, 4  ;;  %v2412_v48 = vrot.slane %v2338_v45, 6  ;;  %v2603_v39 = vsel %vm2602_vm8, %v2338_v45, -inf  ;;  %v1549_v8 = vpop.f32.mrf.mxu1 }
 0x21b   : > { %v2604_v36 = vrot.slane %v2603_v39, 4  ;;  %v1791_v25 = vadd.f32 %v1702_v35, %v1635_v49 }
 0x21c   : > { %v2610_v27 = vsel %vm2602_vm8, %v2410_v58, -inf  ;;  %v2617_v54 = vsel %vm2602_vm8, %v2411_v29, -inf  ;;  %v2624_v34 = vsel %vm2602_vm8, %v2412_v48, -inf }
 0x21d   : > { %v2605_v63 = vmax.f32 %v2603_v39, %v2604_v36  ;;  %v2611_v45 = vrot.slane %v2610_v27, 4  ;;  %v2618_v53 = vrot.slane %v2617_v54, 4  ;;  %v2625_v15 = vrot.slane %v2624_v34, 4  ;;  %4244 = vmatmul.msk.bf16.gmra.mxu1 %vm474_vm2, %v1461_v1 }
 0x21e   : > { %v2071_v49 = vadd.f32 %v1982_v16, %v1791_v25  ;;  %4262 = vmatmul.msk.bf16.gmra.mxu2 %vm474_vm2, %v5383_v18  ;;  %v1636_v1 = vadd.f32 %v1549_v8, %v4962_v11  ;;  %v5397_v25 = vld [vmem:[%s4500_s24 + $0x68] sm:$0xff]  ;;  %v2217_v11 = vpop.f32.mrf.mxu0 }
 0x21f   : > { %v2606_v57 = vrot.slane %v2605_v63, 2  ;;  %v2612_v35 = vmax.f32 %v2610_v27, %v2611_v45  ;;  %v2619_v58 = vmax.f32 %v2617_v54, %v2618_v53  ;;  %v2626_v29 = vmax.f32 %v2624_v34, %v2625_v15  ;;  %4298 = vmatmul.msk.bf16.gmra.mxu0 %vm474_vm2, %v2129_v51 }
 0x220   : > { %v2303_v48 = vadd.f32 %v2214_v19, %v2071_v49 }
 0x221   : > { %v2607_v47 = vmax.f32 %v2605_v63, %v2606_v57  ;;  %v2613_v22 = vrot.slane %v2612_v35, 2  ;;  %v2620_v39 = vrot.slane %v2619_v58, 2  ;;  %v2627_v36 = vrot.slane %v2626_v29, 2  ;;  %v1705_v62 = vpop.f32.mrf.mxu2 }
 0x222   : > { %v2339_v43 = vmax.f32 %v2303_v48, 0.0  ;;  %v1551_v16 = vpop.f32.mrf.mxu1  ;;  %v1792_v8 = vadd.f32 %v1705_v62, %v1636_v1 }
 0x223   : > { %v2608_v15 = vrot.slane %v2607_v47, 1  ;;  %v2614_v27 = vmax.f32 %v2612_v35, %v2613_v22  ;;  %v2621_v54 = vmax.f32 %v2619_v58, %v2620_v39  ;;  %v2628_v19 = vmax.f32 %v2626_v29, %v2627_v36 }
 0x224   : > { %v2413_v34 = vrot.slane %v2339_v43, 2  ;;  %v2414_v51 = vrot.slane %v2339_v43, 4  ;;  %v2415_v63 = vrot.slane %v2339_v43, 6  ;;  %v2631_v45 = vsel %vm2602_vm8, %v2339_v43, -inf }
 0x225   : > { %v2615_v49 = vrot.slane %v2614_v27, 1  ;;  %v2622_v57 = vrot.slane %v2621_v54, 1  ;;  %v2629_v48 = vrot.slane %v2628_v19, 1  ;;  %v2632_v60 = vrot.slane %v2631_v45, 4 }
 0x226   : > { %v2638_v44 = vsel %vm2602_vm8, %v2413_v34, -inf  ;;  %v2645_v23 = vsel %vm2602_vm8, %v2414_v51, -inf  ;;  %v2652_v53 = vsel %vm2602_vm8, %v2415_v63, -inf  ;;  %v2609_v35 = vmax.f32 %v2607_v47, %v2608_v15 }
 0x227   : > { %v2630_v58 = vmax.f32 %v2628_v19, %v2629_v48  ;;  %v6454_v29 = vrot.slane %v5397_v25, 2  ;;  %v6455_v22 = vrot.slane %v5374_v26, 2  ;;  %v2633_v39 = vmax.f32 %v2631_v45, %v2632_v60 }
 0x228   : > { %v2639_v36 = vrot.slane %v2638_v44, 4  ;;  %v2646_v62 = vrot.slane %v2645_v23, 4  ;;  %v2653_v1 = vrot.slane %v2652_v53, 4  ;;  %v2616_v31 = vmax.f32 %v2614_v27, %v2615_v49 }
 0x229   : > { %v5410_v43 = vsel %vm1440_vm6, %v6455_v22, %v6454_v29  ;;  %v2623_v34 = vmax.f32 %v2621_v54, %v2622_v57  ;;  %v2072_v9 = vadd.f32 %v1985_v32, %v1792_v8  ;;  %v1707_v51 = vpop.f32.mrf.mxu2  ;;  %v6456_v63 = vrot.slane %v5397_v25, 3  ;;  %v1987_v54 = vpop.f32.mrf.mxu3 }
 0x22a   : > { %v6457_v47 = vrot.slane %v5374_v26, 3  ;;  %v2634_v19 = vrot.slane %v2633_v39, 2  ;;  %v2640_v48 = vmax.f32 %v2638_v44, %v2639_v36  ;;  %v2647_v7 = vmax.f32 %v2645_v23, %v2646_v62  ;;  %v1554_v45 = vpop.f32.mrf.mxu1 }
 0x22b   : > { %v2654_v28 = vmax.f32 %v2652_v53, %v2653_v1  ;;  %v5418_v29 = vsel %vm3499_vm9, %v2609_v35, -inf  ;;  %v5421_v60 = vsel %vm3499_vm9, %v2630_v58, -inf  ;;  %v2304_v27 = vadd.f32 %v2217_v11, %v2072_v9 }
 0x22c   : > { %v2131_v15 = vsel %vm2108_vm7, %v6457_v47, %v6456_v63  ;;  %v1637_v32 = vadd.f32 %v1551_v16, %v4971_v6  ;;  %v2635_v49 = vmax.f32 %v2633_v39, %v2634_v19  ;;  %v2641_v57 = vrot.slane %v2640_v48, 2 }
 0x22d   : > { %v2648_v26 = vrot.slane %v2647_v7, 2  ;;  %v2655_v8 = vrot.slane %v2654_v28, 2  ;;  %v2340_v22 = vmax.f32 %v2304_v27, 0.0  ;;  %v5425_v44 = vsel %vm3499_vm9, %v2616_v31, -inf  ;;  %4245 = vmatmul.msk.bf16.gmra.mxu1 %vm474_vm2, %v5383_v18  ;;  %v2219_v31 = vpop.f32.mrf.mxu0 }
 0x22e   : > { %v5428_v23 = vsel %vm3499_vm9, %v2623_v34, -inf  ;;  %v1793_v53 = vadd.f32 %v1707_v51, %v1637_v32  ;;  %v2636_v9 = vrot.slane %v2635_v49, 1  ;;  %v2642_v11 = vmax.f32 %v2640_v48, %v2641_v57  ;;  %4263 = vmatmul.msk.bf16.gmra.mxu2 %vm474_vm2, %v5410_v43 }
 0x22f   : > { %v2649_v6 = vmax.f32 %v2647_v7, %v2648_v26  ;;  %v5432_v16 = vmax.f32 %v2654_v28, %v2655_v8  ;;  %v2416_v35 = vrot.slane %v2340_v22, 2  ;;  %v2417_v58 = vrot.slane %v2340_v22, 4  ;;  %4299 = vmatmul.msk.bf16.gmra.mxu0 %vm474_vm2, %v2131_v15 }
 0x230   : > { %v2418_v39 = vrot.slane %v2340_v22, 6  ;;  %v2073_v36 = vadd.f32 %v1987_v54, %v1793_v53  ;;  %v2637_v62 = vmax.f32 %v2635_v49, %v2636_v9  ;;  %v2643_v1 = vrot.slane %v2642_v11, 1 }
 0x231   : > { %v2650_v34 = vrot.slane %v2649_v6, 1  ;;  %v1638_v18 = vadd.f32 %v1554_v45, %v4982_v24  ;;  %v2659_v51 = vsel %vm2602_vm8, %v2416_v35, -inf  ;;  %v2666_v28 = vsel %vm2602_vm8, %v2417_v58, -inf  ;;  %v1710_v47 = vpop.f32.mrf.mxu2 }
 0x232   : > { %v2673_v7 = vsel %vm2602_vm8, %v2418_v39, -inf  ;;  %v2305_v63 = vadd.f32 %v2219_v31, %v2073_v36  ;;  %v2644_v19 = vmax.f32 %v2642_v11, %v2643_v1  ;;  %v2660_v32 = vrot.slane %v2659_v51, 4  ;;  %v5451_v35 = vpop.f32.mrf.mxu1 }
 0x233   : > { %v2651_v48 = vmax.f32 %v2649_v6, %v2650_v34  ;;  %v2667_v54 = vrot.slane %v2666_v28, 4  ;;  %v2674_v15 = vrot.slane %v2673_v7, 4  ;;  %v1794_v57 = vadd.f32 %v1710_v47, %v1638_v18  ;;  %v1990_v6 = vpop.f32.mrf.mxu3 }
 0x234   : > { %v2341_v49 = vmax.f32 %v2305_v63, 0.0  ;;  %v5443_v26 = vsel %vm3499_vm9, %v2637_v62, -inf  ;;  %v5446_v24 = vsel %vm3499_vm9, %v2644_v19, -inf  ;;  %v2661_v8 = vmax.f32 %v2659_v51, %v2660_v32 }
 0x235   : > { %v5449_v45 = vsel %vm3499_vm9, %v2651_v48, -inf  ;;  %v2668_v22 = vmax.f32 %v2666_v28, %v2667_v54  ;;  %v2675_v53 = vmax.f32 %v2673_v7, %v2674_v15  ;;  %v2074_v36 = vadd.f32 %v1990_v6, %v1794_v57  ;;  %v2222_v54 = vpop.f32.mrf.mxu0 }
 0x236   : > { %v2419_v9 = vrot.slane %v2341_v49, 2  ;;  %v2420_v11 = vrot.slane %v2341_v49, 4  ;;  %v2662_v58 = vrot.slane %v2661_v8, 2  ;;  %v2421_v39 = vrot.slane %v2341_v49, 6 }
 0x237   : > { %v2680_v31 = vsel %vm2602_vm8, %v2341_v49, -inf  ;;  %v2669_v62 = vrot.slane %v2668_v22, 2  ;;  %v2676_v1 = vrot.slane %v2675_v53, 2  ;;  %v2306_v57 = vadd.f32 %v2222_v54, %v2074_v36 }
 0x238   : > { %v2681_v34 = vrot.slane %v2680_v31, 4  ;;  %v2687_v18 = vsel %vm2602_vm8, %v2419_v9, -inf  ;;  %v2663_v63 = vmax.f32 %v2661_v8, %v2662_v58  ;;  %v2694_v51 = vsel %vm2602_vm8, %v2420_v11, -inf }
 0x239   : > { %v2688_v47 = vrot.slane %v2687_v18, 4  ;;  %v2701_v28 = vsel %vm2602_vm8, %v2421_v39, -inf  ;;  %v2670_v7 = vmax.f32 %v2668_v22, %v2669_v62  ;;  %v2677_v19 = vmax.f32 %v2675_v53, %v2676_v1 }
 0x23a   : > { %v2682_v48 = vmax.f32 %v2680_v31, %v2681_v34  ;;  %v2695_v32 = vrot.slane %v2694_v51, 4  ;;  %v2664_v15 = vrot.slane %v2663_v63, 1  ;;  %v2702_v49 = vrot.slane %v2701_v28, 4 }
 0x23b   : > { %v2689_v27 = vmax.f32 %v2687_v18, %v2688_v47  ;;  %v2671_v6 = vrot.slane %v2670_v7, 1  ;;  %v2678_v52 = vrot.slane %v2677_v19, 1  ;;  %v2342_v20 = vmax.f32 %v2306_v57, 0.0 }
 0x23c   : > { %v2683_v42 = vrot.slane %v2682_v48, 2  ;;  %v2696_v9 = vmax.f32 %v2694_v51, %v2695_v32  ;;  %v2665_v8 = vmax.f32 %v2663_v63, %v2664_v15  ;;  %v2703_v11 = vmax.f32 %v2701_v28, %v2702_v49  ;;  %v5463_v28 = vpop.f32.mrf.mxu2 }
 0x23d   : > { %v2690_v58 = vrot.slane %v2689_v27, 2  ;;  %v2672_v39 = vmax.f32 %v2670_v7, %v2671_v6  ;;  %v2679_v22 = vmax.f32 %v2677_v19, %v2678_v52  ;;  %4246 = vmatmul.msk.bf16.gmra.mxu1 %vm474_vm2, %v5410_v43  ;;  %v2422_v34 = vrot.slane %v2342_v20, 4 }
 0x23e   : > { %v2684_v53 = vmax.f32 %v2682_v48, %v2683_v42  ;;  %v2697_v31 = vrot.slane %v2696_v9, 2  ;;  %v3501_v62 = vsel %vm3499_vm9, %v2665_v8, -inf  ;;  %v2704_v1 = vrot.slane %v2703_v11, 2  ;;  %v5465_v42 = vpop.f32.mrf.mxu1 }
 0x23f   : > { %v2691_v36 = vmax.f32 %v2689_v27, %v2690_v58  ;;  %v3502_v18 = vmax.f32 %v5418_v29, %v3501_v62  ;;  %v3504_v63 = vsel %vm3499_vm9, %v2672_v39, -inf  ;;  %v3507_v47 = vsel %vm3499_vm9, %v2679_v22, -inf  ;;  %v5471_v22 = vpop.f32.mrf.mxu3 }
 0x240   : > { %v2685_v51 = vrot.slane %v2684_v53, 1  ;;  %v3505_v52 = vmax.f32 %v5425_v44, %v3504_v63  ;;  %v3508_v43 = vmax.f32 %v5428_v23, %v3507_v47  ;;  %v2698_v27 = vmax.f32 %v2696_v9, %v2697_v31 }
 0x241   : > { %v2692_v7 = vrot.slane %v2691_v36, 1  ;;  %v3692_v19 = vpack.c.bf16 %v3502_v18, %v3502_v18  ;;  %v2705_v32 = vmax.f32 %v2703_v11, %v2704_v1  ;;  %v2423_v29 = vrot.slane %v2342_v20, 6  ;;  %v5476_v1 = vpop.f32.mrf.mxu0 }
 0x242   : > { %v2686_v48 = vmax.f32 %v2684_v53, %v2685_v51  ;;  %v3693_v54 = vpack.c.bf16 %v3505_v52, %v3505_v52  ;;  %v3694_v15 = vpack.c.bf16 %v3508_v43, %v3508_v43  ;;  %v2699_v57 = vrot.slane %v2698_v27, 1 }
 0x243   : > { %v2693_v49 = vmax.f32 %v2691_v36, %v2692_v7  ;;  %v3820_v6 = vunpack.c.l.b16 %v3692_v19  ;;  %v2706_v8 = vrot.slane %v2705_v32, 1  ;;  %v2708_v39 = vsel %vm2602_vm8, %v2342_v20, -inf }
 0x244   : > { %v3510_v58 = vsel %vm3499_vm9, %v2686_v48, -inf  ;;  %v3821_v44 = vunpack.c.l.b16 %v3693_v54  ;;  %v3822_v23 = vunpack.c.l.b16 %v3694_v15  ;;  %v2700_v62 = vmax.f32 %v2698_v27, %v2699_v57 }
 0x245   : > { %v3511_v9 = vmax.f32 %v5421_v60, %v3510_v58  ;;  %v2707_v53 = vmax.f32 %v2705_v32, %v2706_v8  ;;  %v3513_v11 = vsel %vm3499_vm9, %v2693_v49, -inf  ;;  %v2709_v31 = vrot.slane %v2708_v39, 4  ;;  %v1715_v49 = vpop.f32.mrf.mxu2 }
 0x246   : > { %v2715_v36 = vsel %vm2602_vm8, %v2422_v34, -inf  ;;  %v3885_v18 = vsel %vm3884_vm10, %v3821_v44, %v3820_v6  ;;  %v3514_v63 = vmax.f32 %v5443_v26, %v3513_v11  ;;  %v3516_v20 = vsel %vm3499_vm9, %v2700_v62, -inf  ;;  %v1561_v57 = vpop.f32.mrf.mxu1 }
 0x247   : > { %v3695_v47 = vpack.c.bf16 %v3511_v9, %v3511_v9  ;;  %v3887_v51 = vsel %vm3886_vm11, %v3822_v23, %v3885_v18  ;;  %v3517_v52 = vmax.f32 %v5446_v24, %v3516_v20  ;;  %v3519_v60 = vsel %vm3499_vm9, %v2707_v53, -inf  ;;  %v1995_v11 = vpop.f32.mrf.mxu3 }
 0x248   : > { %v2710_v43 = vmax.f32 %v2708_v39, %v2709_v31  ;;  %v3520_v7 = vmax.f32 %v5449_v45, %v3519_v60  ;;  %v3696_v27 = vpack.c.bf16 %v3514_v63, %v3514_v63  ;;  %v2716_v19 = vrot.slane %v2715_v36, 4 }
 0x249   : > { %v3823_v34 = vunpack.c.l.b16 %v3695_v47  ;;  %v3697_v48 = vpack.c.bf16 %v3517_v52, %v3517_v52  ;;  %v6458_v32 = vrot.slane %v5432_v16, 1  ;;  %v2722_v15 = vsel %vm2602_vm8, %v2423_v29, -inf  ;;  %v2227_v52 = vpop.f32.mrf.mxu0 }
 0x24a   : > { %v2711_v54 = vrot.slane %v2710_v43, 2  ;;  %v3698_v6 = vpack.c.bf16 %v3520_v7, %v3520_v7  ;;  %v3824_v24 = vunpack.c.l.b16 %v3696_v27  ;;  %v2717_v58 = vmax.f32 %v2715_v36, %v2716_v19  ;;  %v5501_v27 = vld [vmem:[%s4500_s24 + $0x70] sm:$0xff] }
 0x24b   : > { %v2658_v26 = vmax.f32 %v5432_v16, %v6458_v32  ;;  %v3889_v8 = vsel %vm3888_vm12, %v3823_v34, %v3887_v51  ;;  %v3825_v39 = vunpack.c.l.b16 %v3697_v48  ;;  %v2723_v44 = vrot.slane %v2722_v15, 4 }
 0x24c   : > { %v2712_v45 = vmax.f32 %v2710_v43, %v2711_v54  ;;  %v3826_v23 = vunpack.c.l.b16 %v3698_v6  ;;  %v2718_v62 = vrot.slane %v2717_v58, 2  ;;  %v3891_v9 = vsel %vm3890_vm13, %v3824_v24, %v3889_v8 }
 0x24d   : > { %v2724_v53 = vmax.f32 %v2722_v15, %v2723_v44  ;;  %v3893_v29 = vsel %vm3892_vm14, %v3825_v39, %v3891_v9  ;;  %v3521_v18 = vsel %vm3499_vm9, %v2658_v26, -inf  ;;  %v1639_v47 = vadd.f32 %v5451_v35, %v4991_v46  ;;  %v1717_v24 = vpop.f32.mrf.mxu2 }
 0x24e   : > { %v2713_v16 = vrot.slane %v2712_v45, 1  ;;  %v2719_v31 = vmax.f32 %v2717_v58, %v2718_v62  ;;  %v3895_v36 = vsel %vm3894_vm15, %v3826_v23, %v3893_v29  ;;  %v1876_v51 = vrot.slane %v4752_v3, 2  ;;  %v1564_v8 = vpop.f32.mrf.mxu1 }
 0x24f   : > { %v2725_v20 = vrot.slane %v2724_v53, 2  ;;  %v1877_v43 = vrot.slane %v4728_v33, 3  ;;  %v1640_v7 = vadd.f32 %v5465_v42, %v5002_v4  ;;  %v1466_v34 = vrot.slane %v5501_v27, 2  ;;  %v1997_v29 = vpop.f32.mrf.mxu3 }
 0x250   : > { %v2714_v63 = vmax.f32 %v2712_v45, %v2713_v16  ;;  %v2720_v60 = vrot.slane %v2719_v31, 1  ;;  %v1795_v32 = vadd.f32 %v5463_v28, %v1639_v47  ;;  %v2132_v46 = vrot.slane %v5501_v27, 3 }
 0x251   : > { %v2726_v19 = vmax.f32 %v2724_v53, %v2725_v20  ;;  %v1878_v26 = vor.u32 %v1877_v43, %v1876_v51  ;;  %v6459_v33 = vrot.slane %v5397_v25, 2  ;;  %v6460_v28 = vrot.slane %v5397_v25, 3  ;;  %v2229_v51 = vpop.f32.mrf.mxu0 }
 0x252   : > { %v3522_v48 = vsel %vm3499_vm9, %v2714_v63, -inf  ;;  %v2721_v3 = vmax.f32 %v2719_v31, %v2720_v60  ;;  %v2075_v54 = vadd.f32 %v5471_v22, %v1795_v32  ;;  %v1796_v6 = vadd.f32 %v1715_v49, %v1640_v7  ;;  %v5539_v31 = vld [vmem:[%s4500_s24 + $0x78] sm:$0xff] }
 0x253   : > { %v3523_v35 = vmax.f32 %v3521_v18, %v3522_v48  ;;  %v1467_v4 = vsel %vm1440_vm6, %v6459_v33, %v1466_v34  ;;  %v2727_v42 = vrot.slane %v2726_v19, 1  ;;  %v2133_v15 = vsel %vm2108_vm7, %v6460_v28, %v2132_v46 }
 0x254   : > { %4264 = vmatmul.msk.bf16.gmra.mxu2 %vm474_vm2, %v1467_v4  ;;  %4247 = vmatmul.msk.bf16.gmra.mxu1 %vm474_vm2, %v1467_v4  ;;  %v5521_v58 = vsel %vm3499_vm9, %v2721_v3, -inf  ;;  %v1879_v22 = vsel %vm1828_vm5, %v5362_v50, %v1878_v26  ;;  %v1641_v45 = vadd.f32 %v1561_v57, %v5011_v2  ;;  %v2307_v49 = vadd.f32 %v5476_v1, %v2075_v54 }
 0x255   : > { %v3699_v39 = vpack.c.bf16 %v3523_v35, %v3523_v35  ;;  %4300 = vmatmul.msk.bf16.gmra.mxu0 %vm474_vm2, %v2133_v15  ;;  %v2728_v25 = vmax.f32 %v2726_v19, %v2727_v42  ;;  %4282 = vmatmul.msk.bf16.gmra.mxu3 %vm474_vm2, %v1879_v22  ;;  %v2076_v44 = vadd.f32 %v1995_v11, %v1796_v6  ;;  %v1880_v23 = vrot.slane %v4579_v40, 2 }
 0x256   : > { %v1881_v9 = vrot.slane %v4572_v38, 3  ;;  %v1797_v16 = vadd.f32 %v1717_v24, %v1641_v45  ;;  %v5533_v50 = vadd.f32 %v1564_v8, %v5022_v5  ;;  %v2343_v2 = vmax.f32 %v2307_v49, 0.0 }
 0x257   : > { %v3827_v62 = vunpack.c.l.b16 %v3699_v39  ;;  %v5536_v53 = vsel %vm3499_vm9, %v2728_v25, -inf  ;;  %v2308_v57 = vadd.f32 %v2227_v52, %v2076_v44  ;;  %v1468_v1 = vrot.slane %v5539_v31, 2 }
 0x258   : > { %v5548_v40 = vor.u32 %v1881_v9, %v1880_v23  ;;  %v2077_v5 = vadd.f32 %v1997_v29, %v1797_v16  ;;  %v2134_v11 = vrot.slane %v5539_v31, 3  ;;  %v2424_v63 = vrot.slane %v2343_v2, 2 }
 0x259   : > { %v3897_v38 = vsel %vm3896_vm0, %v3827_v62, %v3895_v36  ;;  %v2425_v20 = vrot.slane %v2343_v2, 4  ;;  %v2426_v47 = vrot.slane %v2343_v2, 6  ;;  %v2729_v52 = vsel %vm2602_vm8, %v2343_v2, -inf }
 0x25a   : > { %v3947_v18 = vpack.c.b16 %v3897_v38, %v3897_v38  ;;  %v2344_v60 = vmax.f32 %v2308_v57, 0.0  ;;  %v1883_v43 = vsel %vm1828_vm5, %v1878_v26, %v5548_v40  ;;  %v2309_v7 = vadd.f32 %v2229_v51, %v2077_v5 }
 0x25b   : > { %v2730_v36 = vrot.slane %v2729_v52, 4  ;;  %v2736_v19 = vsel %vm2602_vm8, %v2424_v63, -inf  ;;  %v2743_v48 = vsel %vm2602_vm8, %v2425_v20, -inf  ;;  %v2750_v32 = vsel %vm2602_vm8, %v2426_v47, -inf }
 0x25c   : > { %3964 = vst.msk [vmem:[%s5545_s28] sm:$0xf] %vm3963_vm1, %v3947_v18  ;;  %v2737_v3 = vrot.slane %v2736_v19, 4  ;;  %v2744_v35 = vrot.slane %v2743_v48, 4  ;;  %v2751_v33 = vrot.slane %v2750_v32, 4  ;;  %v2427_v4 = vrot.slane %v2344_v60, 2 }
 0x25d   : > { %v2731_v42 = vmax.f32 %v2729_v52, %v2730_v36  ;;  %v2428_v54 = vrot.slane %v2344_v60, 6  ;;  %v2757_v28 = vsel %vm2602_vm8, %v2344_v60, -inf  ;;  %v2345_v15 = vmax.f32 %v2309_v7, 0.0 }
 0x25e   : > { %v2738_v26 = vmax.f32 %v2736_v19, %v2737_v3  ;;  %v2745_v6 = vmax.f32 %v2743_v48, %v2744_v35  ;;  %v2752_v24 = vmax.f32 %v2750_v32, %v2751_v33  ;;  %v2758_v8 = vrot.slane %v2757_v28, 4 }
 0x25f   : > { %v2732_v39 = vrot.slane %v2731_v42, 2  ;;  %v2764_v22 = vsel %vm2602_vm8, %v2427_v4, -inf  ;;  %v2771_v45 = vsel %vm2602_vm8, %v2428_v54, -inf  ;;  %v2429_v25 = vrot.slane %v2345_v15, 2 }
 0x260   : > { %v2739_v49 = vrot.slane %v2738_v26, 2  ;;  %v2746_v44 = vrot.slane %v2745_v6, 2  ;;  %v2753_v23 = vrot.slane %v2752_v24, 2  ;;  %v2759_v62 = vmax.f32 %v2757_v28, %v2758_v8  ;;  %v1566_v8 = vpop.f32.mrf.mxu1 }
 0x261   : > { %v2733_v9 = vmax.f32 %v2731_v42, %v2732_v39  ;;  %v2765_v16 = vrot.slane %v2764_v22, 4  ;;  %v2772_v2 = vrot.slane %v2771_v45, 4  ;;  %v2430_v57 = vrot.slane %v2345_v15, 4 }
 0x262   : > { %v2740_v29 = vmax.f32 %v2738_v26, %v2739_v49  ;;  %v2747_v38 = vmax.f32 %v2745_v6, %v2746_v44  ;;  %v2754_v5 = vmax.f32 %v2752_v24, %v2753_v23  ;;  %v2760_v18 = vrot.slane %v2759_v62, 2  ;;  %v1720_v24 = vpop.f32.mrf.mxu2 }
 0x263   : > { %v2734_v63 = vrot.slane %v2733_v9, 1  ;;  %v2766_v20 = vmax.f32 %v2764_v22, %v2765_v16  ;;  %v2773_v47 = vmax.f32 %v2771_v45, %v2772_v2  ;;  %v2431_v51 = vrot.slane %v2345_v15, 6  ;;  %v2000_v2 = vpop.f32.mrf.mxu3 }
 0x264   : > { %v2741_v52 = vrot.slane %v2740_v29, 1  ;;  %v2748_v60 = vrot.slane %v2747_v38, 1  ;;  %v2755_v7 = vrot.slane %v2754_v5, 1  ;;  %v2761_v36 = vmax.f32 %v2759_v62, %v2760_v18 }
 0x265   : > { %v2735_v19 = vmax.f32 %v2733_v9, %v2734_v63  ;;  %v2767_v48 = vrot.slane %v2766_v20, 2  ;;  %v2774_v32 = vrot.slane %v2773_v47, 2  ;;  %4283 = vmatmul.msk.bf16.gmra.mxu3 %vm474_vm2, %v1883_v43  ;;  %v2778_v3 = vsel %vm2602_vm8, %v2345_v15, -inf }
 0x266   : > { %v2742_v35 = vmax.f32 %v2740_v29, %v2741_v52  ;;  %v2749_v33 = vmax.f32 %v2747_v38, %v2748_v60  ;;  %v2762_v4 = vrot.slane %v2761_v36, 1  ;;  %v2779_v42 = vrot.slane %v2778_v3, 4 }
 0x267   : > { %v5565_v54 = vsel %vm3499_vm9, %v2735_v19, -inf  ;;  %v2768_v28 = vmax.f32 %v2766_v20, %v2767_v48  ;;  %v2775_v26 = vmax.f32 %v2773_v47, %v2774_v32  ;;  %v2785_v6 = vsel %vm2602_vm8, %v2429_v25, -inf }
 0x268   : > { %v5569_v39 = vsel %vm3499_vm9, %v2742_v35, -inf  ;;  %v5572_v43 = vsel %vm3499_vm9, %v2749_v33, -inf  ;;  %v2763_v15 = vmax.f32 %v2761_v36, %v2762_v4  ;;  %v2780_v22 = vmax.f32 %v2778_v3, %v2779_v42 }
 0x269   : > { %v2769_v45 = vrot.slane %v2768_v28, 1  ;;  %v2776_v49 = vrot.slane %v2775_v26, 1  ;;  %v2786_v44 = vrot.slane %v2785_v6, 4  ;;  %v2792_v23 = vsel %vm2602_vm8, %v2430_v57, -inf }
 0x26a   : > { %v5576_v62 = vsel %vm3499_vm9, %v2763_v15, -inf  ;;  %v2781_v9 = vrot.slane %v2780_v22, 2  ;;  %v2793_v25 = vrot.slane %v2792_v23, 4  ;;  %v2799_v16 = vsel %vm2602_vm8, %v2431_v51, -inf }
 0x26b   : > { %v2770_v29 = vmax.f32 %v2768_v28, %v2769_v45  ;;  %v2777_v38 = vmax.f32 %v2775_v26, %v2776_v49  ;;  %v2787_v18 = vmax.f32 %v2785_v6, %v2786_v44  ;;  %v2800_v63 = vrot.slane %v2799_v16, 4  ;;  %v2232_v26 = vpop.f32.mrf.mxu0 }
 0x26c   : > { %v2782_v20 = vmax.f32 %v2780_v22, %v2781_v9  ;;  %v2794_v47 = vmax.f32 %v2792_v23, %v2793_v25  ;;  %v1469_v57 = vsel %vm1440_vm6, %v1466_v34, %v1468_v1  ;;  %v2135_v52 = vsel %vm2108_vm7, %v2132_v46, %v2134_v11 }
 0x26d   : > { %v3525_v51 = vsel %vm3499_vm9, %v2777_v38, -inf  ;;  %v5591_v60 = vsel %vm3499_vm9, %v2770_v29, -inf  ;;  %v2788_v36 = vrot.slane %v2787_v18, 2  ;;  %v2801_v19 = vmax.f32 %v2799_v16, %v2800_v63  ;;  %4265 = vmatmul.msk.bf16.gmra.mxu2 %vm474_vm2, %v1469_v57  ;;  %4301 = vmatmul.msk.bf16.gmra.mxu0 %vm474_vm2, %v2135_v52 }
 0x26e   : > { %v3526_v48 = vmax.f32 %v5521_v58, %v3525_v51  ;;  %v2783_v34 = vrot.slane %v2782_v20, 1  ;;  %v2795_v32 = vrot.slane %v2794_v47, 2  ;;  %v1798_v3 = vadd.f32 %v1720_v24, %v5533_v50  ;;  %4248 = vmatmul.msk.bf16.gmra.mxu1 %vm474_vm2, %v1469_v57  ;;  %v1722_v50 = vpop.f32.mrf.mxu2  ;;  %v1569_v24 = vpop.f32.mrf.mxu1 }
 0x26f   : > { %v2789_v27 = vmax.f32 %v2787_v18, %v2788_v36  ;;  %v2802_v46 = vrot.slane %v2801_v19, 2  ;;  %v2756_v35 = vmax.f32 %v2754_v5, %v2755_v7  ;;  %v1643_v33 = vadd.f32 %v1566_v8, %v5033_v37 }
 0x270   : > { %v3700_v4 = vpack.c.bf16 %v3526_v48, %v3526_v48  ;;  %v2784_v42 = vmax.f32 %v2782_v20, %v2783_v34  ;;  %v2796_v28 = vmax.f32 %v2794_v47, %v2795_v32  ;;  %v2078_v6 = vadd.f32 %v2000_v2, %v1798_v3  ;;  %v2002_v2 = vpop.f32.mrf.mxu3 }
 0x271   : > { %v2790_v15 = vrot.slane %v2789_v27, 1  ;;  %v2803_v22 = vmax.f32 %v2801_v19, %v2802_v46  ;;  %v5600_v58 = vsel %vm3499_vm9, %v2756_v35, -inf  ;;  %v1884_v45 = vrot.slane %v4626_v0, 2 }
 0x272   : > { %v3828_v49 = vunpack.c.l.b16 %v3700_v4  ;;  %v2797_v44 = vrot.slane %v2796_v28, 1  ;;  %v3528_v5 = vsel %vm3499_vm9, %v2784_v42, -inf  ;;  %v2310_v7 = vadd.f32 %v2232_v26, %v2078_v6 }
 0x273   : > { %v2791_v37 = vmax.f32 %v2789_v27, %v2790_v15  ;;  %v2804_v8 = vrot.slane %v2803_v22, 1  ;;  %v3529_v23 = vmax.f32 %v5536_v53, %v3528_v5  ;;  %v1885_v9 = vrot.slane %v4582_v41, 3 }
 0x274   : > { %v2798_v25 = vmax.f32 %v2796_v28, %v2797_v44  ;;  %v2346_v16 = vmax.f32 %v2310_v7, 0.0  ;;  %v1799_v29 = vadd.f32 %v1722_v50, %v1643_v33  ;;  %v1644_v38 = vadd.f32 %v1569_v24, %v5046_v61  ;;  %v2234_v50 = vpop.f32.mrf.mxu0  ;;  %v5626_v7 = vld [vmem:[%s4500_s24 + $0x80] sm:$0xff] }
 0x275   : > { %v2805_v0 = vmax.f32 %v2803_v22, %v2804_v8  ;;  %v3531_v18 = vsel %vm3499_vm9, %v2791_v37, -inf  ;;  %v3701_v63 = vpack.c.bf16 %v3529_v23, %v3529_v23  ;;  %v5608_v20 = vor.u32 %v1885_v9, %v1884_v45 }
 0x276   : > { %v3532_v47 = vmax.f32 %v5565_v54, %v3531_v18  ;;  %v3534_v57 = vsel %vm3499_vm9, %v2798_v25, -inf  ;;  %v2432_v52 = vrot.slane %v2346_v16, 2  ;;  %v2433_v53 = vrot.slane %v2346_v16, 4  ;;  %v1725_v24 = vpop.f32.mrf.mxu2  ;;  %v1571_v8 = vpop.f32.mrf.mxu1 }
 0x277   : > { %v3535_v41 = vmax.f32 %v5569_v39, %v3534_v57  ;;  %v3537_v51 = vsel %vm3499_vm9, %v2805_v0, -inf  ;;  %v3829_v36 = vunpack.c.l.b16 %v3701_v63  ;;  %v2806_v19 = vsel %vm2602_vm8, %v2346_v16, -inf }
 0x278   : > { %v3538_v61 = vmax.f32 %v5572_v43, %v3537_v51  ;;  %v3702_v48 = vpack.c.bf16 %v3532_v47, %v3532_v47  ;;  %v2807_v34 = vrot.slane %v2806_v19, 4  ;;  %v2813_v32 = vsel %vm2602_vm8, %v2432_v52, -inf  ;;  %v2005_v25 = vpop.f32.mrf.mxu3 }
 0x279   : > { %v3703_v3 = vpack.c.bf16 %v3535_v41, %v3535_v41  ;;  %v3898_v54 = vsel %vm3884_vm10, %v3829_v36, %v3828_v49  ;;  %v2814_v27 = vrot.slane %v2813_v32, 4  ;;  %v2820_v46 = vsel %vm2602_vm8, %v2433_v53, -inf }
 0x27a   : > { %v3704_v35 = vpack.c.bf16 %v3538_v61, %v3538_v61  ;;  %v3830_v33 = vunpack.c.l.b16 %v3702_v48  ;;  %v2808_v39 = vmax.f32 %v2806_v19, %v2807_v34  ;;  %v2821_v4 = vrot.slane %v2820_v46, 4 }
 0x27b   : > { %v3831_v42 = vunpack.c.l.b16 %v3703_v3  ;;  %v2815_v28 = vmax.f32 %v2813_v32, %v2814_v27  ;;  %v1887_v43 = vsel %vm1828_vm5, %v5548_v40, %v5608_v20  ;;  %v2079_v26 = vadd.f32 %v2002_v2, %v1799_v29 }
 0x27c   : > { %v3832_v6 = vunpack.c.l.b16 %v3704_v35  ;;  %v2809_v15 = vrot.slane %v2808_v39, 2  ;;  %v2822_v22 = vmax.f32 %v2820_v46, %v2821_v4  ;;  %v3899_v45 = vsel %vm3886_vm11, %v3830_v33, %v3898_v54  ;;  %4284 = vmatmul.msk.bf16.gmra.mxu3 %vm474_vm2, %v1887_v43 }
 0x27d   : > { %v2816_v49 = vrot.slane %v2815_v28, 2  ;;  %v3900_v44 = vsel %vm3888_vm12, %v3831_v42, %v3899_v45  ;;  %v2311_v5 = vadd.f32 %v2234_v50, %v2079_v26  ;;  %v1470_v37 = vrot.slane %v5626_v7, 2 }
 0x27e   : > { %v2810_v40 = vmax.f32 %v2808_v39, %v2809_v15  ;;  %v2823_v23 = vrot.slane %v2822_v22, 2  ;;  %v3901_v9 = vsel %vm3890_vm13, %v3832_v6, %v3900_v44  ;;  %v2136_v16 = vrot.slane %v5626_v7, 3 }
 0x27f   : > { %v2817_v2 = vmax.f32 %v2815_v28, %v2816_v49  ;;  %v2347_v29 = vmax.f32 %v2311_v5, 0.0  ;;  %v1471_v0 = vsel %vm1440_vm6, %v1468_v1, %v1470_v37  ;;  %v1800_v18 = vadd.f32 %v1725_v24, %v1644_v38 }
 0x280   : > { %v2811_v63 = vrot.slane %v2810_v40, 1  ;;  %v2824_v47 = vmax.f32 %v2822_v22, %v2823_v23  ;;  %4266 = vmatmul.msk.bf16.gmra.mxu2 %vm474_vm2, %v1471_v0  ;;  %v2137_v57 = vsel %vm2108_vm7, %v2134_v11, %v2136_v16  ;;  %v5643_v52 = vadd.f32 %v1571_v8, %v5059_v10  ;;  %4249 = vmatmul.msk.bf16.gmra.mxu1 %vm474_vm2, %v1471_v0  ;;  %v2237_v22 = vpop.f32.mrf.mxu0  ;;  %v2007_v49 = vpop.f32.mrf.mxu3 }
 0x281   : > { %v2818_v53 = vrot.slane %v2817_v2, 1  ;;  %v2434_v41 = vrot.slane %v2347_v29, 2  ;;  %v2435_v51 = vrot.slane %v2347_v29, 4  ;;  %v2436_v1 = vrot.slane %v2347_v29, 6  ;;  %4302 = vmatmul.msk.bf16.gmra.mxu0 %vm474_vm2, %v2137_v57  ;;  %v1574_v23 = vpop.f32.mrf.mxu1 }
 0x282   : > { %v2812_v38 = vmax.f32 %v2810_v40, %v2811_v63  ;;  %v2825_v36 = vrot.slane %v2824_v47, 1  ;;  %v2827_v19 = vsel %vm2602_vm8, %v2347_v29, -inf  ;;  %v2080_v61 = vadd.f32 %v2005_v25, %v1800_v18 }
 0x283   : > { %v2819_v48 = vmax.f32 %v2817_v2, %v2818_v53  ;;  %v2828_v31 = vrot.slane %v2827_v19, 4  ;;  %v2834_v11 = vsel %vm2602_vm8, %v2434_v41, -inf  ;;  %v2841_v10 = vsel %vm2602_vm8, %v2435_v51, -inf }
 0x284   : > { %v2826_v34 = vmax.f32 %v2824_v47, %v2825_v36  ;;  %v3540_v32 = vsel %vm3499_vm9, %v2812_v38, -inf  ;;  %v2835_v3 = vrot.slane %v2834_v11, 4  ;;  %v2842_v54 = vrot.slane %v2841_v10, 4 }
 0x285   : > { %v3541_v27 = vmax.f32 %v5600_v58, %v3540_v32  ;;  %v3543_v46 = vsel %vm3499_vm9, %v2819_v48, -inf  ;;  %v2829_v35 = vmax.f32 %v2827_v19, %v2828_v31  ;;  %v2848_v33 = vsel %vm2602_vm8, %v2436_v1, -inf }
 0x286   : > { %v3544_v39 = vmax.f32 %v5576_v62, %v3543_v46  ;;  %v3546_v4 = vsel %vm3499_vm9, %v2826_v34, -inf  ;;  %v2836_v42 = vmax.f32 %v2834_v11, %v2835_v3  ;;  %v2843_v28 = vmax.f32 %v2841_v10, %v2842_v54  ;;  %v1727_v62 = vpop.f32.mrf.mxu2 }
 0x287   : > { %v3547_v43 = vmax.f32 %v5591_v60, %v3546_v4  ;;  %v3705_v26 = vpack.c.bf16 %v3541_v27, %v3541_v27  ;;  %v2830_v6 = vrot.slane %v2829_v35, 2  ;;  %v2849_v15 = vrot.slane %v2848_v33, 4 }
 0x288   : > { %v3706_v45 = vpack.c.bf16 %v3544_v39, %v3544_v39  ;;  %v2837_v50 = vrot.slane %v2836_v42, 2  ;;  %v2844_v58 = vrot.slane %v2843_v28, 2  ;;  %v2312_v24 = vadd.f32 %v2237_v22, %v2080_v61  ;;  %v2239_v4 = vpop.f32.mrf.mxu0 }
 0x289   : > { %v3707_v44 = vpack.c.bf16 %v3547_v43, %v3547_v43  ;;  %v3833_v5 = vunpack.c.l.b16 %v3705_v26  ;;  %v2831_v8 = vmax.f32 %v2829_v35, %v2830_v6  ;;  %v2850_v40 = vmax.f32 %v2848_v33, %v2849_v15  ;;  %v2010_v15 = vpop.f32.mrf.mxu3 }
 0x28a   : > { %v3834_v25 = vunpack.c.l.b16 %v3706_v45  ;;  %v2838_v2 = vmax.f32 %v2836_v42, %v2837_v50  ;;  %v2845_v29 = vmax.f32 %v2843_v28, %v2844_v58  ;;  %v2348_v0 = vmax.f32 %v2312_v24, 0.0 }
 0x28b   : > { %v3835_v60 = vunpack.c.l.b16 %v3707_v44  ;;  %v3902_v18 = vsel %vm3892_vm14, %v3833_v5, %v3901_v9  ;;  %v2832_v63 = vrot.slane %v2831_v8, 1  ;;  %v2851_v47 = vrot.slane %v2850_v40, 2  ;;  %v1576_v44 = vpop.f32.mrf.mxu1 }
 0x28c   : > { %v3903_v57 = vsel %vm3894_vm15, %v3834_v25, %v3902_v18  ;;  %v2839_v53 = vrot.slane %v2838_v2, 1  ;;  %v2846_v41 = vrot.slane %v2845_v29, 1  ;;  %v2437_v51 = vrot.slane %v2348_v0, 2 }
 0x28d   : > { %v3904_v1 = vsel %vm3896_vm0, %v3835_v60, %v3903_v57  ;;  %v2833_v38 = vmax.f32 %v2831_v8, %v2832_v63  ;;  %v2852_v36 = vmax.f32 %v2850_v40, %v2851_v47  ;;  %v2438_v19 = vrot.slane %v2348_v0, 4 }
 0x28e   : > { %v3948_v61 = vpack.c.b16 %v3904_v1, %v3904_v1  ;;  %v2840_v48 = vmax.f32 %v2838_v2, %v2839_v53  ;;  %v2847_v31 = vmax.f32 %v2845_v29, %v2846_v41  ;;  %v2439_v11 = vrot.slane %v2348_v0, 6  ;;  %v1730_v24 = vpop.f32.mrf.mxu2 }
 0x28f   : > { %v2853_v10 = vrot.slane %v2852_v36, 1  ;;  %v5661_v9 = vsel %vm3499_vm9, %v2833_v38, -inf  ;;  %v2855_v34 = vsel %vm2602_vm8, %v2348_v0, -inf  ;;  %v2862_v32 = vsel %vm2602_vm8, %v2437_v51, -inf }
 0x290   : > { %3965 = vst.msk [vmem:[%s5545_s28 + $0x4] sm:$0xf] %vm3963_vm1, %v3948_v61  ;;  %v2856_v3 = vrot.slane %v2855_v34, 4  ;;  %v2863_v54 = vrot.slane %v2862_v32, 4  ;;  %v2869_v27 = vsel %vm2602_vm8, %v2438_v19, -inf  ;;  %v2876_v46 = vsel %vm2602_vm8, %v2439_v11, -inf }
 0x291   : > { %v2854_v35 = vmax.f32 %v2852_v36, %v2853_v10  ;;  %v2870_v33 = vrot.slane %v2869_v27, 4  ;;  %v2877_v39 = vrot.slane %v2876_v46, 4  ;;  %v1888_v42 = vrot.slane %v6386_v14, 2  ;;  %v2242_v10 = vpop.f32.mrf.mxu0 }
 0x292   : > { %v2857_v28 = vmax.f32 %v2855_v34, %v2856_v3  ;;  %v2864_v43 = vmax.f32 %v2862_v32, %v2863_v54  ;;  %v1889_v26 = vrot.slane %v6387_v21, 3  ;;  %v1801_v6 = vadd.f32 %v1727_v62, %v5643_v52  ;;  %v5682_v62 = vld [vmem:[%s4500_s24 + $0x88] sm:$0xff]  ;;  %v2012_v54 = vpop.f32.mrf.mxu3 }
 0x293   : > { %v2871_v22 = vmax.f32 %v2869_v27, %v2870_v33  ;;  %v2878_v45 = vmax.f32 %v2876_v46, %v2877_v39  ;;  %v5673_v50 = vsel %vm3499_vm9, %v2840_v48, -inf  ;;  %v5676_v58 = vsel %vm3499_vm9, %v2847_v31, -inf }
 0x294   : > { %v2858_v5 = vrot.slane %v2857_v28, 2  ;;  %v2865_v14 = vrot.slane %v2864_v43, 2  ;;  %v5678_v8 = vor.u32 %v1889_v26, %v1888_v42  ;;  %v2081_v40 = vadd.f32 %v2007_v49, %v1801_v6  ;;  %v6462_v6 = vld [vmem:[#allocation16_spill] sm:$0xff] }
 0x295   : > { %v2872_v21 = vrot.slane %v2871_v22, 2  ;;  %v2879_v25 = vrot.slane %v2878_v45, 2  ;;  %v1646_v52 = vadd.f32 %v1574_v23, %v5085_v56  ;;  %v1472_v2 = vrot.slane %v5682_v62, 2 }
 0x296   : > { %v2859_v29 = vmax.f32 %v2857_v28, %v2858_v5  ;;  %v2866_v0 = vmax.f32 %v2864_v43, %v2865_v14  ;;  %v1891_v60 = vsel %vm1828_vm5, %v5608_v20, %v5678_v8  ;;  %v2313_v18 = vadd.f32 %v2239_v4, %v2081_v40  ;;  %v1732_v39 = vpop.f32.mrf.mxu2  ;;  %v1579_v4 = vpop.f32.mrf.mxu1  ;;  %v6461_v43 = vld [vmem:[#allocation14_spill] sm:$0xff] }
 0x297   : > { %v2873_v63 = vmax.f32 %v2871_v22, %v2872_v21  ;;  %v2880_v47 = vmax.f32 %v2878_v45, %v2879_v25  ;;  %4285 = vmatmul.msk.bf16.gmra.mxu3 %vm474_vm2, %v1891_v60  ;;  %v1473_v56 = vsel %vm1440_vm6, %v1470_v37, %v1472_v2  ;;  %v2138_v49 = vrot.slane %v5682_v62, 3 }
 0x298   : > { %v2860_v23 = vrot.slane %v2859_v29, 1  ;;  %v2867_v57 = vrot.slane %v2866_v0, 1  ;;  %v2349_v53 = vmax.f32 %v2313_v18, 0.0  ;;  %4267 = vmatmul.msk.bf16.gmra.mxu2 %vm474_vm2, %v1473_v56  ;;  %v1802_v41 = vadd.f32 %v1730_v24, %v1646_v52  ;;  %4250 = vmatmul.msk.bf16.gmra.mxu1 %vm474_vm2, %v1473_v56 }
 0x299   : > { %v2874_v20 = vrot.slane %v2873_v63, 1  ;;  %v2881_v51 = vrot.slane %v2880_v47, 1  ;;  %v2139_v1 = vsel %vm2108_vm7, %v2136_v16, %v2138_v49  ;;  %v5703_v37 = vsel %vm3499_vm9, %v2854_v35, -inf }
 0x29a   : > { %v2861_v38 = vmax.f32 %v2859_v29, %v2860_v23  ;;  %v2868_v36 = vmax.f32 %v2866_v0, %v2867_v57  ;;  %v2440_v19 = vrot.slane %v2349_v53, 2  ;;  %v2441_v61 = vrot.slane %v2349_v53, 4  ;;  %4303 = vmatmul.msk.bf16.gmra.mxu0 %vm474_vm2, %v2139_v1  ;;  %v6465_v29 = vld [vmem:[#allocation13_spill] sm:$0xff] }
 0x29b   : > { %v2875_v48 = vmax.f32 %v2873_v63, %v2874_v20  ;;  %v2882_v31 = vmax.f32 %v2880_v47, %v2881_v51  ;;  %v2442_v11 = vrot.slane %v2349_v53, 6  ;;  %v2082_v34 = vadd.f32 %v2010_v15, %v1802_v41  ;;  %v5732_v63 = vld [vmem:[%s4500_s24 + $0x90] sm:$0xff]  }
 0x29c   : > { %v5707_v32 = vsel %vm3499_vm9, %v2861_v38, -inf  ;;  %v5710_v7 = vsel %vm3499_vm9, %v2868_v36, -inf  ;;  %v2883_v16 = vsel %vm2602_vm8, %v2440_v19, -inf  ;;  %v2890_v3 = vsel %vm2602_vm8, %v2441_v61, -inf }
 0x29d   : > { %v5715_v27 = vsel %vm3499_vm9, %v2875_v48, -inf  ;;  %v2884_v46 = vrot.slane %v2883_v16, 4  ;;  %v2891_v35 = vrot.slane %v2890_v3, 4  ;;  %v2897_v33 = vsel %vm2602_vm8, %v2442_v11, -inf }
 0x29e   : > { %v2898_v42 = vrot.slane %v2897_v33, 4  ;;  %v2314_v28 = vadd.f32 %v2242_v10, %v2082_v34  ;;  %v1647_v26 = vadd.f32 %v1576_v44, %v6461_v43  ;;  %v6463_v15 = vshrl.u32 %v6462_v6, 16  ;;  %v2244_v34 = vpop.f32.mrf.mxu0 }
 0x29f   : > { %v2885_v45 = vmax.f32 %v2883_v16, %v2884_v46  ;;  %v2892_v24 = vmax.f32 %v2890_v3, %v2891_v35  ;;  %v6464_v5 = vshll.u32 %v6462_v6, 16  ;;  %v5724_v40 = vsel %vm3499_vm9, %v2882_v31, -inf }
 0x2a0   : > { %v1892_v22 = vrot.slane %v6463_v15, 2  ;;  %v2899_v21 = vmax.f32 %v2897_v33, %v2898_v42  ;;  %v2350_v25 = vmax.f32 %v2314_v28, 0.0  ;;  %v1803_v52 = vadd.f32 %v1732_v39, %v1647_v26  ;;  %v5744_v33 = vpop.f32.mrf.mxu3 }
 0x2a1   : > { %v1893_v14 = vrot.slane %v6464_v5, 3  ;;  %v5727_v0 = vadd.f32 %v1579_v4, %v6465_v29  ;;  %v2886_v60 = vrot.slane %v2885_v45, 2  ;;  %v2893_v18 = vrot.slane %v2892_v24, 2  ;;  %v5749_v5 = vpop.f32.mrf.mxu2 }
 0x2a2   : > { %v5735_v47 = vrot.slane %v5732_v63, 2  ;;  %v2900_v56 = vrot.slane %v2899_v21, 2  ;;  %v2443_v23 = vrot.slane %v2350_v25, 2  ;;  %v2444_v57 = vrot.slane %v2350_v25, 4 }
 0x2a3   : > { %v5729_v44 = vor.u32 %v1893_v14, %v1892_v22  ;;  %v2445_v53 = vrot.slane %v2350_v25, 6  ;;  %v2887_v41 = vmax.f32 %v2885_v45, %v2886_v60  ;;  %v2894_v20 = vmax.f32 %v2892_v24, %v2893_v18 }
 0x2a4   : > { %v2904_v51 = vsel %vm2602_vm8, %v2350_v25, -inf  ;;  %v2901_v38 = vmax.f32 %v2899_v21, %v2900_v56  ;;  %v2911_v19 = vsel %vm2602_vm8, %v2443_v23, -inf  ;;  %v2918_v61 = vsel %vm2602_vm8, %v2444_v57, -inf }
 0x2a5   : > { %v1895_v1 = vsel %vm1828_vm5, %v5678_v8, %v5729_v44  ;;  %v2905_v36 = vrot.slane %v2904_v51, 4  ;;  %v2888_v48 = vrot.slane %v2887_v41, 1  ;;  %v2895_v31 = vrot.slane %v2894_v20, 1 }
 0x2a6   : > { %v2912_v11 = vrot.slane %v2911_v19, 4  ;;  %v2919_v10 = vrot.slane %v2918_v61, 4  ;;  %v2902_v16 = vrot.slane %v2901_v38, 1  ;;  %v2925_v46 = vsel %vm2602_vm8, %v2445_v53, -inf }
 0x2a7   : > { %v2906_v3 = vmax.f32 %v2904_v51, %v2905_v36  ;;  %v2083_v35 = vadd.f32 %v2012_v54, %v1803_v52  ;;  %v2889_v39 = vmax.f32 %v2887_v41, %v2888_v48  ;;  %v2896_v8 = vmax.f32 %v2894_v20, %v2895_v31  ;;  %4286 = vmatmul.msk.bf16.gmra.mxu3 %vm474_vm2, %v1895_v1 }
 0x2a8   : > { %v2913_v4 = vmax.f32 %v2911_v19, %v2912_v11  ;;  %v2920_v42 = vmax.f32 %v2918_v61, %v2919_v10  ;;  %v2903_v28 = vmax.f32 %v2901_v38, %v2902_v16  ;;  %v2926_v26 = vrot.slane %v2925_v46, 4  ;;  %v1581_v19 = vpop.f32.mrf.mxu1  ;;  %v5755_v11 = vpop.f32.mrf.mxu0 }
 0x2a9   : > { %v2907_v43 = vrot.slane %v2906_v3, 2  ;;  %v2315_v6 = vadd.f32 %v2244_v34, %v2083_v35  ;;  %v3549_v15 = vsel %vm3499_vm9, %v2889_v39, -inf  ;;  %v3552_v22 = vsel %vm3499_vm9, %v2896_v8, -inf }
 0x2aa   : > { %v2914_v45 = vrot.slane %v2913_v4, 2  ;;  %v2921_v24 = vrot.slane %v2920_v42, 2  ;;  %v3550_v54 = vmax.f32 %v5661_v9, %v3549_v15  ;;  %v3553_v14 = vmax.f32 %v5673_v50, %v3552_v22 }
 0x2ab   : > { %v3555_v21 = vsel %vm3499_vm9, %v2903_v28, -inf  ;;  %v2908_v25 = vmax.f32 %v2906_v3, %v2907_v43  ;;  %v2927_v18 = vmax.f32 %v2925_v46, %v2926_v26  ;;  %v2351_v53 = vmax.f32 %v2315_v6, 0.0  ;;  %v5760_v46 = vpop.f32.mrf.mxu3 }
 0x2ac   : > { %v3556_v52 = vmax.f32 %v5676_v58, %v3555_v21  ;;  %v2915_v29 = vmax.f32 %v2913_v4, %v2914_v45  ;;  %v2922_v60 = vmax.f32 %v2920_v42, %v2921_v24  ;;  %v3708_v56 = vpack.c.bf16 %v3550_v54, %v3550_v54  ;;  %v1737_v24 = vpop.f32.mrf.mxu2 }
 0x2ad   : > { %v3709_v23 = vpack.c.bf16 %v3553_v14, %v3553_v14  ;;  %v2909_v57 = vrot.slane %v2908_v25, 1  ;;  %v2928_v1 = vrot.slane %v2927_v18, 2  ;;  %v2446_v50 = vrot.slane %v2351_v53, 4 }
 0x2ae   : > { %v3710_v41 = vpack.c.bf16 %v3556_v52, %v3556_v52  ;;  %v2916_v20 = vrot.slane %v2915_v29, 1  ;;  %v2923_v51 = vrot.slane %v2922_v60, 1  ;;  %v3836_v38 = vunpack.c.l.b16 %v3708_v56 }
 0x2af   : > { %v3837_v9 = vunpack.c.l.b16 %v3709_v23  ;;  %v2910_v36 = vmax.f32 %v2908_v25, %v2909_v57  ;;  %v2929_v58 = vmax.f32 %v2927_v18, %v2928_v1  ;;  %v2447_v16 = vrot.slane %v2351_v53, 6 }
 0x2b0   : > { %v3838_v61 = vunpack.c.l.b16 %v3710_v41  ;;  %v2917_v48 = vmax.f32 %v2915_v29, %v2916_v20  ;;  %v2924_v31 = vmax.f32 %v2922_v60, %v2923_v51  ;;  %v2932_v3 = vsel %vm2602_vm8, %v2351_v53, -inf }
 0x2b1   : > { %v3905_v10 = vsel %vm3884_vm10, %v3837_v9, %v3836_v38  ;;  %v3558_v34 = vsel %vm3499_vm9, %v2910_v36, -inf  ;;  %v2930_v39 = vrot.slane %v2929_v58, 1  ;;  %v2933_v43 = vrot.slane %v2932_v3, 4  ;;  %v1584_v38 = vpop.f32.mrf.mxu1 }
 0x2b2   : > { %v3906_v35 = vsel %vm3886_vm11, %v3838_v61, %v3905_v10  ;;  %v3559_v8 = vmax.f32 %v5703_v37, %v3558_v34  ;;  %v3561_v4 = vsel %vm3499_vm9, %v2917_v48, -inf  ;;  %v3564_v28 = vsel %vm3499_vm9, %v2924_v31, -inf  ;;  %v2249_v61 = vpop.f32.mrf.mxu0  ;;  %v6466_v10 = vld [vmem:[#allocation22_spill] sm:$0xff] }
 0x2b3   : > { %v3562_v42 = vmax.f32 %v5707_v32, %v3561_v4  ;;  %v2939_v26 = vsel %vm2602_vm8, %v2446_v50, -inf  ;;  %v2931_v6 = vmax.f32 %v2929_v58, %v2930_v39  ;;  %v3565_v15 = vmax.f32 %v5710_v7, %v3564_v28  ;;  %v5795_v39 = vld [vmem:[%s4500_s24 + $0x98] sm:$0xff]  }
 0x2b4   : > { %v3711_v22 = vpack.c.bf16 %v3559_v8, %v3559_v8  ;;  %v2940_v45 = vrot.slane %v2939_v26, 4  ;;  %v2934_v14 = vmax.f32 %v2932_v3, %v2933_v43  ;;  %v2946_v21 = vsel %vm2602_vm8, %v2447_v16, -inf  ;;  %v5791_v16 = vpop.f32.mrf.mxu3 }
 0x2b5   : > { %v3712_v54 = vpack.c.bf16 %v3562_v42, %v3562_v42  ;;  %v1475_v37 = vsel %vm1440_vm6, %v1472_v2, %v5735_v47  ;;  %v3567_v32 = vsel %vm3499_vm9, %v2931_v6, -inf  ;;  %v3713_v25 = vpack.c.bf16 %v3565_v15, %v3565_v15 }
 0x2b6   : > { %v3839_v52 = vunpack.c.l.b16 %v3711_v22  ;;  %v2941_v29 = vmax.f32 %v2939_v26, %v2940_v45  ;;  %4268 = vmatmul.msk.bf16.gmra.mxu2 %vm474_vm2, %v1475_v37  ;;  %4251 = vmatmul.msk.bf16.gmra.mxu1 %vm474_vm2, %v1475_v37  ;;  %v3568_v7 = vmax.f32 %v5715_v27, %v3567_v32  ;;  %v2935_v18 = vrot.slane %v2934_v14, 2  ;;  %v5801_v26 = vpop.f32.mrf.mxu2  ;;  %v6467_v22 = vld [vmem:[#allocation39_spill] sm:$0xff] }
 0x2b7   : > { %v3840_v60 = vunpack.c.l.b16 %v3712_v54  ;;  %v2947_v56 = vrot.slane %v2946_v21, 4  ;;  %v3841_v23 = vunpack.c.l.b16 %v3713_v25  ;;  %v2140_v2 = vrot.slane %v5732_v63, 3 }
 0x2b8   : > { %v3907_v57 = vsel %vm3888_vm12, %v3839_v52, %v3906_v35  ;;  %v2942_v53 = vrot.slane %v2941_v29, 2  ;;  %v3714_v41 = vpack.c.bf16 %v3568_v7, %v3568_v7  ;;  %v2936_v51 = vmax.f32 %v2934_v14, %v2935_v18 }
 0x2b9   : > { %v3908_v20 = vsel %vm3890_vm13, %v3840_v60, %v3907_v57  ;;  %v2948_v1 = vmax.f32 %v2946_v21, %v2947_v56  ;;  %v2141_v27 = vsel %vm2108_vm7, %v2138_v49, %v2140_v2  ;;  %v1804_v50 = vadd.f32 %v5749_v5, %v5727_v0 }
 0x2ba   : > { %v2943_v9 = vmax.f32 %v2941_v29, %v2942_v53  ;;  %v3909_v36 = vsel %vm3892_vm14, %v3841_v23, %v3908_v20  ;;  %v3842_v48 = vunpack.c.l.b16 %v3714_v41  ;;  %v2937_v31 = vrot.slane %v2936_v51, 1  ;;  %4304 = vmatmul.msk.bf16.gmra.mxu0 %vm474_vm2, %v2141_v27  ;;  %v5823_v23 = vpop.f32.mrf.mxu1 }
 0x2bb   : > { %v2949_v58 = vrot.slane %v2948_v1, 2  ;;  %v1649_v34 = vadd.f32 %v1581_v19, %v6466_v10  ;;  %v2084_v35 = vadd.f32 %v5744_v33, %v1804_v50  ;;  %v1897_v62 = vshrl.u32 %v5795_v39, 16 }
 0x2bc   : > { %v2944_v3 = vrot.slane %v2943_v9, 1  ;;  %v1900_v49 = vshll.u32 %v5795_v39, 16  ;;  %v2938_v0 = vmax.f32 %v2936_v51, %v2937_v31  ;;  %v3910_v8 = vsel %vm3894_vm15, %v3842_v48, %v3909_v36  ;;  %v5828_v51 = vpop.f32.mrf.mxu0 }
 0x2bd   : > { %v2950_v5 = vmax.f32 %v2948_v1, %v2949_v58  ;;  %v1805_v4 = vadd.f32 %v1737_v24, %v1649_v34  ;;  %v2316_v28 = vadd.f32 %v5755_v11, %v2084_v35  ;;  %v1899_v19 = vrot.slane %v1897_v62, 2 }
 0x2be   : > { %v2945_v42 = vmax.f32 %v2943_v9, %v2944_v3  ;;  %v1902_v43 = vrot.slane %v1900_v49, 3  ;;  %v3570_v33 = vsel %vm3499_vm9, %v2938_v0, -inf  ;;  %v5806_v45 = vadd.f32 %v1584_v38, %v6467_v22  ;;  %v1742_v0 = vpop.f32.mrf.mxu2 }
 0x2bf   : > { %v2951_v6 = vrot.slane %v2950_v5, 1  ;;  %v2085_v15 = vadd.f32 %v5760_v46, %v1805_v4  ;;  %v3571_v54 = vmax.f32 %v5724_v40, %v3570_v33  ;;  %v2352_v24 = vmax.f32 %v2316_v28, 0.0 }
 0x2c0   : > { %v5810_v14 = vsel %vm3499_vm9, %v2945_v42, -inf  ;;  %v5812_v21 = vor.u32 %v1902_v43, %v1899_v19  ;;  %v1678_v32 = vrot.slane %v5795_v39, 2  ;;  %v2142_v25 = vrot.slane %v5795_v39, 3 }
 0x2c1   : > { %v2952_v11 = vmax.f32 %v2950_v5, %v2951_v6  ;;  %v2317_v37 = vadd.f32 %v2249_v61, %v2085_v15  ;;  %v3715_v52 = vpack.c.bf16 %v3571_v54, %v3571_v54  ;;  %v2448_v29 = vrot.slane %v2352_v24, 2 }
 0x2c2   : > { %v2449_v46 = vrot.slane %v2352_v24, 4  ;;  %v2450_v7 = vrot.slane %v2352_v24, 6  ;;  %v2953_v40 = vsel %vm2602_vm8, %v2352_v24, -inf  ;;  %v1904_v18 = vsel %vm1828_vm5, %v5729_v44, %v5812_v21  ;;  %v5831_v44 = vpop.f32.mrf.mxu3 }
 0x2c3   : > { %v5817_v60 = vsel %vm3499_vm9, %v2952_v11, -inf  ;;  %v2353_v56 = vmax.f32 %v2317_v37, 0.0  ;;  %v3843_v57 = vunpack.c.l.b16 %v3715_v52  ;;  %v2954_v53 = vrot.slane %v2953_v40, 4  ;;  %4287 = vmatmul.msk.bf16.gmra.mxu3 %vm474_vm2, %v1904_v18  ;;  %v1589_v18 = vpop.f32.mrf.mxu1 }
 0x2c4   : > { %v2960_v41 = vsel %vm2602_vm8, %v2448_v29, -inf  ;;  %v2967_v20 = vsel %vm2602_vm8, %v2449_v46, -inf  ;;  %v2974_v9 = vsel %vm2602_vm8, %v2450_v7, -inf  ;;  %v1679_v54 = vsel %vm1440_vm6, %v5735_v47, %v1678_v32 }
 0x2c5   : > { %v2961_v1 = vrot.slane %v2960_v41, 4  ;;  %v2968_v38 = vrot.slane %v2967_v20, 4  ;;  %v2451_v36 = vrot.slane %v2353_v56, 2  ;;  %v3911_v27 = vsel %vm3896_vm0, %v3843_v57, %v3910_v8 }
 0x2c6   : > { %v2955_v50 = vmax.f32 %v2953_v40, %v2954_v53  ;;  %v2975_v61 = vrot.slane %v2974_v9, 4  ;;  %v2452_v48 = vrot.slane %v2353_v56, 6  ;;  %v3949_v31 = vpack.c.b16 %v3911_v27, %v3911_v27  ;;  %4269 = vmatmul.msk.bf16.gmra.mxu2 %vm474_vm2, %v1679_v54  ;;  %v228_v27 = vld [vmem:[%s4500_s24 + $0xa0] sm:$0xf] }
 0x2c7   : > { %v2962_v58 = vmax.f32 %v2960_v41, %v2961_v1  ;;  %v2969_v10 = vmax.f32 %v2967_v20, %v2968_v38  ;;  %v2981_v34 = vsel %vm2602_vm8, %v2353_v56, -inf  ;;  %v2988_v49 = vsel %vm2602_vm8, %v2451_v36, -inf  ;;  %v2254_v20 = vpop.f32.mrf.mxu0 }
 0x2c8   : > { %v2956_v3 = vrot.slane %v2955_v50, 2  ;;  %v2976_v35 = vmax.f32 %v2974_v9, %v2975_v61  ;;  %v2982_v62 = vrot.slane %v2981_v34, 4  ;;  %3966 = vst.msk [vmem:[%s5545_s28 + $0x8] sm:$0xf] %vm3963_vm1, %v3949_v31  ;;  %v2989_v42 = vrot.slane %v2988_v49, 4 }
 0x2c9   : > { %v2963_v5 = vrot.slane %v2962_v58, 2  ;;  %v2970_v4 = vrot.slane %v2969_v10, 2  ;;  %v2995_v8 = vsel %vm2602_vm8, %v2452_v48, -inf  ;;  %v2143_v40 = vsel %vm2108_vm7, %v2140_v2, %v2142_v25 }
 0x2ca   : > { %v2957_v28 = vmax.f32 %v2955_v50, %v2956_v3  ;;  %v2977_v19 = vrot.slane %v2976_v35, 2  ;;  %v2983_v43 = vmax.f32 %v2981_v34, %v2982_v62  ;;  %v2996_v6 = vrot.slane %v2995_v8, 4  ;;  %4305 = vmatmul.msk.bf16.gmra.mxu0 %vm474_vm2, %v2143_v40  ;;  %v5853_v50 = vpop.f32.mrf.mxu3 }
 0x2cb   : > { %v2964_v33 = vmax.f32 %v2962_v58, %v2963_v5  ;;  %v2971_v15 = vmax.f32 %v2969_v10, %v2970_v4  ;;  %v2990_v22 = vmax.f32 %v2988_v49, %v2989_v42  ;;  %v1806_v36 = vadd.f32 %v5801_v26, %v5806_v45  ;;  %v6468_v45 = vld [vmem:[#allocation23_spill] sm:$0xff]  ;;  %v1745_v49 = vpop.f32.mrf.mxu2 }
 0x2cc   : > { %v2958_v24 = vrot.slane %v2957_v28, 1  ;;  %v2978_v11 = vmax.f32 %v2976_v35, %v2977_v19  ;;  %v2984_v37 = vrot.slane %v2983_v43, 2  ;;  %v2997_v52 = vmax.f32 %v2995_v8, %v2996_v6  ;;  %v6469_v8 = vld [vmem:[#allocation42_spill] sm:$0xff] }
 0x2cd   : > { %v2965_v29 = vrot.slane %v2964_v33, 1  ;;  %v2972_v46 = vrot.slane %v2971_v15, 1  ;;  %v2991_v7 = vrot.slane %v2990_v22, 2  ;;  %v2086_v34 = vadd.f32 %v5791_v16, %v1806_v36 }
 0x2ce   : > { %v2959_v56 = vmax.f32 %v2957_v28, %v2958_v24  ;;  %v2979_v57 = vrot.slane %v2978_v11, 1  ;;  %v2985_v53 = vmax.f32 %v2983_v43, %v2984_v37  ;;  %v2998_v41 = vrot.slane %v2997_v52, 2 }
 0x2cf   : > { %v2966_v1 = vmax.f32 %v2964_v33, %v2965_v29  ;;  %v2973_v38 = vmax.f32 %v2971_v15, %v2972_v46  ;;  %v2992_v9 = vmax.f32 %v2990_v22, %v2991_v7  ;;  %v1651_v35 = vadd.f32 %v5823_v23, %v6468_v45  ;;  %v6470_v15 = vld [vmem:[#allocation25_spill] sm:$0xff]  ;;  %v5888_v7 = vpop.f32.mrf.mxu1 }
 0x2d0   : > { %v2980_v63 = vmax.f32 %v2978_v11, %v2979_v57  ;;  %v5856_v2 = vsel %vm3499_vm9, %v2959_v56, -inf  ;;  %v2986_v61 = vrot.slane %v2985_v53, 1  ;;  %v2999_v48 = vmax.f32 %v2997_v52, %v2998_v41 }
 0x2d1   : > { %v5859_v31 = vsel %vm3499_vm9, %v2966_v1, -inf  ;;  %v5862_v58 = vsel %vm3499_vm9, %v2973_v38, -inf  ;;  %v2993_v10 = vrot.slane %v2992_v9, 1  ;;  %v1675_v62 = vunpack.c.l.b16 %v228_v27 }
 0x2d2   : > { %v2987_v3 = vmax.f32 %v2985_v53, %v2986_v61  ;;  %v3000_v26 = vrot.slane %v2999_v48, 1  ;;  %v2318_v4 = vadd.f32 %v5828_v51, %v2086_v34  ;;  %v5869_v42 = vsel %vm3499_vm9, %v2980_v63, -inf  ;;  %v5891_v53 = vpop.f32.mrf.mxu0 }
 0x2d3   : > { %v2994_v5 = vmax.f32 %v2992_v9, %v2993_v10  ;;  %v1652_v28 = vadd.f32 %v1589_v18, %v6469_v8  ;;  %v5875_v16 = vpack.c.b16 %v1675_v62, %v1675_v62  ;;  %v1807_v6 = vadd.f32 %v1742_v0, %v1651_v35  ;;  %v5895_v9 = vpop.f32.mrf.mxu3 }
 0x2d4   : > { %v3001_v19 = vmax.f32 %v2999_v48, %v3000_v26  ;;  %v5873_v43 = vsel %vm3499_vm9, %v2987_v3, -inf  ;;  %v2354_v23 = vmax.f32 %v2318_v4, 0.0  ;;  %v1476_v22 = vrot.slane %v6470_v15, 2 }
 0x2d5   : > { %v5878_v33 = vsel %vm3499_vm9, %v2994_v5, -inf  ;;  %v5881_v54 = vadd.f32 %v1745_v49, %v1652_v28  ;;  %v1906_v24 = vshrl.u32 %v5875_v16, 16  ;;  %v1909_v11 = vshll.u32 %v5875_v16, 16 }
 0x2d6   : > { %v3573_v51 = vsel %vm3499_vm9, %v3001_v19, -inf  ;;  %v2087_v37 = vadd.f32 %v5831_v44, %v1807_v6  ;;  %v2453_v29 = vrot.slane %v2354_v23, 2  ;;  %v2454_v0 = vrot.slane %v2354_v23, 4 }
 0x2d7   : > { %v3574_v52 = vmax.f32 %v5810_v14, %v3573_v51  ;;  %v2455_v46 = vrot.slane %v2354_v23, 6  ;;  %v3002_v40 = vsel %vm2602_vm8, %v2354_v23, -inf  ;;  %v1908_v18 = vrot.slane %v1906_v24, 2 }
 0x2d8   : > { %v1911_v56 = vrot.slane %v1909_v11, 3  ;;  %v2319_v57 = vadd.f32 %v2254_v20, %v2087_v37  ;;  %v3003_v1 = vrot.slane %v3002_v40, 4  ;;  %v3009_v38 = vsel %vm2602_vm8, %v2453_v29, -inf }
 0x2d9   : > { %v3716_v41 = vpack.c.bf16 %v3574_v52, %v3574_v52  ;;  %v3016_v44 = vsel %vm2602_vm8, %v2454_v0, -inf  ;;  %v3010_v14 = vrot.slane %v3009_v38, 4  ;;  %v3023_v27 = vsel %vm2602_vm8, %v2455_v46, -inf  ;;  %v5912_v46 = vpop.f32.mrf.mxu1 }
 0x2da   : > { %v3017_v36 = vrot.slane %v3016_v44, 4  ;;  %v1912_v63 = vor.u32 %v1911_v56, %v1908_v18  ;;  %v3004_v48 = vmax.f32 %v3002_v40, %v3003_v1  ;;  %v3024_v10 = vrot.slane %v3023_v27, 4 }
 0x2db   : > { %v5898_v61 = vunpack.c.l.b16 %v3716_v41  ;;  %v2355_v20 = vmax.f32 %v2319_v57, 0.0  ;;  %v3011_v34 = vmax.f32 %v3009_v38, %v3010_v14  ;;  %v1477_v45 = vsel %vm1440_vm6, %v5735_v47, %v1476_v22  ;;  %v5909_v47 = vpop.f32.mrf.mxu2  ;;  %v5917_v41 = vpop.f32.mrf.mxu0 }
 0x2dc   : > { %v3018_v3 = vmax.f32 %v3016_v44, %v3017_v36  ;;  %v1913_v26 = vsel %vm1828_vm5, %v5812_v21, %v1912_v63  ;;  %v3005_v35 = vrot.slane %v3004_v48, 2  ;;  %v3025_v62 = vmax.f32 %v3023_v27, %v3024_v10  ;;  %4252 = vmatmul.msk.bf16.gmra.mxu1 %vm474_vm2, %v1477_v45  ;;  %v5920_v36 = vpop.f32.mrf.mxu3 }
 0x2dd   : > { %4288 = vmatmul.msk.bf16.gmra.mxu3 %vm474_vm2, %v1913_v26  ;;  %v2456_v49 = vrot.slane %v2355_v20, 2  ;;  %v2457_v5 = vrot.slane %v2355_v20, 4  ;;  %v3012_v4 = vrot.slane %v3011_v34, 2  ;;  %v3030_v28 = vsel %vm2602_vm8, %v2355_v20, -inf }
 0x2de   : > { %v3019_v8 = vrot.slane %v3018_v3, 2  ;;  %v1680_v19 = vrot.slane %v5875_v16, 2  ;;  %v3006_v6 = vmax.f32 %v3004_v48, %v3005_v35  ;;  %v3026_v23 = vrot.slane %v3025_v62, 2 }
 0x2df   : > { %v3031_v21 = vrot.slane %v3030_v28, 4  ;;  %v3037_v15 = vsel %vm2602_vm8, %v2456_v49, -inf  ;;  %v3013_v22 = vmax.f32 %v3011_v34, %v3012_v4  ;;  %v3044_v11 = vsel %vm2602_vm8, %v2457_v5, -inf }
 0x2e0   : > { %v3020_v51 = vmax.f32 %v3018_v3, %v3019_v8  ;;  %v3038_v24 = vrot.slane %v3037_v15, 4  ;;  %v3007_v37 = vrot.slane %v3006_v6, 1  ;;  %v3027_v52 = vmax.f32 %v3025_v62, %v3026_v23 }
 0x2e1   : > { %v3032_v29 = vmax.f32 %v3030_v28, %v3031_v21  ;;  %v3045_v0 = vrot.slane %v3044_v11, 4  ;;  %v3014_v40 = vrot.slane %v3013_v22, 1  ;;  %v1681_v57 = vsel %vm1440_vm6, %v1678_v32, %v1680_v19 }
 0x2e2   : > { %v3021_v18 = vrot.slane %v3020_v51, 1  ;;  %v3039_v56 = vmax.f32 %v3037_v15, %v3038_v24  ;;  %v3008_v1 = vmax.f32 %v3006_v6, %v3007_v37  ;;  %v3028_v38 = vrot.slane %v3027_v52, 1  ;;  %4270 = vmatmul.msk.bf16.gmra.mxu2 %vm474_vm2, %v1681_v57 }
 0x2e3   : > { %v3033_v44 = vrot.slane %v3032_v29, 2  ;;  %v3046_v14 = vmax.f32 %v3044_v11, %v3045_v0  ;;  %v3015_v27 = vmax.f32 %v3013_v22, %v3014_v40  ;;  %v2144_v10 = vrot.slane %v5875_v16, 3  ;;  %v1750_v22 = vpop.f32.mrf.mxu2 }
 0x2e4   : > { %v3022_v63 = vmax.f32 %v3020_v51, %v3021_v18  ;;  %v3040_v48 = vrot.slane %v3039_v56, 2  ;;  %v3029_v20 = vmax.f32 %v3027_v52, %v3028_v38  ;;  %v3576_v34 = vsel %vm3499_vm9, %v3008_v1, -inf  ;;  %v5941_v18 = vpop.f32.mrf.mxu0  ;;  %v6471_v38 = vld [vmem:[#allocation26_spill] sm:$0xff] }
 0x2e5   : > { %v3034_v3 = vmax.f32 %v3032_v29, %v3033_v44  ;;  %v3047_v32 = vrot.slane %v3046_v14, 2  ;;  %v3577_v26 = vmax.f32 %v5817_v60, %v3576_v34  ;;  %v3579_v45 = vsel %vm3499_vm9, %v3015_v27, -inf  ;;  %v1596_v29 = vpop.f32.mrf.mxu1  ;;  %v6472_v34 = vld [vmem:[#allocation24_spill] sm:$0xff] }
 0x2e6   : > { %v3582_v35 = vsel %vm3499_vm9, %v3022_v63, -inf  ;;  %v3041_v62 = vmax.f32 %v3039_v56, %v3040_v48  ;;  %v3580_v49 = vmax.f32 %v5856_v2, %v3579_v45  ;;  %v3585_v4 = vsel %vm3499_vm9, %v3029_v20, -inf }
 0x2e7   : > { %v3583_v5 = vmax.f32 %v5859_v31, %v3582_v35  ;;  %v3035_v8 = vrot.slane %v3034_v3, 1  ;;  %v3586_v16 = vmax.f32 %v5862_v58, %v3585_v4  ;;  %v3717_v28 = vpack.c.bf16 %v3577_v26, %v3577_v26 }
 0x2e8   : > { %v3042_v19 = vrot.slane %v3041_v62, 1  ;;  %v3048_v6 = vmax.f32 %v3046_v14, %v3047_v32  ;;  %v3718_v23 = vpack.c.bf16 %v3580_v49, %v3580_v49  ;;  %v2145_v15 = vsel %vm2108_vm7, %v2142_v25, %v2144_v10 }
 0x2e9   : > { %v3719_v21 = vpack.c.bf16 %v3583_v5, %v3583_v5  ;;  %v3036_v60 = vmax.f32 %v3034_v3, %v3035_v8  ;;  %v3720_v51 = vpack.c.bf16 %v3586_v16, %v3586_v16  ;;  %v3845_v2 = vunpack.c.l.b16 %v3717_v28  ;;  %4306 = vmatmul.msk.bf16.gmra.mxu0 %vm474_vm2, %v2145_v15  ;;  %v6473_v3 = vld [vmem:[#allocation44_spill] sm:$0xff] }
 0x2ea   : > { %v3043_v24 = vmax.f32 %v3041_v62, %v3042_v19  ;;  %v3049_v31 = vrot.slane %v3048_v6, 1  ;;  %v3846_v11 = vunpack.c.l.b16 %v3718_v23  ;;  %v2088_v52 = vadd.f32 %v5853_v50, %v5881_v54  ;;  %v5948_v50 = vpop.f32.mrf.mxu3 }
 0x2eb   : > { %v3847_v37 = vunpack.c.l.b16 %v3719_v21  ;;  %v3588_v58 = vsel %vm3499_vm9, %v3036_v60, -inf  ;;  %v3848_v0 = vunpack.c.l.b16 %v3720_v51  ;;  %v3912_v39 = vsel %vm3884_vm10, %v3845_v2, %v5898_v61 }
 0x2ec   : > { %v3050_v25 = vmax.f32 %v3048_v6, %v3049_v31  ;;  %v3589_v40 = vmax.f32 %v5869_v42, %v3588_v58  ;;  %v3913_v56 = vsel %vm3886_vm11, %v3846_v11, %v3912_v39  ;;  %v3591_v57 = vsel %vm3499_vm9, %v3043_v24, -inf }
 0x2ed   : > { %v2320_v1 = vadd.f32 %v5891_v53, %v2088_v52  ;;  %v1653_v44 = vadd.f32 %v5888_v7, %v6471_v38  ;;  %v3592_v54 = vmax.f32 %v5873_v43, %v3591_v57  ;;  %v3914_v42 = vsel %vm3888_vm12, %v3847_v37, %v3913_v56  ;;  %v1599_v51 = vpop.f32.mrf.mxu1  ;;  %v2264_v37 = vpop.f32.mrf.mxu0 }
 0x2ee   : > { %v3594_v61 = vsel %vm3499_vm9, %v3050_v25, -inf  ;;  %v3721_v14 = vpack.c.bf16 %v3589_v40, %v3589_v40  ;;  %v3915_v63 = vsel %vm3890_vm13, %v3848_v0, %v3914_v42  ;;  %v1654_v7 = vadd.f32 %v5912_v46, %v6472_v34  ;;  %v1752_v46 = vpop.f32.mrf.mxu2 }
 0x2ef   : > { %v3595_v27 = vmax.f32 %v5878_v33, %v3594_v61  ;;  %v2356_v48 = vmax.f32 %v2320_v1, 0.0  ;;  %v1809_v10 = vadd.f32 %v5909_v47, %v1653_v44  ;;  %v3722_v53 = vpack.c.bf16 %v3592_v54, %v3592_v54 }
 0x2f0   : > { %v3849_v20 = vunpack.c.l.b16 %v3721_v14  ;;  %v1655_v32 = vadd.f32 %v1596_v29, %v6473_v3  ;;  %v1810_v11 = vadd.f32 %v1750_v22, %v1654_v7 }
 0x2f1   : > { %v3723_v43 = vpack.c.bf16 %v3595_v27, %v3595_v27  ;;  %v2458_v26 = vrot.slane %v2356_v48, 2  ;;  %v2459_v45 = vrot.slane %v2356_v48, 4  ;;  %v2460_v35 = vrot.slane %v2356_v48, 6 }
 0x2f2   : > { %v3850_v62 = vunpack.c.l.b16 %v3722_v53  ;;  %v3916_v49 = vsel %vm3892_vm14, %v3849_v20, %v3915_v63  ;;  %v3051_v33 = vsel %vm2602_vm8, %v2356_v48, -inf  ;;  %v2089_v5 = vadd.f32 %v5895_v9, %v1809_v10  ;;  %v5968_v39 = vpop.f32.mrf.mxu3 }
 0x2f3   : > { %v3851_v4 = vunpack.c.l.b16 %v3723_v43  ;;  %v3052_v47 = vrot.slane %v3051_v33, 4  ;;  %v3058_v8 = vsel %vm2602_vm8, %v2458_v26, -inf  ;;  %v3065_v16 = vsel %vm2602_vm8, %v2459_v45, -inf }
 0x2f4   : > { %v3917_v28 = vsel %vm3894_vm15, %v3850_v62, %v3916_v49  ;;  %v3059_v19 = vrot.slane %v3058_v8, 4  ;;  %v3066_v6 = vrot.slane %v3065_v16, 4  ;;  %v3072_v23 = vsel %vm2602_vm8, %v2460_v35, -inf }
 0x2f5   : > { %v3918_v21 = vsel %vm3896_vm0, %v3851_v4, %v3917_v28  ;;  %v3053_v60 = vmax.f32 %v3051_v33, %v3052_v47  ;;  %v3073_v15 = vrot.slane %v3072_v23, 4  ;;  %v2321_v9 = vadd.f32 %v5917_v41, %v2089_v5 }
 0x2f6   : > { %v3950_v2 = vpack.c.b16 %v3918_v21, %v3918_v21  ;;  %v3060_v24 = vmax.f32 %v3058_v8, %v3059_v19  ;;  %v3067_v31 = vmax.f32 %v3065_v16, %v3066_v6  ;;  %v1811_v0 = vadd.f32 %v1752_v46, %v1655_v32  ;;  %v1755_v32 = vpop.f32.mrf.mxu2  ;;  %v2267_v46 = vpop.f32.mrf.mxu0 }
 0x2f7   : > { %v3054_v58 = vrot.slane %v3053_v60, 2  ;;  %v3074_v52 = vmax.f32 %v3072_v23, %v3073_v15  ;;  %v2357_v29 = vmax.f32 %v2321_v9, 0.0  ;;  %v2090_v56 = vadd.f32 %v5920_v36, %v1810_v11  ;;  %v5989_v21 = vpop.f32.mrf.mxu1 }
 0x2f8   : > { %3967 = vst.msk [vmem:[%s5545_s28 + $0xc] sm:$0xf] %vm3963_vm1, %v3950_v2  ;;  %v3061_v25 = vrot.slane %v3060_v24, 2  ;;  %v3068_v40 = vrot.slane %v3067_v31, 2  ;;  %v1656_v41 = vadd.f32 %v1599_v51, %v5261_v13  ;;  %v2091_v23 = vadd.f32 %v5948_v50, %v1811_v0 }
 0x2f9   : > { %v3055_v57 = vmax.f32 %v3053_v60, %v3054_v58  ;;  %v3075_v1 = vrot.slane %v3074_v52, 2  ;;  %v2461_v38 = vrot.slane %v2357_v29, 2  ;;  %v2462_v44 = vrot.slane %v2357_v29, 4 }
 0x2fa   : > { %v3062_v22 = vmax.f32 %v3060_v24, %v3061_v25  ;;  %v3069_v54 = vmax.f32 %v3067_v31, %v3068_v40  ;;  %v2463_v61 = vrot.slane %v2357_v29, 6  ;;  %v3079_v14 = vsel %vm2602_vm8, %v2357_v29, -inf  ;;  %v5991_v60 = vpop.f32.mrf.mxu3 }
 0x2fb   : > { %v3056_v42 = vrot.slane %v3055_v57, 1  ;;  %v3076_v27 = vmax.f32 %v3074_v52, %v3075_v1  ;;  %v3080_v63 = vrot.slane %v3079_v14, 4  ;;  %v3086_v48 = vsel %vm2602_vm8, %v2461_v38, -inf }
 0x2fc   : > { %v3063_v10 = vrot.slane %v3062_v22, 1  ;;  %v3070_v53 = vrot.slane %v3069_v54, 1  ;;  %v3087_v20 = vrot.slane %v3086_v48, 4  ;;  %v3093_v36 = vsel %vm2602_vm8, %v2462_v44, -inf }
 0x2fd   : > { %v3057_v13 = vmax.f32 %v3055_v57, %v3056_v42  ;;  %v3077_v34 = vrot.slane %v3076_v27, 1  ;;  %v3081_v7 = vmax.f32 %v3079_v14, %v3080_v63  ;;  %v3094_v3 = vrot.slane %v3093_v36, 4 }
 0x2fe   : > { %v3064_v43 = vmax.f32 %v3062_v22, %v3063_v10  ;;  %v3071_v26 = vmax.f32 %v3069_v54, %v3070_v53  ;;  %v3088_v45 = vmax.f32 %v3086_v48, %v3087_v20  ;;  %v3100_v35 = vsel %vm2602_vm8, %v2463_v61, -inf  ;;  %v6001_v61 = vpop.f32.mrf.mxu2 }
 0x2ff   : > { %v3078_v62 = vmax.f32 %v3076_v27, %v3077_v34  ;;  %v5979_v49 = vsel %vm3499_vm9, %v3057_v13, -inf  ;;  %v3082_v33 = vrot.slane %v3081_v7, 2  ;;  %v3095_v5 = vmax.f32 %v3093_v36, %v3094_v3  ;;  %v6010_v36 = vpop.f32.mrf.mxu1 }
 0x300   : > { %v3089_v4 = vrot.slane %v3088_v45, 2  ;;  %v3101_v47 = vrot.slane %v3100_v35, 4  ;;  %v2322_v8 = vadd.f32 %v5941_v18, %v2090_v56  ;;  %v5983_v16 = vsel %vm3499_vm9, %v3064_v43, -inf }
 0x301   : > { %v3083_v28 = vmax.f32 %v3081_v7, %v3082_v33  ;;  %v3096_v19 = vrot.slane %v3095_v5, 2  ;;  %v5986_v6 = vsel %vm3499_vm9, %v3071_v26, -inf  ;;  %v5994_v18 = vsel %vm3499_vm9, %v3078_v62, -inf }
 0x302   : > { %v3090_v15 = vmax.f32 %v3088_v45, %v3089_v4  ;;  %v3102_v9 = vmax.f32 %v3100_v35, %v3101_v47  ;;  %v2358_v51 = vmax.f32 %v2322_v8, 0.0  ;;  %v2323_v31 = vadd.f32 %v2264_v37, %v2091_v23  ;;  %v6017_v62 = vpop.f32.mrf.mxu3 }
 0x303   : > { %v3084_v2 = vrot.slane %v3083_v28, 1  ;;  %v3097_v24 = vmax.f32 %v3095_v5, %v3096_v19  ;;  %v1812_v11 = vadd.f32 %v1755_v32, %v1656_v41  ;;  %v6015_v32 = vpop.f32.mrf.mxu0 }
 0x304   : > { %v3091_v58 = vrot.slane %v3090_v15, 1  ;;  %v3103_v52 = vrot.slane %v3102_v9, 2  ;;  %v2464_v29 = vrot.slane %v2358_v51, 2  ;;  %v2465_v25 = vrot.slane %v2358_v51, 4 }
 0x305   : > { %v3085_v40 = vmax.f32 %v3083_v28, %v3084_v2  ;;  %v3098_v50 = vrot.slane %v3097_v24, 1  ;;  %v2466_v0 = vrot.slane %v2358_v51, 6  ;;  %v2359_v56 = vmax.f32 %v2323_v31, 0.0 }
 0x306   : > { %v3092_v57 = vmax.f32 %v3090_v15, %v3091_v58  ;;  %v3104_v1 = vmax.f32 %v3102_v9, %v3103_v52  ;;  %v3107_v38 = vsel %vm2602_vm8, %v2464_v29, -inf  ;;  %v3114_v44 = vsel %vm2602_vm8, %v2465_v25, -inf  ;;  %v6023_v29 = vpop.f32.mrf.mxu2 }
 0x307   : > { %v3099_v22 = vmax.f32 %v3097_v24, %v3098_v50  ;;  %v5999_v54 = vsel %vm3499_vm9, %v3085_v40, -inf  ;;  %v3108_v37 = vrot.slane %v3107_v38, 4  ;;  %v3115_v41 = vrot.slane %v3114_v44, 4 }
 0x308   : > { %v3105_v14 = vrot.slane %v3104_v1, 1  ;;  %v6004_v42 = vsel %vm3499_vm9, %v3092_v57, -inf  ;;  %v3121_v27 = vsel %vm2602_vm8, %v2466_v0, -inf  ;;  %v2467_v63 = vrot.slane %v2359_v56, 2 }
 0x309   : > { %v6008_v48 = vsel %vm3499_vm9, %v3099_v22, -inf  ;;  %v3109_v10 = vmax.f32 %v3107_v38, %v3108_v37  ;;  %v3116_v53 = vmax.f32 %v3114_v44, %v3115_v41  ;;  %v3122_v20 = vrot.slane %v3121_v27, 4 }
 0x30a   : > { %v6012_v13 = vmax.f32 %v3104_v1, %v3105_v14  ;;  %v2468_v34 = vrot.slane %v2359_v56, 4  ;;  %v2469_v7 = vrot.slane %v2359_v56, 6  ;;  %v3128_v3 = vsel %vm2602_vm8, %v2359_v56, -inf  ;;  %v6025_v1 = vpop.f32.mrf.mxu1 }
 0x30b   : > { %v3110_v43 = vrot.slane %v3109_v10, 2  ;;  %v3117_v26 = vrot.slane %v3116_v53, 2  ;;  %v3123_v45 = vmax.f32 %v3121_v27, %v3122_v20  ;;  %v3129_v35 = vrot.slane %v3128_v3, 4 }
 0x30c   : > { %v3135_v33 = vsel %vm2602_vm8, %v2467_v63, -inf  ;;  %v3142_v5 = vsel %vm2602_vm8, %v2468_v34, -inf  ;;  %v3149_v4 = vsel %vm2602_vm8, %v2469_v7, -inf  ;;  %v2092_v47 = vadd.f32 %v5968_v39, %v1812_v11  ;;  %v6031_v34 = vpop.f32.mrf.mxu0 }
 0x30d   : > { %v3111_v8 = vmax.f32 %v3109_v10, %v3110_v43  ;;  %v3118_v28 = vmax.f32 %v3116_v53, %v3117_v26  ;;  %v3124_v19 = vrot.slane %v3123_v45, 2  ;;  %v3130_v23 = vmax.f32 %v3128_v3, %v3129_v35 }
 0x30e   : > { %v3136_v15 = vrot.slane %v3135_v33, 4  ;;  %v3143_v9 = vrot.slane %v3142_v5, 4  ;;  %v3150_v51 = vrot.slane %v3149_v4, 4  ;;  %v2324_v2 = vadd.f32 %v2267_v46, %v2092_v47 }
 0x30f   : > { %v3112_v24 = vrot.slane %v3111_v8, 1  ;;  %v3119_v31 = vrot.slane %v3118_v28, 1  ;;  %v3125_v58 = vmax.f32 %v3123_v45, %v3124_v19  ;;  %v3131_v52 = vrot.slane %v3130_v23, 2  ;;  %v6034_v45 = vpop.f32.mrf.mxu3 }
 0x310   : > { %v3137_v25 = vmax.f32 %v3135_v33, %v3136_v15  ;;  %v3144_v40 = vmax.f32 %v3142_v5, %v3143_v9  ;;  %v3151_v50 = vmax.f32 %v3149_v4, %v3150_v51  ;;  %v2360_v0 = vmax.f32 %v2324_v2, 0.0 }
 0x311   : > { %v3113_v56 = vmax.f32 %v3111_v8, %v3112_v24  ;;  %v3120_v39 = vmax.f32 %v3118_v28, %v3119_v31  ;;  %v3126_v11 = vrot.slane %v3125_v58, 1  ;;  %v3132_v57 = vmax.f32 %v3130_v23, %v3131_v52  ;;  %v1762_v28 = vpop.f32.mrf.mxu2 }
 0x312   : > { %v3138_v38 = vrot.slane %v3137_v25, 2  ;;  %v3145_v44 = vrot.slane %v3144_v40, 2  ;;  %v3152_v22 = vrot.slane %v3151_v50, 2  ;;  %v2470_v46 = vrot.slane %v2360_v0, 4 }
 0x313   : > { %v3127_v37 = vmax.f32 %v3125_v58, %v3126_v11  ;;  %v3597_v41 = vsel %vm3499_vm9, %v3113_v56, -inf  ;;  %v3600_v14 = vsel %vm3499_vm9, %v3120_v39, -inf  ;;  %v3133_v27 = vrot.slane %v3132_v57, 1 }
 0x314   : > { %v3598_v63 = vmax.f32 %v5979_v49, %v3597_v41  ;;  %v3601_v10 = vmax.f32 %v5983_v16, %v3600_v14  ;;  %v3139_v53 = vmax.f32 %v3137_v25, %v3138_v38  ;;  %v3146_v20 = vmax.f32 %v3144_v40, %v3145_v44 }
 0x315   : > { %v3603_v7 = vsel %vm3499_vm9, %v3127_v37, -inf  ;;  %v3134_v3 = vmax.f32 %v3132_v57, %v3133_v27  ;;  %v3153_v43 = vmax.f32 %v3151_v50, %v3152_v22  ;;  %v2471_v26 = vrot.slane %v2360_v0, 6 }
 0x316   : > { %v3604_v35 = vmax.f32 %v5986_v6, %v3603_v7  ;;  %v3724_v33 = vpack.c.bf16 %v3598_v63, %v3598_v63  ;;  %v3725_v5 = vpack.c.bf16 %v3601_v10, %v3601_v10  ;;  %v3140_v4 = vrot.slane %v3139_v53, 1  ;;  %v1609_v6 = vpop.f32.mrf.mxu1  ;;  %v2274_v63 = vpop.f32.mrf.mxu0 }
 0x317   : > { %v3147_v47 = vrot.slane %v3146_v20, 1  ;;  %v3154_v49 = vrot.slane %v3153_v43, 1  ;;  %v3606_v16 = vsel %vm3499_vm9, %v3134_v3, -inf  ;;  %v3156_v8 = vsel %vm2602_vm8, %v2360_v0, -inf  ;;  %v2045_v7 = vpop.f32.mrf.mxu3 }
 0x318   : > { %v3726_v19 = vpack.c.bf16 %v3604_v35, %v3604_v35  ;;  %v3852_v23 = vunpack.c.l.b16 %v3724_v33  ;;  %v3853_v15 = vunpack.c.l.b16 %v3725_v5  ;;  %v3141_v9 = vmax.f32 %v3139_v53, %v3140_v4 }
 0x319   : > { %v3148_v51 = vmax.f32 %v3146_v20, %v3147_v47  ;;  %v3155_v2 = vmax.f32 %v3153_v43, %v3154_v49  ;;  %v3607_v24 = vmax.f32 %v5994_v18, %v3606_v16  ;;  %v3157_v31 = vrot.slane %v3156_v8, 4 }
 0x31a   : > { %v3854_v58 = vunpack.c.l.b16 %v3726_v19  ;;  %v3919_v52 = vsel %vm3884_vm10, %v3853_v15, %v3852_v23  ;;  %v3609_v25 = vsel %vm3499_vm9, %v3141_v9, -inf  ;;  %v3163_v40 = vsel %vm2602_vm8, %v2470_v46, -inf }
 0x31b   : > { %v3610_v50 = vmax.f32 %v5999_v54, %v3609_v25  ;;  %v3612_v0 = vsel %vm3499_vm9, %v3148_v51, -inf  ;;  %v3615_v56 = vsel %vm3499_vm9, %v3155_v2, -inf  ;;  %v3727_v39 = vpack.c.bf16 %v3607_v24, %v3607_v24 }
 0x31c   : > { %v3920_v11 = vsel %vm3886_vm11, %v3854_v58, %v3919_v52  ;;  %v3613_v18 = vmax.f32 %v6004_v42, %v3612_v0  ;;  %v3616_v57 = vmax.f32 %v6008_v48, %v3615_v56  ;;  %v3158_v38 = vmax.f32 %v3156_v8, %v3157_v31  ;;  %v1765_v48 = vpop.f32.mrf.mxu2 }
 0x31d   : > { %v3728_v44 = vpack.c.bf16 %v3610_v50, %v3610_v50  ;;  %v3855_v22 = vunpack.c.l.b16 %v3727_v39  ;;  %v3164_v37 = vrot.slane %v3163_v40, 4  ;;  %v3170_v41 = vsel %vm2602_vm8, %v2471_v26, -inf }
 0x31e   : > { %v3729_v46 = vpack.c.bf16 %v3613_v18, %v3613_v18  ;;  %v3730_v14 = vpack.c.bf16 %v3616_v57, %v3616_v57  ;;  %v3159_v54 = vrot.slane %v3158_v38, 2  ;;  %v3171_v27 = vrot.slane %v3170_v41, 4  ;;  %v1611_v19 = vpop.f32.mrf.mxu1 }
 0x31f   : > { %v3856_v10 = vunpack.c.l.b16 %v3728_v44  ;;  %v3921_v53 = vsel %vm3888_vm12, %v3855_v22, %v3920_v11  ;;  %v3165_v20 = vmax.f32 %v3163_v40, %v3164_v37  ;;  %v3617_v42 = vsel %vm3499_vm9, %v6012_v13, -inf  ;;  %v2277_v11 = vpop.f32.mrf.mxu0 }
 0x320   : > { %v3857_v3 = vunpack.c.l.b16 %v3729_v46  ;;  %v3858_v43 = vunpack.c.l.b16 %v3730_v14  ;;  %v3160_v35 = vmax.f32 %v3158_v38, %v3159_v54  ;;  %v3172_v33 = vmax.f32 %v3170_v41, %v3171_v27 }
 0x321   : > { %v3922_v26 = vsel %vm3890_vm13, %v3856_v10, %v3921_v53  ;;  %v3166_v5 = vrot.slane %v3165_v20, 2  ;;  %v1657_v4 = vadd.f32 %v5989_v21, %v5296_v59  ;;  %v1658_v47 = vadd.f32 %v6010_v36, %v5310_v30 }
 0x322   : > { %v3161_v49 = vrot.slane %v3160_v35, 1  ;;  %v3173_v16 = vrot.slane %v3172_v33, 2  ;;  %v3923_v8 = vsel %vm3892_vm14, %v3857_v3, %v3922_v26  ;;  %v1659_v13 = vadd.f32 %v6025_v1, %v5324_v12 }
 0x323   : > { %v3167_v23 = vmax.f32 %v3165_v20, %v3166_v5  ;;  %v3924_v15 = vsel %vm3894_vm15, %v3858_v43, %v3923_v8  ;;  %v1813_v9 = vadd.f32 %v6001_v61, %v1657_v4  ;;  %v1814_v51 = vadd.f32 %v6023_v29, %v1658_v47 }
 0x324   : > { %v3162_v2 = vmax.f32 %v3160_v35, %v3161_v49  ;;  %v3174_v59 = vmax.f32 %v3172_v33, %v3173_v16  ;;  %v1815_v21 = vadd.f32 %v1762_v28, %v1659_v13  ;;  %v1660_v30 = vadd.f32 %v1609_v6, %v5342_v17  ;;  %v1767_v17 = vpop.f32.mrf.mxu2 }
 0x325   : > { %v3168_v36 = vrot.slane %v3167_v23, 1  ;;  %v2093_v24 = vadd.f32 %v5991_v60, %v1813_v9  ;;  %v2094_v31 = vadd.f32 %v6017_v62, %v1814_v51  ;;  %v1661_v12 = vadd.f32 %v1611_v19, %v5357_v55 }
 0x326   : > { %v3175_v1 = vrot.slane %v3174_v59, 1  ;;  %v3618_v58 = vsel %vm3499_vm9, %v3162_v2, -inf  ;;  %v2095_v52 = vadd.f32 %v6034_v45, %v1815_v21  ;;  %v1816_v61 = vadd.f32 %v1765_v48, %v1660_v30  ;;  %v2047_v45 = vpop.f32.mrf.mxu3 }
 0x327   : > { %v3169_v25 = vmax.f32 %v3167_v23, %v3168_v36  ;;  %v3619_v29 = vmax.f32 %v3617_v42, %v3618_v58  ;;  %v2325_v40 = vadd.f32 %v6015_v32, %v2093_v24  ;;  %v2326_v28 = vadd.f32 %v6031_v34, %v2094_v31 }
 0x328   : > { %v3176_v6 = vmax.f32 %v3174_v59, %v3175_v1  ;;  %v2327_v50 = vadd.f32 %v2274_v63, %v2095_v52  ;;  %v2096_v60 = vadd.f32 %v2045_v7, %v1816_v61  ;;  %v1817_v0 = vadd.f32 %v1767_v17, %v1661_v12 }
 0x329   : > { %v6073_v62 = vsel %vm3499_vm9, %v3169_v25, -inf  ;;  %v3731_v55 = vpack.c.bf16 %v3619_v29, %v3619_v29  ;;  %v2361_v56 = vmax.f32 %v2325_v40, 0.0  ;;  %v2362_v39 = vmax.f32 %v2326_v28, 0.0 }
 0x32a   : > { %v6076_v18 = vsel %vm3499_vm9, %v3176_v6, -inf  ;;  %v6078_v57 = vmax.f32 %v2327_v50, 0.0  ;;  %v6080_v32 = vadd.f32 %v2277_v11, %v2096_v60  ;;  %v6082_v34 = vadd.f32 %v2047_v45, %v1817_v0 }
 0x32b   : > { %v3859_v38 = vunpack.c.l.b16 %v3731_v55  ;;  %v2472_v44 = vrot.slane %v2361_v56, 2  ;;  %v2473_v22 = vrot.slane %v2361_v56, 4  ;;  %v2474_v37 = vrot.slane %v2361_v56, 6 }
 0x32c   : > { %v3177_v41 = vsel %vm2602_vm8, %v2361_v56, -inf  ;;  %v2475_v46 = vrot.slane %v2362_v39, 2  ;;  %v2476_v14 = vrot.slane %v2362_v39, 6  ;;  %v3205_v54 = vsel %vm2602_vm8, %v2362_v39, -inf }
 0x32d   : > { %v3925_v27 = vsel %vm3896_vm0, %v3859_v38, %v3924_v15  ;;  %v3178_v63 = vrot.slane %v3177_v41, 4  ;;  %v3184_v10 = vsel %vm2602_vm8, %v2472_v44, -inf  ;;  %v3191_v53 = vsel %vm2602_vm8, %v2473_v22, -inf }
 0x32e   : > { %v3951_v20 = vpack.c.b16 %v3925_v27, %v3925_v27  ;;  %v3185_v42 = vrot.slane %v3184_v10, 4  ;;  %v3192_v7 = vrot.slane %v3191_v53, 4  ;;  %v3198_v48 = vsel %vm2602_vm8, %v2474_v37, -inf }
 0x32f   : > { %v3179_v3 = vmax.f32 %v3177_v41, %v3178_v63  ;;  %v3199_v43 = vrot.slane %v3198_v48, 4  ;;  %v3206_v35 = vrot.slane %v3205_v54, 4  ;;  %v3212_v33 = vsel %vm2602_vm8, %v2475_v46, -inf }
 0x330   : > { %3968 = vst.msk [vmem:[%s5545_s28 + $0x10] sm:$0xf] %vm3963_vm1, %v3951_v20  ;;  %v3186_v26 = vmax.f32 %v3184_v10, %v3185_v42  ;;  %v3193_v5 = vmax.f32 %v3191_v53, %v3192_v7  ;;  %v3213_v4 = vrot.slane %v3212_v33, 4  ;;  %v3219_v47 = vsel %vm2602_vm8, %v2476_v14, -inf }
 0x331   : > { %v3180_v49 = vrot.slane %v3179_v3, 2  ;;  %v3200_v16 = vmax.f32 %v3198_v48, %v3199_v43  ;;  %v3207_v8 = vmax.f32 %v3205_v54, %v3206_v35  ;;  %v3220_v13 = vrot.slane %v3219_v47, 4 }
 0x332   : > { %v3187_v19 = vrot.slane %v3186_v26, 2  ;;  %v3194_v23 = vrot.slane %v3193_v5, 2  ;;  %v3214_v15 = vmax.f32 %v3212_v33, %v3213_v4  ;;  %v2477_v9 = vrot.slane %v6078_v57, 2 }
 0x333   : > { %v3181_v51 = vmax.f32 %v3179_v3, %v3180_v49  ;;  %v3201_v2 = vrot.slane %v3200_v16, 2  ;;  %v3208_v59 = vrot.slane %v3207_v8, 2  ;;  %v3221_v21 = vmax.f32 %v3219_v47, %v3220_v13 }
 0x334   : > { %v3188_v30 = vmax.f32 %v3186_v26, %v3187_v19  ;;  %v3195_v36 = vmax.f32 %v3193_v5, %v3194_v23  ;;  %v3215_v24 = vrot.slane %v3214_v15, 2  ;;  %v2478_v31 = vrot.slane %v6078_v57, 4 }
 0x335   : > { %v3182_v12 = vrot.slane %v3181_v51, 1  ;;  %v3202_v1 = vmax.f32 %v3200_v16, %v3201_v2  ;;  %v3209_v58 = vmax.f32 %v3207_v8, %v3208_v59  ;;  %v3222_v52 = vrot.slane %v3221_v21, 2 }
 0x336   : > { %v3189_v61 = vrot.slane %v3188_v30, 1  ;;  %v3196_v25 = vrot.slane %v3195_v36, 1  ;;  %v3216_v29 = vmax.f32 %v3214_v15, %v3215_v24  ;;  %v2479_v40 = vrot.slane %v6078_v57, 6  ;;  %v2279_v24 = vpop.f32.mrf.mxu0 }
 0x337   : > { %v3183_v28 = vmax.f32 %v3181_v51, %v3182_v12  ;;  %v3203_v17 = vrot.slane %v3202_v1, 1  ;;  %v3210_v6 = vrot.slane %v3209_v58, 1  ;;  %v3223_v50 = vmax.f32 %v3221_v21, %v3222_v52 }
 0x338   : > { %v3190_v60 = vmax.f32 %v3188_v30, %v3189_v61  ;;  %v3197_v0 = vmax.f32 %v3195_v36, %v3196_v25  ;;  %v3217_v55 = vrot.slane %v3216_v29, 1  ;;  %v3226_v56 = vsel %vm2602_vm8, %v6078_v57, -inf }
 0x339   : > { %v3204_v39 = vmax.f32 %v3202_v1, %v3203_v17  ;;  %v6100_v11 = vsel %vm3499_vm9, %v3183_v28, -inf  ;;  %v3211_v45 = vmax.f32 %v3209_v58, %v3210_v6  ;;  %v3224_v38 = vrot.slane %v3223_v50, 1 }
 0x33a   : > { %v6103_v44 = vsel %vm3499_vm9, %v3190_v60, -inf  ;;  %v6106_v22 = vsel %vm3499_vm9, %v3197_v0, -inf  ;;  %v3218_v37 = vmax.f32 %v3216_v29, %v3217_v55  ;;  %v3227_v41 = vrot.slane %v3226_v56, 4 }
 0x33b   : > { %v3225_v46 = vmax.f32 %v3223_v50, %v3224_v38  ;;  %v6109_v14 = vsel %vm3499_vm9, %v3211_v45, -inf  ;;  %v3233_v57 = vsel %vm2602_vm8, %v2477_v9, -inf  ;;  %v3240_v54 = vsel %vm2602_vm8, %v2478_v31, -inf }
 0x33c   : > { %v6114_v27 = vsel %vm3499_vm9, %v3218_v37, -inf  ;;  %v3228_v63 = vmax.f32 %v3226_v56, %v3227_v41  ;;  %v3234_v10 = vrot.slane %v3233_v57, 4  ;;  %v3241_v53 = vrot.slane %v3240_v54, 4 }
 0x33d   : > { %v3621_v20 = vsel %vm3499_vm9, %v3225_v46, -inf  ;;  %v3247_v42 = vsel %vm2602_vm8, %v2479_v40, -inf  ;;  %v2364_v7 = vmax.f32 %v6080_v32, 0.0  ;;  %v6120_v48 = vsel %vm3499_vm9, %v3204_v39, -inf }
 0x33e   : > { %v3622_v3 = vmax.f32 %v6073_v62, %v3621_v20  ;;  %v3229_v43 = vrot.slane %v3228_v63, 2  ;;  %v3235_v35 = vmax.f32 %v3233_v57, %v3234_v10  ;;  %v3242_v33 = vmax.f32 %v3240_v54, %v3241_v53  ;;  %v1614_v57 = vpop.f32.mrf.mxu1 }
 0x33f   : > { %v3248_v26 = vrot.slane %v3247_v42, 4  ;;  %v2480_v5 = vrot.slane %v2364_v7, 2  ;;  %v2481_v4 = vrot.slane %v2364_v7, 4  ;;  %v3254_v47 = vsel %vm2602_vm8, %v2364_v7, -inf }
 0x340   : > { %v3732_v49 = vpack.c.bf16 %v3622_v3, %v3622_v3  ;;  %v3230_v16 = vmax.f32 %v3228_v63, %v3229_v43  ;;  %v3236_v8 = vrot.slane %v3235_v35, 2  ;;  %v3243_v13 = vrot.slane %v3242_v33, 2 }
 0x341   : > { %v3249_v19 = vmax.f32 %v3247_v42, %v3248_v26  ;;  %v3255_v23 = vrot.slane %v3254_v47, 4  ;;  %v3261_v32 = vsel %vm2602_vm8, %v2480_v5, -inf  ;;  %v3268_v15 = vsel %vm2602_vm8, %v2481_v4, -inf }
 0x342   : > { %v3860_v9 = vunpack.c.l.b16 %v3732_v49  ;;  %v3231_v62 = vrot.slane %v3230_v16, 1  ;;  %v3237_v51 = vmax.f32 %v3235_v35, %v3236_v8  ;;  %v3244_v2 = vmax.f32 %v3242_v33, %v3243_v13  ;;  %v2050_v13 = vpop.f32.mrf.mxu3 }
 0x343   : > { %v3250_v59 = vrot.slane %v3249_v19, 2  ;;  %v3256_v21 = vmax.f32 %v3254_v47, %v3255_v23  ;;  %v3262_v30 = vrot.slane %v3261_v32, 4  ;;  %v3269_v36 = vrot.slane %v3268_v15, 4 }
 0x344   : > { %v3232_v31 = vmax.f32 %v3230_v16, %v3231_v62  ;;  %v3238_v12 = vrot.slane %v3237_v51, 1  ;;  %v3245_v1 = vrot.slane %v3244_v2, 1  ;;  %v2329_v58 = vadd.f32 %v2279_v24, %v6082_v34 }
 0x345   : > { %v3251_v52 = vmax.f32 %v3249_v19, %v3250_v59  ;;  %v3257_v61 = vrot.slane %v3256_v21, 2  ;;  %v3263_v25 = vmax.f32 %v3261_v32, %v3262_v30  ;;  %v3270_v29 = vmax.f32 %v3268_v15, %v3269_v36 }
 0x346   : > { %v3239_v40 = vmax.f32 %v3237_v51, %v3238_v12  ;;  %v3246_v28 = vmax.f32 %v3244_v2, %v3245_v1  ;;  %v3624_v17 = vsel %vm3499_vm9, %v3232_v31, -inf  ;;  %v2365_v6 = vmax.f32 %v2329_v58, 0.0  ;;  %v2282_v2 = vpop.f32.mrf.mxu0 }
 0x347   : > { %v3252_v50 = vrot.slane %v3251_v52, 1  ;;  %v3625_v60 = vmax.f32 %v6076_v18, %v3624_v17  ;;  %v3258_v0 = vmax.f32 %v3256_v21, %v3257_v61  ;;  %v3264_v55 = vrot.slane %v3263_v25, 2  ;;  %v1770_v18 = vpop.f32.mrf.mxu2 }
 0x348   : > { %v3627_v56 = vsel %vm3499_vm9, %v3239_v40, -inf  ;;  %v3630_v39 = vsel %vm3499_vm9, %v3246_v28, -inf  ;;  %v3271_v45 = vrot.slane %v3270_v29, 2  ;;  %v2482_v34 = vrot.slane %v2365_v6, 2 }
 0x349   : > { %v3253_v38 = vmax.f32 %v3251_v52, %v3252_v50  ;;  %v3628_v37 = vmax.f32 %v6100_v11, %v3627_v56  ;;  %v3631_v41 = vmax.f32 %v6103_v44, %v3630_v39  ;;  %v3733_v46 = vpack.c.bf16 %v3625_v60, %v3625_v60 }
 0x34a   : > { %v3259_v54 = vrot.slane %v3258_v0, 1  ;;  %v3265_v63 = vmax.f32 %v3263_v25, %v3264_v55  ;;  %v3272_v10 = vmax.f32 %v3270_v29, %v3271_v45  ;;  %v2483_v53 = vrot.slane %v2365_v6, 4  ;;  %v1616_v25 = vpop.f32.mrf.mxu1 }
 0x34b   : > { %v3633_v20 = vsel %vm3499_vm9, %v3253_v38, -inf  ;;  %v3734_v42 = vpack.c.bf16 %v3628_v37, %v3628_v37  ;;  %v3735_v7 = vpack.c.bf16 %v3631_v41, %v3631_v41  ;;  %v3861_v3 = vunpack.c.l.b16 %v3733_v46  ;;  %v6475_v37 = vld [vmem:[#allocation18_spill] sm:$0xff] }
 0x34c   : > { %v3634_v43 = vmax.f32 %v6106_v22, %v3633_v20  ;;  %v3260_v35 = vmax.f32 %v3258_v0, %v3259_v54  ;;  %v3266_v33 = vrot.slane %v3265_v63, 1  ;;  %v3273_v26 = vrot.slane %v3272_v10, 1  ;;  %v6476_v41 = vld [vmem:[#allocation10_spill] sm:$0xff] }
 0x34d   : > { %v3862_v11 = vunpack.c.l.b16 %v3734_v42  ;;  %v3863_v5 = vunpack.c.l.b16 %v3735_v7  ;;  %v3926_v44 = vsel %vm3884_vm10, %v3861_v3, %v3860_v9  ;;  %v2484_v4 = vrot.slane %v2365_v6, 6 }
 0x34e   : > { %v3736_v47 = vpack.c.bf16 %v3634_v43, %v3634_v43  ;;  %v3267_v49 = vmax.f32 %v3265_v63, %v3266_v33  ;;  %v3274_v16 = vmax.f32 %v3272_v10, %v3273_v26  ;;  %v3636_v8 = vsel %vm3499_vm9, %v3260_v35, -inf  ;;  %v2284_v33 = vpop.f32.mrf.mxu0 }
 0x34f   : > { %v3927_v19 = vsel %vm3886_vm11, %v3862_v11, %v3926_v44  ;;  %v3637_v23 = vmax.f32 %v6120_v48, %v3636_v8  ;;  %v3275_v22 = vsel %vm2602_vm8, %v2365_v6, -inf  ;;  %v3282_v32 = vsel %vm2602_vm8, %v2482_v34, -inf  ;;  %v6477_v44 = vld [vmem:[#allocation6_spill] sm:$0xff] }
 0x350   : > { %v3864_v15 = vunpack.c.l.b16 %v3736_v47  ;;  %v3639_v62 = vsel %vm3499_vm9, %v3267_v49, -inf  ;;  %v3642_v9 = vsel %vm3499_vm9, %v3274_v16, -inf  ;;  %v3928_v51 = vsel %vm3888_vm12, %v3863_v5, %v3927_v19 }
 0x351   : > { %v3640_v59 = vmax.f32 %v6109_v14, %v3639_v62  ;;  %v3643_v21 = vmax.f32 %v6114_v27, %v3642_v9  ;;  %v3737_v30 = vpack.c.bf16 %v3637_v23, %v3637_v23  ;;  %v3276_v36 = vrot.slane %v3275_v22, 4  ;;  %v6474_v14 = vld [vmem:[#allocation27_spill] sm:$0xff]  ;;  %v1772_v27 = vpop.f32.mrf.mxu2  ;;  %v6480_v62 = vld [vmem:[#allocation5_spill] sm:$0xff] }
 0x352   : > { %v3929_v48 = vsel %vm3890_vm13, %v3864_v15, %v3928_v51  ;;  %v3283_v24 = vrot.slane %v3282_v32, 4  ;;  %v3289_v31 = vsel %vm2602_vm8, %v2483_v53, -inf  ;;  %v3296_v12 = vsel %vm2602_vm8, %v2484_v4, -inf  ;;  %v2052_v53 = vpop.f32.mrf.mxu3  ;;  %v6478_v4 = vld [vmem:[#allocation46_spill] sm:$0xff]  ;;  %v1619_v19 = vpop.f32.mrf.mxu1  ;;  %v6479_v15 = vld [vmem:[#allocation28_spill] sm:$0xff] }
 0x353   : > { %v3738_v1 = vpack.c.bf16 %v3640_v59, %v3640_v59  ;;  %v3739_v58 = vpack.c.bf16 %v3643_v21, %v3643_v21  ;;  %v3865_v52 = vunpack.c.l.b16 %v3737_v30  ;;  %v3277_v61 = vmax.f32 %v3275_v22, %v3276_v36 }
 0x354   : > { %v3284_v29 = vmax.f32 %v3282_v32, %v3283_v24  ;;  %v3290_v40 = vrot.slane %v3289_v31, 4  ;;  %v3297_v28 = vrot.slane %v3296_v12, 4  ;;  %v1662_v17 = vadd.f32 %v1614_v57, %v6474_v14 }
 0x355   : > { %v3866_v6 = vunpack.c.l.b16 %v3738_v1  ;;  %v3867_v50 = vunpack.c.l.b16 %v3739_v58  ;;  %v3930_v60 = vsel %vm3892_vm14, %v3865_v52, %v3929_v48  ;;  %v3278_v0 = vrot.slane %v3277_v61, 2 }
 0x356   : > { %v3285_v55 = vrot.slane %v3284_v29, 2  ;;  %v3291_v56 = vmax.f32 %v3289_v31, %v3290_v40  ;;  %v3298_v39 = vmax.f32 %v3296_v12, %v3297_v28  ;;  %v1818_v45 = vadd.f32 %v1770_v18, %v1662_v17 }
 0x357   : > { %v3931_v34 = vsel %vm3894_vm15, %v3866_v6, %v3930_v60  ;;  %v3279_v38 = vmax.f32 %v3277_v61, %v3278_v0  ;;  %v1431_v46 = vadd.f32 %v6476_v41, %v6475_v37  ;;  %v1432_v47 = vadd.f32 %v6478_v4, %v6477_v44 }
 0x358   : > { %v3932_v54 = vsel %vm3896_vm0, %v3867_v50, %v3931_v34  ;;  %v3286_v57 = vmax.f32 %v3284_v29, %v3285_v55  ;;  %v3292_v63 = vrot.slane %v3291_v56, 2  ;;  %v3299_v10 = vrot.slane %v3298_v39, 2  ;;  %v2287_v55 = vpop.f32.mrf.mxu0 }
 0x359   : > { %v3952_v20 = vpack.c.b16 %v3932_v54, %v3932_v54  ;;  %v3280_v42 = vrot.slane %v3279_v38, 1  ;;  %v2098_v7 = vadd.f32 %v2050_v13, %v1818_v45  ;;  %v1663_v3 = vadd.f32 %v1616_v25, %v1431_v46  ;;  %v1775_v32 = vpop.f32.mrf.mxu2 }
 0x35a   : > { %v3287_v43 = vrot.slane %v3286_v57, 1  ;;  %v3293_v35 = vmax.f32 %v3291_v56, %v3292_v63  ;;  %v3300_v18 = vmax.f32 %v3298_v39, %v3299_v10  ;;  %v1664_v13 = vadd.f32 %v1619_v19, %v1432_v47  ;;  %v2055_v40 = vpop.f32.mrf.mxu3 }
 0x35b   : > { %3969 = vst.msk [vmem:[%s5545_s28 + $0x14] sm:$0xf] %vm3963_vm1, %v3952_v20  ;;  %v2330_v26 = vadd.f32 %v2282_v2, %v2098_v7  ;;  %v1819_v11 = vadd.f32 %v1772_v27, %v1663_v3  ;;  %v3281_v5 = vmax.f32 %v3279_v38, %v3280_v42  ;;  %v6161_v9 = vadd.f32 %v6480_v62, %v6479_v15 }
 0x35c   : > { %v3294_v49 = vrot.slane %v3293_v35, 1  ;;  %v3288_v23 = vmax.f32 %v3286_v57, %v3287_v43  ;;  %v3301_v22 = vrot.slane %v3300_v18, 1  ;;  %v1820_v24 = vadd.f32 %v1775_v32, %v1664_v13 }
 0x35d   : > { %v2366_v16 = vmax.f32 %v2330_v26, 0.0  ;;  %v2099_v8 = vadd.f32 %v2052_v53, %v1819_v11  ;;  %v6165_v30 = vsel %vm3499_vm9, %v3281_v5, -inf }
 0x35e   : > { %v3295_v31 = vmax.f32 %v3293_v35, %v3294_v49  ;;  %v3302_v28 = vmax.f32 %v3300_v18, %v3301_v22  ;;  %v6171_v17 = vsel %vm3499_vm9, %v3288_v23, -inf  ;;  %v2100_v27 = vadd.f32 %v2055_v40, %v1820_v24 }
 0x35f   : > { %v2485_v51 = vrot.slane %v2366_v16, 2  ;;  %v2486_v59 = vrot.slane %v2366_v16, 4  ;;  %v2487_v2 = vrot.slane %v2366_v16, 6  ;;  %v3303_v21 = vsel %vm2602_vm8, %v2366_v16, -inf  ;;  %v1621_v16 = vpop.f32.mrf.mxu1 }
 0x360   : > { %v3304_v36 = vrot.slane %v3303_v21, 4  ;;  %v2331_v48 = vadd.f32 %v2284_v33, %v2099_v8  ;;  %v2332_v34 = vadd.f32 %v2287_v55, %v2100_v27  ;;  %v3650_v7 = vsel %vm3499_vm9, %v3295_v31, -inf  ;;  %v2289_v27 = vpop.f32.mrf.mxu0 }
 0x361   : > { %v3310_v12 = vsel %vm2602_vm8, %v2485_v51, -inf  ;;  %v3317_v1 = vsel %vm2602_vm8, %v2486_v59, -inf  ;;  %v3324_v58 = vsel %vm2602_vm8, %v2487_v2, -inf  ;;  %v6178_v18 = vsel %vm3499_vm9, %v3302_v28, -inf  ;;  %v1777_v13 = vpop.f32.mrf.mxu2 }
 0x362   : > { %v3305_v52 = vmax.f32 %v3303_v21, %v3304_v36  ;;  %v3311_v61 = vrot.slane %v3310_v12, 4  ;;  %v3318_v25 = vrot.slane %v3317_v1, 4  ;;  %v3325_v29 = vrot.slane %v3324_v58, 4  ;;  %v2057_v59 = vpop.f32.mrf.mxu3 }
 0x363   : > { %v2367_v14 = vmax.f32 %v2331_v48, 0.0  ;;  %v2368_v10 = vmax.f32 %v2332_v34, 0.0 }
 0x364   : > { %v3306_v6 = vrot.slane %v3305_v52, 2  ;;  %v3312_v50 = vmax.f32 %v3310_v12, %v3311_v61  ;;  %v3319_v60 = vmax.f32 %v3317_v1, %v3318_v25  ;;  %v3326_v0 = vmax.f32 %v3324_v58, %v3325_v29 }
 0x365   : > { %v2488_v56 = vrot.slane %v2367_v14, 2  ;;  %v2489_v39 = vrot.slane %v2367_v14, 4  ;;  %v2490_v45 = vrot.slane %v2367_v14, 6  ;;  %v2491_v5 = vrot.slane %v2368_v10, 2 }
 0x366   : > { %v3307_v38 = vmax.f32 %v3305_v52, %v3306_v6  ;;  %v3313_v37 = vrot.slane %v3312_v50, 2  ;;  %v3320_v41 = vrot.slane %v3319_v60, 2  ;;  %v3327_v46 = vrot.slane %v3326_v0, 2 }
 0x367   : > { %v3331_v54 = vsel %vm2602_vm8, %v2488_v56, -inf  ;;  %v3338_v57 = vsel %vm2602_vm8, %v2489_v39, -inf  ;;  %v3345_v63 = vsel %vm2602_vm8, %v2490_v45, -inf  ;;  %v2492_v22 = vrot.slane %v2368_v10, 4 }
 0x368   : > { %v3308_v53 = vrot.slane %v3307_v38, 1  ;;  %v3314_v20 = vmax.f32 %v3312_v50, %v3313_v37  ;;  %v3321_v42 = vmax.f32 %v3319_v60, %v3320_v41  ;;  %v3332_v3 = vrot.slane %v3331_v54, 4 }
 0x369   : > { %v3339_v43 = vrot.slane %v3338_v57, 4  ;;  %v3346_v35 = vrot.slane %v3345_v63, 4  ;;  %v6180_v44 = vmax.f32 %v3326_v0, %v3327_v46  ;;  %v2493_v51 = vrot.slane %v2368_v10, 6 }
 0x36a   : > { %v3309_v33 = vmax.f32 %v3307_v38, %v3308_v53  ;;  %v3315_v26 = vrot.slane %v3314_v20, 1  ;;  %v3322_v11 = vrot.slane %v3321_v42, 1  ;;  %v3333_v4 = vmax.f32 %v3331_v54, %v3332_v3  ;;  %v6201_v3 = vpop.f32.mrf.mxu2 }
 0x36b   : > { %v3340_v47 = vmax.f32 %v3338_v57, %v3339_v43  ;;  %v3347_v49 = vmax.f32 %v3345_v63, %v3346_v35  ;;  %v3352_v36 = vsel %vm2602_vm8, %v2368_v10, -inf  ;;  %v3359_v48 = vsel %vm2602_vm8, %v2491_v5, -inf  ;;  %v1624_v63 = vpop.f32.mrf.mxu1 }
 0x36c   : > { %v3316_v8 = vmax.f32 %v3314_v20, %v3315_v26  ;;  %v3323_v19 = vmax.f32 %v3321_v42, %v3322_v11  ;;  %v6183_v23 = vsel %vm3499_vm9, %v3309_v33, -inf  ;;  %v3334_v32 = vrot.slane %v3333_v4, 2  ;;  %v6203_v11 = vpop.f32.mrf.mxu3 }
 0x36d   : > { %v3341_v15 = vrot.slane %v3340_v47, 2  ;;  %v3348_v62 = vrot.slane %v3347_v49, 2  ;;  %v3353_v1 = vrot.slane %v3352_v36, 4  ;;  %v3360_v58 = vrot.slane %v3359_v48, 4 }
 0x36e   : > { %v6186_v2 = vsel %vm3499_vm9, %v3316_v8, -inf  ;;  %v6189_v21 = vsel %vm3499_vm9, %v3323_v19, -inf  ;;  %v3335_v24 = vmax.f32 %v3333_v4, %v3334_v32  ;;  %v3366_v52 = vsel %vm2602_vm8, %v2492_v22, -inf }
 0x36f   : > { %v3342_v31 = vmax.f32 %v3340_v47, %v3341_v15  ;;  %v3349_v12 = vmax.f32 %v3347_v49, %v3348_v62  ;;  %v3373_v61 = vsel %vm2602_vm8, %v2493_v51, -inf  ;;  %v1665_v25 = vadd.f32 %v1621_v16, %v6161_v9 }
 0x370   : > { %v3336_v29 = vrot.slane %v3335_v24, 1  ;;  %v3354_v14 = vmax.f32 %v3352_v36, %v3353_v1  ;;  %v3361_v6 = vmax.f32 %v3359_v48, %v3360_v58  ;;  %v3367_v50 = vrot.slane %v3366_v52, 4 }
 0x371   : > { %v3343_v40 = vrot.slane %v3342_v31, 1  ;;  %v3350_v28 = vrot.slane %v3349_v12, 1  ;;  %v3374_v60 = vrot.slane %v3373_v61, 4  ;;  %v1821_v0 = vadd.f32 %v1777_v13, %v1665_v25 }
 0x372   : > { %v3337_v55 = vmax.f32 %v3335_v24, %v3336_v29  ;;  %v3355_v45 = vrot.slane %v3354_v14, 2  ;;  %v3362_v34 = vrot.slane %v3361_v6, 2  ;;  %v3368_v38 = vmax.f32 %v3366_v52, %v3367_v50 }
 0x373   : > { %v3344_v56 = vmax.f32 %v3342_v31, %v3343_v40  ;;  %v3351_v39 = vmax.f32 %v3349_v12, %v3350_v28  ;;  %v3375_v37 = vmax.f32 %v3373_v61, %v3374_v60  ;;  %v2101_v41 = vadd.f32 %v2057_v59, %v1821_v0  ;;  %v2292_v59 = vpop.f32.mrf.mxu0  ;;  %v1626_v61 = vpop.f32.mrf.mxu1 }
 0x374   : > { %v3645_v46 = vsel %vm3499_vm9, %v3337_v55, -inf  ;;  %v3356_v57 = vmax.f32 %v3354_v14, %v3355_v45  ;;  %v3363_v42 = vmax.f32 %v3361_v6, %v3362_v34  ;;  %v3369_v35 = vrot.slane %v3368_v38, 2  ;;  %v1782_v14 = vpop.f32.mrf.mxu2  ;;  %v6481_v55 = vld [vmem:[#allocation30_spill] sm:$0xff] }
 0x375   : > { %v3648_v9 = vsel %vm3499_vm9, %v3344_v56, -inf  ;;  %v3651_v54 = vsel %vm3499_vm9, %v3351_v39, -inf  ;;  %v3646_v10 = vmax.f32 %v6165_v30, %v3645_v46  ;;  %v3376_v33 = vrot.slane %v3375_v37, 2  ;;  %v6482_v56 = vld [vmem:[#allocation21_spill] sm:$0xff] }
 0x376   : > { %v3649_v53 = vmax.f32 %v6171_v17, %v3648_v9  ;;  %v3652_v20 = vmax.f32 %v3650_v7, %v3651_v54  ;;  %v3357_v43 = vrot.slane %v3356_v57, 1  ;;  %v2333_v26 = vadd.f32 %v2289_v27, %v2101_v41  ;;  %v6484_v41 = vld [vmem:[#allocation11_spill] sm:$0xff]  ;;  %v2062_v9 = vpop.f32.mrf.mxu3 }
 0x377   : > { %v3740_v5 = vpack.c.bf16 %v3646_v10, %v3646_v10  ;;  %v3364_v49 = vrot.slane %v3363_v42, 1  ;;  %v3370_v8 = vmax.f32 %v3368_v38, %v3369_v35  ;;  %v3377_v19 = vmax.f32 %v3375_v37, %v3376_v33  ;;  %v6483_v37 = vld [vmem:[#allocation7_spill] sm:$0xff]  ;;  %v6485_v33 = vld [vmem:[#allocation12_spill] sm:$0xff] }
 0x378   : > { %v3741_v4 = vpack.c.bf16 %v3649_v53, %v3649_v53  ;;  %v3742_v47 = vpack.c.bf16 %v3652_v20, %v3652_v20  ;;  %v3358_v16 = vmax.f32 %v3356_v57, %v3357_v43  ;;  %v2369_v30 = vmax.f32 %v2333_v26, 0.0  ;;  %v6486_v26 = vld [vmem:[#allocation32_spill] sm:$0xff] }
 0x379   : > { %v3868_v22 = vunpack.c.l.b16 %v3740_v5  ;;  %v3365_v13 = vmax.f32 %v3363_v42, %v3364_v49  ;;  %v3371_v32 = vrot.slane %v3370_v8, 1  ;;  %v3378_v15 = vrot.slane %v3377_v19, 1 }
 0x37a   : > { %v3869_v17 = vunpack.c.l.b16 %v3741_v4  ;;  %v3870_v7 = vunpack.c.l.b16 %v3742_v47  ;;  %v3654_v62 = vsel %vm3499_vm9, %v3358_v16, -inf  ;;  %v2494_v51 = vrot.slane %v2369_v30, 4 }
 0x37b   : > { %v3655_v48 = vmax.f32 %v6178_v18, %v3654_v62  ;;  %v3657_v24 = vsel %vm3499_vm9, %v3365_v13, -inf  ;;  %v2495_v31 = vrot.slane %v2369_v30, 6  ;;  %v3372_v1 = vmax.f32 %v3370_v8, %v3371_v32  ;;  %v2294_v8 = vpop.f32.mrf.mxu0 }
 0x37c   : > { %v3933_v36 = vsel %vm3884_vm10, %v3869_v17, %v3868_v22  ;;  %v3379_v58 = vmax.f32 %v3377_v19, %v3378_v15  ;;  %v3658_v52 = vmax.f32 %v6183_v23, %v3657_v24  ;;  %v3380_v29 = vsel %vm2602_vm8, %v2369_v30, -inf  ;;  %v1629_v19 = vpop.f32.mrf.mxu1  ;;  %v1785_v13 = vpop.f32.mrf.mxu2 }
 0x37d   : > { %v3934_v12 = vsel %vm3886_vm11, %v3870_v7, %v3933_v36  ;;  %v3743_v25 = vpack.c.bf16 %v3655_v48, %v3655_v48  ;;  %v3387_v40 = vsel %vm2602_vm8, %v2494_v51, -inf  ;;  %v3394_v28 = vsel %vm2602_vm8, %v2495_v31, -inf }
 0x37e   : > { %v3660_v18 = vsel %vm3499_vm9, %v3372_v1, -inf  ;;  %v3663_v27 = vsel %vm3499_vm9, %v3379_v58, -inf  ;;  %v3744_v6 = vpack.c.bf16 %v3658_v52, %v3658_v52  ;;  %v3381_v50 = vrot.slane %v3380_v29, 4 }
 0x37f   : > { %v3661_v60 = vmax.f32 %v6186_v2, %v3660_v18  ;;  %v3664_v0 = vmax.f32 %v6189_v21, %v3663_v27  ;;  %v3871_v23 = vunpack.c.l.b16 %v3743_v25  ;;  %v1434_v39 = vadd.f32 %v6482_v56, %v6481_v55  ;;  %v6487_v56 = vld [vmem:[#allocation40_spill] sm:$0xff] }
 0x380   : > { %v3872_v45 = vunpack.c.l.b16 %v3744_v6  ;;  %v3382_v34 = vmax.f32 %v3380_v29, %v3381_v50  ;;  %v3388_v38 = vrot.slane %v3387_v40, 4  ;;  %v1435_v46 = vadd.f32 %v6484_v41, %v6483_v37 }
 0x381   : > { %v3745_v54 = vpack.c.bf16 %v3661_v60, %v3661_v60  ;;  %v3746_v57 = vpack.c.bf16 %v3664_v0, %v3664_v0  ;;  %v3935_v10 = vsel %vm3888_vm12, %v3871_v23, %v3934_v12  ;;  %v3395_v53 = vrot.slane %v3394_v28, 4 }
 0x382   : > { %v3329_v2 = vrot.slane %v6180_v44, 1  ;;  %v3936_v21 = vsel %vm3890_vm13, %v3872_v45, %v3935_v10  ;;  %v3383_v20 = vrot.slane %v3382_v34, 2  ;;  %v1666_v42 = vadd.f32 %v1624_v63, %v1434_v39  ;;  %v6488_v39 = vld [vmem:[#allocation34_spill] sm:$0xff] }
 0x383   : > { %v3873_v43 = vunpack.c.l.b16 %v3745_v54  ;;  %v1667_v35 = vadd.f32 %v1626_v61, %v1435_v46  ;;  %v1436_v5 = vadd.f32 %v6486_v26, %v6485_v33  ;;  %v3874_v4 = vunpack.c.l.b16 %v3746_v57  ;;  %v2065_v61 = vpop.f32.mrf.mxu3  ;;  %v2297_v55 = vpop.f32.mrf.mxu0  ;;  %v6489_v57 = vld [vmem:[#allocation38_spill] sm:$0xff] }
 0x384   : > { %v3384_v47 = vmax.f32 %v3382_v34, %v3383_v20  ;;  %v3389_v49 = vmax.f32 %v3387_v40, %v3388_v38  ;;  %v1822_v16 = vadd.f32 %v6201_v3, %v1666_v42  ;;  %v3396_v30 = vmax.f32 %v3394_v28, %v3395_v53 }
 0x385   : > { %v3937_v22 = vsel %vm3892_vm14, %v3873_v43, %v3936_v21  ;;  %v1823_v17 = vadd.f32 %v1782_v14, %v1667_v35  ;;  %v1668_v7 = vadd.f32 %v1629_v19, %v1436_v5  ;;  %v3330_v63 = vmax.f32 %v6180_v44, %v3329_v2 }
 0x386   : > { %v3385_v32 = vrot.slane %v3384_v47, 1  ;;  %v3938_v15 = vsel %vm3894_vm15, %v3874_v4, %v3937_v22  ;;  %v2102_v62 = vadd.f32 %v6203_v11, %v1822_v16  ;;  %v3390_v24 = vrot.slane %v3389_v49, 2 }
 0x387   : > { %v2103_v51 = vadd.f32 %v2062_v9, %v1823_v17  ;;  %v1824_v36 = vadd.f32 %v1785_v13, %v1668_v7  ;;  %v3397_v31 = vrot.slane %v3396_v30, 2  ;;  %v3665_v1 = vsel %vm3499_vm9, %v3330_v63, -inf }
 0x388   : > { %v3386_v48 = vmax.f32 %v3384_v47, %v3385_v32  ;;  %v2334_v3 = vadd.f32 %v2292_v59, %v2102_v62  ;;  %v3391_v40 = vmax.f32 %v3389_v49, %v3390_v24  ;;  %v768_v45 = vadd.f32 %v6488_v39, %v6487_v56  ;;  %v6490_v49 = vld [vmem:[#allocation19_spill] sm:$0xff]  ;;  %v6491_v24 = vld [vmem:[#allocation36_spill] sm:$0xff] }
 0x389   : > { %v2335_v12 = vadd.f32 %v2294_v8, %v2103_v51  ;;  %v2104_v29 = vadd.f32 %v2065_v61, %v1824_v36  ;;  %v3398_v18 = vmax.f32 %v3396_v30, %v3397_v31 }
 0x38a   : > { %v3666_v58 = vsel %vm3499_vm9, %v3386_v48, -inf  ;;  %v2370_v52 = vmax.f32 %v2334_v3, 0.0  ;;  %v1001_v10 = vadd.f32 %v6489_v57, %v768_v45  ;;  %v3392_v53 = vrot.slane %v3391_v40, 1 }
 0x38b   : > { %v3667_v25 = vmax.f32 %v3665_v1, %v3666_v58  ;;  %v2371_v44 = vmax.f32 %v2335_v12, 0.0  ;;  %v2336_v37 = vadd.f32 %v2297_v55, %v2104_v29  ;;  %v3399_v21 = vrot.slane %v3398_v18, 1  ;;  %v1787_v55 = vpop.f32.mrf.mxu2 }
 0x38c   : > { %v2496_v28 = vrot.slane %v2370_v52, 2  ;;  %v2497_v14 = vrot.slane %v2370_v52, 4  ;;  %v2498_v11 = vrot.slane %v2370_v52, 6  ;;  %v3401_v6 = vsel %vm2602_vm8, %v2370_v52, -inf }
 0x38d   : > { %v3747_v27 = vpack.c.bf16 %v3667_v25, %v3667_v25  ;;  %v2500_v59 = vrot.slane %v2371_v44, 6  ;;  %v3402_v50 = vrot.slane %v3401_v6, 4  ;;  %v2499_v9 = vrot.slane %v2371_v44, 2 }
 0x38e   : > { %v3408_v60 = vsel %vm2602_vm8, %v2496_v28, -inf  ;;  %v3415_v0 = vsel %vm2602_vm8, %v2497_v14, -inf  ;;  %v3422_v23 = vsel %vm2602_vm8, %v2498_v11, -inf  ;;  %v3429_v35 = vsel %vm2602_vm8, %v2371_v44, -inf  ;;  %v1631_v11 = vpop.f32.mrf.mxu1 }
 0x38f   : > { %v3875_v34 = vunpack.c.l.b16 %v3747_v27  ;;  %v3409_v38 = vrot.slane %v3408_v60, 4  ;;  %v3416_v41 = vrot.slane %v3415_v0, 4  ;;  %v3423_v46 = vrot.slane %v3422_v23, 4 }
 0x390   : > { %v3443_v54 = vsel %vm2602_vm8, %v2500_v59, -inf  ;;  %v3403_v42 = vmax.f32 %v3401_v6, %v3402_v50  ;;  %v3436_v4 = vsel %vm2602_vm8, %v2499_v9, -inf  ;;  %v2372_v47 = vmax.f32 %v2336_v37, 0.0 }
 0x391   : > { %v3939_v2 = vsel %vm3896_vm0, %v3875_v34, %v3938_v15  ;;  %v3410_v43 = vmax.f32 %v3408_v60, %v3409_v38  ;;  %v3444_v33 = vrot.slane %v3443_v54, 4  ;;  %v3417_v26 = vmax.f32 %v3415_v0, %v3416_v41 }
 0x392   : > { %v3953_v20 = vpack.c.b16 %v3939_v2, %v3939_v2  ;;  %v3424_v5 = vmax.f32 %v3422_v23, %v3423_v46  ;;  %v1157_v16 = vadd.f32 %v6490_v49, %v1001_v10  ;;  %v3393_v8 = vmax.f32 %v3391_v40, %v3392_v53 }
 0x393   : > { %v3445_v19 = vmax.f32 %v3443_v54, %v3444_v33  ;;  %v3400_v30 = vmax.f32 %v3398_v18, %v3399_v21  ;;  %v3404_v22 = vrot.slane %v3403_v42, 2  ;;  %v3411_v17 = vrot.slane %v3410_v43, 2 }
 0x394   : > { %3970 = vst.msk [vmem:[%s5545_s28 + $0x18] sm:$0xf] %vm3963_vm1, %v3953_v20  ;;  %v3430_v7 = vrot.slane %v3429_v35, 4  ;;  %v3437_v13 = vrot.slane %v3436_v4, 4  ;;  %v3418_v32 = vrot.slane %v3417_v26, 2  ;;  %v3425_v15 = vrot.slane %v3424_v5, 2 }
 0x395   : > { %v3446_v63 = vrot.slane %v3445_v19, 2  ;;  %v2501_v62 = vrot.slane %v2372_v47, 2  ;;  %v3668_v51 = vsel %vm3499_vm9, %v3393_v8, -inf  ;;  %v2502_v48 = vrot.slane %v2372_v47, 4 }
 0x396   : > { %v1437_v3 = vadd.f32 %v6491_v24, %v1157_v16  ;;  %v6251_v31 = vsel %vm3499_vm9, %v3400_v30, -inf  ;;  %v3405_v12 = vmax.f32 %v3403_v42, %v3404_v22  ;;  %v3412_v1 = vmax.f32 %v3410_v43, %v3411_v17  ;;  %v2067_v42 = vpop.f32.mrf.mxu3  ;;  %v2299_v16 = vpop.f32.mrf.mxu0 }
 0x397   : > { %v3447_v36 = vmax.f32 %v3445_v19, %v3446_v63  ;;  %v2503_v58 = vrot.slane %v2372_v47, 6  ;;  %v3431_v52 = vmax.f32 %v3429_v35, %v3430_v7  ;;  %v6253_v61 = vmax.f32 %v3436_v4, %v3437_v13 }
 0x398   : > { %v3450_v44 = vsel %vm2602_vm8, %v2372_v47, -inf  ;;  %v3419_v29 = vmax.f32 %v3417_v26, %v3418_v32  ;;  %v6256_v40 = vmax.f32 %v3424_v5, %v3425_v15  ;;  %v3457_v14 = vsel %vm2602_vm8, %v2501_v62, -inf }
 0x399   : > { %v3448_v25 = vrot.slane %v3447_v36, 1  ;;  %v3451_v28 = vrot.slane %v3450_v44, 4  ;;  %v3458_v27 = vrot.slane %v3457_v14, 4  ;;  %v3464_v6 = vsel %vm2602_vm8, %v2502_v48, -inf }
 0x39a   : > { %v3471_v59 = vsel %vm2602_vm8, %v2503_v58, -inf  ;;  %v3406_v50 = vrot.slane %v3405_v12, 1  ;;  %v3413_v60 = vrot.slane %v3412_v1, 1  ;;  %v3465_v23 = vrot.slane %v3464_v6, 4 }
 0x39b   : > { %v3449_v18 = vmax.f32 %v3447_v36, %v3448_v25  ;;  %v3452_v0 = vmax.f32 %v3450_v44, %v3451_v28  ;;  %v3459_v39 = vmax.f32 %v3457_v14, %v3458_v27  ;;  %v3472_v45 = vrot.slane %v3471_v59, 4 }
 0x39c   : > { %v1669_v34 = vadd.f32 %v1631_v11, %v1437_v3  ;;  %v3420_v38 = vrot.slane %v3419_v29, 1  ;;  %v3466_v46 = vmax.f32 %v3464_v6, %v3465_v23  ;;  %v3432_v9 = vrot.slane %v3431_v52, 2 }
 0x39d   : > { %v3669_v56 = vsel %vm3499_vm9, %v3449_v18, -inf  ;;  %v3453_v41 = vrot.slane %v3452_v0, 2  ;;  %v3460_v54 = vrot.slane %v3459_v39, 2  ;;  %v3473_v57 = vmax.f32 %v3471_v59, %v3472_v45 }
 0x39e   : > { %v3670_v37 = vmax.f32 %v3668_v51, %v3669_v56  ;;  %v1825_v10 = vadd.f32 %v1787_v55, %v1669_v34  ;;  %v3407_v53 = vmax.f32 %v3405_v12, %v3406_v50  ;;  %v3439_v2 = vrot.slane %v6253_v61, 2 }
 0x39f   : > { %v3454_v21 = vmax.f32 %v3452_v0, %v3453_v41  ;;  %v3467_v20 = vrot.slane %v3466_v46, 2  ;;  %v3414_v43 = vmax.f32 %v3412_v1, %v3413_v60  ;;  %v3461_v35 = vmax.f32 %v3459_v39, %v3460_v54 }
 0x3a0   : > { %v3474_v33 = vrot.slane %v3473_v57, 2  ;;  %v2105_v26 = vadd.f32 %v2067_v42, %v1825_v10  ;;  %v3421_v5 = vmax.f32 %v3419_v29, %v3420_v38  ;;  %v3748_v4 = vpack.c.bf16 %v3670_v37, %v3670_v37 }
 0x3a1   : > { %v3455_v47 = vrot.slane %v3454_v21, 1  ;;  %v3468_v49 = vmax.f32 %v3466_v46, %v3467_v20  ;;  %v3427_v8 = vrot.slane %v6256_v40, 1  ;;  %v3462_v19 = vrot.slane %v3461_v35, 1 }
 0x3a2   : > { %v3475_v30 = vmax.f32 %v3473_v57, %v3474_v33  ;;  %v2337_v22 = vadd.f32 %v2299_v16, %v2105_v26  ;;  %v3674_v17 = vsel %vm3499_vm9, %v3407_v53, -inf  ;;  %v3433_v7 = vmax.f32 %v3431_v52, %v3432_v9 }
 0x3a3   : > { %v3456_v13 = vmax.f32 %v3454_v21, %v3455_v47  ;;  %v3469_v63 = vrot.slane %v3468_v49, 1  ;;  %v3677_v32 = vsel %vm3499_vm9, %v3414_v43, -inf  ;;  %v3463_v15 = vmax.f32 %v3461_v35, %v3462_v19 }
 0x3a4   : > { %v3476_v62 = vrot.slane %v3475_v30, 1  ;;  %v2373_v51 = vmax.f32 %v2337_v22, 0.0  ;;  %v3680_v36 = vsel %vm3499_vm9, %v3421_v5, -inf  ;;  %v3876_v48 = vunpack.c.l.b16 %v3748_v4 }
 0x3a5   : > { %v3470_v24 = vmax.f32 %v3468_v49, %v3469_v63  ;;  %v3672_v3 = vsel %vm3499_vm9, %v3456_v13, -inf  ;;  %v3675_v58 = vsel %vm3499_vm9, %v3463_v15, -inf  ;;  %v3440_v56 = vmax.f32 %v6253_v61, %v3439_v2 }
 0x3a6   : > { %v3477_v12 = vmax.f32 %v3475_v30, %v3476_v62  ;;  %v3673_v1 = vmax.f32 %v6251_v31, %v3672_v3  ;;  %v2504_v25 = vrot.slane %v2373_v51, 2  ;;  %v3676_v52 = vmax.f32 %v3674_v17, %v3675_v58 }
 0x3a7   : > { %v3678_v44 = vsel %vm3499_vm9, %v3470_v24, -inf  ;;  %v2505_v29 = vrot.slane %v2373_v51, 4  ;;  %v3478_v28 = vsel %vm2602_vm8, %v2373_v51, -inf  ;;  %v3434_v10 = vrot.slane %v3433_v7, 1 }
 0x3a8   : > { %v3679_v14 = vmax.f32 %v3677_v32, %v3678_v44  ;;  %v3681_v11 = vsel %vm3499_vm9, %v3477_v12, -inf  ;;  %v3749_v18 = vpack.c.bf16 %v3673_v1, %v3673_v1  ;;  %v3479_v27 = vrot.slane %v3478_v28, 4 }
 0x3a9   : > { %v3682_v6 = vmax.f32 %v3680_v36, %v3681_v11  ;;  %v3750_v59 = vpack.c.bf16 %v3676_v52, %v3676_v52  ;;  %v3485_v50 = vsel %vm2602_vm8, %v2504_v25, -inf  ;;  %v3492_v31 = vsel %vm2602_vm8, %v2505_v29, -inf }
 0x3aa   : > { %v3751_v60 = vpack.c.bf16 %v3679_v14, %v3679_v14  ;;  %v3877_v0 = vunpack.c.l.b16 %v3749_v18  ;;  %v3480_v23 = vmax.f32 %v3478_v28, %v3479_v27  ;;  %v3486_v55 = vrot.slane %v3485_v50, 4 }
 0x3ab   : > { %v3752_v39 = vpack.c.bf16 %v3682_v6, %v3682_v6  ;;  %v3878_v45 = vunpack.c.l.b16 %v3750_v59  ;;  %v3493_v34 = vrot.slane %v3492_v31, 4  ;;  %v3441_v42 = vrot.slane %v3440_v56, 1 }
 0x3ac   : > { %v3879_v38 = vunpack.c.l.b16 %v3751_v60  ;;  %v3940_v37 = vsel %vm3884_vm10, %v3877_v0, %v3876_v48  ;;  %v3481_v41 = vrot.slane %v3480_v23, 2  ;;  %v3487_v46 = vmax.f32 %v3485_v50, %v3486_v55 }
 0x3ad   : > { %v3880_v9 = vunpack.c.l.b16 %v3752_v39  ;;  %v3941_v54 = vsel %vm3886_vm11, %v3878_v45, %v3940_v37  ;;  %v3494_v57 = vmax.f32 %v3492_v31, %v3493_v34  ;;  %v3428_v2 = vmax.f32 %v6256_v40, %v3427_v8 }
 0x3ae   : > { %v3482_v53 = vmax.f32 %v3480_v23, %v3481_v41  ;;  %v3488_v21 = vrot.slane %v3487_v46, 2  ;;  %v3942_v20 = vsel %vm3888_vm12, %v3879_v38, %v3941_v54  ;;  %v3435_v5 = vmax.f32 %v3433_v7, %v3434_v10 }
 0x3af   : > { %v3495_v43 = vrot.slane %v3494_v57, 2  ;;  %v3943_v61 = vsel %vm3890_vm13, %v3880_v9, %v3942_v20  ;;  %v3442_v49 = vmax.f32 %v3440_v56, %v3441_v42  ;;  %v3683_v30 = vsel %vm3499_vm9, %v3428_v2, -inf }
 0x3b0   : > { %v3483_v35 = vrot.slane %v3482_v53, 1  ;;  %v3489_v33 = vmax.f32 %v3487_v46, %v3488_v21  ;;  %v3686_v63 = vsel %vm3499_vm9, %v3435_v5, -inf }
 0x3b1   : > { %v3496_v26 = vmax.f32 %v3494_v57, %v3495_v43  ;;  %v3689_v8 = vsel %vm3499_vm9, %v3442_v49, -inf }
 0x3b2   : > { %v3484_v4 = vmax.f32 %v3482_v53, %v3483_v35  ;;  %v3490_v47 = vrot.slane %v3489_v33, 1 }
 0x3b3   : > { %v3497_v16 = vrot.slane %v3496_v26, 1 }
 0x3b4   : > { %v3491_v19 = vmax.f32 %v3489_v33, %v3490_v47  ;;  %v3684_v22 = vsel %vm3499_vm9, %v3484_v4, -inf }
 0x3b5   : > { %v3498_v17 = vmax.f32 %v3496_v26, %v3497_v16  ;;  %v3685_v13 = vmax.f32 %v3683_v30, %v3684_v22 }
 0x3b6   : > { %v3687_v40 = vsel %vm3499_vm9, %v3491_v19, -inf }
 0x3b7   : > { %v3688_v32 = vmax.f32 %v3686_v63, %v3687_v40  ;;  %v3690_v7 = vsel %vm3499_vm9, %v3498_v17, -inf  ;;  %v3753_v15 = vpack.c.bf16 %v3685_v13, %v3685_v13 }
 0x3b8   : > { %v3691_v62 = vmax.f32 %v3689_v8, %v3690_v7 }
 0x3b9   : > { %v3754_v51 = vpack.c.bf16 %v3688_v32, %v3688_v32  ;;  %v3881_v36 = vunpack.c.l.b16 %v3753_v15 }
 0x3ba   : > { %v3755_v48 = vpack.c.bf16 %v3691_v62, %v3691_v62 }
 0x3bb   : > { %v3882_v24 = vunpack.c.l.b16 %v3754_v51  ;;  %v3944_v3 = vsel %vm3892_vm14, %v3881_v36, %v3943_v61 }
 0x3bc   : > { %v3883_v12 = vunpack.c.l.b16 %v3755_v48 }
 0x3bd   : > { %v3945_v1 = vsel %vm3894_vm15, %v3882_v24, %v3944_v3 }
 0x3be   : > { %v3946_v58 = vsel %vm3896_vm0, %v3883_v12, %v3945_v1 }
 0x3bf   : > { %v3954_v25 = vpack.c.b16 %v3946_v58, %v3946_v58 }
 0x3c1   : > { %3971 = vst.msk [vmem:[%s5545_s28 + $0x1c] sm:$0xf] %vm3963_vm1, %v3954_v25 }
 0x3c2 PF: > { %s13_s11 = sadd.s32 1, %s4452_s11   ;;  %s6492_s9 = smov %s4448_s10 }
 0x3c3   : > { %p10_p8 = scmp.ge.s32.totalorder %s13_s11, 4   ;;  %s6493_s10 = smov %s6495_s13 }
 0x3c5   :  { %12 = sbr.rel (!%p10_p8) target bundleno = 2 (0x2), region = 72 }
 0x3ca   :  { %3999 = vsyncpa [#allocation3], 1 }
 0x3cb   :  { %4001 = vsyncpa [#allocation3 + $0x1], 1 }

// kernel: snn_small_vgg_forward.5
= control target key start
LH: loop header
LB: loop body
LE: loop exit
PB: predicated region body
PF: predicated region fallthrough
CT: control target
= control target key end

     0   :  { %7 = vsyncpa [#allocation3], 0  ;;  %s3381_s9 = smov 0   ;;  %s3383_s10 = smov 0   ;;  %s4351_s0 = inlined_call_operand.vmem [shape: bf16[2,110,64], index: 0, kind: input, shape index: {}]   ;;  %s4352_s1 = inlined_call_operand.hbm [shape: bf16[9,64,256], index: 1, kind: input, shape index: {}]   ;;  %s4353_s2 = inlined_call_operand.vmem [shape: bf16[2,16,256], index: 2, kind: output, shape index: {}]  }
   0x1   :  { %s3385_s11 = smov 0  }
   0x2 LB: > { %s2734_s12 = sadd.s32 4294967295, %s3361_s11   ;;  %s25_s13 = sadd.s32 1, %s3357_s10  ;;  %s3361_s11 = sphi %s3385_s11, %s13_s11   ;;  %s3357_s10 = sphi %s3383_s10, %s4355_s10   ;;  %s3353_s9 = sphi %s3381_s9, %s4354_s9  }
   0x3   : > { %p27_p0 = scmp.ge.s32.totalorder %s25_s13, 2  ;;  %p2736_p1 = scmp.ge.s32.totalorder %s3361_s11, 1 }
   0x4   : > { %p110_p2 = scmp.lt.s32.totalorder %s3361_s11, 3  ;;  %p3271_p4 = scmp.eq.s32.totalorder %s2734_s12, 0 }
   0x5   : > { %s4357_s13 = smov (%p27_p0, %s25_s13), 0  ;;  %s124_s16 = sshll.u32 %s4352_s1, 4  ;;  %s125_s16 = int_to_ptr.hbm [resolvable:$true] %s124_s16 }
   0x6   : > { %p111_p3 = pnand %p2736_p1, %p110_p2  ;;  %s3363_s17 = smov [#allocation2]  }
   0x7   : > { %s126_s18 = sshll.u32 %s3363_s17, 4  ;;  %s3364_s19 = smov 128   ;;  %s127_s18 = int_to_ptr.vmem [resolvable:$true] %s126_s18 }
   0x8   : > { %p3267_p5 = pneg %p111_p3  ;;  %s3365_s20 = smov 8  }
   0x9   : > { %150 = sbr.rel (%p111_p3) target bundleno = 650 (0x28a), region = 28 }
   0xa   : > { %p3268_p6 = pnand %p3271_p4, %p3267_p5 }
   0xc   : > { %3270 = dma.hbm_to_vmem [thread:$0]  (!%p3268_p6), %s125_s16, 9216, %s127_s18, [#allocation3], %s3364_s19, %s3364_s19, %s3365_s20  }
   0xe   : > { %3348 = dma.done.wait (%p3271_p4), [#allocation3], 9216  }
   0xf   : > { %3350 = vsyncadd (%p3271_p4), [#allocation3], 4294958080  ;;  %p177_p7 = scmp.lt.s32.totalorder %s3353_s9, 1  ;;  %v2770_v0 = vld [vmem:[#allocation2 + $0x70] sm:$0xf]  ;;  %vm337_vm1 = vcmask 523264  }
  0x10   : > { %v3140_v1 = vld [vmem:[#allocation2 + $0x74] sm:$0xf0]  ;;  %v3139_v2 = vld [vmem:[#allocation2 + $0x74] sm:$0xf]  ;;  %v2772_v4 = vld [vmem:[#allocation2 + $0x78] sm:$0xf0] }
  0x11   : > { %s4359_s9 = smov (!%p177_p7, %s3353_s9), 1  ;;  %v2771_v3 = vor.u32 %v3140_v1, %v2770_v0  ;;  %v2762_v5 = vld [vmem:[#allocation2 + $0x60] sm:$0xf]  ;;  %v3138_v6 = vld [vmem:[#allocation2 + $0x64] sm:$0xf0]  ;;  %v2775_v7 = vor.u32 %v3139_v2, %v2772_v4  ;;  %vm548_vm2 = vcmask 1046528  }
  0x12   : > { %s3262_s21 = smul.u32 56, %s4359_s9  ;;  %v3137_v8 = vld [vmem:[#allocation2 + $0x64] sm:$0xf]  ;;  %v2764_v9 = vld [vmem:[#allocation2 + $0x68] sm:$0xf0]  ;;  %v2763_v10 = vor.u32 %v3138_v6, %v2762_v5  ;;  %vm1089_vm4 = vcmask 1045504  }
  0x13   : > { %357 = vmatpush.bf16.msra.mxu0 %v2771_v3  ;;  %3254 = vmatpush.bf16.msra.mxu2 %v2771_v3  ;;  %v2754_v11 = vld [vmem:[#allocation2 + $0x50] sm:$0xf]  ;;  %v3136_v12 = vld [vmem:[#allocation2 + $0x54] sm:$0xf0]  ;;  %v2767_v13 = vor.u32 %v3137_v8, %v2764_v9  ;;  %v3135_v14 = vld [vmem:[#allocation2 + $0x54] sm:$0xf] }
  0x14   : > { %s3409_s24 = scalar_lea.vmem %s4351_s0, %s3262_s21  ;;  %391 = vmatpush.bf16.msra.mxu1 %v2775_v7  ;;  %3258 = vmatpush.bf16.msra.mxu3 %v2775_v7  ;;  %v2756_v15 = vld [vmem:[#allocation2 + $0x58] sm:$0xf0]  ;;  %vm252_vm0 = vsmask.f32 7424  ;;  %v2755_v18 = vor.u32 %v3136_v12, %v2754_v11  ;;  %v2746_v19 = vld [vmem:[#allocation2 + $0x40] sm:$0xf] }
  0x15   : > { %v3412_v16 = vld [vmem:[%s3409_s24] sm:$0xff]   ;;  %v3415_v17 = vld [vmem:[%s3409_s24 + $0x8] sm:$0xff]   ;;  %v3420_v22 = vld [vmem:[%s3409_s24 + $0x18] sm:$0xff]   ;;  %v2759_v29 = vor.u32 %v3135_v14, %v2756_v15  ;;  %vm883_vm3 = vsmask.f32 6400  ;;  %vm1606_vm6 = vcmask 1044480  }
  0x16   : > { %v256_v20 = vshll.u32 %v3412_v16, 16  ;;  %v261_v21 = vshll.u32 %v3415_v17, 16  ;;  %v3423_v23 = vld [vmem:[%s3409_s24 + $0x20] sm:$0xff]   ;;  %v3134_v24 = vld [vmem:[#allocation2 + $0x44] sm:$0xf0]  ;;  %v254_v25 = vshrl.u32 %v3412_v16, 16 }
  0x17   : > { %358 = vmatpush.bf16.msra.mxu0 %v2763_v10  ;;  %3255 = vmatpush.bf16.msra.mxu2 %v2763_v10  ;;  %v277_v26 = vshll.u32 %v3420_v22, 16  ;;  %v281_v27 = vshrl.u32 %v3420_v22, 16  ;;  %v285_v28 = vshll.u32 %v3423_v23, 16  ;;  %v3133_v30 = vld [vmem:[#allocation2 + $0x44] sm:$0xf]  ;;  %v3436_v36 = vld [vmem:[%s3409_s24 + $0x10] sm:$0xff]   ;;  %v2747_v38 = vor.u32 %v3134_v24, %v2746_v19 }
  0x18   : > { %392 = vmatpush.bf16.msra.mxu1 %v2767_v13  ;;  %3259 = vmatpush.bf16.msra.mxu3 %v2767_v13  ;;  %v2748_v31 = vld [vmem:[#allocation2 + $0x48] sm:$0xf0]  ;;  %v258_v32 = vrot.slane %v256_v20, 1  ;;  %v3429_v33 = vrot.slane %v261_v21, 1  ;;  %v3147_v35 = vld [vmem:[#allocation2 + $0xb4] sm:$0xf] }
  0x19   : > { %v3433_v34 = vrot.slane %v277_v26, 1  ;;  %v265_v37 = vshrl.u32 %v3415_v17, 16  ;;  %v2856_v39 = vld [vmem:[#allocation2 + $0xb8] sm:$0xf0]  ;;  %v2854_v40 = vld [vmem:[#allocation2 + $0xb0] sm:$0xf]  ;;  %v2751_v47 = vor.u32 %v3133_v30, %v2748_v31 }
  0x1a   : > { %v3148_v41 = vld [vmem:[#allocation2 + $0xb4] sm:$0xf0]  ;;  %v259_v42 = vor.u32 %v258_v32, %v254_v25  ;;  %v3439_v43 = vrot.slane %v261_v21, 3  ;;  %v3446_v45 = vrot.slane %v285_v28, 1  ;;  %v3131_v46 = vld [vmem:[#allocation2 + $0x34] sm:$0xf]  ;;  %v2859_v51 = vor.u32 %v3147_v35, %v2856_v39 }
  0x1b   : > { %359 = vmatpush.bf16.msra.mxu0 %v2755_v18  ;;  %3256 = vmatpush.bf16.msra.mxu2 %v2755_v18  ;;  %v283_v44 = vor.u32 %v281_v27, %v3433_v34  ;;  %v2814_v48 = vld [vmem:[#allocation2 + $0x38] sm:$0xf0]  ;;  %v2812_v49 = vld [vmem:[#allocation2 + $0x30] sm:$0xf]  ;;  %v3449_v50 = vld [vmem:[%s3409_s24 + $0x28] sm:$0xff]   ;;  %v2855_v52 = vor.u32 %v3148_v41, %v2854_v40  ;;  %v269_v55 = vshll.u32 %v3436_v36, 16 }
  0x1c   : > { %393 = vmatpush.bf16.msra.mxu1 %v2759_v29  ;;  %3260 = vmatpush.bf16.msra.mxu3 %v2759_v29  ;;  %v3132_v53 = vld [vmem:[#allocation2 + $0x34] sm:$0xf0]  ;;  %v3145_v54 = vld [vmem:[#allocation2 + $0xa4] sm:$0xf]  ;;  %v3454_v56 = vrot.slane %v265_v37, 2  ;;  %v264_v60 = vsel %vm252_vm0, %v259_v42, %v3429_v33  ;;  %v3463_v63 = vunpack.c.l.b16 %v3449_v50  ;;  %v2817_v0 = vor.u32 %v3131_v46, %v2814_v48  ;;  %s3124_s25 = sshll.u32 %s4359_s9, 4 }
  0x1d   : > { %v2848_v57 = vld [vmem:[#allocation2 + $0xa8] sm:$0xf0]  ;;  %v2846_v58 = vld [vmem:[#allocation2 + $0xa0] sm:$0xf]  ;;  %v3146_v59 = vld [vmem:[#allocation2 + $0xa4] sm:$0xf0]  ;;  %v288_v61 = vsel %vm252_vm0, %v283_v44, %v3446_v45  ;;  %v2813_v1 = vor.u32 %v3132_v53, %v2812_v49  ;;  %s4140_s28 = scalar_lea.vmem %s4353_s2, %s3124_s25 }
  0x1e   : > { %v1423_v62 = vor.u32 %v3439_v43, %v3454_v56  ;;  %v3129_v2 = vld [vmem:[#allocation2 + $0x24] sm:$0xf]  ;;  %v2806_v3 = vld [vmem:[#allocation2 + $0x28] sm:$0xf0]  ;;  %v2804_v4 = vld [vmem:[#allocation2 + $0x20] sm:$0xf]  ;;  %v2851_v5 = vor.u32 %v3145_v54, %v2848_v57  ;;  %v2847_v6 = vor.u32 %v3146_v59, %v2846_v58  ;;  %v3474_v14 = vpack.c.b16 %v3463_v63, %v3463_v63 }
  0x1f   : > { %360 = vmatpush.bf16.msra.mxu0 %v2747_v38  ;;  %3257 = vmatpush.bf16.msra.mxu2 %v2747_v38  ;;  %v3130_v7 = vld [vmem:[#allocation2 + $0x24] sm:$0xf0]  ;;  %v3143_v8 = vld [vmem:[#allocation2 + $0x94] sm:$0xf]  ;;  %v2840_v9 = vld [vmem:[#allocation2 + $0x98] sm:$0xf0]  ;;  %v2809_v15 = vor.u32 %v3129_v2, %v2806_v3  ;;  %v267_v59 = vor.u32 %v265_v37, %v3429_v33 }
  0x20   : > { %394 = vmatpush.bf16.msra.mxu1 %v2751_v47  ;;  %3261 = vmatpush.bf16.msra.mxu3 %v2751_v47  ;;  %v1425_v10 = vrot.slane %v269_v55, 3  ;;  %v2838_v11 = vld [vmem:[#allocation2 + $0x90] sm:$0xf]  ;;  %v3144_v12 = vld [vmem:[#allocation2 + $0x94] sm:$0xf0]  ;;  %v273_v13 = vshrl.u32 %v3436_v36, 16  ;;  %v2805_v18 = vor.u32 %v3130_v7, %v2804_v4  ;;  %v2843_v24 = vor.u32 %v3143_v8, %v2840_v9 }
  0x21   : > { %v3127_v19 = vld [vmem:[#allocation2 + $0x14] sm:$0xf]  ;;  %v2798_v20 = vld [vmem:[#allocation2 + $0x18] sm:$0xf0]  ;;  %v2796_v25 = vld [vmem:[#allocation2 + $0x10] sm:$0xf]  ;;  %v2839_v30 = vor.u32 %v3144_v12, %v2838_v11 }
  0x22   : > { %2776 = vmatmul.msk.bf16.vlgmr.msra.gmra.mxu0 %vm337_vm1, %v264_v60  ;;  %2779 = vmatmul.msk.bf16.vlgmr.msra.gmra.mxu2 %vm337_vm1, %v288_v61  ;;  %v1424_v21 = vrot.slane %v273_v13, 2  ;;  %v3128_v29 = vld [vmem:[#allocation2 + $0x14] sm:$0xf0]  ;;  %v3141_v31 = vld [vmem:[#allocation2 + $0x84] sm:$0xf]  ;;  %v289_v40 = vshrl.u32 %v3423_v23, 16  ;;  %v2801_v42 = vor.u32 %v3127_v19, %v2798_v20 }
  0x23   : > { %619 = vmatpush.bf16.msrb.mxu0 %v2855_v52  ;;  %2781 = vmatmul.msk.bf16.vlgmr.msra.gmra.mxu1 %vm337_vm1, %v264_v60  ;;  %v2832_v35 = vld [vmem:[#allocation2 + $0x88] sm:$0xf0]  ;;  %v2830_v38 = vld [vmem:[#allocation2 + $0x80] sm:$0xf]  ;;  %v3142_v39 = vld [vmem:[#allocation2 + $0x84] sm:$0xf0]  ;;  %v2797_v44 = vor.u32 %v3128_v29, %v2796_v25 }
  0x24   : > { %653 = vmatpush.bf16.msrb.mxu1 %v2859_v51  ;;  %2784 = vmatmul.msk.bf16.vlgmr.msra.gmra.mxu3 %vm337_vm1, %v288_v61  ;;  %v3478_v32 = vor.u32 %v1425_v10, %v1424_v21  ;;  %v293_v41 = vshll.u32 %v3474_v14, 16  ;;  %v2788_v46 = vld [vmem:[#allocation2] sm:$0xf]  ;;  %v3126_v47 = vld [vmem:[#allocation2 + $0x4] sm:$0xf0]  ;;  %v2835_v51 = vor.u32 %v3141_v31, %v2832_v35  ;;  %v2831_v52 = vor.u32 %v3142_v39, %v2830_v38 }
  0x25   : > { %509 = vmatpush.bf16.msrb.mxu3 %v2817_v0  ;;  %475 = vmatpush.bf16.msrb.mxu2 %v2813_v1  ;;  %v3125_v48 = vld [vmem:[#allocation2 + $0x4] sm:$0xf]  ;;  %v2790_v49 = vld [vmem:[#allocation2 + $0x8] sm:$0xf0]  ;;  %v3155_v53 = vld [vmem:[#allocation2 + $0xf4] sm:$0xf]  ;;  %v291_v61 = vor.u32 %v289_v40, %v3446_v45  ;;  %v2789_v1 = vor.u32 %v3126_v47, %v2788_v46 }
  0x26   : > { %v2898_v54 = vld [vmem:[#allocation2 + $0xf8] sm:$0xf0]  ;;  %v2896_v57 = vld [vmem:[#allocation2 + $0xf0] sm:$0xf]  ;;  %v3156_v58 = vld [vmem:[#allocation2 + $0xf4] sm:$0xf0]  ;;  %v2793_v2 = vor.u32 %v3125_v48, %v2790_v49 }
  0x27   : > { %620 = vmatpush.bf16.msrb.mxu0 %v2847_v6  ;;  %v271_v60 = vrot.slane %v269_v55, 1  ;;  %v295_v0 = vrot.slane %v293_v41, 1  ;;  %v2901_v3 = vor.u32 %v3155_v53, %v2898_v54  ;;  %v2897_v4 = vor.u32 %v3156_v58, %v2896_v57  ;;  %v3163_v37 = vld [vmem:[#allocation2 + $0x134] sm:$0xf]  ;;  %v2940_v45 = vld [vmem:[#allocation2 + $0x138] sm:$0xf0] }
  0x28   : > { %654 = vmatpush.bf16.msrb.mxu1 %v2851_v5  ;;  %v2938_v55 = vld [vmem:[#allocation2 + $0x130] sm:$0xf]  ;;  %v2943_v6 = vor.u32 %v3163_v37, %v2940_v45  ;;  %v3164_v7 = vld [vmem:[#allocation2 + $0x134] sm:$0xf0]  ;;  %v3153_v8 = vld [vmem:[#allocation2 + $0xe4] sm:$0xf] }
  0x29   : > { %510 = vmatpush.bf16.msrb.mxu3 %v2809_v15  ;;  %476 = vmatpush.bf16.msrb.mxu2 %v2805_v18  ;;  %v272_v5 = vsel %vm252_vm0, %v267_v59, %v271_v60  ;;  %v296_v33 = vsel %vm252_vm0, %v291_v61, %v295_v0  ;;  %v2890_v9 = vld [vmem:[#allocation2 + $0xe8] sm:$0xf0]  ;;  %v2939_v10 = vor.u32 %v3164_v7, %v2938_v55  ;;  %v2888_v12 = vld [vmem:[#allocation2 + $0xe0] sm:$0xf]  ;;  %v3154_v15 = vld [vmem:[#allocation2 + $0xe4] sm:$0xf0] }
  0x2a   : > { %v2893_v11 = vor.u32 %v3153_v8, %v2890_v9  ;;  %v2889_v18 = vor.u32 %v3154_v15, %v2888_v12  ;;  %v275_v19 = vor.u32 %v273_v13, %v271_v60  ;;  %v3161_v21 = vld [vmem:[#allocation2 + $0x124] sm:$0xf]  ;;  %v2930_v25 = vld [vmem:[#allocation2 + $0x120] sm:$0xf]  ;;  %v550_v13 = vrot.slane %v3415_v17, 1 }
  0x2b   : > { %621 = vmatpush.bf16.msrb.mxu0 %v2839_v30  ;;  %v3162_v30 = vld [vmem:[#allocation2 + $0x124] sm:$0xf0]  ;;  %v3151_v38 = vld [vmem:[#allocation2 + $0xd4] sm:$0xf]  ;;  %v2882_v39 = vld [vmem:[#allocation2 + $0xd8] sm:$0xf0] }
  0x2c   : > { %655 = vmatpush.bf16.msrb.mxu1 %v2843_v24  ;;  %v280_v20 = vsel %vm252_vm0, %v275_v19, %v3433_v34  ;;  %v2932_v24 = vld [vmem:[#allocation2 + $0x128] sm:$0xf0]  ;;  %v2931_v31 = vor.u32 %v3162_v30, %v2930_v25  ;;  %v549_v34 = vrot.slane %v3412_v16, 1  ;;  %v2880_v41 = vld [vmem:[#allocation2 + $0xd0] sm:$0xf]  ;;  %v552_v53 = vrot.slane %v3436_v36, 1 }
  0x2d   : > { %511 = vmatpush.bf16.msrb.mxu3 %v2801_v42  ;;  %477 = vmatpush.bf16.msrb.mxu2 %v2797_v44  ;;  %v2935_v29 = vor.u32 %v3161_v21, %v2932_v24  ;;  %v2885_v42 = vor.u32 %v3151_v38, %v2882_v39  ;;  %v3159_v44 = vld [vmem:[#allocation2 + $0x114] sm:$0xf]  ;;  %v2924_v46 = vld [vmem:[#allocation2 + $0x118] sm:$0xf0]  ;;  %v2922_v49 = vld [vmem:[#allocation2 + $0x110] sm:$0xf] }
  0x2e   : > { %v551_v35 = vsel %vm548_vm2, %v549_v34, %v550_v13  ;;  %v2927_v48 = vor.u32 %v3159_v44, %v2924_v46  ;;  %v553_v54 = vsel %vm548_vm2, %v550_v13, %v552_v53  ;;  %v3149_v57 = vld [vmem:[#allocation2 + $0xc4] sm:$0xf]  ;;  %v2874_v58 = vld [vmem:[#allocation2 + $0xc8] sm:$0xf0]  ;;  %v2872_v59 = vld [vmem:[#allocation2 + $0xc0] sm:$0xf] }
  0x2f   : > { %622 = vmatpush.bf16.msrb.mxu0 %v2831_v52  ;;  %v2877_v60 = vor.u32 %v3149_v57, %v2874_v58  ;;  %v3150_v61 = vld [vmem:[#allocation2 + $0xc4] sm:$0xf0]  ;;  %v3157_v0 = vld [vmem:[#allocation2 + $0x104] sm:$0xf]  ;;  %v554_v37 = vrot.slane %v3420_v22, 1  ;;  %v3540_v25 = vld [vmem:[%s3409_s24 + $0x4] sm:$0xff]  }
  0x30   : > { %656 = vmatpush.bf16.msrb.mxu1 %v2835_v51  ;;  %v3160_v51 = vld [vmem:[#allocation2 + $0x114] sm:$0xf0]  ;;  %v3171_v55 = vld [vmem:[#allocation2 + $0x174] sm:$0xf]  ;;  %v2980_v7 = vld [vmem:[#allocation2 + $0x170] sm:$0xf] }
  0x31   : > { %478 = vmatpush.bf16.msrb.mxu2 %v2789_v1  ;;  %512 = vmatpush.bf16.msrb.mxu3 %v2793_v2  ;;  %v2923_v52 = vor.u32 %v3160_v51, %v2922_v49  ;;  %v2916_v1 = vld [vmem:[#allocation2 + $0x108] sm:$0xf0]  ;;  %v2873_v2 = vor.u32 %v3150_v61, %v2872_v59  ;;  %v555_v45 = vsel %vm548_vm2, %v552_v53, %v554_v37  ;;  %v3172_v9 = vld [vmem:[#allocation2 + $0x174] sm:$0xf0]  ;;  %v3179_v15 = vld [vmem:[#allocation2 + $0x1b4] sm:$0xf] }
  0x32   : > { %2777 = vmatmul.msk.bf16.gmra.mxu0 %vm337_vm1, %v272_v5  ;;  %2780 = vmatmul.msk.bf16.gmra.mxu2 %vm337_vm1, %v296_v33  ;;  %v3022_v19 = vld [vmem:[#allocation2 + $0x1b0] sm:$0xf]  ;;  %v3180_v21 = vld [vmem:[#allocation2 + $0x1b4] sm:$0xf0]  ;;  %v558_v30 = vrot.slane %v3474_v14, 1  ;;  %v885_v14 = vshrl.u32 %v3540_v25, 16 }
  0x33   : > { %2782 = vmatmul.msk.bf16.gmra.mxu1 %vm337_vm1, %v272_v5  ;;  %996 = vmatpush.bf16.msra.mxu0 %v2939_v10  ;;  %v3158_v5 = vld [vmem:[#allocation2 + $0x104] sm:$0xf0]  ;;  %v2981_v10 = vor.u32 %v3172_v9, %v2980_v7  ;;  %v3023_v24 = vor.u32 %v3180_v21, %v3022_v19  ;;  %v3169_v13 = vld [vmem:[#allocation2 + $0x164] sm:$0xf]  ;;  %v888_v46 = vshll.u32 %v3540_v25, 16  ;;  %v3559_v53 = vld [vmem:[%s3409_s24 + $0x14] sm:$0xff]  }
  0x34   : > { %2785 = vmatmul.msk.bf16.gmra.mxu3 %vm337_vm1, %v296_v33  ;;  %1030 = vmatpush.bf16.msra.mxu1 %v2943_v6  ;;  %v2982_v6 = vld [vmem:[#allocation2 + $0x178] sm:$0xf0]  ;;  %v887_v49 = vrot.slane %v885_v14, 1  ;;  %v3177_v51 = vld [vmem:[#allocation2 + $0x1a4] sm:$0xf]  ;;  %v3581_v19 = vld [vmem:[%s3409_s24 + $0x1c] sm:$0xff]  }
  0x35   : > { %824 = vmatpush.bf16.msra.mxu3 %v2901_v3  ;;  %790 = vmatpush.bf16.msra.mxu2 %v2897_v4  ;;  %v2919_v3 = vor.u32 %v3157_v0, %v2916_v1  ;;  %v2914_v4 = vld [vmem:[#allocation2 + $0x100] sm:$0xf]  ;;  %v2985_v8 = vor.u32 %v3171_v55, %v2982_v6  ;;  %v3178_v61 = vld [vmem:[#allocation2 + $0x1a4] sm:$0xf0]  ;;  %v723_v1 = vrot.slane %v3559_v53, 1  ;;  %v905_v55 = vshll.u32 %v3559_v53, 16 }
  0x36   : > { %v2915_v33 = vor.u32 %v3158_v5, %v2914_v4  ;;  %v3167_v6 = vld [vmem:[#allocation2 + $0x154] sm:$0xf]  ;;  %v2966_v7 = vld [vmem:[#allocation2 + $0x158] sm:$0xf0]  ;;  %vm1420_vm5 = vsmask.f32 5376 }
  0x37   : > { %997 = vmatpush.bf16.msra.mxu0 %v2931_v31  ;;  %v720_v31 = vrot.slane %v3540_v25, 1  ;;  %v2969_v9 = vor.u32 %v3167_v6, %v2966_v7  ;;  %v907_v21 = vrot.slane %v905_v55, 2  ;;  %vm1811_vm7 = vcmask 1041408  }
  0x38   : > { %1031 = vmatpush.bf16.msra.mxu1 %v2935_v29  ;;  %v3543_v29 = vld [vmem:[%s3409_s24 + $0xc] sm:$0xff]   ;;  %vm1813_vm8 = vcmask 1043458   ;;  %vm1816_vm9 = vcmask 1045508   ;;  %vm2598_vm10 = vcmask 1041409   ;;  %vm2600_vm11 = vcmask 1042434  }
  0x39   : > { %825 = vmatpush.bf16.msra.mxu3 %v2893_v11  ;;  %791 = vmatpush.bf16.msra.mxu2 %v2889_v18  ;;  %v556_v11 = vrot.slane %v3423_v23, 1  ;;  %v3024_v18 = vld [vmem:[#allocation2 + $0x1b8] sm:$0xf0]  ;;  %v721_v34 = vrot.slane %v3543_v29, 1  ;;  %vm2602_vm12 = vcmask 1043459   ;;  %vm2604_vm13 = vcmask 1044484  }
  0x3a   : > { %vm2606_vm14 = vcmask 1045509   ;;  %vm2608_vm15 = vcmask 1046534   ;;  %vm2610_vm0 = vcmask 1047559  }
  0x3b   : > { %998 = vmatpush.bf16.msra.mxu0 %v2923_v52  ;;  %v557_v12 = vsel %vm548_vm2, %v554_v37, %v556_v11  ;;  %v559_v38 = vsel %vm548_vm2, %v556_v11, %v558_v30  ;;  %v722_v39 = vsel %vm548_vm2, %v720_v31, %v721_v34  ;;  %v3016_v52 = vld [vmem:[#allocation2 + $0x1a8] sm:$0xf0]  ;;  %v724_v5 = vsel %vm548_vm2, %v721_v34, %v723_v1  ;;  %v3175_v30 = vld [vmem:[#allocation2 + $0x194] sm:$0xf]  ;;  %v3008_v31 = vld [vmem:[#allocation2 + $0x198] sm:$0xf0] }
  0x3c   : > { %1032 = vmatpush.bf16.msra.mxu1 %v2927_v48  ;;  %v896_v48 = vshll.u32 %v3543_v29, 16  ;;  %v3019_v59 = vor.u32 %v3177_v51, %v3016_v52  ;;  %v3006_v34 = vld [vmem:[#allocation2 + $0x190] sm:$0xf]  ;;  %v914_v51 = vshll.u32 %v3581_v19, 16 }
  0x3d   : > { %826 = vmatpush.bf16.msra.mxu3 %v2885_v42  ;;  %v2972_v42 = vld [vmem:[#allocation2 + $0x160] sm:$0xf] }
  0x3e   : > { %v898_v58 = vrot.slane %v896_v48, 2  ;;  %v3216_v48 = vunpack.c.h.b16 %v3423_v23 }
  0x3f   : > { %999 = vmatpush.bf16.msra.mxu0 %v2915_v33 }
  0x40   : > { %1033 = vmatpush.bf16.msra.mxu1 %v2919_v3 }
  0x41   : > { %827 = vmatpush.bf16.msra.mxu3 %v2877_v60  ;;  %v3014_v60 = vld [vmem:[#allocation2 + $0x1a0] sm:$0xf] }
  0x42   : > { %2778 = vmatmul.msk.bf16.gmra.mxu0 %vm337_vm1, %v280_v20  ;;  %2818 = vmatmul.msk.bf16.vlgmr.msrb.gmra.mxu2 %vm337_vm1, %v3412_v16  ;;  %v3015_v0 = vor.u32 %v3178_v61, %v3014_v60  ;;  %v916_v60 = vrot.slane %v914_v51, 2  ;;  %v3165_v61 = vld [vmem:[#allocation2 + $0x144] sm:$0xf] }
  0x43   : > { %2783 = vmatmul.msk.bf16.gmra.mxu1 %vm337_vm1, %v280_v20  ;;  %v3027_v20 = vor.u32 %v3179_v15, %v3024_v18 }
  0x44   : > { %2823 = vmatmul.msk.bf16.vlgmr.msrb.gmra.mxu3 %vm337_vm1, %v3412_v16  ;;  %v3152_v16 = vld [vmem:[#allocation2 + $0xd4] sm:$0xf0] }
  0x45   : > { %v2881_v47 = vor.u32 %v3152_v16, %v2880_v41  ;;  %1194 = vmatpush.bf16.msrb.mxu3 %v2985_v8  ;;  %v3170_v16 = vld [vmem:[#allocation2 + $0x164] sm:$0xf0]  ;;  %v2964_v8 = vld [vmem:[#allocation2 + $0x150] sm:$0xf] }
  0x46   : > { %v2973_v44 = vor.u32 %v3170_v16, %v2972_v42 }
  0x47   : > { %792 = vmatpush.bf16.msra.mxu2 %v2881_v47  ;;  %v893_v47 = vshrl.u32 %v3543_v29, 16 }
  0x49   : > { %v895_v57 = vrot.slane %v893_v47, 1 }
  0x4b   : > { %793 = vmatpush.bf16.msra.mxu2 %v2873_v2  ;;  %v899_v3 = vor.u32 %v898_v58, %v895_v57  ;;  %v3608_v57 = vpack.c.b16 %v3463_v63, %v3216_v48 }
  0x4f   : > { %1160 = vmatpush.bf16.msrb.mxu2 %v2981_v10  ;;  %v3168_v10 = vld [vmem:[#allocation2 + $0x154] sm:$0xf0] }
  0x52   : > { %2819 = vmatmul.msk.bf16.gmra.mxu2 %vm337_vm1, %v3415_v17  ;;  %2860 = vmatmul.msk.bf16.vlgmr.msrb.gmra.mxu0 %vm337_vm1, %v551_v35 }
  0x53   : > { %2865 = vmatmul.msk.bf16.vlgmr.msrb.gmra.mxu1 %vm337_vm1, %v551_v35  ;;  %1327 = vmatpush.bf16.msrb.mxu0 %v3023_v24  ;;  %v2974_v35 = vld [vmem:[#allocation2 + $0x168] sm:$0xf0] }
  0x54   : > { %2824 = vmatmul.msk.bf16.gmra.mxu3 %vm337_vm1, %v3415_v17  ;;  %1361 = vmatpush.bf16.msrb.mxu1 %v3027_v20  ;;  %v2977_v41 = vor.u32 %v3169_v13, %v2974_v35  ;;  %v3011_v13 = vor.u32 %v3175_v30, %v3008_v31  ;;  %v3176_v35 = vld [vmem:[#allocation2 + $0x194] sm:$0xf0]  ;;  %v2998_v30 = vld [vmem:[#allocation2 + $0x180] sm:$0xf]  ;;  %v3174_v31 = vld [vmem:[#allocation2 + $0x184] sm:$0xf0] }
  0x55   : > { %1161 = vmatpush.bf16.msrb.mxu2 %v2973_v44 }
  0x56   : > { %1195 = vmatpush.bf16.msrb.mxu3 %v2977_v41 }
  0x57   : > { %1328 = vmatpush.bf16.msrb.mxu0 %v3015_v0  ;;  %v2958_v0 = vld [vmem:[#allocation2 + $0x148] sm:$0xf0] }
  0x58   : > { %1362 = vmatpush.bf16.msrb.mxu1 %v3019_v59 }
  0x5a   : > { %1196 = vmatpush.bf16.msrb.mxu3 %v2969_v9 }
  0x5c   : > { %1363 = vmatpush.bf16.msrb.mxu1 %v3011_v13  ;;  %v3220_v13 = vunpack.c.h.b16 %v3449_v50  ;;  %v3187_v50 = vld [vmem:[#allocation2 + $0x1f4] sm:$0xf] }
  0x62   : > { %2820 = vmatmul.msk.bf16.gmra.mxu2 %vm337_vm1, %v3436_v36  ;;  %2861 = vmatmul.msk.bf16.gmra.mxu0 %vm337_vm1, %v553_v54 }
  0x63   : > { %2866 = vmatmul.msk.bf16.gmra.mxu1 %vm337_vm1, %v553_v54  ;;  %v890_v54 = vrot.slane %v888_v46, 2 }
  0x64   : > { %2825 = vmatmul.msk.bf16.gmra.mxu3 %vm337_vm1, %v3436_v36 }
  0x65   : > { %v891_v2 = vor.u32 %v890_v54, %v887_v49  ;;  %v911_v49 = vshrl.u32 %v3581_v19, 16 }
  0x67   : > { %v900_v33 = vsel %vm883_vm3, %v891_v2, %v899_v3  ;;  %v913_v59 = vrot.slane %v911_v49, 1  ;;  %v2961_v2 = vor.u32 %v3165_v61, %v2958_v0  ;;  %v3636_v49 = vpack.c.b16 %v3220_v13, %v3220_v13  ;;  %v3066_v61 = vld [vmem:[#allocation2 + $0x1f8] sm:$0xf0]  ;;  %v3064_v0 = vld [vmem:[#allocation2 + $0x1f0] sm:$0xf] }
  0x69   : > { %1197 = vmatpush.bf16.msrb.mxu3 %v2961_v2  ;;  %v917_v55 = vor.u32 %v916_v60, %v913_v59  ;;  %v3069_v2 = vor.u32 %v3187_v50, %v3066_v61 }
  0x72   : > { %2821 = vmatmul.msk.bf16.gmra.mxu2 %vm337_vm1, %v3420_v22  ;;  %2862 = vmatmul.msk.bf16.gmra.mxu0 %vm337_vm1, %v555_v45 }
  0x73   : > { %2867 = vmatmul.msk.bf16.gmra.mxu1 %vm337_vm1, %v555_v45  ;;  %v902_v45 = vshrl.u32 %v3559_v53, 16 }
  0x74   : > { %2826 = vmatmul.msk.bf16.gmra.mxu3 %vm337_vm1, %v3420_v22 }
  0x75   : > { %v904_v20 = vrot.slane %v902_v45, 1  ;;  %v727_v45 = vrot.slane %v3608_v57, 1 }
  0x77   : > { %v908_v41 = vor.u32 %v907_v21, %v904_v20 }
  0x79   : > { %v909_v46 = vsel %vm883_vm3, %v899_v3, %v908_v41  ;;  %v2956_v3 = vld [vmem:[#allocation2 + $0x140] sm:$0xf]  ;;  %v918_v9 = vsel %vm883_vm3, %v908_v41, %v917_v55 }
  0x82   : > { %2822 = vmatmul.msk.bf16.gmra.mxu2 %vm337_vm1, %v3423_v23  ;;  %2863 = vmatmul.msk.bf16.gmra.mxu0 %vm337_vm1, %v557_v12 }
  0x83   : > { %2868 = vmatmul.msk.bf16.gmra.mxu1 %vm337_vm1, %v557_v12  ;;  %v2965_v12 = vor.u32 %v3168_v10, %v2964_v8  ;;  %v3173_v10 = vld [vmem:[#allocation2 + $0x184] sm:$0xf] }
  0x84   : > { %2827 = vmatmul.msk.bf16.gmra.mxu3 %vm337_vm1, %v3423_v23 }
  0x85   : > { %1162 = vmatpush.bf16.msrb.mxu2 %v2965_v12  ;;  %v3000_v12 = vld [vmem:[#allocation2 + $0x188] sm:$0xf0] }
  0x86   : > { %v3003_v21 = vor.u32 %v3173_v10, %v3000_v12 }
  0x88   : > { %1364 = vmatpush.bf16.msrb.mxu1 %v3003_v21 }
  0x92   : > { %2864 = vmatmul.msk.bf16.gmra.mxu0 %vm337_vm1, %v559_v38  ;;  %2902 = vmatmul.msk.bf16.vlgmr.msra.gmra.mxu2 %vm337_vm1, %v722_v39 }
  0x93   : > { %2869 = vmatmul.msk.bf16.gmra.mxu1 %vm337_vm1, %v559_v38  ;;  %v3007_v38 = vor.u32 %v3176_v35, %v3006_v34  ;;  %v2999_v34 = vor.u32 %v3174_v31, %v2998_v30  ;;  %v920_v35 = vshrl.u32 %v3608_v57, 16 }
  0x94   : > { %2907 = vmatmul.msk.bf16.vlgmr.msra.gmra.mxu3 %vm337_vm1, %v722_v39  ;;  %v725_v39 = vrot.slane %v3581_v19, 1 }
  0x95   : > { %1329 = vmatpush.bf16.msrb.mxu0 %v3007_v38  ;;  %v923_v38 = vshll.u32 %v3608_v57, 16  ;;  %v922_v51 = vrot.slane %v920_v35, 1  ;;  %1547 = vmatpush.bf16.msra.mxu3 %v3069_v2  ;;  %v929_v35 = vshrl.u32 %v3636_v49, 16 }
  0x96   : > { %v726_v14 = vsel %vm548_vm2, %v723_v1, %v725_v39  ;;  %v728_v8 = vsel %vm548_vm2, %v725_v39, %v727_v45 }
  0x97   : > { %v925_v59 = vrot.slane %v923_v38, 2  ;;  %v931_v61 = vrot.slane %v929_v35, 1  ;;  %v3185_v35 = vld [vmem:[#allocation2 + $0x1e4] sm:$0xf] }
  0x99   : > { %1330 = vmatpush.bf16.msrb.mxu0 %v2999_v34 }
  0x9f   : > { %v3562_v4 = vpop.f32.mrf.mxu0 }
  0xa0   : > { %v3566_v37 = vpop.f32.mrf.mxu1 }
  0xa2   : > { %2903 = vmatmul.msk.bf16.gmra.mxu2 %vm337_vm1, %v724_v5  ;;  %2944 = vmatmul.msk.bf16.vlgmr.msra.gmra.mxu0 %vm337_vm1, %v900_v33 }
  0xa3   : > { %2949 = vmatmul.msk.bf16.vlgmr.msra.gmra.mxu1 %vm337_vm1, %v900_v33 }
  0xa4   : > { %2908 = vmatmul.msk.bf16.gmra.mxu3 %vm337_vm1, %v724_v5  ;;  %v3166_v5 = vld [vmem:[#allocation2 + $0x144] sm:$0xf0] }
  0xa5   : > { %v3574_v11 = vpop.f32.mrf.mxu2  ;;  %v2957_v33 = vor.u32 %v3166_v5, %v2956_v3  ;;  %v3188_v3 = vld [vmem:[#allocation2 + $0x1f4] sm:$0xf0]  ;;  %v729_v5 = vrot.slane %v3636_v49, 1 }
  0xa7   : > { %v3576_v15 = vpop.f32.mrf.mxu3  ;;  %v3578_v18 = vpop.f32.mrf.mxu0  ;;  %1163 = vmatpush.bf16.msrb.mxu2 %v2957_v33  ;;  %v926_v33 = vor.u32 %v925_v59, %v922_v51  ;;  %v730_v21 = vsel %vm548_vm2, %v727_v45, %v729_v5  ;;  %v3108_v45 = vld [vmem:[#allocation2 + $0x238] sm:$0xf0] }
  0xa8   : > { %v3583_v24 = vpop.f32.mrf.mxu1 }
  0xa9   : > { %v927_v30 = vsel %vm883_vm3, %v917_v55, %v926_v33  ;;  %v3106_v55 = vld [vmem:[#allocation2 + $0x230] sm:$0xf] }
  0xad   : > { %v3586_v42 = vpop.f32.mrf.mxu2 }
  0xaf   : > { %v3588_v16 = vpop.f32.mrf.mxu3  ;;  %v3590_v44 = vpop.f32.mrf.mxu0 }
  0xb0   : > { %v3594_v47 = vpop.f32.mrf.mxu1 }
  0xb2   : > { %2904 = vmatmul.msk.bf16.gmra.mxu2 %vm337_vm1, %v726_v14  ;;  %2945 = vmatmul.msk.bf16.gmra.mxu0 %vm337_vm1, %v909_v46 }
  0xb3   : > { %2950 = vmatmul.msk.bf16.gmra.mxu1 %vm337_vm1, %v909_v46 }
  0xb4   : > { %2909 = vmatmul.msk.bf16.gmra.mxu3 %vm337_vm1, %v726_v14 }
  0xb5   : > { %v3603_v52 = vpop.f32.mrf.mxu2 }
  0xb7   : > { %v3605_v54 = vpop.f32.mrf.mxu3  ;;  %v3610_v58 = vpop.f32.mrf.mxu0 }
  0xb8   : > { %v3612_v1 = vpop.f32.mrf.mxu1 }
  0xbd   : > { %v3615_v6 = vpop.f32.mrf.mxu2 }
  0xbf   : > { %v3617_v63 = vpop.f32.mrf.mxu3  ;;  %v3619_v7 = vpop.f32.mrf.mxu0 }
  0xc0   : > { %v3623_v20 = vpop.f32.mrf.mxu1 }
  0xc2   : > { %2905 = vmatmul.msk.bf16.gmra.mxu2 %vm337_vm1, %v728_v8  ;;  %2946 = vmatmul.msk.bf16.gmra.mxu0 %vm337_vm1, %v918_v9 }
  0xc3   : > { %2951 = vmatmul.msk.bf16.gmra.mxu1 %vm337_vm1, %v918_v9 }
  0xc4   : > { %2910 = vmatmul.msk.bf16.gmra.mxu3 %vm337_vm1, %v728_v8 }
  0xc5   : > { %v480_v39 = vpop.f32.mrf.mxu2 }
  0xc6   : > { %v481_v41 = vadd.f32 %v480_v39, %v3562_v4  ;;  %v3065_v4 = vor.u32 %v3188_v3, %v3064_v0  ;;  %v3196_v39 = vld [vmem:[#allocation2 + $0x234] sm:$0xf0] }
  0xc7   : > { %v514_v14 = vpop.f32.mrf.mxu3  ;;  %v3634_v48 = vpop.f32.mrf.mxu0 }
  0xc8   : > { %v515_v46 = vadd.f32 %v514_v14, %v3566_v37  ;;  %v3638_v60 = vpop.f32.mrf.mxu1  ;;  %1513 = vmatpush.bf16.msra.mxu2 %v3065_v4  ;;  %v3107_v14 = vor.u32 %v3196_v39, %v3106_v55  ;;  %v3186_v55 = vld [vmem:[#allocation2 + $0x1e4] sm:$0xf0] }
  0xca   : > { %1677 = vmatpush.bf16.msra.mxu0 %v3107_v14  ;;  %v3193_v14 = vld [vmem:[#allocation2 + $0x224] sm:$0xf] }
  0xcd   : > { %v482_v8 = vpop.f32.mrf.mxu2 }
  0xce   : > { %v483_v37 = vadd.f32 %v482_v8, %v3578_v18  ;;  %v932_v18 = vshll.u32 %v3636_v49, 16  ;;  %v1090_v8 = vrot.slane %v3540_v25, 2 }
  0xcf   : > { %v516_v9 = vpop.f32.mrf.mxu3  ;;  %v624_v12 = vpop.f32.mrf.mxu0 }
  0xd0   : > { %v517_v10 = vadd.f32 %v516_v9, %v3583_v24  ;;  %v3645_v31 = vadd.f32 %v624_v12, %v481_v41  ;;  %v658_v34 = vpop.f32.mrf.mxu1  ;;  %v3195_v24 = vld [vmem:[#allocation2 + $0x234] sm:$0xf]  ;;  %v934_v0 = vrot.slane %v932_v18, 2  ;;  %v1091_v9 = vrot.slane %v3543_v29, 2  ;;  %v3056_v29 = vld [vmem:[#allocation2 + $0x1e0] sm:$0xf] }
  0xd1   : > { %v3647_v13 = vadd.f32 %v658_v34, %v515_v46  ;;  %v3111_v38 = vor.u32 %v3195_v24, %v3108_v45 }
  0xd2   : > { %2906 = vmatmul.msk.bf16.gmra.mxu2 %vm337_vm1, %v730_v21  ;;  %2947 = vmatmul.msk.bf16.gmra.mxu0 %vm337_vm1, %v927_v30  ;;  %v935_v4 = vor.u32 %v934_v0, %v931_v61  ;;  %v3098_v0 = vld [vmem:[#allocation2 + $0x220] sm:$0xf] }
  0xd3   : > { %2952 = vmatmul.msk.bf16.gmra.mxu1 %vm337_vm1, %v927_v30 }
  0xd4   : > { %2911 = vmatmul.msk.bf16.gmra.mxu3 %vm337_vm1, %v730_v21  ;;  %1711 = vmatpush.bf16.msra.mxu1 %v3111_v38  ;;  %v936_v34 = vsel %vm883_vm3, %v926_v33, %v935_v4 }
  0xd5   : > { %v485_v41 = vpop.f32.mrf.mxu2 }
  0xd6   : > { %v486_v46 = vadd.f32 %v485_v41, %v3590_v44 }
  0xd7   : > { %v519_v51 = vpop.f32.mrf.mxu3  ;;  %v626_v50 = vpop.f32.mrf.mxu0 }
  0xd8   : > { %v520_v59 = vadd.f32 %v519_v51, %v3594_v47  ;;  %v3657_v2 = vadd.f32 %v626_v50, %v483_v37  ;;  %v660_v3 = vpop.f32.mrf.mxu1  ;;  %v1092_v37 = vsel %vm1089_vm4, %v1090_v8, %v1091_v9  ;;  %v1093_v8 = vrot.slane %v3559_v53, 2 }
  0xd9   : > { %v3659_v5 = vadd.f32 %v660_v3, %v517_v10  ;;  %v3058_v10 = vld [vmem:[#allocation2 + $0x1e8] sm:$0xf0]  ;;  %v3194_v3 = vld [vmem:[#allocation2 + $0x224] sm:$0xf0] }
  0xda   : > { %v3061_v25 = vor.u32 %v3185_v35, %v3058_v10  ;;  %v3099_v4 = vor.u32 %v3194_v3, %v3098_v0 }
  0xdc   : > { %1548 = vmatpush.bf16.msra.mxu3 %v3061_v25  ;;  %1678 = vmatpush.bf16.msra.mxu0 %v3099_v4 }
  0xdd   : > { %v487_v44 = vpop.f32.mrf.mxu2 }
  0xde   : > { %v488_v12 = vadd.f32 %v487_v44, %v3610_v58  ;;  %v3057_v58 = vor.u32 %v3186_v55, %v3056_v29  ;;  %v1258_v44 = vrot.slane %v3436_v36, 2  ;;  %v3050_v36 = vld [vmem:[#allocation2 + $0x1d8] sm:$0xf0] }
  0xdf   : > { %v521_v21 = vpop.f32.mrf.mxu3  ;;  %v629_v30 = vpop.f32.mrf.mxu0 }
  0xe0   : > { %v522_v47 = vadd.f32 %v521_v21, %v3612_v1  ;;  %v3667_v18 = vadd.f32 %v629_v30, %v486_v46  ;;  %v663_v24 = vpop.f32.mrf.mxu1  ;;  %1514 = vmatpush.bf16.msra.mxu2 %v3057_v58  ;;  %v3100_v46 = vld [vmem:[#allocation2 + $0x228] sm:$0xf0] }
  0xe1   : > { %v3669_v45 = vadd.f32 %v663_v24, %v520_v59  ;;  %v3103_v50 = vor.u32 %v3193_v14, %v3100_v46  ;;  %v3192_v46 = vld [vmem:[#allocation2 + $0x214] sm:$0xf0] }
  0xe2   : > { %2948 = vmatmul.msk.bf16.gmra.mxu0 %vm337_vm1, %v936_v34  ;;  %2986 = vmatmul.msk.bf16.vlgmr.msrb.gmra.mxu2 %vm337_vm1, %v1092_v37 }
  0xe3   : > { %2953 = vmatmul.msk.bf16.gmra.mxu1 %vm337_vm1, %v936_v34 }
  0xe4   : > { %2991 = vmatmul.msk.bf16.vlgmr.msrb.gmra.mxu3 %vm337_vm1, %v1092_v37  ;;  %1712 = vmatpush.bf16.msra.mxu1 %v3103_v50  ;;  %v1260_v50 = vrot.slane %v3420_v22, 2 }
  0xe5   : > { %v490_v1 = vpop.f32.mrf.mxu2 }
  0xe6   : > { %v491_v33 = vadd.f32 %v490_v1, %v3619_v7  ;;  %v1257_v7 = vrot.slane %v3415_v17, 2  ;;  %v3183_v17 = vld [vmem:[#allocation2 + $0x1d4] sm:$0xf] }
  0xe7   : > { %v524_v38 = vpop.f32.mrf.mxu3  ;;  %v631_v41 = vpop.f32.mrf.mxu0 }
  0xe8   : > { %v525_v39 = vadd.f32 %v524_v38, %v3623_v20  ;;  %v3677_v51 = vadd.f32 %v631_v41, %v488_v12  ;;  %v665_v59 = vpop.f32.mrf.mxu1  ;;  %v1259_v37 = vsel %vm1089_vm4, %v1257_v7, %v1258_v44  ;;  %v3191_v38 = vld [vmem:[#allocation2 + $0x214] sm:$0xf]  ;;  %v3090_v41 = vld [vmem:[#allocation2 + $0x210] sm:$0xf] }
  0xe9   : > { %v3679_v61 = vadd.f32 %v665_v59, %v522_v47  ;;  %v1094_v47 = vsel %vm1089_vm4, %v1091_v9, %v1093_v8  ;;  %v3184_v9 = vld [vmem:[#allocation2 + $0x1d4] sm:$0xf0]  ;;  %v1095_v59 = vrot.slane %v3581_v19, 2  ;;  %v3091_v0 = vor.u32 %v3192_v46, %v3090_v41 }
  0xeb   : > { %1679 = vmatpush.bf16.msra.mxu0 %v3091_v0 }
  0xed   : > { %v492_v20 = vpop.f32.mrf.mxu2 }
  0xee   : > { %v493_v21 = vadd.f32 %v492_v20, %v3634_v48  ;;  %v3048_v48 = vld [vmem:[#allocation2 + $0x1d0] sm:$0xf] }
  0xef   : > { %v526_v12 = vpop.f32.mrf.mxu3  ;;  %v634_v34 = vpop.f32.mrf.mxu0  ;;  %v3049_v25 = vor.u32 %v3184_v9, %v3048_v48 }
  0xf0   : > { %v527_v30 = vadd.f32 %v526_v12, %v3638_v60  ;;  %v3688_v35 = vadd.f32 %v634_v34, %v491_v33  ;;  %v668_v10 = vpop.f32.mrf.mxu1  ;;  %v3053_v60 = vor.u32 %v3183_v17, %v3050_v36  ;;  %v1096_v12 = vsel %vm1089_vm4, %v1093_v8, %v1095_v59  ;;  %v3042_v17 = vld [vmem:[#allocation2 + $0x1c8] sm:$0xf0] }
  0xf1   : > { %v3690_v53 = vadd.f32 %v668_v10, %v525_v39  ;;  %1515 = vmatpush.bf16.msra.mxu2 %v3049_v25  ;;  %v3092_v39 = vld [vmem:[#allocation2 + $0x218] sm:$0xf0]  ;;  %v3181_v10 = vld [vmem:[#allocation2 + $0x1c4] sm:$0xf]  ;;  %v3182_v25 = vld [vmem:[#allocation2 + $0x1c4] sm:$0xf0] }
  0xf2   : > { %2987 = vmatmul.msk.bf16.gmra.mxu2 %vm337_vm1, %v1094_v47  ;;  %3028 = vmatmul.msk.bf16.vlgmr.msrb.gmra.mxu0 %vm337_vm1, %v1259_v37  ;;  %v3095_v14 = vor.u32 %v3191_v38, %v3092_v39 }
  0xf3   : > { %3033 = vmatmul.msk.bf16.vlgmr.msrb.gmra.mxu1 %vm337_vm1, %v1259_v37  ;;  %1549 = vmatpush.bf16.msra.mxu3 %v3053_v60  ;;  %v3045_v60 = vor.u32 %v3181_v10, %v3042_v17  ;;  %v3752_v10 = vld [vmem:[%s3409_s24 + $0x28] sm:$0xff]  }
  0xf4   : > { %2992 = vmatmul.msk.bf16.gmra.mxu3 %vm337_vm1, %v1094_v47  ;;  %1713 = vmatpush.bf16.msra.mxu1 %v3095_v14 }
  0xf5   : > { %v495_v24 = vpop.f32.mrf.mxu2 }
  0xf6   : > { %v496_v4 = vadd.f32 %v495_v24, %v3574_v11  ;;  %v3040_v24 = vld [vmem:[#allocation2 + $0x1c0] sm:$0xf] }
  0xf7   : > { %v529_v29 = vpop.f32.mrf.mxu3  ;;  %v636_v55 = vpop.f32.mrf.mxu0  ;;  %1550 = vmatpush.bf16.msra.mxu3 %v3045_v60 }
  0xf8   : > { %v3696_v58 = vadd.f32 %v636_v55, %v493_v21  ;;  %v670_v1 = vpop.f32.mrf.mxu1  ;;  %v530_v20 = vadd.f32 %v529_v29, %v3576_v15  ;;  %v3041_v29 = vor.u32 %v3182_v25, %v3040_v24  ;;  %v1097_v55 = vrot.slane %v3608_v57, 2 }
  0xf9   : > { %v3698_v33 = vadd.f32 %v670_v1, %v527_v30  ;;  %v1261_v30 = vsel %vm1089_vm4, %v1258_v44, %v1260_v50  ;;  %v3722_v1 = vld [vmem:[%s3409_s24 + $0x20] sm:$0xff]  }
  0xfa   : > { %1516 = vmatpush.bf16.msra.mxu2 %v3041_v29  ;;  %v1098_v46 = vsel %vm1089_vm4, %v1095_v59, %v1097_v55 }
  0xfd   : > { %v497_v3 = vpop.f32.mrf.mxu2 }
  0xfe   : > { %v498_v15 = vadd.f32 %v497_v3, %v3586_v42  ;;  %v1262_v42 = vrot.slane %v3722_v1, 2  ;;  %v3189_v3 = vld [vmem:[#allocation2 + $0x204] sm:$0xf] }
  0xff   : > { %v531_v7 = vpop.f32.mrf.mxu3  ;;  %v639_v21 = vpop.f32.mrf.mxu0 }
 0x100   : > { %v3706_v34 = vadd.f32 %v639_v21, %v496_v4  ;;  %v673_v47 = vpop.f32.mrf.mxu1  ;;  %v532_v44 = vadd.f32 %v531_v7, %v3588_v16  ;;  %v1263_v0 = vsel %vm1089_vm4, %v1260_v50, %v1262_v42  ;;  %v3084_v4 = vld [vmem:[#allocation2 + $0x208] sm:$0xf0] }
 0x101   : > { %v3708_v19 = vadd.f32 %v673_v47, %v530_v20  ;;  %v3087_v20 = vor.u32 %v3189_v3, %v3084_v4 }
 0x102   : > { %2988 = vmatmul.msk.bf16.gmra.mxu2 %vm337_vm1, %v1096_v12  ;;  %3029 = vmatmul.msk.bf16.gmra.mxu0 %vm337_vm1, %v1261_v30 }
 0x103   : > { %3034 = vmatmul.msk.bf16.gmra.mxu1 %vm337_vm1, %v1261_v30  ;;  %v3190_v30 = vld [vmem:[#allocation2 + $0x204] sm:$0xf0] }
 0x104   : > { %2993 = vmatmul.msk.bf16.gmra.mxu3 %vm337_vm1, %v1096_v12  ;;  %v3082_v12 = vld [vmem:[#allocation2 + $0x200] sm:$0xf]  ;;  %1714 = vmatpush.bf16.msra.mxu1 %v3087_v20 }
 0x105   : > { %v500_v11 = vpop.f32.mrf.mxu2 }
 0x106   : > { %v501_v38 = vadd.f32 %v500_v11, %v3603_v52  ;;  %v3083_v52 = vor.u32 %v3190_v30, %v3082_v12 }
 0x107   : > { %v534_v8 = vpop.f32.mrf.mxu3  ;;  %v641_v37 = vpop.f32.mrf.mxu0 }
 0x108   : > { %v3716_v36 = vadd.f32 %v641_v37, %v498_v15  ;;  %v675_v48 = vpop.f32.mrf.mxu1  ;;  %v535_v41 = vadd.f32 %v534_v8, %v3605_v54  ;;  %v1427_v54 = vsel %vm1420_vm5, %v1423_v62, %v3478_v32  ;;  %1680 = vmatpush.bf16.msra.mxu0 %v3083_v52  ;;  %v1099_v37 = vrot.slane %v3636_v49, 2 }
 0x109   : > { %v3718_v9 = vadd.f32 %v675_v48, %v532_v44 }
 0x10a   : > { %v1100_v60 = vsel %vm1089_vm4, %v1097_v55, %v1099_v37 }
 0x10d   : > { %v502_v16 = vpop.f32.mrf.mxu2 }
 0x10e   : > { %v503_v50 = vadd.f32 %v502_v16, %v3615_v6  ;;  %v1264_v6 = vrot.slane %v3752_v10, 2  ;;  %v206_v16 = vld [vmem:[%s3409_s24 + $0x30] sm:$0xf] }
 0x10f   : > { %v536_v39 = vpop.f32.mrf.mxu3  ;;  %v644_v14 = vpop.f32.mrf.mxu0 }
 0x110   : > { %v3729_v7 = vadd.f32 %v644_v14, %v501_v38  ;;  %v678_v57 = vpop.f32.mrf.mxu1  ;;  %v537_v15 = vadd.f32 %v536_v39, %v3617_v63  ;;  %v1265_v24 = vsel %vm1089_vm4, %v1262_v42, %v1264_v6 }
 0x111   : > { %v3731_v21 = vadd.f32 %v678_v57, %v535_v41 }
 0x112   : > { %2989 = vmatmul.msk.bf16.gmra.mxu2 %vm337_vm1, %v1098_v46  ;;  %3030 = vmatmul.msk.bf16.gmra.mxu0 %vm337_vm1, %v1263_v0 }
 0x113   : > { %3035 = vmatmul.msk.bf16.gmra.mxu1 %vm337_vm1, %v1263_v0 }
 0x114   : > { %2994 = vmatmul.msk.bf16.gmra.mxu3 %vm337_vm1, %v1098_v46 }
 0x115   : > { %v795_v59 = vpop.f32.mrf.mxu2 }
 0x116   : > { %v854_v47 = vadd.f32 %v795_v59, %v3645_v31 }
 0x117   : > { %v829_v11 = vpop.f32.mrf.mxu3  ;;  %v646_v43 = vpop.f32.mrf.mxu0 }
 0x118   : > { %v855_v8 = vadd.f32 %v829_v11, %v3647_v13  ;;  %v3746_v56 = vadd.f32 %v646_v43, %v503_v50  ;;  %v680_v62 = vpop.f32.mrf.mxu1 }
 0x119   : > { %v3748_v44 = vadd.f32 %v680_v62, %v537_v15  ;;  %v1428_v15 = vrot.slane %v281_v27, 2 }
 0x11d   : > { %v797_v17 = vpop.f32.mrf.mxu2 }
 0x11e   : > { %v856_v31 = vadd.f32 %v797_v17, %v3657_v2  ;;  %v1254_v2 = vunpack.c.l.b16 %v206_v16 }
 0x11f   : > { %v831_v48 = vpop.f32.mrf.mxu3  ;;  %v1001_v13 = vpop.f32.mrf.mxu0 }
 0x120   : > { %v857_v63 = vadd.f32 %v831_v48, %v3659_v5  ;;  %v3759_v25 = vadd.f32 %v1001_v13, %v854_v47  ;;  %v1035_v29 = vpop.f32.mrf.mxu1  ;;  %v3770_v41 = vpack.c.b16 %v1254_v2, %v1254_v2 }
 0x121   : > { %v3762_v49 = vadd.f32 %v1035_v29, %v855_v8  ;;  %v1429_v8 = vrot.slane %v277_v26, 3 }
 0x122   : > { %2990 = vmatmul.msk.bf16.gmra.mxu2 %vm337_vm1, %v1100_v60  ;;  %3031 = vmatmul.msk.bf16.gmra.mxu0 %vm337_vm1, %v1265_v24  ;;  %v1266_v3 = vrot.slane %v3770_v41, 2 }
 0x123   : > { %3036 = vmatmul.msk.bf16.gmra.mxu1 %vm337_vm1, %v1265_v24 }
 0x124   : > { %2995 = vmatmul.msk.bf16.gmra.mxu3 %vm337_vm1, %v1100_v60  ;;  %v1267_v30 = vsel %vm1089_vm4, %v1264_v6, %v1266_v3  ;;  %v1430_v6 = vor.u32 %v1429_v8, %v1428_v15  ;;  %v3304_v3 = vld [vmem:[%s3409_s24 + $0x18] sm:$0xff]  }
 0x125   : > { %v800_v5 = vpop.f32.mrf.mxu2 }
 0x126   : > { %v858_v55 = vadd.f32 %v800_v5, %v3667_v18  ;;  %v1431_v22 = vsel %vm1420_vm5, %v3478_v32, %v1430_v6  ;;  %v1432_v5 = vrot.slane %v289_v40, 2 }
 0x127   : > { %v834_v38 = vpop.f32.mrf.mxu3  ;;  %v1003_v39 = vpop.f32.mrf.mxu0 }
 0x128   : > { %v859_v42 = vadd.f32 %v834_v38, %v3669_v45  ;;  %v3772_v14 = vadd.f32 %v1003_v39, %v856_v31  ;;  %v1037_v46 = vpop.f32.mrf.mxu1  ;;  %v3303_v31 = vld [vmem:[%s3409_s24 + $0x10] sm:$0xff]  }
 0x129   : > { %v3774_v0 = vadd.f32 %v1037_v46, %v857_v63 }
 0x12d   : > { %v802_v4 = vpop.f32.mrf.mxu2 }
 0x12e   : > { %v860_v57 = vadd.f32 %v802_v4, %v3677_v51  ;;  %v1610_v4 = vrot.slane %v3304_v3, 3 }
 0x12f   : > { %v836_v20 = vpop.f32.mrf.mxu3  ;;  %v1006_v18 = vpop.f32.mrf.mxu0 }
 0x130   : > { %v861_v12 = vadd.f32 %v836_v20, %v3679_v61  ;;  %v3780_v45 = vadd.f32 %v1006_v18, %v858_v55  ;;  %v1040_v52 = vpop.f32.mrf.mxu1  ;;  %v1433_v55 = vrot.slane %v285_v28, 3 }
 0x131   : > { %v3782_v59 = vadd.f32 %v1040_v52, %v859_v42 }
 0x132   : > { %3032 = vmatmul.msk.bf16.gmra.mxu0 %vm337_vm1, %v1267_v30  ;;  %3070 = vmatmul.msk.bf16.vlgmr.msra.gmra.mxu2 %vm337_vm1, %v1427_v54  ;;  %v1434_v46 = vor.u32 %v1433_v55, %v1432_v5 }
 0x133   : > { %3037 = vmatmul.msk.bf16.gmra.mxu1 %vm337_vm1, %v1267_v30 }
 0x134   : > { %3075 = vmatmul.msk.bf16.vlgmr.msra.gmra.mxu3 %vm337_vm1, %v1427_v54  ;;  %v3302_v54 = vld [vmem:[%s3409_s24 + $0x8] sm:$0xff]   ;;  %v1435_v40 = vsel %vm1420_vm5, %v1430_v6, %v1434_v46 }
 0x135   : > { %v805_v51 = vpop.f32.mrf.mxu2  ;;  %v1607_v17 = vrot.slane %v3302_v54, 3 }
 0x136   : > { %v862_v61 = vadd.f32 %v805_v51, %v3688_v35  ;;  %v1608_v35 = vrot.slane %v3303_v31, 3 }
 0x137   : > { %v839_v50 = vpop.f32.mrf.mxu3  ;;  %v1008_v11 = vpop.f32.mrf.mxu0 }
 0x138   : > { %v863_v47 = vadd.f32 %v839_v50, %v3690_v53  ;;  %v3794_v43 = vadd.f32 %v1008_v11, %v860_v57  ;;  %v1042_v62 = vpop.f32.mrf.mxu1  ;;  %v1609_v26 = vsel %vm1606_vm6, %v1607_v17, %v1608_v35  ;;  %v1611_v23 = vsel %vm1606_vm6, %v1608_v35, %v1610_v4 }
 0x139   : > { %v3796_v37 = vadd.f32 %v1042_v62, %v861_v12  ;;  %v1612_v17 = vrot.slane %v3722_v1, 3  ;;  %v1446_v1 = vshrl.u32 %v3770_v41, 16 }
 0x13d   : > { %v807_v48 = vpop.f32.mrf.mxu2 }
 0x13e   : > { %v864_v53 = vadd.f32 %v807_v48, %v3696_v58 }
 0x13f   : > { %v841_v63 = vpop.f32.mrf.mxu3  ;;  %v1011_v13 = vpop.f32.mrf.mxu0 }
 0x140   : > { %v865_v27 = vadd.f32 %v841_v63, %v3698_v33  ;;  %v3805_v60 = vadd.f32 %v1011_v13, %v862_v61  ;;  %v1045_v24 = vpop.f32.mrf.mxu1  ;;  %v1613_v63 = vsel %vm1606_vm6, %v1610_v4, %v1612_v17 }
 0x141   : > { %v3807_v29 = vadd.f32 %v1045_v24, %v863_v47 }
 0x142   : > { %3071 = vmatmul.msk.bf16.gmra.mxu2 %vm337_vm1, %v1431_v22  ;;  %3112 = vmatmul.msk.bf16.vlgmr.msra.gmra.mxu0 %vm337_vm1, %v1609_v26 }
 0x143   : > { %3117 = vmatmul.msk.bf16.vlgmr.msra.gmra.mxu1 %vm337_vm1, %v1609_v26 }
 0x144   : > { %3076 = vmatmul.msk.bf16.gmra.mxu3 %vm337_vm1, %v1431_v22 }
 0x145   : > { %v810_v58 = vpop.f32.mrf.mxu2 }
 0x146   : > { %v866_v33 = vadd.f32 %v810_v58, %v3706_v34 }
 0x147   : > { %v844_v32 = vpop.f32.mrf.mxu3  ;;  %v1013_v2 = vpop.f32.mrf.mxu0 }
 0x148   : > { %v867_v16 = vadd.f32 %v844_v32, %v3708_v19  ;;  %v3819_v38 = vadd.f32 %v1013_v2, %v864_v53  ;;  %v1047_v42 = vpop.f32.mrf.mxu1  ;;  %v1448_v32 = vrot.slane %v1446_v1, 2 }
 0x149   : > { %v3821_v39 = vadd.f32 %v1047_v42, %v865_v27 }
 0x14d   : > { %v812_v57 = vpop.f32.mrf.mxu2 }
 0x14e   : > { %v868_v34 = vadd.f32 %v812_v57, %v3716_v36  ;;  %v1437_v36 = vshrl.u32 %v3752_v10, 16 }
 0x14f   : > { %v846_v20 = vpop.f32.mrf.mxu3  ;;  %v1016_v12 = vpop.f32.mrf.mxu0 }
 0x150   : > { %v869_v19 = vadd.f32 %v846_v20, %v3718_v9  ;;  %v3828_v28 = vadd.f32 %v1016_v12, %v866_v33  ;;  %v1050_v18 = vpop.f32.mrf.mxu1  ;;  %v1440_v9 = vshll.u32 %v3752_v10, 16  ;;  %v1439_v11 = vrot.slane %v1437_v36, 2 }
 0x151   : > { %v3830_v30 = vadd.f32 %v1050_v18, %v867_v16 }
 0x152   : > { %3072 = vmatmul.msk.bf16.gmra.mxu2 %vm337_vm1, %v1435_v40  ;;  %3113 = vmatmul.msk.bf16.gmra.mxu0 %vm337_vm1, %v1611_v23  ;;  %v1442_v15 = vrot.slane %v1440_v9, 3 }
 0x153   : > { %3118 = vmatmul.msk.bf16.gmra.mxu1 %vm337_vm1, %v1611_v23 }
 0x154   : > { %3077 = vmatmul.msk.bf16.gmra.mxu3 %vm337_vm1, %v1435_v40  ;;  %v1443_v54 = vor.u32 %v1442_v15, %v1439_v11 }
 0x155   : > { %v815_v52 = vpop.f32.mrf.mxu2 }
 0x156   : > { %v870_v51 = vadd.f32 %v815_v52, %v3729_v7 }
 0x157   : > { %v849_v61 = vpop.f32.mrf.mxu3  ;;  %v1018_v47 = vpop.f32.mrf.mxu0 }
 0x158   : > { %v871_v50 = vadd.f32 %v849_v61, %v3731_v21  ;;  %v3840_v8 = vadd.f32 %v1018_v47, %v868_v34  ;;  %v1052_v62 = vpop.f32.mrf.mxu1  ;;  %v1444_v21 = vsel %vm1420_vm5, %v1434_v46, %v1443_v54  ;;  %v1614_v46 = vrot.slane %v3752_v10, 3 }
 0x159   : > { %v3842_v6 = vadd.f32 %v1052_v62, %v869_v19 }
 0x15a   : > { %v1615_v20 = vsel %vm1606_vm6, %v1612_v17, %v1614_v46 }
 0x15d   : > { %v817_v31 = vpop.f32.mrf.mxu2 }
 0x15e   : > { %v872_v35 = vadd.f32 %v817_v31, %v3746_v56  ;;  %v1449_v56 = vshll.u32 %v3770_v41, 16 }
 0x15f   : > { %v851_v48 = vpop.f32.mrf.mxu3  ;;  %v1021_v53 = vpop.f32.mrf.mxu0 }
 0x160   : > { %v873_v7 = vadd.f32 %v851_v48, %v3748_v44  ;;  %v3849_v27 = vadd.f32 %v1021_v53, %v870_v51  ;;  %v1055_v13 = vpop.f32.mrf.mxu1  ;;  %v1451_v16 = vrot.slane %v1449_v56, 3  ;;  %v1616_v51 = vrot.slane %v3770_v41, 3 }
 0x161   : > { %v3851_v22 = vadd.f32 %v1055_v13, %v871_v50 }
 0x162   : > { %3073 = vmatmul.msk.bf16.gmra.mxu2 %vm337_vm1, %v1444_v21  ;;  %3114 = vmatmul.msk.bf16.gmra.mxu0 %vm337_vm1, %v1613_v63  ;;  %v1452_v42 = vor.u32 %v1451_v16, %v1448_v32 }
 0x163   : > { %3119 = vmatmul.msk.bf16.gmra.mxu1 %vm337_vm1, %v1613_v63 }
 0x164   : > { %3078 = vmatmul.msk.bf16.gmra.mxu3 %vm337_vm1, %v1444_v21 }
 0x165   : > { %v1165_v44 = vpop.f32.mrf.mxu2 }
 0x166   : > { %v1224_v26 = vadd.f32 %v1165_v44, %v3759_v25 }
 0x167   : > { %v1199_v24 = vpop.f32.mrf.mxu3  ;;  %v1023_v33 = vpop.f32.mrf.mxu0 }
 0x168   : > { %v1225_v58 = vadd.f32 %v1199_v24, %v3762_v49  ;;  %v3861_v2 = vadd.f32 %v1023_v33, %v872_v35  ;;  %v1057_v5 = vpop.f32.mrf.mxu1  ;;  %v1453_v49 = vsel %vm1420_vm5, %v1443_v54, %v1452_v42 }
 0x169   : > { %v3863_v55 = vadd.f32 %v1057_v5, %v873_v7 }
 0x16d   : > { %v1167_v3 = vpop.f32.mrf.mxu2 }
 0x16e   : > { %v1226_v4 = vadd.f32 %v1167_v3, %v3772_v14 }
 0x16f   : > { %v1201_v57 = vpop.f32.mrf.mxu3  ;;  %v1332_v34 = vpop.f32.mrf.mxu0 }
 0x170   : > { %v1227_v25 = vadd.f32 %v1201_v57, %v3774_v0  ;;  %v3870_v19 = vadd.f32 %v1332_v34, %v1224_v26  ;;  %v1366_v12 = vpop.f32.mrf.mxu1 }
 0x171   : > { %v3872_v40 = vadd.f32 %v1366_v12, %v1225_v58 }
 0x172   : > { %3074 = vmatmul.msk.bf16.gmra.mxu2 %vm337_vm1, %v1453_v49  ;;  %3115 = vmatmul.msk.bf16.gmra.mxu0 %vm337_vm1, %v1615_v20 }
 0x173   : > { %3120 = vmatmul.msk.bf16.gmra.mxu1 %vm337_vm1, %v1615_v20 }
 0x174   : > { %3079 = vmatmul.msk.bf16.gmra.mxu3 %vm337_vm1, %v1453_v49 }
 0x175   : > { %v1170_v10 = vpop.f32.mrf.mxu2 }
 0x176   : > { %v1228_v14 = vadd.f32 %v1170_v10, %v3780_v45  ;;  %v1617_v45 = vsel %vm1606_vm6, %v1614_v46, %v1616_v51 }
 0x177   : > { %v1204_v0 = vpop.f32.mrf.mxu3  ;;  %v1334_v18 = vpop.f32.mrf.mxu0 }
 0x178   : > { %v1229_v23 = vadd.f32 %v1204_v0, %v3782_v59  ;;  %v3880_v36 = vadd.f32 %v1334_v18, %v1226_v4  ;;  %v1368_v9 = vpop.f32.mrf.mxu1 }
 0x179   : > { %v3882_v52 = vadd.f32 %v1368_v9, %v1227_v25 }
 0x17d   : > { %v1172_v61 = vpop.f32.mrf.mxu2 }
 0x17e   : > { %v1230_v50 = vadd.f32 %v1172_v61, %v3794_v43 }
 0x17f   : > { %v1206_v47 = vpop.f32.mrf.mxu3  ;;  %v1337_v15 = vpop.f32.mrf.mxu0 }
 0x180   : > { %v1231_v11 = vadd.f32 %v1206_v47, %v3796_v37  ;;  %v3888_v62 = vadd.f32 %v1337_v15, %v1228_v14  ;;  %v1371_v59 = vpop.f32.mrf.mxu1 }
 0x181   : > { %v3890_v54 = vadd.f32 %v1371_v59, %v1229_v23 }
 0x182   : > { %3116 = vmatmul.msk.bf16.gmra.mxu0 %vm337_vm1, %v1617_v45 }
 0x183   : > { %3121 = vmatmul.msk.bf16.gmra.mxu1 %vm337_vm1, %v1617_v45 }
 0x185   : > { %v1175_v17 = vpop.f32.mrf.mxu2 }
 0x186   : > { %v1232_v41 = vadd.f32 %v1175_v17, %v3805_v60 }
 0x187   : > { %v1209_v31 = vpop.f32.mrf.mxu3  ;;  %v1339_v35 = vpop.f32.mrf.mxu0 }
 0x188   : > { %v1233_v43 = vadd.f32 %v1209_v31, %v3807_v29  ;;  %v3896_v37 = vadd.f32 %v1339_v35, %v1230_v50  ;;  %v1373_v48 = vpop.f32.mrf.mxu1 }
 0x189   : > { %v3898_v7 = vadd.f32 %v1373_v48, %v1231_v11 }
 0x18d   : > { %v1177_v53 = vpop.f32.mrf.mxu2 }
 0x18e   : > { %v1234_v21 = vadd.f32 %v1177_v53, %v3819_v38 }
 0x18f   : > { %v1211_v63 = vpop.f32.mrf.mxu3  ;;  %v1342_v1 = vpop.f32.mrf.mxu0 }
 0x190   : > { %v1235_v13 = vadd.f32 %v1211_v63, %v3821_v39  ;;  %v3902_v56 = vadd.f32 %v1342_v1, %v1232_v41  ;;  %v1376_v44 = vpop.f32.mrf.mxu1 }
 0x191   : > { %v3904_v60 = vadd.f32 %v1376_v44, %v1233_v43 }
 0x195   : > { %v1180_v26 = vpop.f32.mrf.mxu2 }
 0x196   : > { %v1236_v29 = vadd.f32 %v1180_v26, %v3828_v28 }
 0x197   : > { %v1214_v24 = vpop.f32.mrf.mxu3  ;;  %v1344_v33 = vpop.f32.mrf.mxu0 }
 0x198   : > { %v1237_v58 = vadd.f32 %v1214_v24, %v3830_v30  ;;  %v3908_v32 = vadd.f32 %v1344_v33, %v1234_v21  ;;  %v1378_v16 = vpop.f32.mrf.mxu1 }
 0x199   : > { %v3910_v38 = vadd.f32 %v1378_v16, %v1235_v13 }
 0x19d   : > { %v1182_v5 = vpop.f32.mrf.mxu2 }
 0x19e   : > { %v1238_v39 = vadd.f32 %v1182_v5, %v3840_v8 }
 0x19f   : > { %v1216_v42 = vpop.f32.mrf.mxu3  ;;  %v1347_v3 = vpop.f32.mrf.mxu0 }
 0x1a0   : > { %v1239_v46 = vadd.f32 %v1216_v42, %v3842_v6  ;;  %v3914_v4 = vadd.f32 %v1347_v3, %v1236_v29  ;;  %v1381_v57 = vpop.f32.mrf.mxu1 }
 0x1a1   : > { %v3916_v28 = vadd.f32 %v1381_v57, %v1237_v58 }
 0x1a5   : > { %v1185_v25 = vpop.f32.mrf.mxu2 }
 0x1a6   : > { %v1240_v30 = vadd.f32 %v1185_v25, %v3849_v27 }
 0x1a7   : > { %v1219_v34 = vpop.f32.mrf.mxu3  ;;  %v1349_v20 = vpop.f32.mrf.mxu0 }
 0x1a8   : > { %v1241_v49 = vadd.f32 %v1219_v34, %v3851_v22  ;;  %v3920_v12 = vadd.f32 %v1349_v20, %v1238_v39  ;;  %v1383_v10 = vpop.f32.mrf.mxu1 }
 0x1a9   : > { %v3922_v8 = vadd.f32 %v1383_v10, %v1239_v46 }
 0x1ad   : > { %v1187_v14 = vpop.f32.mrf.mxu2 }
 0x1ae   : > { %v1242_v6 = vadd.f32 %v1187_v14, %v3861_v2 }
 0x1af   : > { %v1221_v0 = vpop.f32.mrf.mxu3  ;;  %v1352_v18 = vpop.f32.mrf.mxu0 }
 0x1b0   : > { %v1243_v23 = vadd.f32 %v1221_v0, %v3863_v55  ;;  %v3926_v9 = vadd.f32 %v1352_v18, %v1240_v30  ;;  %v1386_v51 = vpop.f32.mrf.mxu1 }
 0x1b1   : > { %v3928_v27 = vadd.f32 %v1386_v51, %v1241_v49 }
 0x1b5   : > { %v1518_v61 = vpop.f32.mrf.mxu2 }
 0x1b6   : > { %v1577_v45 = vadd.f32 %v1518_v61, %v3870_v19 }
 0x1b7   : > { %v1552_v22 = vpop.f32.mrf.mxu3  ;;  %v1354_v50 = vpop.f32.mrf.mxu0 }
 0x1b8   : > { %v3930_v47 = vadd.f32 %v1354_v50, %v1242_v6  ;;  %v1388_v11 = vpop.f32.mrf.mxu1  ;;  %v1578_v2 = vadd.f32 %v1552_v22, %v3872_v40 }
 0x1b9   : > { %v3932_v15 = vadd.f32 %v1388_v11, %v1243_v23 }
 0x1bd   : > { %v1520_v17 = vpop.f32.mrf.mxu2 }
 0x1be   : > { %v1579_v21 = vadd.f32 %v1520_v17, %v3880_v36 }
 0x1bf   : > { %v1682_v59 = vpop.f32.mrf.mxu0  ;;  %v1554_v41 = vpop.f32.mrf.mxu3 }
 0x1c0   : > { %v1716_v55 = vpop.f32.mrf.mxu1  ;;  %v1741_v31 = vadd.f32 %v1682_v59, %v1577_v45  ;;  %v1580_v63 = vadd.f32 %v1554_v41, %v3882_v52 }
 0x1c1   : > { %v1742_v43 = vadd.f32 %v1716_v55, %v1578_v2 }
 0x1c2   : > { %v1761_v48 = vmax.f32 %v1741_v31, 0.0 }
 0x1c3   : > { %v1762_v35 = vmax.f32 %v1742_v43, 0.0 }
 0x1c5   : > { %v1801_v53 = vrot.slane %v1762_v35, 6  ;;  %v1523_v33 = vpop.f32.mrf.mxu2 }
 0x1c6   : > { %v1581_v42 = vadd.f32 %v1523_v33, %v3888_v62 }
 0x1c7   : > { %v1812_v19 = vsel %vm1811_vm7, %v1761_v48, %v1801_v53  ;;  %v1814_v40 = vsel %vm1813_vm8, %v1761_v48, %v1801_v53  ;;  %v1817_v13 = vsel %vm1816_vm9, %v1761_v48, %v1801_v53  ;;  %v1820_v1 = vsel %vm1089_vm4, %v1801_v53, %v1761_v48  ;;  %v1684_v44 = vpop.f32.mrf.mxu0  ;;  %v1557_v16 = vpop.f32.mrf.mxu3 }
 0x1c8   : > { %v1815_v26 = vrot.slane %v1814_v40, 2  ;;  %1885 = vst [vmem:[#allocation1] ss:$4 sm:$0xff] %v1812_v19  ;;  %v1718_v29 = vpop.f32.mrf.mxu1  ;;  %v1743_v24 = vadd.f32 %v1684_v44, %v1579_v21  ;;  %v1818_v39 = vrot.slane %v1817_v13, 4  ;;  %v1582_v46 = vadd.f32 %v1557_v16, %v3890_v54 }
 0x1c9   : > { %v1744_v58 = vadd.f32 %v1718_v29, %v1580_v63  ;;  %v1821_v10 = vrot.slane %v1820_v1, 6 }
 0x1ca   : > { %1889 = vst [vmem:[#allocation1 + $0x20] ss:$4 sm:$0xff] %v1815_v26  ;;  %v1763_v5 = vmax.f32 %v1743_v24, 0.0 }
 0x1cb   : > { %v1764_v36 = vmax.f32 %v1744_v58, 0.0 }
 0x1cd   : > { %v1802_v52 = vrot.slane %v1764_v36, 6  ;;  %v1525_v31 = vpop.f32.mrf.mxu2 }
 0x1cf   : > { %v1886_v3 = vld.sshfl [vmem:[#allocation1] sm:$0xff pattern:$0x73625140]  ;;  %v1887_v57 = vld.sshfl [vmem:[#allocation1 + $0x8] sm:$0xff pattern:$0x73625140]  ;;  %v1822_v25 = vsel %vm1811_vm7, %v1763_v5, %v1802_v52  ;;  %v1823_v30 = vsel %vm1813_vm8, %v1763_v5, %v1802_v52  ;;  %v1825_v34 = vsel %vm1816_vm9, %v1763_v5, %v1802_v52  ;;  %v3948_v49 = vsel %vm1089_vm4, %v1802_v52, %v1763_v5  ;;  %v1687_v20 = vpop.f32.mrf.mxu0  ;;  %v1559_v48 = vpop.f32.mrf.mxu3 }
 0x1d0   : > { %1892 = vst [vmem:[#allocation1] ss:$4 sm:$0xff] %v1818_v39  ;;  %v2054_v14 = vsel %vm1811_vm7, %v1886_v3, -inf  ;;  %v2061_v62 = vsel %vm1811_vm7, %v1887_v57, -inf  ;;  %v1721_v6 = vpop.f32.mrf.mxu1  ;;  %v1745_v23 = vadd.f32 %v1687_v20, %v1581_v42  ;;  %v1824_v35 = vrot.slane %v1823_v30, 2 }
 0x1d1   : > { %v1890_v54 = vld.sshfl [vmem:[#allocation1 + $0x20] sm:$0xff pattern:$0x73625140]  ;;  %v1891_v0 = vld.sshfl [vmem:[#allocation1 + $0x28] sm:$0xff pattern:$0x73625140]  ;;  %v1746_v18 = vadd.f32 %v1721_v6, %v1582_v46 }
 0x1d2   : > { %1895 = vst [vmem:[#allocation1 + $0x20] ss:$4 sm:$0xff] %v1821_v10  ;;  %v2055_v51 = vrot.slane %v2054_v14, 4  ;;  %v2062_v61 = vrot.slane %v2061_v62, 4  ;;  %v2068_v22 = vsel %vm1811_vm7, %v1890_v54, -inf  ;;  %v2075_v50 = vsel %vm1811_vm7, %v1891_v0, -inf }
 0x1d3   : > { %v2069_v11 = vrot.slane %v2068_v22, 4  ;;  %v2076_v45 = vrot.slane %v2075_v50, 4  ;;  %v1766_v55 = vmax.f32 %v1746_v18, 0.0  ;;  %v1765_v53 = vmax.f32 %v1745_v23, 0.0 }
 0x1d4   : > { %v2056_v2 = vmax.f32 %v2054_v14, %v2055_v51  ;;  %v2063_v59 = vmax.f32 %v2061_v62, %v2062_v61  ;;  %v1826_v44 = vrot.slane %v1825_v34, 4  ;;  %v1828_v30 = vrot.slane %v3948_v49, 6 }
 0x1d5   : > { %v2070_v17 = vmax.f32 %v2068_v22, %v2069_v11  ;;  %v2077_v41 = vmax.f32 %v2075_v50, %v2076_v45  ;;  %v1803_v21 = vrot.slane %v1766_v55, 6  ;;  %v1528_v34 = vpop.f32.mrf.mxu2  ;;  %v1583_v50 = vadd.f32 %v1525_v31, %v3896_v37 }
 0x1d6   : > { %v2057_v43 = vrot.slane %v2056_v2, 2  ;;  %v2064_v40 = vrot.slane %v2063_v59, 2  ;;  %v1584_v49 = vadd.f32 %v1559_v48, %v3898_v7  ;;  %v3974_v11 = vadd.f32 %v1528_v34, %v3902_v56 }
 0x1d7   : > { %v1893_v63 = vld.sshfl [vmem:[#allocation1] sm:$0xff pattern:$0x73625140]  ;;  %v1894_v19 = vld.sshfl [vmem:[#allocation1 + $0x8] sm:$0xff pattern:$0x73625140]  ;;  %v1829_v24 = vsel %vm1811_vm7, %v1765_v53, %v1803_v21  ;;  %v3956_v58 = vsel %vm1813_vm8, %v1765_v53, %v1803_v21  ;;  %v3959_v33 = vsel %vm1816_vm9, %v1765_v53, %v1803_v21  ;;  %v3962_v16 = vsel %vm1089_vm4, %v1803_v21, %v1765_v53  ;;  %v1562_v6 = vpop.f32.mrf.mxu3 }
 0x1d8   : > { %v2071_v13 = vrot.slane %v2070_v17, 2  ;;  %v2078_v1 = vrot.slane %v2077_v41, 2  ;;  %1898 = vst [vmem:[#allocation1] ss:$4 sm:$0xff] %v1822_v25  ;;  %v2058_v36 = vmax.f32 %v2056_v2, %v2057_v43  ;;  %v2082_v5 = vsel %vm1811_vm7, %v1893_v63, -inf }
 0x1d9   : > { %v1896_v26 = vld.sshfl [vmem:[#allocation1 + $0x20] sm:$0xff pattern:$0x73625140]  ;;  %v1897_v29 = vld.sshfl [vmem:[#allocation1 + $0x28] sm:$0xff pattern:$0x73625140]  ;;  %v2065_v52 = vmax.f32 %v2063_v59, %v2064_v40  ;;  %v1689_v40 = vpop.f32.mrf.mxu0 }
 0x1da   : > { %1899 = vst [vmem:[#allocation1 + $0x20] ss:$4 sm:$0xff] %v1824_v35  ;;  %v2072_v39 = vmax.f32 %v2070_v17, %v2071_v13  ;;  %v2089_v42 = vsel %vm1811_vm7, %v1894_v19, -inf  ;;  %v2079_v46 = vmax.f32 %v2077_v41, %v2078_v1  ;;  %v2083_v3 = vrot.slane %v2082_v5, 4 }
 0x1db   : > { %1902 = vst [vmem:[#allocation1] ss:$4 sm:$0xff] %v1826_v44  ;;  %v2059_v57 = vrot.slane %v2058_v36, 1  ;;  %v2090_v25 = vrot.slane %v2089_v42, 4  ;;  %v2066_v20 = vrot.slane %v2065_v52, 1  ;;  %v1831_v14 = vrot.slane %v3956_v58, 2 }
 0x1dc   : > { %v2073_v10 = vrot.slane %v2072_v39, 1  ;;  %v1833_v62 = vrot.slane %v3959_v33, 4  ;;  %v2080_v54 = vrot.slane %v2079_v46, 1  ;;  %v2096_v23 = vsel %vm1811_vm7, %v1896_v26, -inf  ;;  %v1723_v26 = vpop.f32.mrf.mxu1 }
 0x1dd   : > { %v2103_v18 = vsel %vm1811_vm7, %v1897_v29, -inf  ;;  %v2084_v51 = vmax.f32 %v2082_v5, %v2083_v3  ;;  %v3976_v45 = vmax.f32 %v2058_v36, %v2059_v57  ;;  %v2091_v2 = vmax.f32 %v2089_v42, %v2090_v25 }
 0x1de   : > { %v3980_v17 = vadd.f32 %v1562_v6, %v3904_v60  ;;  %v3985_v56 = vmax.f32 %v2065_v52, %v2066_v20  ;;  %v2097_v48 = vrot.slane %v2096_v23, 4  ;;  %v2104_v19 = vrot.slane %v2103_v18, 4 }
 0x1df   : > { %v2085_v53 = vrot.slane %v2084_v51, 2  ;;  %v3987_v60 = vmax.f32 %v2072_v39, %v2073_v10  ;;  %v1835_v44 = vrot.slane %v3962_v16, 6  ;;  %v2092_v29 = vrot.slane %v2091_v2, 2  ;;  %v1564_v33 = vpop.f32.mrf.mxu3 }
 0x1e0   : > { %v3990_v36 = vmax.f32 %v2079_v46, %v2080_v54  ;;  %v2098_v3 = vmax.f32 %v2096_v23, %v2097_v48  ;;  %v3992_v57 = vadd.f32 %v1689_v40, %v1583_v50  ;;  %v2105_v20 = vmax.f32 %v2103_v18, %v2104_v19 }
 0x1e1   : > { %v1900_v0 = vld.sshfl [vmem:[#allocation1 + $0x20] sm:$0xff pattern:$0x73625140]  ;;  %v1901_v61 = vld.sshfl [vmem:[#allocation1 + $0x28] sm:$0xff pattern:$0x73625140]  ;;  %v2086_v25 = vmax.f32 %v2084_v51, %v2085_v53  ;;  %v3994_v10 = vadd.f32 %v1723_v26, %v1584_v49 }
 0x1e2   : > { %v1903_v22 = vld.sshfl [vmem:[#allocation1] sm:$0xff pattern:$0x73625140]  ;;  %v1904_v59 = vld.sshfl [vmem:[#allocation1 + $0x8] sm:$0xff pattern:$0x73625140] }
 0x1e3   : > { %1905 = vst [vmem:[#allocation1 + $0x20] ss:$4 sm:$0xff] %v1828_v30  ;;  %v2110_v55 = vsel %vm1811_vm7, %v1900_v0, -inf  ;;  %v2117_v43 = vsel %vm1811_vm7, %v1901_v61, -inf  ;;  %v2124_v37 = vsel %vm1811_vm7, %v1903_v22, -inf  ;;  %v2131_v7 = vsel %vm1811_vm7, %v1904_v59, -inf  ;;  %v1530_v61 = vpop.f32.mrf.mxu2 }
 0x1e4   : > { %v2111_v41 = vrot.slane %v2110_v55, 4  ;;  %1908 = vst [vmem:[#allocation1] ss:$4 sm:$0xff] %v1829_v24  ;;  %v2118_v31 = vrot.slane %v2117_v43, 4  ;;  %v2125_v35 = vrot.slane %v2124_v37, 4  ;;  %v2132_v63 = vrot.slane %v2131_v7, 4 }
 0x1e5   : > { %v2093_v22 = vmax.f32 %v2091_v2, %v2092_v29  ;;  %v4003_v2 = vadd.f32 %v1530_v61, %v3908_v32 }
 0x1e6   : > { %v2112_v21 = vmax.f32 %v2110_v55, %v2111_v41  ;;  %v2119_v13 = vmax.f32 %v2117_v43, %v2118_v31  ;;  %v2126_v1 = vmax.f32 %v2124_v37, %v2125_v35  ;;  %v2133_v5 = vmax.f32 %v2131_v7, %v2132_v63 }
 0x1e7   : > { %v2099_v7 = vrot.slane %v2098_v3, 2  ;;  %v2087_v31 = vrot.slane %v2086_v25, 1 }
 0x1e8   : > { %v2113_v24 = vrot.slane %v2112_v21, 2  ;;  %v2120_v52 = vrot.slane %v2119_v13, 2  ;;  %v2127_v42 = vrot.slane %v2126_v1, 2  ;;  %v2134_v0 = vrot.slane %v2133_v5, 2 }
 0x1ea   : > { %v1906_v30 = vld.sshfl [vmem:[#allocation1 + $0x20] sm:$0xff pattern:$0x73625140]  ;;  %v1907_v34 = vld.sshfl [vmem:[#allocation1 + $0x28] sm:$0xff pattern:$0x73625140]  ;;  %v2114_v39 = vmax.f32 %v2112_v21, %v2113_v24  ;;  %v2121_v6 = vmax.f32 %v2119_v13, %v2120_v52  ;;  %v2128_v16 = vmax.f32 %v2126_v1, %v2127_v42  ;;  %v2135_v43 = vmax.f32 %v2133_v5, %v2134_v0  ;;  %v1692_v24 = vpop.f32.mrf.mxu0  ;;  %v1726_v5 = vpop.f32.mrf.mxu1 }
 0x1eb   : > { %v2138_v46 = vsel %vm1811_vm7, %v1906_v30, -inf  ;;  %v1909_v54 = vld.sshfl [vmem:[#allocation1] sm:$0xff pattern:$0x73625140]  ;;  %v2145_v23 = vsel %vm1811_vm7, %v1907_v34, -inf  ;;  %v2094_v21 = vrot.slane %v2093_v22, 1  ;;  %v4018_v61 = vadd.f32 %v1726_v5, %v3980_v17 }
 0x1ec   : > { %v2115_v59 = vrot.slane %v2114_v39, 1  ;;  %v2139_v55 = vrot.slane %v2138_v46, 4  ;;  %v1910_v50 = vld.sshfl [vmem:[#allocation1 + $0x8] sm:$0xff pattern:$0x73625140]  ;;  %v2122_v51 = vrot.slane %v2121_v6, 1 }
 0x1ed   : > { %v2129_v41 = vrot.slane %v2128_v16, 1  ;;  %v2146_v37 = vrot.slane %v2145_v23, 4  ;;  %1911 = vst [vmem:[#allocation1 + $0x20] ss:$4 sm:$0xff] %v1831_v14  ;;  %v2136_v48 = vrot.slane %v2135_v43, 1  ;;  %v2152_v58 = vsel %vm1811_vm7, %v1909_v54, -inf }
 0x1ee   : > { %v2116_v18 = vmax.f32 %v2114_v39, %v2115_v59  ;;  %v2140_v49 = vmax.f32 %v2138_v46, %v2139_v55  ;;  %1912 = vst [vmem:[#allocation1] ss:$4 sm:$0xff] %v1833_v62  ;;  %v2123_v35 = vmax.f32 %v2121_v6, %v2122_v51  ;;  %v2106_v13 = vrot.slane %v2105_v20, 2 }
 0x1ef   : > { %v2147_v53 = vmax.f32 %v2145_v23, %v2146_v37  ;;  %1915 = vst [vmem:[#allocation1 + $0x20] ss:$4 sm:$0xff] %v1835_v44  ;;  %v2130_v63 = vmax.f32 %v2128_v16, %v2129_v41  ;;  %v2137_v14 = vmax.f32 %v2135_v43, %v2136_v48  ;;  %v2153_v1 = vrot.slane %v2152_v58, 4 }
 0x1f0   : > { %v2141_v19 = vrot.slane %v2140_v49, 2  ;;  %v4006_v62 = vmax.f32 %v2098_v3, %v2099_v7  ;;  %v2159_v32 = vsel %vm1811_vm7, %v1910_v50, -inf  ;;  %v2502_v29 = vmax.f32 %v3976_v45, %v2116_v18 }
 0x1f1   : > { %v2148_v40 = vrot.slane %v2147_v53, 2  ;;  %v2154_v52 = vmax.f32 %v2152_v58, %v2153_v1  ;;  %v2160_v42 = vrot.slane %v2159_v32, 4  ;;  %v2503_v30 = vmax.f32 %v3985_v56, %v2123_v35 }
 0x1f2   : > { %v2142_v26 = vmax.f32 %v2140_v49, %v2141_v19  ;;  %v2504_v34 = vmax.f32 %v3987_v60, %v2130_v63  ;;  %v2505_v39 = vmax.f32 %v3990_v36, %v2137_v14  ;;  %v1588_v3 = vadd.f32 %v1564_v33, %v3910_v38  ;;  %v1728_v1 = vpop.f32.mrf.mxu1 }
 0x1f3   : > { %v2149_v44 = vmax.f32 %v2147_v53, %v2148_v40  ;;  %v2088_v16 = vmax.f32 %v2086_v25, %v2087_v31  ;;  %v2161_v54 = vmax.f32 %v2159_v32, %v2160_v42  ;;  %v4015_v45 = vadd.f32 %v1692_v24, %v3974_v11  ;;  %v1533_v53 = vpop.f32.mrf.mxu2 }
 0x1f4   : > { %v2143_v6 = vrot.slane %v2142_v26, 1  ;;  %v2095_v59 = vmax.f32 %v2093_v22, %v2094_v21  ;;  %v2107_v55 = vmax.f32 %v2105_v20, %v2106_v13  ;;  %v1768_v60 = vmax.f32 %v3994_v10, 0.0  ;;  %v1567_v21 = vpop.f32.mrf.mxu3  ;;  %v1694_v13 = vpop.f32.mrf.mxu0 }
 0x1f5   : > { %v1913_v0 = vld.sshfl [vmem:[#allocation1] sm:$0xff pattern:$0x73625140]  ;;  %v1914_v46 = vld.sshfl [vmem:[#allocation1 + $0x8] sm:$0xff pattern:$0x73625140]  ;;  %v2534_v25 = vpack.c.bf16 %v2503_v30, %v2502_v29  ;;  %v2535_v50 = vpack.c.bf16 %v2505_v39, %v2504_v34  ;;  %v4030_v42 = vadd.f32 %v1533_v53, %v3914_v4  ;;  %v4033_v30 = vadd.f32 %v1567_v21, %v3916_v28 }
 0x1f6   : > { %v2144_v56 = vmax.f32 %v2142_v26, %v2143_v6  ;;  %v2101_v36 = vrot.slane %v4006_v62, 1  ;;  %v2150_v23 = vrot.slane %v2149_v44, 1  ;;  %v2155_v38 = vrot.slane %v2154_v52, 2  ;;  %v1916_v63 = vld.sshfl [vmem:[#allocation1 + $0x20] sm:$0xff pattern:$0x73625140] }
 0x1f7   : > { %v2162_v51 = vrot.slane %v2161_v54, 2  ;;  %v2166_v41 = vsel %vm1811_vm7, %v1913_v0, -inf  ;;  %v2173_v11 = vsel %vm1811_vm7, %v1914_v46, -inf  ;;  %v1767_v49 = vmax.f32 %v3992_v57, 0.0 }
 0x1f8   : > { %v2151_v43 = vmax.f32 %v2149_v44, %v2150_v23  ;;  %v2156_v17 = vmax.f32 %v2154_v52, %v2155_v38  ;;  %v2167_v37 = vrot.slane %v2166_v41, 4  ;;  %v2174_v22 = vrot.slane %v2173_v11, 4  ;;  %v1917_v26 = vld.sshfl [vmem:[#allocation1 + $0x28] sm:$0xff pattern:$0x73625140] }
 0x1f9   : > { %v2163_v20 = vmax.f32 %v2161_v54, %v2162_v51  ;;  %v2506_v18 = vmax.f32 %v2088_v16, %v2144_v56  ;;  %v1804_v10 = vrot.slane %v1768_v60, 6  ;;  %v2568_v33 = vunpack.c.l.b16 %v2535_v50 }
 0x1fa   : > { %v2157_v7 = vrot.slane %v2156_v17, 1  ;;  %v2168_v31 = vmax.f32 %v2166_v41, %v2167_v37  ;;  %v2175_v35 = vmax.f32 %v2173_v11, %v2174_v22  ;;  %v2507_v48 = vmax.f32 %v2095_v59, %v2151_v43 }
 0x1fb   : > { %v2164_v19 = vrot.slane %v2163_v20, 1  ;;  %v1836_v58 = vsel %vm1811_vm7, %v1767_v49, %v1804_v10  ;;  %v1837_v14 = vsel %vm1813_vm8, %v1767_v49, %v1804_v10  ;;  %v1839_v40 = vsel %vm1816_vm9, %v1767_v49, %v1804_v10 }
 0x1fc   : > { %v2108_v57 = vrot.slane %v2107_v55, 1  ;;  %v2566_v32 = vunpack.c.l.b16 %v2534_v25  ;;  %v2567_v29 = vunpack.c.h.b16 %v2534_v25  ;;  %1918 = vst [vmem:[#allocation1] ss:$4 sm:$0xff] %v1836_v58  ;;  %v2569_v24 = vunpack.c.h.b16 %v2535_v50 }
 0x1fd   : > { %v2169_v5 = vrot.slane %v2168_v31, 2  ;;  %v1838_v44 = vrot.slane %v1837_v14, 2  ;;  %v1841_v52 = vsel %vm1089_vm4, %v1804_v10, %v1767_v49  ;;  %v4036_v34 = vadd.f32 %v1694_v13, %v4003_v2 }
 0x1fe   : > { %v4038_v39 = vadd.f32 %v1728_v1, %v1588_v3  ;;  %v2158_v6 = vmax.f32 %v2156_v17, %v2157_v7  ;;  %v2165_v16 = vmax.f32 %v2163_v20, %v2164_v19  ;;  %v2176_v0 = vrot.slane %v2175_v35, 2 }
 0x1ff   : > { %v2536_v46 = vpack.c.bf16 %v2507_v48, %v2506_v18  ;;  %1921 = vst [vmem:[#allocation1 + $0x20] ss:$4 sm:$0xff] %v1838_v44  ;;  %v2102_v54 = vmax.f32 %v4006_v62, %v2101_v36  ;;  %v2109_v59 = vmax.f32 %v2107_v55, %v2108_v57  ;;  %v2599_v56 = vsel %vm2598_vm10, %v2568_v33, %v2566_v32 }
 0x200   : > { %v1770_v4 = vmax.f32 %v4018_v61, 0.0  ;;  %v4043_v60 = vmax.f32 %v2168_v31, %v2169_v5  ;;  %v2612_v28 = vsel %vm2598_vm10, %v2569_v24, %v2567_v29  ;;  %v1840_v2 = vrot.slane %v1839_v40, 4 }
 0x201   : > { %v2180_v3 = vsel %vm1811_vm7, %v1916_v63, -inf  ;;  %v1842_v23 = vrot.slane %v1841_v52, 6  ;;  %v1769_v38 = vmax.f32 %v4015_v45, 0.0  ;;  %v2177_v51 = vmax.f32 %v2175_v35, %v2176_v0  ;;  %v1697_v0 = vpop.f32.mrf.mxu0 }
 0x202   : > { %v1805_v25 = vrot.slane %v1770_v4, 6  ;;  %v2181_v50 = vrot.slane %v2180_v3, 4  ;;  %v2508_v41 = vmax.f32 %v2102_v54, %v2158_v6  ;;  %v2509_v62 = vmax.f32 %v2109_v59, %v2165_v16 }
 0x203   : > { %v2570_v55 = vunpack.c.l.b16 %v2536_v46  ;;  %v1919_v36 = vld.sshfl [vmem:[#allocation1] sm:$0xff pattern:$0x73625140]  ;;  %v1920_v11 = vld.sshfl [vmem:[#allocation1 + $0x8] sm:$0xff pattern:$0x73625140]  ;;  %v2571_v49 = vunpack.c.h.b16 %v2536_v46 }
 0x204   : > { %1924 = vst [vmem:[#allocation1] ss:$4 sm:$0xff] %v1840_v2  ;;  %v2194_v61 = vsel %vm1811_vm7, %v1919_v36, -inf  ;;  %v2201_v43 = vsel %vm1811_vm7, %v1920_v11, -inf  ;;  %v1843_v17 = vsel %vm1811_vm7, %v1769_v38, %v1805_v25  ;;  %v1844_v37 = vsel %vm1813_vm8, %v1769_v38, %v1805_v25 }
 0x205   : > { %v2171_v45 = vrot.slane %v4043_v60, 1  ;;  %v2195_v22 = vrot.slane %v2194_v61, 4  ;;  %v2202_v20 = vrot.slane %v2201_v43, 4  ;;  %1928 = vst [vmem:[#allocation1] ss:$4 sm:$0xff] %v1843_v17  ;;  %v2187_v18 = vsel %vm1811_vm7, %v1917_v26, -inf }
 0x206   : > { %v1922_v10 = vld.sshfl [vmem:[#allocation1 + $0x20] sm:$0xff pattern:$0x73625140]  ;;  %v1923_v7 = vld.sshfl [vmem:[#allocation1 + $0x28] sm:$0xff pattern:$0x73625140]  ;;  %v1846_v31 = vsel %vm1816_vm9, %v1769_v38, %v1805_v25  ;;  %v4056_v35 = vsel %vm1089_vm4, %v1805_v25, %v1769_v38  ;;  %v2182_v48 = vmax.f32 %v2180_v3, %v2181_v50  ;;  %v2601_v21 = vsel %vm2600_vm11, %v2570_v55, %v2599_v56  ;;  %v1535_v3 = vpop.f32.mrf.mxu2 }
 0x207   : > { %v2178_v53 = vrot.slane %v2177_v51, 1  ;;  %1925 = vst [vmem:[#allocation1 + $0x20] ss:$4 sm:$0xff] %v1842_v23  ;;  %v2196_v63 = vmax.f32 %v2194_v61, %v2195_v22  ;;  %v2203_v19 = vmax.f32 %v2201_v43, %v2202_v20  ;;  %v2537_v58 = vpack.c.bf16 %v2509_v62, %v2508_v41 }
 0x208   : > { %v2183_v14 = vrot.slane %v2182_v48, 2  ;;  %v2188_v40 = vrot.slane %v2187_v18, 4  ;;  %v2208_v13 = vsel %vm1811_vm7, %v1922_v10, -inf  ;;  %v2215_v57 = vsel %vm1811_vm7, %v1923_v7, -inf  ;;  %v1569_v10 = vpop.f32.mrf.mxu3  ;;  %v1731_v7 = vpop.f32.mrf.mxu1 }
 0x209   : > { %v2197_v1 = vrot.slane %v2196_v63, 2  ;;  %v2204_v33 = vrot.slane %v2203_v19, 2  ;;  %v2209_v26 = vrot.slane %v2208_v13, 4  ;;  %v2613_v32 = vsel %vm2600_vm11, %v2571_v49, %v2612_v28 }
 0x20a   : > { %v1845_v29 = vrot.slane %v1844_v37, 2  ;;  %v2189_v24 = vmax.f32 %v2187_v18, %v2188_v40  ;;  %v2216_v5 = vrot.slane %v2215_v57, 4  ;;  %v1847_v6 = vrot.slane %v1846_v31, 4 }
 0x20b   : > { %v2198_v44 = vmax.f32 %v2196_v63, %v2197_v1  ;;  %v2205_v52 = vmax.f32 %v2203_v19, %v2204_v33  ;;  %v1849_v16 = vrot.slane %v4056_v35, 6  ;;  %v2572_v46 = vunpack.c.l.b16 %v2537_v58 }
 0x20c   : > { %v2573_v54 = vunpack.c.h.b16 %v2537_v58  ;;  %v1929_v59 = vld.sshfl [vmem:[#allocation1] sm:$0xff pattern:$0x73625140]  ;;  %v1930_v56 = vld.sshfl [vmem:[#allocation1 + $0x8] sm:$0xff pattern:$0x73625140]  ;;  %v2210_v4 = vmax.f32 %v2208_v13, %v2209_v26  ;;  %v2217_v2 = vmax.f32 %v2215_v57, %v2216_v5  ;;  %v2184_v23 = vmax.f32 %v2182_v48, %v2183_v14  ;;  %v1699_v58 = vpop.f32.mrf.mxu0 }
 0x20d   : > { %1934 = vst [vmem:[#allocation1] ss:$4 sm:$0xff] %v1847_v6  ;;  %v2190_v38 = vrot.slane %v2189_v24, 2  ;;  %v4064_v28 = vmax.f32 %v4036_v34, 0.0  ;;  %v1772_v25 = vmax.f32 %v4038_v39, 0.0  ;;  %v4068_v50 = vmax.f32 %v4043_v60, %v2171_v45 }
 0x20e   : > { %v4070_v41 = vmax.f32 %v2177_v51, %v2178_v53  ;;  %v4073_v62 = vsel %vm2602_vm12, %v2572_v46, %v2601_v21  ;;  %v4076_v55 = vsel %vm2602_vm12, %v2573_v54, %v2613_v32  ;;  %v1926_v36 = vld.sshfl [vmem:[#allocation1 + $0x20] sm:$0xff pattern:$0x73625140]  ;;  %v1927_v11 = vld.sshfl [vmem:[#allocation1 + $0x28] sm:$0xff pattern:$0x73625140]  ;;  %v1591_v17 = vadd.f32 %v1535_v3, %v3920_v12 }
 0x20f   : > { %v2199_v61 = vrot.slane %v2198_v44, 1  ;;  %v2206_v43 = vrot.slane %v2205_v52, 1  ;;  %1931 = vst [vmem:[#allocation1 + $0x20] ss:$4 sm:$0xff] %v1845_v29  ;;  %v2191_v34 = vmax.f32 %v2189_v24, %v2190_v38  ;;  %v2211_v37 = vrot.slane %v2210_v4, 2 }
 0x210   : > { %v2218_v22 = vrot.slane %v2217_v2, 2  ;;  %v2222_v60 = vsel %vm1811_vm7, %v1926_v36, -inf  ;;  %v2229_v51 = vsel %vm1811_vm7, %v1927_v11, -inf  ;;  %v2185_v45 = vrot.slane %v2184_v23, 1 }
 0x211   : > { %v2223_v20 = vrot.slane %v2222_v60, 4  ;;  %v2230_v18 = vrot.slane %v2229_v51, 4  ;;  %v2236_v49 = vsel %vm1811_vm7, %v1929_v59, -inf  ;;  %v2192_v31 = vrot.slane %v2191_v34, 1 }
 0x212   : > { %v4082_v35 = vmax.f32 %v2210_v4, %v2211_v37  ;;  %v2237_v48 = vrot.slane %v2236_v49, 4  ;;  %v2243_v53 = vsel %vm1811_vm7, %v1930_v56, -inf  ;;  %v4085_v12 = vmax.f32 %v2217_v2, %v2218_v22 }
 0x213   : > { %v2224_v21 = vmax.f32 %v2222_v60, %v2223_v20  ;;  %v2231_v63 = vmax.f32 %v2229_v51, %v2230_v18  ;;  %v2244_v19 = vrot.slane %v2243_v53, 4  ;;  %v4088_v40 = vadd.f32 %v1569_v10, %v3922_v8 }
 0x214   : > { %v2238_v14 = vmax.f32 %v2236_v49, %v2237_v48  ;;  %v4091_v13 = vadd.f32 %v1697_v0, %v4030_v42  ;;  %v4094_v1 = vadd.f32 %v1731_v7, %v4033_v30  ;;  %v4096_v33 = vmax.f32 %v2198_v44, %v2199_v61  ;;  %v1935_v57 = vld.sshfl [vmem:[#allocation1] sm:$0xff pattern:$0x73625140]  ;;  %v1936_v32 = vld.sshfl [vmem:[#allocation1 + $0x8] sm:$0xff pattern:$0x73625140] }
 0x215   : > { %v4098_v26 = vmax.f32 %v2205_v52, %v2206_v43  ;;  %v2225_v29 = vrot.slane %v2224_v21, 2  ;;  %v2232_v24 = vrot.slane %v2231_v63, 2  ;;  %v2186_v46 = vmax.f32 %v2184_v23, %v2185_v45 }
 0x216   : > { %v1932_v5 = vld.sshfl [vmem:[#allocation1 + $0x20] sm:$0xff pattern:$0x73625140]  ;;  %v1933_v6 = vld.sshfl [vmem:[#allocation1 + $0x28] sm:$0xff pattern:$0x73625140]  ;;  %v2193_v54 = vmax.f32 %v2191_v34, %v2192_v31  ;;  %v2245_v8 = vmax.f32 %v2243_v53, %v2244_v19  ;;  %v4100_v59 = vadd.f32 %v1699_v58, %v1591_v17 }
 0x217   : > { %1937 = vst [vmem:[#allocation1 + $0x20] ss:$4 sm:$0xff] %v1849_v16  ;;  %v2213_v42 = vrot.slane %v4082_v35, 1  ;;  %v2220_v30 = vrot.slane %v4085_v12, 1  ;;  %v2226_v44 = vmax.f32 %v2224_v21, %v2225_v29  ;;  %v2233_v0 = vmax.f32 %v2231_v63, %v2232_v24 }
 0x218   : > { %v2239_v52 = vrot.slane %v2238_v14, 2  ;;  %v2246_v56 = vrot.slane %v2245_v8, 2  ;;  %v2250_v4 = vsel %vm1811_vm7, %v1932_v5, -inf  ;;  %v2257_v2 = vsel %vm1811_vm7, %v1933_v6, -inf }
 0x219   : > { %v2227_v3 = vrot.slane %v2226_v44, 1  ;;  %v2234_v38 = vrot.slane %v2233_v0, 1  ;;  %v2251_v23 = vrot.slane %v2250_v4, 4  ;;  %v2258_v36 = vrot.slane %v2257_v2, 4 }
 0x21a   : > { %v2240_v11 = vmax.f32 %v2238_v14, %v2239_v52  ;;  %v2247_v61 = vmax.f32 %v2245_v8, %v2246_v56  ;;  %v2264_v16 = vsel %vm1811_vm7, %v1935_v57, -inf  ;;  %v2271_v43 = vsel %vm1811_vm7, %v1936_v32, -inf  ;;  %v1733_v14 = vpop.f32.mrf.mxu1 }
 0x21b   : > { %v2228_v34 = vmax.f32 %v2226_v44, %v2227_v3  ;;  %v2235_v17 = vmax.f32 %v2233_v0, %v2234_v38  ;;  %v2252_v37 = vmax.f32 %v2250_v4, %v2251_v23  ;;  %v2259_v22 = vmax.f32 %v2257_v2, %v2258_v36 }
 0x21c   : > { %v2241_v60 = vrot.slane %v2240_v11, 1  ;;  %v2248_v51 = vrot.slane %v2247_v61, 1  ;;  %v2265_v45 = vrot.slane %v2264_v16, 4  ;;  %v2272_v20 = vrot.slane %v2271_v43, 4 }
 0x21d   : > { %v2253_v18 = vrot.slane %v2252_v37, 2  ;;  %v2260_v49 = vrot.slane %v2259_v22, 2  ;;  %v2510_v10 = vmax.f32 %v4068_v50, %v2228_v34  ;;  %v2511_v7 = vmax.f32 %v4070_v41, %v2235_v17 }
 0x21e   : > { %v2242_v31 = vmax.f32 %v2240_v11, %v2241_v60  ;;  %v2249_v48 = vmax.f32 %v2247_v61, %v2248_v51  ;;  %v2266_v53 = vmax.f32 %v2264_v16, %v2265_v45  ;;  %v2273_v21 = vmax.f32 %v2271_v43, %v2272_v20  ;;  %v1538_v45 = vpop.f32.mrf.mxu2 }
 0x21f   : > { %v2254_v63 = vmax.f32 %v2252_v37, %v2253_v18  ;;  %v2261_v19 = vmax.f32 %v2259_v22, %v2260_v49  ;;  %v2538_v58 = vpack.c.bf16 %v2511_v7, %v2510_v10  ;;  %v1756_v52 = vadd.f32 %v1733_v14, %v4088_v40 }
 0x220   : > { %v2267_v57 = vrot.slane %v2266_v53, 2  ;;  %v2274_v32 = vrot.slane %v2273_v21, 2  ;;  %v2512_v29 = vmax.f32 %v2186_v46, %v2242_v31  ;;  %v2513_v24 = vmax.f32 %v2193_v54, %v2249_v48  ;;  %v1572_v31 = vpop.f32.mrf.mxu3 }
 0x221   : > { %v2255_v5 = vrot.slane %v2254_v63, 1  ;;  %v2262_v6 = vrot.slane %v2261_v19, 1  ;;  %v2574_v8 = vunpack.c.l.b16 %v2538_v58  ;;  %v2575_v44 = vunpack.c.h.b16 %v2538_v58 }
 0x222   : > { %v2268_v50 = vmax.f32 %v2266_v53, %v2267_v57  ;;  %v2275_v0 = vmax.f32 %v2273_v21, %v2274_v32  ;;  %v2539_v41 = vpack.c.bf16 %v2513_v24, %v2512_v29  ;;  %v2214_v56 = vmax.f32 %v4082_v35, %v2213_v42  ;;  %v1736_v58 = vpop.f32.mrf.mxu1 }
 0x223   : > { %v2256_v4 = vmax.f32 %v2254_v63, %v2255_v5  ;;  %v2263_v2 = vmax.f32 %v2261_v19, %v2262_v6  ;;  %v2605_v46 = vsel %vm2604_vm13, %v2574_v8, %v4073_v62  ;;  %v2615_v61 = vsel %vm2604_vm13, %v2575_v44, %v4076_v55  ;;  %v1702_v19 = vpop.f32.mrf.mxu0 }
 0x224   : > { %v2269_v3 = vrot.slane %v2268_v50, 1  ;;  %v2276_v38 = vrot.slane %v2275_v0, 1  ;;  %v2576_v23 = vunpack.c.l.b16 %v2539_v41  ;;  %v2577_v11 = vunpack.c.h.b16 %v2539_v41 }
 0x225   : > { %v2514_v54 = vmax.f32 %v4096_v33, %v2256_v4  ;;  %v2515_v36 = vmax.f32 %v4098_v26, %v2263_v2  ;;  %v2221_v40 = vmax.f32 %v4085_v12, %v2220_v30  ;;  %v1806_v62 = vrot.slane %v1772_v25, 6 }
 0x226   : > { %v2270_v35 = vmax.f32 %v2268_v50, %v2269_v3  ;;  %v2277_v42 = vmax.f32 %v2275_v0, %v2276_v38  ;;  %v2607_v43 = vsel %vm2606_vm14, %v2576_v23, %v2605_v46  ;;  %v2616_v34 = vsel %vm2606_vm14, %v2577_v11, %v2615_v61  ;;  %v1540_v23 = vpop.f32.mrf.mxu2 }
 0x227   : > { %v2540_v16 = vpack.c.bf16 %v2515_v36, %v2514_v54  ;;  %v1774_v17 = vmax.f32 %v4094_v1, 0.0  ;;  %v1776_v37 = vmax.f32 %v1756_v52, 0.0  ;;  %v1850_v12 = vsel %vm1811_vm7, %v4064_v28, %v1806_v62 }
 0x228   : > { %v2516_v33 = vmax.f32 %v2214_v56, %v2270_v35  ;;  %v2517_v26 = vmax.f32 %v2221_v40, %v2277_v42  ;;  %v1851_v30 = vsel %vm1813_vm8, %v4064_v28, %v1806_v62  ;;  %v1853_v39 = vsel %vm1816_vm9, %v4064_v28, %v1806_v62  ;;  %1938 = vst [vmem:[#allocation1] ss:$4 sm:$0xff] %v1850_v12  ;;  %v1574_v61 = vpop.f32.mrf.mxu3 }
 0x229   : > { %v2578_v55 = vunpack.c.l.b16 %v2540_v16  ;;  %v2579_v22 = vunpack.c.h.b16 %v2540_v16  ;;  %v1852_v51 = vrot.slane %v1851_v30, 2  ;;  %v1855_v25 = vsel %vm1089_vm4, %v1806_v62, %v4064_v28 }
 0x22a   : > { %v2541_v60 = vpack.c.bf16 %v2517_v26, %v2516_v33  ;;  %v1773_v18 = vmax.f32 %v4091_v13, 0.0  ;;  %v1807_v7 = vrot.slane %v1774_v17, 6  ;;  %v1808_v48 = vrot.slane %v1776_v37, 6 }
 0x22b   : > { %v2609_v1 = vsel %vm2608_vm15, %v2578_v55, %v2607_v43  ;;  %v2617_v20 = vsel %vm2608_vm15, %v2579_v22, %v2616_v34  ;;  %1941 = vst [vmem:[#allocation1 + $0x20] ss:$4 sm:$0xff] %v1852_v51  ;;  %v1775_v53 = vmax.f32 %v4100_v59, 0.0  ;;  %v1594_v32 = vadd.f32 %v1572_v31, %v3928_v27  ;;  %v1704_v62 = vpop.f32.mrf.mxu0  ;;  %v1738_v22 = vpop.f32.mrf.mxu1 }
 0x22c   : > { %v2580_v49 = vunpack.c.l.b16 %v2541_v60  ;;  %v2581_v10 = vunpack.c.h.b16 %v2541_v60  ;;  %v1857_v13 = vsel %vm1811_vm7, %v1773_v18, %v1807_v7  ;;  %v1858_v63 = vsel %vm1813_vm8, %v1773_v18, %v1807_v7 }
 0x22d   : > { %v1860_v57 = vsel %vm1816_vm9, %v1773_v18, %v1807_v7  ;;  %v4148_v59 = vsel %vm1089_vm4, %v1807_v7, %v1773_v18  ;;  %v1854_v29 = vrot.slane %v1853_v39, 4  ;;  %v4152_v24 = vsel %vm1811_vm7, %v1775_v53, %v1808_v48 }
 0x22e   : > { %v2611_v28 = vsel %vm2610_vm0, %v2580_v49, %v2609_v1  ;;  %v2618_v21 = vsel %vm2610_vm0, %v2581_v10, %v2617_v20  ;;  %v4155_v5 = vsel %vm1813_vm8, %v1775_v53, %v1808_v48  ;;  %v1593_v44 = vadd.f32 %v1538_v45, %v3926_v9 }
 0x22f   : > { %v2633_v14 = vpack.c.b16 %v2618_v21, %v2611_v28  ;;  %v1939_v6 = vld.sshfl [vmem:[#allocation1] sm:$0xff pattern:$0x73625140]  ;;  %v1940_v8 = vld.sshfl [vmem:[#allocation1 + $0x8] sm:$0xff pattern:$0x73625140]  ;;  %v4160_v50 = vsel %vm1816_vm9, %v1775_v53, %v1808_v48  ;;  %v4163_v0 = vsel %vm1089_vm4, %v1808_v48, %v1775_v53  ;;  %v1758_v41 = vadd.f32 %v1736_v58, %v1594_v32 }
 0x230   : > { %v1856_v27 = vrot.slane %v1855_v25, 6  ;;  %1944 = vst [vmem:[#allocation1] ss:$4 sm:$0xff] %v1854_v29  ;;  %v2278_v52 = vsel %vm1811_vm7, %v1939_v6, -inf  ;;  %v2285_v56 = vsel %vm1811_vm7, %v1940_v8, -inf  ;;  %v1757_v3 = vadd.f32 %v1702_v19, %v1593_v44 }
 0x231   : > { %2637 = vst [vmem:[%s4140_s28] sm:$0xff] %v2633_v14  ;;  %v2279_v38 = vrot.slane %v2278_v52, 4  ;;  %v1778_v54 = vmax.f32 %v1758_v41, 0.0  ;;  %v2286_v36 = vrot.slane %v2285_v56, 4  ;;  %v1595_v11 = vadd.f32 %v1540_v23, %v3930_v47 }
 0x232   : > { %v1942_v4 = vld.sshfl [vmem:[#allocation1 + $0x20] sm:$0xff pattern:$0x73625140]  ;;  %v1943_v2 = vld.sshfl [vmem:[#allocation1 + $0x28] sm:$0xff pattern:$0x73625140]  ;;  %v1596_v60 = vadd.f32 %v1574_v61, %v3932_v15 }
 0x233   : > { %1947 = vst [vmem:[#allocation1 + $0x20] ss:$4 sm:$0xff] %v1856_v27  ;;  %v2292_v9 = vsel %vm1811_vm7, %v1942_v4, -inf  ;;  %v2299_v46 = vsel %vm1811_vm7, %v1943_v2, -inf  ;;  %v1777_v40 = vmax.f32 %v1757_v3, 0.0  ;;  %v1809_v35 = vrot.slane %v1778_v54, 6 }
 0x234   : > { %v2280_v42 = vmax.f32 %v2278_v52, %v2279_v38  ;;  %v1861_v16 = vrot.slane %v1860_v57, 4  ;;  %v2293_v43 = vrot.slane %v2292_v9, 4  ;;  %v2300_v34 = vrot.slane %v2299_v46, 4 }
 0x235   : > { %v4171_v17 = vsel %vm1811_vm7, %v1777_v40, %v1809_v35  ;;  %v4174_v37 = vsel %vm1813_vm8, %v1777_v40, %v1809_v35  ;;  %v4177_v55 = vsel %vm1816_vm9, %v1777_v40, %v1809_v35  ;;  %v4180_v47 = vsel %vm1089_vm4, %v1809_v35, %v1777_v40 }
 0x236   : > { %v2287_v12 = vmax.f32 %v2285_v56, %v2286_v36  ;;  %v1859_v30 = vrot.slane %v1858_v63, 2  ;;  %v1759_v25 = vadd.f32 %v1704_v62, %v1595_v11  ;;  %v2281_v45 = vrot.slane %v2280_v42, 2 }
 0x237   : > { %v1945_v33 = vld.sshfl [vmem:[#allocation1] sm:$0xff pattern:$0x73625140]  ;;  %v1946_v26 = vld.sshfl [vmem:[#allocation1 + $0x8] sm:$0xff pattern:$0x73625140]  ;;  %v2294_v20 = vmax.f32 %v2292_v9, %v2293_v43  ;;  %v2301_v18 = vmax.f32 %v2299_v46, %v2300_v34  ;;  %v1760_v49 = vadd.f32 %v1738_v22, %v1596_v60 }
 0x238   : > { %1950 = vst [vmem:[#allocation1] ss:$4 sm:$0xff] %v1857_v13  ;;  %v2306_v39 = vsel %vm1811_vm7, %v1945_v33, -inf  ;;  %v2313_v7 = vsel %vm1811_vm7, %v1946_v26, -inf  ;;  %v2288_v53 = vrot.slane %v2287_v12, 2  ;;  %v1863_v15 = vrot.slane %v4148_v59, 6 }
 0x239   : > { %1954 = vst [vmem:[#allocation1] ss:$4 sm:$0xff] %v1861_v16  ;;  %v2307_v10 = vrot.slane %v2306_v39, 4  ;;  %v1866_v28 = vrot.slane %v4155_v5, 2  ;;  %v1868_v21 = vrot.slane %v4160_v50, 4  ;;  %v2314_v63 = vrot.slane %v2313_v7, 4 }
 0x23a   : > { %v1948_v51 = vld.sshfl [vmem:[#allocation1 + $0x20] sm:$0xff pattern:$0x73625140]  ;;  %v1949_v1 = vld.sshfl [vmem:[#allocation1 + $0x28] sm:$0xff pattern:$0x73625140]  ;;  %v4190_v14 = vmax.f32 %v2280_v42, %v2281_v45  ;;  %v4195_v5 = vmax.f32 %v2287_v12, %v2288_v53 }
 0x23b   : > { %1951 = vst [vmem:[#allocation1 + $0x20] ss:$4 sm:$0xff] %v1859_v30  ;;  %v2320_v31 = vsel %vm1811_vm7, %v1948_v51, -inf  ;;  %v2327_v48 = vsel %vm1811_vm7, %v1949_v1, -inf  ;;  %v2308_v13 = vmax.f32 %v2306_v39, %v2307_v10  ;;  %v1870_v57 = vrot.slane %v4163_v0, 6 }
 0x23c   : > { %v2321_v19 = vrot.slane %v2320_v31, 4  ;;  %v2328_v58 = vrot.slane %v2327_v48, 4  ;;  %v4193_v32 = vmax.f32 %v1759_v25, 0.0  ;;  %v1780_v29 = vmax.f32 %v1760_v49, 0.0 }
 0x23d   : > { %v2295_v6 = vrot.slane %v2294_v20, 2  ;;  %v2302_v8 = vrot.slane %v2301_v18, 2  ;;  %v2309_v44 = vrot.slane %v2308_v13, 2  ;;  %v2315_v41 = vmax.f32 %v2313_v7, %v2314_v63 }
 0x23e   : > { %v2322_v52 = vmax.f32 %v2320_v31, %v2321_v19  ;;  %v2329_v56 = vmax.f32 %v2327_v48, %v2328_v58  ;;  %v2283_v0 = vrot.slane %v4190_v14, 1  ;;  %v2290_v36 = vrot.slane %v4195_v5, 1 }
 0x23f   : > { %v2316_v50 = vrot.slane %v2315_v41, 2  ;;  %v4199_v3 = vmax.f32 %v2294_v20, %v2295_v6  ;;  %v4201_v38 = vmax.f32 %v2301_v18, %v2302_v8  ;;  %v4203_v23 = vmax.f32 %v2308_v13, %v2309_v44 }
 0x240   : > { %v1955_v59 = vld.sshfl [vmem:[#allocation1] sm:$0xff pattern:$0x73625140]  ;;  %v1956_v27 = vld.sshfl [vmem:[#allocation1 + $0x8] sm:$0xff pattern:$0x73625140] }
 0x241   : > { %1960 = vst [vmem:[#allocation1] ss:$4 sm:$0xff] %v4152_v24  ;;  %v2348_v24 = vsel %vm1811_vm7, %v1955_v59, -inf  ;;  %v2355_v54 = vsel %vm1811_vm7, %v1956_v27, -inf  ;;  %v4210_v11 = vmax.f32 %v2315_v41, %v2316_v50  ;;  %v2323_v61 = vrot.slane %v2322_v52, 2 }
 0x242   : > { %v1952_v4 = vld.sshfl [vmem:[#allocation1 + $0x20] sm:$0xff pattern:$0x73625140]  ;;  %v1953_v2 = vld.sshfl [vmem:[#allocation1 + $0x28] sm:$0xff pattern:$0x73625140] }
 0x243   : > { %1957 = vst [vmem:[#allocation1 + $0x20] ss:$4 sm:$0xff] %v1863_v15  ;;  %v2334_v9 = vsel %vm1811_vm7, %v1952_v4, -inf  ;;  %v2341_v46 = vsel %vm1811_vm7, %v1953_v2, -inf  ;;  %v2330_v40 = vrot.slane %v2329_v56, 2  ;;  %v2349_v16 = vrot.slane %v2348_v24, 4 }
 0x244   : > { %v2335_v35 = vrot.slane %v2334_v9, 4  ;;  %v2342_v42 = vrot.slane %v2341_v46, 4  ;;  %v2356_v43 = vrot.slane %v2355_v54, 4  ;;  %v2297_v34 = vrot.slane %v4199_v3, 1 }
 0x245   : > { %v2304_v62 = vrot.slane %v4201_v38, 1  ;;  %v2311_v33 = vrot.slane %v4203_v23, 1  ;;  %v1873_v26 = vrot.slane %v4174_v37, 2  ;;  %v2350_v51 = vmax.f32 %v2348_v24, %v2349_v16 }
 0x246   : > { %v2336_v30 = vmax.f32 %v2334_v9, %v2335_v35  ;;  %v2343_v60 = vmax.f32 %v2341_v46, %v2342_v42  ;;  %v2357_v39 = vmax.f32 %v2355_v54, %v2356_v43  ;;  %v2318_v25 = vrot.slane %v4210_v11, 1 }
 0x247   : > { %v4219_v20 = vrot.slane %v1780_v29, 6  ;;  %v4221_v10 = vmax.f32 %v2322_v52, %v2323_v61  ;;  %v4223_v7 = vmax.f32 %v2329_v56, %v2330_v40  ;;  %v2351_v53 = vrot.slane %v2350_v51, 2 }
 0x248   : > { %v1961_v22 = vld.sshfl [vmem:[#allocation1] sm:$0xff pattern:$0x73625140]  ;;  %v1962_v12 = vld.sshfl [vmem:[#allocation1 + $0x8] sm:$0xff pattern:$0x73625140]  ;;  %v2312_v37 = vmax.f32 %v4203_v23, %v2311_v33 }
 0x249   : > { %1964 = vst [vmem:[#allocation1] ss:$4 sm:$0xff] %v1868_v21  ;;  %v2376_v45 = vsel %vm1811_vm7, %v1961_v22, -inf  ;;  %v2383_v1 = vsel %vm1811_vm7, %v1962_v12, -inf  ;;  %v2337_v31 = vrot.slane %v2336_v30, 2  ;;  %v2344_v48 = vrot.slane %v2343_v60, 2 }
 0x24a   : > { %v1958_v18 = vld.sshfl [vmem:[#allocation1 + $0x20] sm:$0xff pattern:$0x73625140]  ;;  %v1959_v49 = vld.sshfl [vmem:[#allocation1 + $0x28] sm:$0xff pattern:$0x73625140]  ;;  %v2352_v6 = vmax.f32 %v2350_v51, %v2351_v53  ;;  %v4235_v24 = vsel %vm1813_vm8, %v4193_v32, %v4219_v20  ;;  %v2284_v12 = vmax.f32 %v4190_v14, %v2283_v0  ;;  %v2305_v51 = vmax.f32 %v4201_v38, %v2304_v62 }
 0x24b   : > { %1963 = vst [vmem:[#allocation1 + $0x20] ss:$4 sm:$0xff] %v1866_v28  ;;  %v2358_v15 = vrot.slane %v2357_v39, 2  ;;  %v2362_v21 = vsel %vm1811_vm7, %v1958_v18, -inf  ;;  %v2369_v13 = vsel %vm1811_vm7, %v1959_v49, -inf  ;;  %v2377_v63 = vrot.slane %v2376_v45, 4 }
 0x24c   : > { %v2384_v19 = vrot.slane %v2383_v1, 4  ;;  %1967 = vst [vmem:[#allocation1 + $0x20] ss:$4 sm:$0xff] %v1870_v57  ;;  %v2338_v58 = vmax.f32 %v2336_v30, %v2337_v31  ;;  %v2345_v29 = vmax.f32 %v2343_v60, %v2344_v48  ;;  %v2363_v44 = vrot.slane %v2362_v21, 4 }
 0x24d   : > { %v2359_v8 = vmax.f32 %v2357_v39, %v2358_v15  ;;  %v2370_v41 = vrot.slane %v2369_v13, 4  ;;  %v2378_v59 = vmax.f32 %v2376_v45, %v2377_v63  ;;  %v2353_v52 = vrot.slane %v2352_v6, 1 }
 0x24e   : > { %v2385_v27 = vmax.f32 %v2383_v1, %v2384_v19  ;;  %v2339_v28 = vrot.slane %v2338_v58, 1  ;;  %v2346_v50 = vrot.slane %v2345_v29, 1  ;;  %v2364_v9 = vmax.f32 %v2362_v21, %v2363_v44 }
 0x24f   : > { %v2360_v56 = vrot.slane %v2359_v8, 1  ;;  %v2371_v46 = vmax.f32 %v2369_v13, %v2370_v41  ;;  %v1878_v57 = vsel %vm1811_vm7, %v4193_v32, %v4219_v20  ;;  %v2354_v40 = vmax.f32 %v2352_v6, %v2353_v52 }
 0x250   : > { %v1965_v4 = vld.sshfl [vmem:[#allocation1] sm:$0xff pattern:$0x73625140]  ;;  %v4227_v2 = vld.sshfl [vmem:[#allocation1 + $0x8] sm:$0xff pattern:$0x73625140]  ;;  %v2340_v54 = vmax.f32 %v2338_v58, %v2339_v28  ;;  %v2347_v61 = vmax.f32 %v2345_v29, %v2346_v50  ;;  %v2291_v30 = vmax.f32 %v4195_v5, %v2290_v36  ;;  %v2298_v60 = vmax.f32 %v4199_v3, %v2297_v34 }
 0x251   : > { %v2361_v35 = vmax.f32 %v2359_v8, %v2360_v56  ;;  %1970 = vst [vmem:[#allocation1] ss:$4 sm:$0xff] %v4171_v17  ;;  %v2365_v42 = vrot.slane %v2364_v9, 2  ;;  %v2372_v16 = vrot.slane %v2371_v46, 2  ;;  %v2379_v43 = vrot.slane %v2378_v59, 2 }
 0x252   : > { %v2386_v22 = vrot.slane %v2385_v27, 2  ;;  %v2325_v31 = vrot.slane %v4221_v10, 1  ;;  %v2332_v14 = vrot.slane %v4223_v7, 1  ;;  %v2518_v0 = vmax.f32 %v2284_v12, %v2340_v54 }
 0x253   : > { %v1968_v39 = vld.sshfl [vmem:[#allocation1 + $0x20] sm:$0xff pattern:$0x73625140]  ;;  %v1969_v45 = vld.sshfl [vmem:[#allocation1 + $0x28] sm:$0xff pattern:$0x73625140]  ;;  %v2366_v1 = vmax.f32 %v2364_v9, %v2365_v42  ;;  %v2373_v17 = vmax.f32 %v2371_v46, %v2372_v16  ;;  %v2380_v18 = vmax.f32 %v2378_v59, %v2379_v43  ;;  %v1881_v5 = vsel %vm1816_vm9, %v4193_v32, %v4219_v20 }
 0x254   : > { %v2387_v49 = vmax.f32 %v2385_v27, %v2386_v22  ;;  %1973 = vst [vmem:[#allocation1 + $0x20] ss:$4 sm:$0xff] %v1873_v26  ;;  %v2519_v38 = vmax.f32 %v2291_v30, %v2347_v61  ;;  %v2520_v36 = vmax.f32 %v2298_v60, %v2354_v40  ;;  %v2521_v34 = vmax.f32 %v2305_v51, %v2361_v35 }
 0x255   : > { %v2367_v3 = vrot.slane %v2366_v1, 1  ;;  %v2374_v62 = vrot.slane %v2373_v17, 1  ;;  %v2381_v48 = vrot.slane %v2380_v18, 1  ;;  %v1875_v15 = vrot.slane %v4177_v55, 4 }
 0x256   : > { %v2388_v53 = vrot.slane %v2387_v49, 1  ;;  %v2319_v26 = vmax.f32 %v4210_v11, %v2318_v25  ;;  %v2326_v63 = vmax.f32 %v4221_v10, %v2325_v31  ;;  %v2333_v19 = vmax.f32 %v4223_v7, %v2332_v14 }
 0x257   : > { %v2368_v55 = vmax.f32 %v2366_v1, %v2367_v3  ;;  %v4264_v6 = vpack.c.bf16 %v2519_v38, %v2518_v0  ;;  %v4266_v8 = vpack.c.bf16 %v2521_v34, %v2520_v36  ;;  %v1877_v23 = vrot.slane %v4180_v47, 6 }
 0x258   : > { %v1971_v21 = vld.sshfl [vmem:[#allocation1] sm:$0xff pattern:$0x73625140]  ;;  %v1972_v13 = vld.sshfl [vmem:[#allocation1 + $0x8] sm:$0xff pattern:$0x73625140]  ;;  %v4273_v10 = vsel %vm1089_vm4, %v4219_v20, %v4193_v32  ;;  %v2375_v44 = vmax.f32 %v2373_v17, %v2374_v62  ;;  %v2382_v41 = vmax.f32 %v2380_v18, %v2381_v48  ;;  %v2389_v59 = vmax.f32 %v2387_v49, %v2388_v53 }
 0x259   : > { %1976 = vst [vmem:[#allocation1] ss:$4 sm:$0xff] %v1875_v15  ;;  %v2418_v58 = vsel %vm1811_vm7, %v1971_v21, -inf  ;;  %v2425_v29 = vsel %vm1811_vm7, %v1972_v13, -inf  ;;  %v1880_v25 = vrot.slane %v4235_v24, 2  ;;  %v2390_v28 = vsel %vm1811_vm7, %v1965_v4, -inf }
 0x25a   : > { %1980 = vst [vmem:[#allocation1] ss:$4 sm:$0xff] %v1878_v57  ;;  %v2419_v11 = vrot.slane %v2418_v58, 4  ;;  %v2426_v33 = vrot.slane %v2425_v29, 4  ;;  %v2391_v47 = vrot.slane %v2390_v28, 4  ;;  %v2397_v56 = vsel %vm1811_vm7, %v4227_v2, -inf }
 0x25b   : > { %v1974_v7 = vld.sshfl [vmem:[#allocation1 + $0x20] sm:$0xff pattern:$0x73625140]  ;;  %v1975_v27 = vld.sshfl [vmem:[#allocation1 + $0x28] sm:$0xff pattern:$0x73625140]  ;;  %v2522_v9 = vmax.f32 %v2312_v37, %v2368_v55  ;;  %v2582_v46 = vunpack.c.l.b16 %v4264_v6  ;;  %v2583_v32 = vunpack.c.h.b16 %v4264_v6  ;;  %v2584_v20 = vunpack.c.l.b16 %v4266_v8 }
 0x25c   : > { %v2420_v50 = vmax.f32 %v2418_v58, %v2419_v11  ;;  %v2427_v52 = vmax.f32 %v2425_v29, %v2426_v33  ;;  %1977 = vst [vmem:[#allocation1 + $0x20] ss:$4 sm:$0xff] %v1877_v23  ;;  %v2392_v54 = vmax.f32 %v2390_v28, %v2391_v47  ;;  %v2398_v61 = vrot.slane %v2397_v56, 4 }
 0x25d   : > { %v2523_v40 = vmax.f32 %v2319_v26, %v2375_v44  ;;  %v1882_v4 = vrot.slane %v1881_v5, 4  ;;  %v2404_v35 = vsel %vm1811_vm7, %v1968_v39, -inf  ;;  %v2411_v42 = vsel %vm1811_vm7, %v1969_v45, -inf }
 0x25e   : > { %v2421_v57 = vrot.slane %v2420_v50, 2  ;;  %v2428_v24 = vrot.slane %v2427_v52, 2  ;;  %v2524_v16 = vmax.f32 %v2326_v63, %v2382_v41  ;;  %v2525_v43 = vmax.f32 %v2333_v19, %v2389_v59 }
 0x25f   : > { %v2393_v60 = vrot.slane %v2392_v54, 2  ;;  %v2399_v51 = vmax.f32 %v2397_v56, %v2398_v61  ;;  %v2405_v1 = vrot.slane %v2404_v35, 4  ;;  %v2412_v17 = vrot.slane %v2411_v42, 4 }
 0x260   : > { %v2422_v2 = vmax.f32 %v2420_v50, %v2421_v57  ;;  %v2429_v22 = vmax.f32 %v2427_v52, %v2428_v24  ;;  %v2585_v18 = vunpack.c.h.b16 %v4266_v8  ;;  %v4285_v49 = vsel %vm2598_vm10, %v2584_v20, %v2582_v46 }
 0x261   : > { %v1981_v12 = vld.sshfl [vmem:[#allocation1] sm:$0xff pattern:$0x73625140]  ;;  %v1982_v30 = vld.sshfl [vmem:[#allocation1 + $0x8] sm:$0xff pattern:$0x73625140]  ;;  %v4289_v31 = vpack.c.bf16 %v2523_v40, %v2522_v9  ;;  %v2394_v5 = vmax.f32 %v2392_v54, %v2393_v60  ;;  %v2406_v3 = vmax.f32 %v2404_v35, %v2405_v1  ;;  %v2413_v38 = vmax.f32 %v2411_v42, %v2412_v17 }
 0x262   : > { %1986 = vst [vmem:[#allocation1] ss:$4 sm:$0xff] %v1882_v4  ;;  %v2432_v39 = vsel %vm1811_vm7, %v1974_v7, -inf  ;;  %v2439_v45 = vsel %vm1811_vm7, %v1975_v27, -inf  ;;  %v4291_v36 = vpack.c.bf16 %v2525_v43, %v2524_v16  ;;  %v2423_v34 = vrot.slane %v2422_v2, 1 }
 0x263   : > { %v1978_v14 = vld.sshfl [vmem:[#allocation1 + $0x20] sm:$0xff pattern:$0x73625140]  ;;  %v1979_v0 = vld.sshfl [vmem:[#allocation1 + $0x28] sm:$0xff pattern:$0x73625140]  ;;  %v2586_v8 = vunpack.c.l.b16 %v4289_v31  ;;  %v2587_v23 = vunpack.c.h.b16 %v4289_v31  ;;  %v4298_v11 = vsel %vm2598_vm10, %v2585_v18, %v2583_v32 }
 0x264   : > { %1983 = vst [vmem:[#allocation1 + $0x20] ss:$4 sm:$0xff] %v1880_v25  ;;  %v2400_v62 = vrot.slane %v2399_v51, 2  ;;  %v2433_v48 = vrot.slane %v2432_v39, 4  ;;  %v2430_v53 = vrot.slane %v2429_v22, 1  ;;  %v2407_v15 = vrot.slane %v2406_v3, 2 }
 0x265   : > { %v2414_v37 = vrot.slane %v2413_v38, 2  ;;  %v2440_v26 = vrot.slane %v2439_v45, 4  ;;  %v2395_v21 = vrot.slane %v2394_v5, 1  ;;  %v2446_v19 = vsel %vm1811_vm7, %v1978_v14, -inf }
 0x266   : > { %v2401_v13 = vmax.f32 %v2399_v51, %v2400_v62  ;;  %v2434_v63 = vmax.f32 %v2432_v39, %v2433_v48  ;;  %v2408_v58 = vmax.f32 %v2406_v3, %v2407_v15  ;;  %v2453_v6 = vsel %vm1811_vm7, %v1979_v0, -inf }
 0x267   : > { %v2415_v29 = vmax.f32 %v2413_v38, %v2414_v37  ;;  %v2441_v55 = vmax.f32 %v2439_v45, %v2440_v26  ;;  %v1884_v33 = vrot.slane %v4273_v10, 6  ;;  %v2447_v27 = vrot.slane %v2446_v19, 4 }
 0x268   : > { %v2402_v25 = vrot.slane %v2401_v13, 1  ;;  %v2409_v7 = vrot.slane %v2408_v58, 1  ;;  %v2435_v41 = vrot.slane %v2434_v63, 2  ;;  %v2454_v28 = vrot.slane %v2453_v6, 4 }
 0x269   : > { %v2416_v44 = vrot.slane %v2415_v29, 1  ;;  %v2442_v59 = vrot.slane %v2441_v55, 2  ;;  %v2460_v50 = vsel %vm1811_vm7, %v1981_v12, -inf  ;;  %v2588_v52 = vunpack.c.l.b16 %v4291_v36  ;;  %v1987_v35 = vld.sshfl [vmem:[#allocation1] sm:$0xff pattern:$0x73625140] }
 0x26a   : > { %v4303_v47 = vmax.f32 %v2422_v2, %v2423_v34  ;;  %v4305_v56 = vmax.f32 %v2429_v22, %v2430_v53  ;;  %v2396_v32 = vmax.f32 %v2394_v5, %v2395_v21  ;;  %v2403_v10 = vmax.f32 %v2401_v13, %v2402_v25  ;;  %v1988_v1 = vld.sshfl [vmem:[#allocation1 + $0x8] sm:$0xff pattern:$0x73625140] }
 0x26b   : > { %v1984_v9 = vld.sshfl [vmem:[#allocation1 + $0x20] sm:$0xff pattern:$0x73625140]  ;;  %v1985_v46 = vld.sshfl [vmem:[#allocation1 + $0x28] sm:$0xff pattern:$0x73625140]  ;;  %v2448_v20 = vmax.f32 %v2446_v19, %v2447_v27  ;;  %v2455_v57 = vmax.f32 %v2453_v6, %v2454_v28  ;;  %v4307_v54 = vmax.f32 %v2408_v58, %v2409_v7  ;;  %v4312_v42 = vmax.f32 %v2415_v29, %v2416_v44 }
 0x26c   : > { %1989 = vst [vmem:[#allocation1 + $0x20] ss:$4 sm:$0xff] %v1884_v33  ;;  %v2461_v24 = vrot.slane %v2460_v50, 4  ;;  %v2467_v61 = vsel %vm1811_vm7, %v1982_v30, -inf  ;;  %v2474_v40 = vsel %vm1811_vm7, %v1984_v9, -inf  ;;  %v2481_v4 = vsel %vm1811_vm7, %v1985_v46, -inf }
 0x26d   : > { %v2449_v16 = vrot.slane %v2448_v20, 2  ;;  %v2456_v43 = vrot.slane %v2455_v57, 2  ;;  %v2436_v22 = vmax.f32 %v2434_v63, %v2435_v41  ;;  %v2468_v12 = vrot.slane %v2467_v61, 4 }
 0x26e   : > { %v2462_v2 = vmax.f32 %v2460_v50, %v2461_v24  ;;  %v2475_v60 = vrot.slane %v2474_v40, 4  ;;  %v2482_v51 = vrot.slane %v2481_v4, 4  ;;  %v2443_v17 = vmax.f32 %v2441_v55, %v2442_v59 }
 0x26f   : > { %v2450_v18 = vmax.f32 %v2448_v20, %v2449_v16  ;;  %v2457_v39 = vmax.f32 %v2455_v57, %v2456_v43  ;;  %v2469_v30 = vmax.f32 %v2467_v61, %v2468_v12  ;;  %v2488_v5 = vsel %vm1811_vm7, %v1987_v35, -inf }
 0x270   : > { %v2463_v45 = vrot.slane %v2462_v2, 2  ;;  %v2476_v14 = vmax.f32 %v2474_v40, %v2475_v60  ;;  %v2483_v0 = vmax.f32 %v2481_v4, %v2482_v51  ;;  %v2489_v62 = vrot.slane %v2488_v5, 4 }
 0x271   : > { %v2451_v3 = vrot.slane %v2450_v18, 1  ;;  %v2458_v38 = vrot.slane %v2457_v39, 1  ;;  %v2470_v48 = vrot.slane %v2469_v30, 2  ;;  %v2495_v37 = vsel %vm1811_vm7, %v1988_v1, -inf }
 0x272   : > { %v2464_v34 = vmax.f32 %v2462_v2, %v2463_v45  ;;  %v2477_v53 = vrot.slane %v2476_v14, 2  ;;  %v2484_v15 = vrot.slane %v2483_v0, 2  ;;  %v2490_v63 = vmax.f32 %v2488_v5, %v2489_v62 }
 0x273   : > { %v2452_v26 = vmax.f32 %v2450_v18, %v2451_v3  ;;  %v2459_v21 = vmax.f32 %v2457_v39, %v2458_v38  ;;  %v2471_v19 = vmax.f32 %v2469_v30, %v2470_v48  ;;  %v2496_v55 = vrot.slane %v2495_v37, 4 }
 0x274   : > { %v2465_v13 = vrot.slane %v2464_v34, 1  ;;  %v2478_v58 = vmax.f32 %v2476_v14, %v2477_v53  ;;  %v2485_v29 = vmax.f32 %v2483_v0, %v2484_v15  ;;  %v2491_v33 = vrot.slane %v2490_v63, 2 }
 0x275   : > { %v2526_v25 = vmax.f32 %v2396_v32, %v2452_v26  ;;  %v2527_v7 = vmax.f32 %v2403_v10, %v2459_v21  ;;  %v2472_v44 = vrot.slane %v2471_v19, 1  ;;  %v2497_v27 = vmax.f32 %v2495_v37, %v2496_v55 }
 0x276   : > { %v2466_v6 = vmax.f32 %v2464_v34, %v2465_v13  ;;  %v2479_v41 = vrot.slane %v2478_v58, 1  ;;  %v2486_v59 = vrot.slane %v2485_v29, 1  ;;  %v2437_v28 = vrot.slane %v2436_v22, 1 }
 0x277   : > { %v2492_v50 = vmax.f32 %v2490_v63, %v2491_v33  ;;  %v2546_v46 = vpack.c.bf16 %v2527_v7, %v2526_v25  ;;  %v2473_v20 = vmax.f32 %v2471_v19, %v2472_v44  ;;  %v2498_v61 = vrot.slane %v2497_v27, 2 }
 0x278   : > { %v2528_v9 = vmax.f32 %v4307_v54, %v2466_v6  ;;  %v2480_v57 = vmax.f32 %v2478_v58, %v2479_v41  ;;  %v2487_v24 = vmax.f32 %v2485_v29, %v2486_v59  ;;  %v2589_v40 = vunpack.c.h.b16 %v4291_v36 }
 0x279   : > { %v2620_v32 = vsel %vm2600_vm11, %v2586_v8, %v4285_v49  ;;  %v2444_v10 = vrot.slane %v2443_v17, 1  ;;  %v2493_v4 = vrot.slane %v2492_v50, 1  ;;  %v2499_v35 = vmax.f32 %v2497_v27, %v2498_v61 }
 0x27a   : > { %v2529_v16 = vmax.f32 %v4312_v42, %v2473_v20  ;;  %v2530_v43 = vmax.f32 %v4303_v47, %v2480_v57  ;;  %v2531_v54 = vmax.f32 %v4305_v56, %v2487_v24  ;;  %v2627_v2 = vsel %vm2600_vm11, %v2587_v23, %v4298_v11 }
 0x27b   : > { %v2494_v12 = vmax.f32 %v2492_v50, %v2493_v4  ;;  %v2590_v60 = vunpack.c.l.b16 %v2546_v46  ;;  %v2591_v51 = vunpack.c.h.b16 %v2546_v46  ;;  %v2438_v1 = vmax.f32 %v2436_v22, %v2437_v28 }
 0x27c   : > { %v2500_v18 = vrot.slane %v2499_v35, 1  ;;  %v2547_v49 = vpack.c.bf16 %v2529_v16, %v2528_v9  ;;  %v2548_v8 = vpack.c.bf16 %v2531_v54, %v2530_v43  ;;  %v2621_v42 = vsel %vm2602_vm12, %v2588_v52, %v2620_v32 }
 0x27d   : > { %v2628_v47 = vsel %vm2602_vm12, %v2589_v40, %v2627_v2  ;;  %v2445_v39 = vmax.f32 %v2443_v17, %v2444_v10  ;;  %v2532_v45 = vmax.f32 %v2438_v1, %v2494_v12  ;;  %v2622_v23 = vsel %vm2604_vm13, %v2590_v60, %v2621_v42 }
 0x27e   : > { %v2501_v56 = vmax.f32 %v2499_v35, %v2500_v18  ;;  %v2594_v30 = vunpack.c.l.b16 %v2548_v8  ;;  %v2595_v31 = vunpack.c.h.b16 %v2548_v8  ;;  %v2629_v11 = vsel %vm2604_vm13, %v2591_v51, %v2628_v47 }
 0x27f   : > { %v2592_v14 = vunpack.c.l.b16 %v2547_v49  ;;  %v2593_v0 = vunpack.c.h.b16 %v2547_v49 }
 0x280   : > { %v2533_v22 = vmax.f32 %v2445_v39, %v2501_v56 }
 0x281   : > { %v2623_v36 = vsel %vm2606_vm14, %v2592_v14, %v2622_v23  ;;  %v2630_v52 = vsel %vm2606_vm14, %v2593_v0, %v2629_v11 }
 0x282   : > { %v2549_v5 = vpack.c.bf16 %v2533_v22, %v2532_v45  ;;  %v2624_v3 = vsel %vm2608_vm15, %v2594_v30, %v2623_v36  ;;  %v2631_v17 = vsel %vm2608_vm15, %v2595_v31, %v2630_v52 }
 0x284   : > { %v2596_v38 = vunpack.c.l.b16 %v2549_v5  ;;  %v2597_v34 = vunpack.c.h.b16 %v2549_v5 }
 0x286   : > { %v2625_v62 = vsel %vm2610_vm0, %v2596_v38, %v2624_v3  ;;  %v2632_v48 = vsel %vm2610_vm0, %v2597_v34, %v2631_v17 }
 0x287   : > { %v2634_v53 = vpack.c.b16 %v2632_v48, %v2625_v62 }
 0x289   : > { %2638 = vst [vmem:[%s4140_s28 + $0x8] sm:$0xff] %v2634_v53 }
 0x28a PF: > { %s13_s11 = sadd.s32 1, %s3361_s11   ;;  %s4354_s9 = smov %s3357_s10 }
 0x28b   : > { %p10_p8 = scmp.ge.s32.totalorder %s13_s11, 4   ;;  %s4355_s10 = smov %s4357_s13 }
 0x28d   :  { %12 = sbr.rel (!%p10_p8) target bundleno = 2 (0x2), region = 73 }
 0x292   :  { %2669 = vsyncpa [#allocation3], 1 }
 0x293   :  { %2671 = vsyncpa [#allocation3 + $0x1], 1 }

</bundles_post_ra>
